<compile_context>
chip_gen: v5e
topology: v5e:2x2
jax: 0.10.0
libtpu: 0.0.40
codegen_flags: <defaults>
</compile_context>

<pallas_src>
import math
from functools import partial

import jax
import jax.numpy as jnp
from jax.experimental import pallas as pl
from jax.experimental.pallas import tpu as pltpu


CP = 128  # lane-padded channel width (all feature maps / weights padded to CP)


def _vmem_limit_bytes():
    """~100 MiB scoped VMEM on 128 MiB parts (v5e/v6e); headroom-capped on
    64 MiB v7x; default if the query is unavailable."""
    try:
        cap = pltpu.get_tpu_info().vmem_capacity_bytes
        return int(min(cap - 16 * 1024 * 1024, 100 * 1024 * 1024))
    except Exception:
        return None  # fall back to the default scoped-VMEM limit


# ----------------------------------------------------------------------------
# Pallas kernels
# ----------------------------------------------------------------------------
def _conv3d_relu_kernel(x0_ref, x1_ref, x2_ref, w_ref, b_ref, o_ref, *, H, W, C):
    """One (batch, depth) grid step of a 3x3x3 conv + bias + ReLU.

    x{0,1,2}_ref : (1, 1, Lp, C)  flat padded input planes d, d+1, d+2  (bf16)
                   Lp = (H+3)*(W+2); flat index = row*(W+2) + col.
    w_ref        : (27, C, C)     per-tap weights, kd*9+kh*3+kw order    (bf16)
    b_ref        : (1, C)         bias                                   (f32)
    o_ref        : (1, 1, H, W, C) output plane d                        (bf16)
    """
    Wp = W + 2
    M = H * Wp                      # rows computed (incl. 2 junk cols per row)
    x_refs = (x0_ref, x1_ref, x2_ref)

    acc = jnp.zeros((M, C), jnp.float32)
    for kd in range(3):
        for kh in range(3):
            for kw in range(3):
                t = kd * 9 + kh * 3 + kw
                off = kh * Wp + kw                     # static offset
                win = x_refs[kd][0, 0, off:off + M, :]  # zero-copy view (M, C)
                acc = acc + jnp.dot(win, w_ref[t],
                                    preferred_element_type=jnp.float32)

    y = jnp.maximum(acc + b_ref[...], 0.0).astype(o_ref.dtype)
    # crop the 2 invalid padded-width columns only at the final store
    o_ref[...] = y.reshape(H, Wp, C)[:, :W, :].reshape(1, 1, H, W, C)


def _downsample_kernel(x_ref, w_ref, b_ref, o_ref, *, stride, Ho, Wo, C):
    """1x1x1 conv with spatial stride; one (batch, out-depth) grid step.

    x_ref : (1, 1, H, W, C)   input plane at depth d*stride (bf16)
    w_ref : (C, C)            pointwise weights             (bf16)
    b_ref : (1, C)            bias                          (f32)
    o_ref : (1, 1, Ho, Wo, C) output plane d                (bf16)
    """
    v = x_ref[0, 0]                                  # (H, W, C)
    H, W = v.shape[0], v.shape[1]
    if H == Ho * stride and W == Wo * stride:
        # lane-friendly decomposition (avoid XLU-heavy ::stride gather)
        vs = v.reshape(Ho, stride, Wo, stride, C)[:, 0, :, 0, :]
    else:
        # TODO(synk): non-divisible spatial extents fall back to strided gather
        vs = v[::stride, ::stride, :]
    y = jnp.dot(vs.reshape(Ho * Wo, C), w_ref[...],
                preferred_element_type=jnp.float32) + b_ref[...]
    o_ref[...] = y.reshape(1, 1, Ho, Wo, C).astype(o_ref.dtype)


# ----------------------------------------------------------------------------
# pallas_call wrappers
# ----------------------------------------------------------------------------
def conv3d_relu(x, w27, bias):
    """x: (N, D, H, W, CP) bf16.  w27: (27, CP, CP) bf16.  bias: (1, CP) f32."""
    N, D, H, W, C = x.shape
    Wp, Hp = W + 2, H + 3            # extra bottom row keeps the last tap window in-bounds
    Lp = Hp * Wp

    # D/H/W halo pad + flatten (H, W) -> flat plane; the reshape fuses into the pad.
    xp = jnp.pad(x, ((0, 0), (1, 1), (1, 2), (1, 1), (0, 0)))
    xp = xp.reshape(N, D + 2, Lp, C)

    def plane_spec(kd):
        return pl.BlockSpec((1, 1, Lp, C), lambda n, d, kd=kd: (n, d + kd, 0, 0))

    flops = 2 * 27 * N * D * (H * Wp) * C * C
    bytes_accessed = (3 * N * D * Lp * C        # 3 plane reads per output plane
                      + 27 * C * C              # weights (resident)
                      + N * D * H * W * C) * 2 + C * 4

    return pl.pallas_call(
        partial(_conv3d_relu_kernel, H=H, W=W, C=C),
        out_shape=jax.ShapeDtypeStruct((N, D, H, W, C), jnp.bfloat16),
        grid_spec=pltpu.PrefetchScalarGridSpec(
            num_scalar_prefetch=0,
            grid=(N, D),
            in_specs=[
                plane_spec(0), plane_spec(1), plane_spec(2),
                # weights / bias stay VMEM-resident (constant index maps)
                pl.BlockSpec((27, C, C), lambda n, d: (0, 0, 0)),
                pl.BlockSpec((1, C), lambda n, d: (0, 0)),
            ],
            out_specs=pl.BlockSpec((1, 1, H, W, C), lambda n, d: (n, d, 0, 0, 0)),
        ),
        compiler_params=pltpu.CompilerParams(
            dimension_semantics=("parallel", "parallel"),
            vmem_limit_bytes=_vmem_limit_bytes()),
        cost_estimate=pl.CostEstimate(flops=int(flops), transcendentals=0,
                                      bytes_accessed=int(bytes_accessed)),
    )(xp, xp, xp, w27, bias)


def downsample_conv(x, w, bias, stride):
    """nn.Conv3d(C, C, (1,1,1), padding=0, stride=s). x: (N, D, H, W, CP) bf16."""
    N, D, H, W, C = x.shape
    Do, Ho, Wo = -(-D // stride), -(-H // stride), -(-W // stride)

    flops = 2 * N * Do * Ho * Wo * C * C
    bytes_accessed = (N * Do * H * W * C + C * C + N * Do * Ho * Wo * C) * 2 + C * 4

    return pl.pallas_call(
        partial(_downsample_kernel, stride=stride, Ho=Ho, Wo=Wo, C=C),
        out_shape=jax.ShapeDtypeStruct((N, Do, Ho, Wo, C), jnp.bfloat16),
        grid_spec=pltpu.PrefetchScalarGridSpec(
            num_scalar_prefetch=0,
            grid=(N, Do),
            in_specs=[
                # depth striding via index_map: skipped planes never leave HBM
                pl.BlockSpec((1, 1, H, W, C), lambda n, d: (n, d * stride, 0, 0, 0)),
                pl.BlockSpec((C, C), lambda n, d: (0, 0)),
                pl.BlockSpec((1, C), lambda n, d: (0, 0)),
            ],
            out_specs=pl.BlockSpec((1, 1, Ho, Wo, C), lambda n, d: (n, d, 0, 0, 0)),
        ),
        compiler_params=pltpu.CompilerParams(
            dimension_semantics=("parallel", "parallel"),
            vmem_limit_bytes=_vmem_limit_bytes()),
        cost_estimate=pl.CostEstimate(flops=int(flops), transcendentals=0,
                                      bytes_accessed=int(bytes_accessed)),
    )(x, w, bias)


# ----------------------------------------------------------------------------
# Parameter construction / packing (mirrors UnetEncoder.__init__ shapes)
# ----------------------------------------------------------------------------
def _pack_conv3_weights(w27, bias):
    """(27, cin, cout) f32 -> (27, CP, CP) bf16 ; (1, cout) -> (1, CP) f32."""
    # TODO(synk): for production channel counts >=128 the CP padding is exact;
    #             for tiny widths (4/8/12 here) the MXU K/N dims are mostly zeros.
    cin, cout = w27.shape[1], w27.shape[2]
    wk = jnp.zeros((27, CP, CP), jnp.float32).at[:, :cin, :cout].set(w27)
    bk = jnp.zeros((1, CP), jnp.float32).at[0, :cout].set(bias[0])
    return wk.astype(jnp.bfloat16), bk


def _pack_pointwise_weights(w, bias):
    cin, cout = w.shape
    wp = jnp.zeros((CP, CP), jnp.float32).at[:cin, :cout].set(w).astype(jnp.bfloat16)
    bp = jnp.zeros((1, CP), jnp.float32).at[0, :cout].set(bias[0])
    return wp, bp


def init_unet_encoder_params(key, in_channel, base_inc_channel, layer_blocks,
                             feature_dilation, layer_widths):
    layers, ds_convs, widths = [], [], []
    cin = in_channel
    for i, num_blocks in enumerate(layer_blocks):
        if layer_widths is not None:
            cout = layer_widths[i]
        else:
            cout = base_inc_channel * int(feature_dilation ** (i + 1)) // 2
        blocks = []
        block_cin = cin
        for _ in range(num_blocks):
            key, kw_, kb_ = jax.random.split(key, 3)
            w = jax.random.normal(kw_, (27, block_cin, cout), jnp.float32)
            w = w * (1.0 / math.sqrt(27 * block_cin))
            b = jax.random.normal(kb_, (1, cout), jnp.float32) * 0.01
            blocks.append(_pack_conv3_weights(w, b))
            block_cin = cout
        layers.append(blocks)
        key, kw_, kb_ = jax.random.split(key, 3)
        wd = jax.random.normal(kw_, (cout, cout), jnp.float32) * (1.0 / math.sqrt(cout))
        bd = jax.random.normal(kb_, (1, cout), jnp.float32) * 0.01
        ds_convs.append(_pack_pointwise_weights(wd, bd))
        widths.append(cout)
        cin = cout
    return layers, ds_convs, widths


# ----------------------------------------------------------------------------
# UnetEncoder.forward
# ----------------------------------------------------------------------------
def unet_encoder_forward(x_ncdhw, layers, ds_convs, widths, stride,
                         conv_fn=conv3d_relu, ds_fn=downsample_conv):
    N, C, D, H, W = x_ncdhw.shape
    x = jnp.transpose(x_ncdhw, (0, 2, 3, 4, 1))                      # NCDHW -> NDHWC
    x = jnp.pad(x, ((0, 0), (0, 0), (0, 0), (0, 0), (0, CP - C))).astype(jnp.bfloat16)

    outputs = []  # (padded bf16 feature map, logical channel count)
    n_layers = len(layers)
    # for layer, downsampling in zip(self.layers[:-1], self.downsampling_convolutions):
    for i in range(n_layers - 1):
        for (wk, b) in layers[i]:
            x = conv_fn(x, wk, b)
        outputs.insert(0, (x, widths[i]))
        x = ds_fn(x, *ds_convs[i], stride)
    # outputs.insert(0, x)  (the downsampled input to the last layer)
    outputs.insert(0, (x, widths[n_layers - 2]))
    # x = self.layers[-1](x); x = self.last_downsampling_conv(x)
    for (wk, b) in layers[-1]:
        x = conv_fn(x, wk, b)
    x = ds_fn(x, *ds_convs[-1], stride)
    outputs.insert(0, (x, widths[-1]))

    # crop channel padding, return NCDHW f32 to match the PyTorch convention
    return [jnp.transpose(t[..., :c], (0, 4, 1, 2, 3)).astype(jnp.float32)
            for (t, c) in outputs]


# ----------------------------------------------------------------------------
# Pure-JAX reference (same bf16-storage / f32-accumulation numerics)
# ----------------------------------------------------------------------------
def _conv3d_relu_ref(x, w27, bias):
    N, D, H, W, C = x.shape
    xp = jnp.pad(x, ((0, 0), (1, 1), (1, 1), (1, 1), (0, 0))).astype(jnp.float32)
    wf = w27.astype(jnp.float32)
    acc = jnp.zeros((N, D, H, W, C), jnp.float32)
    for kd in range(3):
        for kh in range(3):
            for kw in range(3):
                t = kd * 9 + kh * 3 + kw
                patch = xp[:, kd:kd + D, kh:kh + H, kw:kw + W, :]
                acc = acc + jnp.einsum('ndhwc,co->ndhwo', patch, wf[t])
    acc = acc + bias.reshape(1, 1, 1, 1, C)
    return jnp.maximum(acc, 0.0).astype(jnp.bfloat16)


def _downsample_ref(x, w, bias, stride):
    xs = x[:, ::stride, ::stride, ::stride, :].astype(jnp.float32)
    y = jnp.einsum('ndhwc,co->ndhwo', xs, w.astype(jnp.float32))
    return (y + bias.reshape(1, 1, 1, 1, -1)).astype(jnp.bfloat16)


# ----------------------------------------------------------------------------
if __name__ == "__main__":
    # Module config (small but consistent with the reference constructor)
    in_channel = 2
    base_inc_channel = 8
    layer_blocks = [1, 1, 2]
    downsampling_stride = 2
    feature_dilation = 1.5
    layer_widths = None            # -> per-layer channels [4, 8, 12]

    key = jax.random.PRNGKey(0)
    key, k_param, k_x = jax.random.split(key, 3)
    layers, ds_convs, widths = init_unet_encoder_params(
        k_param, in_channel, base_inc_channel, layer_blocks,
        feature_dilation, layer_widths)

    # Input: NCDHW, batch=2, channels=2, spatial 8x8x8
    x = jax.random.normal(k_x, (2, in_channel, 8, 8, 8), jnp.float32)

    fwd = jax.jit(partial(unet_encoder_forward,
                          layers=layers, ds_convs=ds_convs, widths=widths,
                          stride=downsampling_stride))
    outputs = jax.block_until_ready(fwd(x))

    ref_fwd = jax.jit(partial(unet_encoder_forward,
                              layers=layers, ds_convs=ds_convs, widths=widths,
                              stride=downsampling_stride,
                              conv_fn=_conv3d_relu_ref, ds_fn=_downsample_ref))
    ref_outputs = jax.block_until_ready(ref_fwd(x))

    assert len(outputs) == len(ref_outputs)
    for got, want in zip(outputs, ref_outputs):
        assert got.shape == want.shape, (got.shape, want.shape)
        # bf16 storage between blocks -> loosened tolerance vs the f32-path ref
        assert jnp.allclose(got, want, rtol=2e-2, atol=2e-2), \
            float(jnp.max(jnp.abs(got - want)))

    print("KERNEL_OK")
</pallas_src>

<mosaic_0001>
module attributes {stable_mosaic.version = 11 : i64} {
  func.func @_downsample_kernel(%arg0: i32, %arg1: i32, %arg2: memref<1x1x8x8x128xbf16, #tpu.memory_space<vmem>>, %arg3: memref<128x128xbf16, #tpu.memory_space<vmem>>, %arg4: memref<1x128xf32, #tpu.memory_space<vmem>>, %arg5: memref<1x1x4x4x128xbf16, #tpu.memory_space<vmem>>) attributes {dimension_semantics = [#tpu.dimension_semantics<parallel>, #tpu.dimension_semantics<parallel>], iteration_bounds = array<i64: 2, 4>, scalar_prefetch = 0 : i64, scratch_operands = 0 : i64, tpu.core_type = #tpu.core_type<tc>, window_params = [{transform_indices = @transform_0, window_bounds = array<i64: 1, 1, 8, 8, 128>}, {pipeline_mode = #tpu.pipeline_mode<synchronous>, transform_indices = @transform_1, window_bounds = array<i64: 128, 128>}, {pipeline_mode = #tpu.pipeline_mode<synchronous>, transform_indices = @transform_2, window_bounds = array<i64: 1, 128>}, {transform_indices = @transform_3, window_bounds = array<i64: 1, 1, 4, 4, 128>}]} {
    %c0 = arith.constant 0 : index
    %c0_0 = arith.constant 0 : index
    %c0_1 = arith.constant 0 : index
    %c0_2 = arith.constant 0 : index
    %c0_3 = arith.constant 0 : index
    %0 = vector.load %arg2[%c0, %c0_0, %c0_1, %c0_2, %c0_3] : memref<1x1x8x8x128xbf16, #tpu.memory_space<vmem>>, vector<1x1x8x8x128xbf16>
    %1 = vector.shape_cast %0 : vector<1x1x8x8x128xbf16> to vector<8x8x128xbf16>
    %2 = vector.shape_cast %1 : vector<8x8x128xbf16> to vector<4x2x4x2x128xbf16>
    %3 = vector.extract_strided_slice %2 {offsets = [0, 0, 0, 0, 0], sizes = [4, 1, 4, 1, 128], strides = [1, 1, 1, 1, 1]} : vector<4x2x4x2x128xbf16> to vector<4x1x4x1x128xbf16>
    %4 = vector.shape_cast %3 : vector<4x1x4x1x128xbf16> to vector<4x4x128xbf16>
    %5 = vector.shape_cast %4 : vector<4x4x128xbf16> to vector<16x128xbf16>
    %c0_4 = arith.constant 0 : index
    %c0_5 = arith.constant 0 : index
    %6 = vector.load %arg3[%c0_4, %c0_5] : memref<128x128xbf16, #tpu.memory_space<vmem>>, vector<128x128xbf16>
    %cst = arith.constant dense<0.000000e+00> : vector<16x128xf32>
    %7 = tpu.matmul %5, %6, %cst {dimension_numbers = #tpu.dot_dimension_numbers<[1], [0], [0], [1], [0, 0, 1, 1], [], []>} : vector<16x128xbf16>, vector<128x128xbf16>, vector<16x128xf32> -> vector<16x128xf32>
    %c0_6 = arith.constant 0 : index
    %c0_7 = arith.constant 0 : index
    %8 = vector.load %arg4[%c0_6, %c0_7] : memref<1x128xf32, #tpu.memory_space<vmem>>, vector<1x128xf32>
    %9 = vector.broadcast %8 : vector<1x128xf32> to vector<16x128xf32>
    %10 = arith.addf %7, %9 : vector<16x128xf32>
    %11 = vector.shape_cast %10 : vector<16x128xf32> to vector<1x1x4x4x128xf32>
    %12 = arith.truncf %11 : vector<1x1x4x4x128xf32> to vector<1x1x4x4x128xbf16>
    %c0_8 = arith.constant 0 : index
    %c0_9 = arith.constant 0 : index
    %c0_10 = arith.constant 0 : index
    %c0_11 = arith.constant 0 : index
    %c0_12 = arith.constant 0 : index
    %13 = vector.load %arg5[%c0_8, %c0_9, %c0_10, %c0_11, %c0_12] : memref<1x1x4x4x128xbf16, #tpu.memory_space<vmem>>, vector<1x1x4x4x128xbf16>
    tpu.vector_store %arg5[%c0_8, %c0_9, %c0_10, %c0_11, %c0_12], %12 {strides = array<i32>} : memref<1x1x4x4x128xbf16, #tpu.memory_space<vmem>>, vector<1x1x4x4x128xbf16>,
    return
  }
  func.func @transform_0(%arg0: i32, %arg1: i32) -> (i32, i32, i32, i32, i32) {
    %c2_i32 = arith.constant 2 : i32
    %0 = arith.muli %arg1, %c2_i32 : i32
    %c0_i32 = arith.constant 0 : i32
    %c0_i32_0 = arith.constant 0 : i32
    %c0_i32_1 = arith.constant 0 : i32
    %c0_i32_2 = arith.constant 0 : i32
    return %arg0, %0, %c0_i32, %c0_i32_0, %c0_i32_1 : i32, i32, i32, i32, i32
  }
  func.func @transform_1(%arg0: i32, %arg1: i32) -> (i32, i32) {
    %c0_i32 = arith.constant 0 : i32
    %c0_i32_0 = arith.constant 0 : i32
    %c0_i32_1 = arith.constant 0 : i32
    return %c0_i32, %c0_i32_0 : i32, i32
  }
  func.func @transform_2(%arg0: i32, %arg1: i32) -> (i32, i32) {
    %c0_i32 = arith.constant 0 : i32
    %c0_i32_0 = arith.constant 0 : i32
    %c0_i32_1 = arith.constant 0 : i32
    return %c0_i32, %c0_i32_0 : i32, i32
  }
  func.func @transform_3(%arg0: i32, %arg1: i32) -> (i32, i32, i32, i32, i32) {
    %c0_i32 = arith.constant 0 : i32
    %c0_i32_0 = arith.constant 0 : i32
    %c0_i32_1 = arith.constant 0 : i32
    %c0_i32_2 = arith.constant 0 : i32
    return %arg0, %arg1, %c0_i32, %c0_i32_0, %c0_i32_1 : i32, i32, i32, i32, i32
  }
}

module attributes {stable_mosaic.version = 11 : i64} {
  func.func @_conv3d_relu_kernel(%arg0: i32, %arg1: i32, %arg2: memref<1x1x110x128xbf16, #tpu.memory_space<vmem>>, %arg3: memref<1x1x110x128xbf16, #tpu.memory_space<vmem>>, %arg4: memref<1x1x110x128xbf16, #tpu.memory_space<vmem>>, %arg5: memref<27x128x128xbf16, #tpu.memory_space<vmem>>, %arg6: memref<1x128xf32, #tpu.memory_space<vmem>>, %arg7: memref<1x1x8x8x128xbf16, #tpu.memory_space<vmem>>) attributes {dimension_semantics = [#tpu.dimension_semantics<parallel>, #tpu.dimension_semantics<parallel>], iteration_bounds = array<i64: 2, 8>, scalar_prefetch = 0 : i64, scratch_operands = 0 : i64, tpu.core_type = #tpu.core_type<tc>, window_params = [{transform_indices = @transform_0, window_bounds = array<i64: 1, 1, 110, 128>}, {transform_indices = @transform_1, window_bounds = array<i64: 1, 1, 110, 128>}, {transform_indices = @transform_2, window_bounds = array<i64: 1, 1, 110, 128>}, {pipeline_mode = #tpu.pipeline_mode<synchronous>, transform_indices = @transform_3, window_bounds = array<i64: 27, 128, 128>}, {pipeline_mode = #tpu.pipeline_mode<synchronous>, transform_indices = @transform_4, window_bounds = array<i64: 1, 128>}, {transform_indices = @transform_5, window_bounds = array<i64: 1, 1, 8, 8, 128>}]} {
    %cst = arith.constant 0.000000e+00 : f32
    %0 = vector.broadcast %cst : f32 to vector<80x128xf32>
    %c0 = arith.constant 0 : index
    %c0_0 = arith.constant 0 : index
    %c0_1 = arith.constant 0 : index
    %c0_2 = arith.constant 0 : index
    %1 = vector.load %arg2[%c0, %c0_0, %c0_1, %c0_2] : memref<1x1x110x128xbf16, #tpu.memory_space<vmem>>, vector<1x1x80x128xbf16>
    %2 = vector.shape_cast %1 : vector<1x1x80x128xbf16> to vector<80x128xbf16>
    %c0_3 = arith.constant 0 : index
    %c0_4 = arith.constant 0 : index
    %c0_5 = arith.constant 0 : index
    %3 = vector.load %arg5[%c0_3, %c0_4, %c0_5] : memref<27x128x128xbf16, #tpu.memory_space<vmem>>, vector<1x128x128xbf16>
    %4 = vector.shape_cast %3 : vector<1x128x128xbf16> to vector<128x128xbf16>
    %cst_6 = arith.constant dense<0.000000e+00> : vector<80x128xf32>
    %5 = tpu.matmul %2, %4, %cst_6 {dimension_numbers = #tpu.dot_dimension_numbers<[1], [0], [0], [1], [0, 0, 1, 1], [], []>} : vector<80x128xbf16>, vector<128x128xbf16>, vector<80x128xf32> -> vector<80x128xf32>
    %6 = arith.addf %0, %5 : vector<80x128xf32>
    %c0_7 = arith.constant 0 : index
    %c0_8 = arith.constant 0 : index
    %c1 = arith.constant 1 : index
    %c0_9 = arith.constant 0 : index
    %7 = vector.load %arg2[%c0_7, %c0_8, %c1, %c0_9] : memref<1x1x110x128xbf16, #tpu.memory_space<vmem>>, vector<1x1x80x128xbf16>
    %8 = vector.shape_cast %7 : vector<1x1x80x128xbf16> to vector<80x128xbf16>
    %c1_10 = arith.constant 1 : index
    %c0_11 = arith.constant 0 : index
    %c0_12 = arith.constant 0 : index
    %9 = vector.load %arg5[%c1_10, %c0_11, %c0_12] : memref<27x128x128xbf16, #tpu.memory_space<vmem>>, vector<1x128x128xbf16>
    %10 = vector.shape_cast %9 : vector<1x128x128xbf16> to vector<128x128xbf16>
    %cst_13 = arith.constant dense<0.000000e+00> : vector<80x128xf32>
    %11 = tpu.matmul %8, %10, %cst_13 {dimension_numbers = #tpu.dot_dimension_numbers<[1], [0], [0], [1], [0, 0, 1, 1], [], []>} : vector<80x128xbf16>, vector<128x128xbf16>, vector<80x128xf32> -> vector<80x128xf32>
    %12 = arith.addf %6, %11 : vector<80x128xf32>
    %c0_14 = arith.constant 0 : index
    %c0_15 = arith.constant 0 : index
    %c2 = arith.constant 2 : index
    %c0_16 = arith.constant 0 : index
    %13 = vector.load %arg2[%c0_14, %c0_15, %c2, %c0_16] : memref<1x1x110x128xbf16, #tpu.memory_space<vmem>>, vector<1x1x80x128xbf16>
    %14 = vector.shape_cast %13 : vector<1x1x80x128xbf16> to vector<80x128xbf16>
    %c2_17 = arith.constant 2 : index
    %c0_18 = arith.constant 0 : index
    %c0_19 = arith.constant 0 : index
    %15 = vector.load %arg5[%c2_17, %c0_18, %c0_19] : memref<27x128x128xbf16, #tpu.memory_space<vmem>>, vector<1x128x128xbf16>
    %16 = vector.shape_cast %15 : vector<1x128x128xbf16> to vector<128x128xbf16>
    %cst_20 = arith.constant dense<0.000000e+00> : vector<80x128xf32>
    %17 = tpu.matmul %14, %16, %cst_20 {dimension_numbers = #tpu.dot_dimension_numbers<[1], [0], [0], [1], [0, 0, 1, 1], [], []>} : vector<80x128xbf16>, vector<128x128xbf16>, vector<80x128xf32> -> vector<80x128xf32>
    %18 = arith.addf %12, %17 : vector<80x128xf32>
    %c0_21 = arith.constant 0 : index
    %c0_22 = arith.constant 0 : index
    %c10 = arith.constant 10 : index
    %c0_23 = arith.constant 0 : index
    %19 = vector.load %arg2[%c0_21, %c0_22, %c10, %c0_23] : memref<1x1x110x128xbf16, #tpu.memory_space<vmem>>, vector<1x1x80x128xbf16>
    %20 = vector.shape_cast %19 : vector<1x1x80x128xbf16> to vector<80x128xbf16>
    %c3 = arith.constant 3 : index
    %c0_24 = arith.constant 0 : index
    %c0_25 = arith.constant 0 : index
    %21 = vector.load %arg5[%c3, %c0_24, %c0_25] : memref<27x128x128xbf16, #tpu.memory_space<vmem>>, vector<1x128x128xbf16>
    %22 = vector.shape_cast %21 : vector<1x128x128xbf16> to vector<128x128xbf16>
    %cst_26 = arith.constant dense<0.000000e+00> : vector<80x128xf32>
    %23 = tpu.matmul %20, %22, %cst_26 {dimension_numbers = #tpu.dot_dimension_numbers<[1], [0], [0], [1], [0, 0, 1, 1], [], []>} : vector<80x128xbf16>, vector<128x128xbf16>, vector<80x128xf32> -> vector<80x128xf32>
    %24 = arith.addf %18, %23 : vector<80x128xf32>
    %c0_27 = arith.constant 0 : index
    %c0_28 = arith.constant 0 : index
    %c11 = arith.constant 11 : index
    %c0_29 = arith.constant 0 : index
    %25 = vector.load %arg2[%c0_27, %c0_28, %c11, %c0_29] : memref<1x1x110x128xbf16, #tpu.memory_space<vmem>>, vector<1x1x80x128xbf16>
    %26 = vector.shape_cast %25 : vector<1x1x80x128xbf16> to vector<80x128xbf16>
    %c4 = arith.constant 4 : index
    %c0_30 = arith.constant 0 : index
    %c0_31 = arith.constant 0 : index
    %27 = vector.load %arg5[%c4, %c0_30, %c0_31] : memref<27x128x128xbf16, #tpu.memory_space<vmem>>, vector<1x128x128xbf16>
    %28 = vector.shape_cast %27 : vector<1x128x128xbf16> to vector<128x128xbf16>
    %cst_32 = arith.constant dense<0.000000e+00> : vector<80x128xf32>
    %29 = tpu.matmul %26, %28, %cst_32 {dimension_numbers = #tpu.dot_dimension_numbers<[1], [0], [0], [1], [0, 0, 1, 1], [], []>} : vector<80x128xbf16>, vector<128x128xbf16>, vector<80x128xf32> -> vector<80x128xf32>
    %30 = arith.addf %24, %29 : vector<80x128xf32>
    %c0_33 = arith.constant 0 : index
    %c0_34 = arith.constant 0 : index
    %c12 = arith.constant 12 : index
    %c0_35 = arith.constant 0 : index
    %31 = vector.load %arg2[%c0_33, %c0_34, %c12, %c0_35] : memref<1x1x110x128xbf16, #tpu.memory_space<vmem>>, vector<1x1x80x128xbf16>
    %32 = vector.shape_cast %31 : vector<1x1x80x128xbf16> to vector<80x128xbf16>
    %c5 = arith.constant 5 : index
    %c0_36 = arith.constant 0 : index
    %c0_37 = arith.constant 0 : index
    %33 = vector.load %arg5[%c5, %c0_36, %c0_37] : memref<27x128x128xbf16, #tpu.memory_space<vmem>>, vector<1x128x128xbf16>
    %34 = vector.shape_cast %33 : vector<1x128x128xbf16> to vector<128x128xbf16>
    %cst_38 = arith.constant dense<0.000000e+00> : vector<80x128xf32>
    %35 = tpu.matmul %32, %34, %cst_38 {dimension_numbers = #tpu.dot_dimension_numbers<[1], [0], [0], [1], [0, 0, 1, 1], [], []>} : vector<80x128xbf16>, vector<128x128xbf16>, vector<80x128xf32> -> vector<80x128xf32>
    %36 = arith.addf %30, %35 : vector<80x128xf32>
    %c0_39 = arith.constant 0 : index
    %c0_40 = arith.constant 0 : index
    %c20 = arith.constant 20 : index
    %c0_41 = arith.constant 0 : index
    %37 = vector.load %arg2[%c0_39, %c0_40, %c20, %c0_41] : memref<1x1x110x128xbf16, #tpu.memory_space<vmem>>, vector<1x1x80x128xbf16>
    %38 = vector.shape_cast %37 : vector<1x1x80x128xbf16> to vector<80x128xbf16>
    %c6 = arith.constant 6 : index
    %c0_42 = arith.constant 0 : index
    %c0_43 = arith.constant 0 : index
    %39 = vector.load %arg5[%c6, %c0_42, %c0_43] : memref<27x128x128xbf16, #tpu.memory_space<vmem>>, vector<1x128x128xbf16>
    %40 = vector.shape_cast %39 : vector<1x128x128xbf16> to vector<128x128xbf16>
    %cst_44 = arith.constant dense<0.000000e+00> : vector<80x128xf32>
    %41 = tpu.matmul %38, %40, %cst_44 {dimension_numbers = #tpu.dot_dimension_numbers<[1], [0], [0], [1], [0, 0, 1, 1], [], []>} : vector<80x128xbf16>, vector<128x128xbf16>, vector<80x128xf32> -> vector<80x128xf32>
    %42 = arith.addf %36, %41 : vector<80x128xf32>
    %c0_45 = arith.constant 0 : index
    %c0_46 = arith.constant 0 : index
    %c21 = arith.constant 21 : index
    %c0_47 = arith.constant 0 : index
    %43 = vector.load %arg2[%c0_45, %c0_46, %c21, %c0_47] : memref<1x1x110x128xbf16, #tpu.memory_space<vmem>>, vector<1x1x80x128xbf16>
    %44 = vector.shape_cast %43 : vector<1x1x80x128xbf16> to vector<80x128xbf16>
    %c7 = arith.constant 7 : index
    %c0_48 = arith.constant 0 : index
    %c0_49 = arith.constant 0 : index
    %45 = vector.load %arg5[%c7, %c0_48, %c0_49] : memref<27x128x128xbf16, #tpu.memory_space<vmem>>, vector<1x128x128xbf16>
    %46 = vector.shape_cast %45 : vector<1x128x128xbf16> to vector<128x128xbf16>
    %cst_50 = arith.constant dense<0.000000e+00> : vector<80x128xf32>
    %47 = tpu.matmul %44, %46, %cst_50 {dimension_numbers = #tpu.dot_dimension_numbers<[1], [0], [0], [1], [0, 0, 1, 1], [], []>} : vector<80x128xbf16>, vector<128x128xbf16>, vector<80x128xf32> -> vector<80x128xf32>
    %48 = arith.addf %42, %47 : vector<80x128xf32>
    %c0_51 = arith.constant 0 : index
    %c0_52 = arith.constant 0 : index
    %c22 = arith.constant 22 : index
    %c0_53 = arith.constant 0 : index
    %49 = vector.load %arg2[%c0_51, %c0_52, %c22, %c0_53] : memref<1x1x110x128xbf16, #tpu.memory_space<vmem>>, vector<1x1x80x128xbf16>
    %50 = vector.shape_cast %49 : vector<1x1x80x128xbf16> to vector<80x128xbf16>
    %c8 = arith.constant 8 : index
    %c0_54 = arith.constant 0 : index
    %c0_55 = arith.constant 0 : index
    %51 = vector.load %arg5[%c8, %c0_54, %c0_55] : memref<27x128x128xbf16, #tpu.memory_space<vmem>>, vector<1x128x128xbf16>
    %52 = vector.shape_cast %51 : vector<1x128x128xbf16> to vector<128x128xbf16>
    %cst_56 = arith.constant dense<0.000000e+00> : vector<80x128xf32>
    %53 = tpu.matmul %50, %52, %cst_56 {dimension_numbers = #tpu.dot_dimension_numbers<[1], [0], [0], [1], [0, 0, 1, 1], [], []>} : vector<80x128xbf16>, vector<128x128xbf16>, vector<80x128xf32> -> vector<80x128xf32>
    %54 = arith.addf %48, %53 : vector<80x128xf32>
    %c0_57 = arith.constant 0 : index
    %c0_58 = arith.constant 0 : index
    %c0_59 = arith.constant 0 : index
    %c0_60 = arith.constant 0 : index
    %55 = vector.load %arg3[%c0_57, %c0_58, %c0_59, %c0_60] : memref<1x1x110x128xbf16, #tpu.memory_space<vmem>>, vector<1x1x80x128xbf16>
    %56 = vector.shape_cast %55 : vector<1x1x80x128xbf16> to vector<80x128xbf16>
    %c9 = arith.constant 9 : index
    %c0_61 = arith.constant 0 : index
    %c0_62 = arith.constant 0 : index
    %57 = vector.load %arg5[%c9, %c0_61, %c0_62] : memref<27x128x128xbf16, #tpu.memory_space<vmem>>, vector<1x128x128xbf16>
    %58 = vector.shape_cast %57 : vector<1x128x128xbf16> to vector<128x128xbf16>
    %cst_63 = arith.constant dense<0.000000e+00> : vector<80x128xf32>
    %59 = tpu.matmul %56, %58, %cst_63 {dimension_numbers = #tpu.dot_dimension_numbers<[1], [0], [0], [1], [0, 0, 1, 1], [], []>} : vector<80x128xbf16>, vector<128x128xbf16>, vector<80x128xf32> -> vector<80x128xf32>
    %60 = arith.addf %54, %59 : vector<80x128xf32>
    %c0_64 = arith.constant 0 : index
    %c0_65 = arith.constant 0 : index
    %c1_66 = arith.constant 1 : index
    %c0_67 = arith.constant 0 : index
    %61 = vector.load %arg3[%c0_64, %c0_65, %c1_66, %c0_67] : memref<1x1x110x128xbf16, #tpu.memory_space<vmem>>, vector<1x1x80x128xbf16>
    %62 = vector.shape_cast %61 : vector<1x1x80x128xbf16> to vector<80x128xbf16>
    %c10_68 = arith.constant 10 : index
    %c0_69 = arith.constant 0 : index
    %c0_70 = arith.constant 0 : index
    %63 = vector.load %arg5[%c10_68, %c0_69, %c0_70] : memref<27x128x128xbf16, #tpu.memory_space<vmem>>, vector<1x128x128xbf16>
    %64 = vector.shape_cast %63 : vector<1x128x128xbf16> to vector<128x128xbf16>
    %cst_71 = arith.constant dense<0.000000e+00> : vector<80x128xf32>
    %65 = tpu.matmul %62, %64, %cst_71 {dimension_numbers = #tpu.dot_dimension_numbers<[1], [0], [0], [1], [0, 0, 1, 1], [], []>} : vector<80x128xbf16>, vector<128x128xbf16>, vector<80x128xf32> -> vector<80x128xf32>
    %66 = arith.addf %60, %65 : vector<80x128xf32>
    %c0_72 = arith.constant 0 : index
    %c0_73 = arith.constant 0 : index
    %c2_74 = arith.constant 2 : index
    %c0_75 = arith.constant 0 : index
    %67 = vector.load %arg3[%c0_72, %c0_73, %c2_74, %c0_75] : memref<1x1x110x128xbf16, #tpu.memory_space<vmem>>, vector<1x1x80x128xbf16>
    %68 = vector.shape_cast %67 : vector<1x1x80x128xbf16> to vector<80x128xbf16>
    %c11_76 = arith.constant 11 : index
    %c0_77 = arith.constant 0 : index
    %c0_78 = arith.constant 0 : index
    %69 = vector.load %arg5[%c11_76, %c0_77, %c0_78] : memref<27x128x128xbf16, #tpu.memory_space<vmem>>, vector<1x128x128xbf16>
    %70 = vector.shape_cast %69 : vector<1x128x128xbf16> to vector<128x128xbf16>
    %cst_79 = arith.constant dense<0.000000e+00> : vector<80x128xf32>
    %71 = tpu.matmul %68, %70, %cst_79 {dimension_numbers = #tpu.dot_dimension_numbers<[1], [0], [0], [1], [0, 0, 1, 1], [], []>} : vector<80x128xbf16>, vector<128x128xbf16>, vector<80x128xf32> -> vector<80x128xf32>
    %72 = arith.addf %66, %71 : vector<80x128xf32>
    %c0_80 = arith.constant 0 : index
    %c0_81 = arith.constant 0 : index
    %c10_82 = arith.constant 10 : index
    %c0_83 = arith.constant 0 : index
    %73 = vector.load %arg3[%c0_80, %c0_81, %c10_82, %c0_83] : memref<1x1x110x128xbf16, #tpu.memory_space<vmem>>, vector<1x1x80x128xbf16>
    %74 = vector.shape_cast %73 : vector<1x1x80x128xbf16> to vector<80x128xbf16>
    %c12_84 = arith.constant 12 : index
    %c0_85 = arith.constant 0 : index
    %c0_86 = arith.constant 0 : index
    %75 = vector.load %arg5[%c12_84, %c0_85, %c0_86] : memref<27x128x128xbf16, #tpu.memory_space<vmem>>, vector<1x128x128xbf16>
    %76 = vector.shape_cast %75 : vector<1x128x128xbf16> to vector<128x128xbf16>
    %cst_87 = arith.constant dense<0.000000e+00> : vector<80x128xf32>
    %77 = tpu.matmul %74, %76, %cst_87 {dimension_numbers = #tpu.dot_dimension_numbers<[1], [0], [0], [1], [0, 0, 1, 1], [], []>} : vector<80x128xbf16>, vector<128x128xbf16>, vector<80x128xf32> -> vector<80x128xf32>
    %78 = arith.addf %72, %77 : vector<80x128xf32>
    %c0_88 = arith.constant 0 : index
    %c0_89 = arith.constant 0 : index
    %c11_90 = arith.constant 11 : index
    %c0_91 = arith.constant 0 : index
    %79 = vector.load %arg3[%c0_88, %c0_89, %c11_90, %c0_91] : memref<1x1x110x128xbf16, #tpu.memory_space<vmem>>, vector<1x1x80x128xbf16>
    %80 = vector.shape_cast %79 : vector<1x1x80x128xbf16> to vector<80x128xbf16>
    %c13 = arith.constant 13 : index
    %c0_92 = arith.constant 0 : index
    %c0_93 = arith.constant 0 : index
    %81 = vector.load %arg5[%c13, %c0_92, %c0_93] : memref<27x128x128xbf16, #tpu.memory_space<vmem>>, vector<1x128x128xbf16>
    %82 = vector.shape_cast %81 : vector<1x128x128xbf16> to vector<128x128xbf16>
    %cst_94 = arith.constant dense<0.000000e+00> : vector<80x128xf32>
    %83 = tpu.matmul %80, %82, %cst_94 {dimension_numbers = #tpu.dot_dimension_numbers<[1], [0], [0], [1], [0, 0, 1, 1], [], []>} : vector<80x128xbf16>, vector<128x128xbf16>, vector<80x128xf32> -> vector<80x128xf32>
    %84 = arith.addf %78, %83 : vector<80x128xf32>
    %c0_95 = arith.constant 0 : index
    %c0_96 = arith.constant 0 : index
    %c12_97 = arith.constant 12 : index
    %c0_98 = arith.constant 0 : index
    %85 = vector.load %arg3[%c0_95, %c0_96, %c12_97, %c0_98] : memref<1x1x110x128xbf16, #tpu.memory_space<vmem>>, vector<1x1x80x128xbf16>
    %86 = vector.shape_cast %85 : vector<1x1x80x128xbf16> to vector<80x128xbf16>
    %c14 = arith.constant 14 : index
    %c0_99 = arith.constant 0 : index
    %c0_100 = arith.constant 0 : index
    %87 = vector.load %arg5[%c14, %c0_99, %c0_100] : memref<27x128x128xbf16, #tpu.memory_space<vmem>>, vector<1x128x128xbf16>
    %88 = vector.shape_cast %87 : vector<1x128x128xbf16> to vector<128x128xbf16>
    %cst_101 = arith.constant dense<0.000000e+00> : vector<80x128xf32>
    %89 = tpu.matmul %86, %88, %cst_101 {dimension_numbers = #tpu.dot_dimension_numbers<[1], [0], [0], [1], [0, 0, 1, 1], [], []>} : vector<80x128xbf16>, vector<128x128xbf16>, vector<80x128xf32> -> vector<80x128xf32>
    %90 = arith.addf %84, %89 : vector<80x128xf32>
    %c0_102 = arith.constant 0 : index
    %c0_103 = arith.constant 0 : index
    %c20_104 = arith.constant 20 : index
    %c0_105 = arith.constant 0 : index
    %91 = vector.load %arg3[%c0_102, %c0_103, %c20_104, %c0_105] : memref<1x1x110x128xbf16, #tpu.memory_space<vmem>>, vector<1x1x80x128xbf16>
    %92 = vector.shape_cast %91 : vector<1x1x80x128xbf16> to vector<80x128xbf16>
    %c15 = arith.constant 15 : index
    %c0_106 = arith.constant 0 : index
    %c0_107 = arith.constant 0 : index
    %93 = vector.load %arg5[%c15, %c0_106, %c0_107] : memref<27x128x128xbf16, #tpu.memory_space<vmem>>, vector<1x128x128xbf16>
    %94 = vector.shape_cast %93 : vector<1x128x128xbf16> to vector<128x128xbf16>
    %cst_108 = arith.constant dense<0.000000e+00> : vector<80x128xf32>
    %95 = tpu.matmul %92, %94, %cst_108 {dimension_numbers = #tpu.dot_dimension_numbers<[1], [0], [0], [1], [0, 0, 1, 1], [], []>} : vector<80x128xbf16>, vector<128x128xbf16>, vector<80x128xf32> -> vector<80x128xf32>
    %96 = arith.addf %90, %95 : vector<80x128xf32>
    %c0_109 = arith.constant 0 : index
    %c0_110 = arith.constant 0 : index
    %c21_111 = arith.constant 21 : index
    %c0_112 = arith.constant 0 : index
    %97 = vector.load %arg3[%c0_109, %c0_110, %c21_111, %c0_112] : memref<1x1x110x128xbf16, #tpu.memory_space<vmem>>, vector<1x1x80x128xbf16>
    %98 = vector.shape_cast %97 : vector<1x1x80x128xbf16> to vector<80x128xbf16>
    %c16 = arith.constant 16 : index
    %c0_113 = arith.constant 0 : index
    %c0_114 = arith.constant 0 : index
    %99 = vector.load %arg5[%c16, %c0_113, %c0_114] : memref<27x128x128xbf16, #tpu.memory_space<vmem>>, vector<1x128x128xbf16>
    %100 = vector.shape_cast %99 : vector<1x128x128xbf16> to vector<128x128xbf16>
    %cst_115 = arith.constant dense<0.000000e+00> : vector<80x128xf32>
    %101 = tpu.matmul %98, %100, %cst_115 {dimension_numbers = #tpu.dot_dimension_numbers<[1], [0], [0], [1], [0, 0, 1, 1], [], []>} : vector<80x128xbf16>, vector<128x128xbf16>, vector<80x128xf32> -> vector<80x128xf32>
    %102 = arith.addf %96, %101 : vector<80x128xf32>
    %c0_116 = arith.constant 0 : index
    %c0_117 = arith.constant 0 : index
    %c22_118 = arith.constant 22 : index
    %c0_119 = arith.constant 0 : index
    %103 = vector.load %arg3[%c0_116, %c0_117, %c22_118, %c0_119] : memref<1x1x110x128xbf16, #tpu.memory_space<vmem>>, vector<1x1x80x128xbf16>
    %104 = vector.shape_cast %103 : vector<1x1x80x128xbf16> to vector<80x128xbf16>
    %c17 = arith.constant 17 : index
    %c0_120 = arith.constant 0 : index
    %c0_121 = arith.constant 0 : index
    %105 = vector.load %arg5[%c17, %c0_120, %c0_121] : memref<27x128x128xbf16, #tpu.memory_space<vmem>>, vector<1x128x128xbf16>
    %106 = vector.shape_cast %105 : vector<1x128x128xbf16> to vector<128x128xbf16>
    %cst_122 = arith.constant dense<0.000000e+00> : vector<80x128xf32>
    %107 = tpu.matmul %104, %106, %cst_122 {dimension_numbers = #tpu.dot_dimension_numbers<[1], [0], [0], [1], [0, 0, 1, 1], [], []>} : vector<80x128xbf16>, vector<128x128xbf16>, vector<80x128xf32> -> vector<80x128xf32>
    %108 = arith.addf %102, %107 : vector<80x128xf32>
    %c0_123 = arith.constant 0 : index
    %c0_124 = arith.constant 0 : index
    %c0_125 = arith.constant 0 : index
    %c0_126 = arith.constant 0 : index
    %109 = vector.load %arg4[%c0_123, %c0_124, %c0_125, %c0_126] : memref<1x1x110x128xbf16, #tpu.memory_space<vmem>>, vector<1x1x80x128xbf16>
    %110 = vector.shape_cast %109 : vector<1x1x80x128xbf16> to vector<80x128xbf16>
    %c18 = arith.constant 18 : index
    %c0_127 = arith.constant 0 : index
    %c0_128 = arith.constant 0 : index
    %111 = vector.load %arg5[%c18, %c0_127, %c0_128] : memref<27x128x128xbf16, #tpu.memory_space<vmem>>, vector<1x128x128xbf16>
    %112 = vector.shape_cast %111 : vector<1x128x128xbf16> to vector<128x128xbf16>
    %cst_129 = arith.constant dense<0.000000e+00> : vector<80x128xf32>
    %113 = tpu.matmul %110, %112, %cst_129 {dimension_numbers = #tpu.dot_dimension_numbers<[1], [0], [0], [1], [0, 0, 1, 1], [], []>} : vector<80x128xbf16>, vector<128x128xbf16>, vector<80x128xf32> -> vector<80x128xf32>
    %114 = arith.addf %108, %113 : vector<80x128xf32>
    %c0_130 = arith.constant 0 : index
    %c0_131 = arith.constant 0 : index
    %c1_132 = arith.constant 1 : index
    %c0_133 = arith.constant 0 : index
    %115 = vector.load %arg4[%c0_130, %c0_131, %c1_132, %c0_133] : memref<1x1x110x128xbf16, #tpu.memory_space<vmem>>, vector<1x1x80x128xbf16>
    %116 = vector.shape_cast %115 : vector<1x1x80x128xbf16> to vector<80x128xbf16>
    %c19 = arith.constant 19 : index
    %c0_134 = arith.constant 0 : index
    %c0_135 = arith.constant 0 : index
    %117 = vector.load %arg5[%c19, %c0_134, %c0_135] : memref<27x128x128xbf16, #tpu.memory_space<vmem>>, vector<1x128x128xbf16>
    %118 = vector.shape_cast %117 : vector<1x128x128xbf16> to vector<128x128xbf16>
    %cst_136 = arith.constant dense<0.000000e+00> : vector<80x128xf32>
    %119 = tpu.matmul %116, %118, %cst_136 {dimension_numbers = #tpu.dot_dimension_numbers<[1], [0], [0], [1], [0, 0, 1, 1], [], []>} : vector<80x128xbf16>, vector<128x128xbf16>, vector<80x128xf32> -> vector<80x128xf32>
    %120 = arith.addf %114, %119 : vector<80x128xf32>
    %c0_137 = arith.constant 0 : index
    %c0_138 = arith.constant 0 : index
    %c2_139 = arith.constant 2 : index
    %c0_140 = arith.constant 0 : index
    %121 = vector.load %arg4[%c0_137, %c0_138, %c2_139, %c0_140] : memref<1x1x110x128xbf16, #tpu.memory_space<vmem>>, vector<1x1x80x128xbf16>
    %122 = vector.shape_cast %121 : vector<1x1x80x128xbf16> to vector<80x128xbf16>
    %c20_141 = arith.constant 20 : index
    %c0_142 = arith.constant 0 : index
    %c0_143 = arith.constant 0 : index
    %123 = vector.load %arg5[%c20_141, %c0_142, %c0_143] : memref<27x128x128xbf16, #tpu.memory_space<vmem>>, vector<1x128x128xbf16>
    %124 = vector.shape_cast %123 : vector<1x128x128xbf16> to vector<128x128xbf16>
    %cst_144 = arith.constant dense<0.000000e+00> : vector<80x128xf32>
    %125 = tpu.matmul %122, %124, %cst_144 {dimension_numbers = #tpu.dot_dimension_numbers<[1], [0], [0], [1], [0, 0, 1, 1], [], []>} : vector<80x128xbf16>, vector<128x128xbf16>, vector<80x128xf32> -> vector<80x128xf32>
    %126 = arith.addf %120, %125 : vector<80x128xf32>
    %c0_145 = arith.constant 0 : index
    %c0_146 = arith.constant 0 : index
    %c10_147 = arith.constant 10 : index
    %c0_148 = arith.constant 0 : index
    %127 = vector.load %arg4[%c0_145, %c0_146, %c10_147, %c0_148] : memref<1x1x110x128xbf16, #tpu.memory_space<vmem>>, vector<1x1x80x128xbf16>
    %128 = vector.shape_cast %127 : vector<1x1x80x128xbf16> to vector<80x128xbf16>
    %c21_149 = arith.constant 21 : index
    %c0_150 = arith.constant 0 : index
    %c0_151 = arith.constant 0 : index
    %129 = vector.load %arg5[%c21_149, %c0_150, %c0_151] : memref<27x128x128xbf16, #tpu.memory_space<vmem>>, vector<1x128x128xbf16>
    %130 = vector.shape_cast %129 : vector<1x128x128xbf16> to vector<128x128xbf16>
    %cst_152 = arith.constant dense<0.000000e+00> : vector<80x128xf32>
    %131 = tpu.matmul %128, %130, %cst_152 {dimension_numbers = #tpu.dot_dimension_numbers<[1], [0], [0], [1], [0, 0, 1, 1], [], []>} : vector<80x128xbf16>, vector<128x128xbf16>, vector<80x128xf32> -> vector<80x128xf32>
    %132 = arith.addf %126, %131 : vector<80x128xf32>
    %c0_153 = arith.constant 0 : index
    %c0_154 = arith.constant 0 : index
    %c11_155 = arith.constant 11 : index
    %c0_156 = arith.constant 0 : index
    %133 = vector.load %arg4[%c0_153, %c0_154, %c11_155, %c0_156] : memref<1x1x110x128xbf16, #tpu.memory_space<vmem>>, vector<1x1x80x128xbf16>
    %134 = vector.shape_cast %133 : vector<1x1x80x128xbf16> to vector<80x128xbf16>
    %c22_157 = arith.constant 22 : index
    %c0_158 = arith.constant 0 : index
    %c0_159 = arith.constant 0 : index
    %135 = vector.load %arg5[%c22_157, %c0_158, %c0_159] : memref<27x128x128xbf16, #tpu.memory_space<vmem>>, vector<1x128x128xbf16>
    %136 = vector.shape_cast %135 : vector<1x128x128xbf16> to vector<128x128xbf16>
    %cst_160 = arith.constant dense<0.000000e+00> : vector<80x128xf32>
    %137 = tpu.matmul %134, %136, %cst_160 {dimension_numbers = #tpu.dot_dimension_numbers<[1], [0], [0], [1], [0, 0, 1, 1], [], []>} : vector<80x128xbf16>, vector<128x128xbf16>, vector<80x128xf32> -> vector<80x128xf32>
    %138 = arith.addf %132, %137 : vector<80x128xf32>
    %c0_161 = arith.constant 0 : index
    %c0_162 = arith.constant 0 : index
    %c12_163 = arith.constant 12 : index
    %c0_164 = arith.constant 0 : index
    %139 = vector.load %arg4[%c0_161, %c0_162, %c12_163, %c0_164] : memref<1x1x110x128xbf16, #tpu.memory_space<vmem>>, vector<1x1x80x128xbf16>
    %140 = vector.shape_cast %139 : vector<1x1x80x128xbf16> to vector<80x128xbf16>
    %c23 = arith.constant 23 : index
    %c0_165 = arith.constant 0 : index
    %c0_166 = arith.constant 0 : index
    %141 = vector.load %arg5[%c23, %c0_165, %c0_166] : memref<27x128x128xbf16, #tpu.memory_space<vmem>>, vector<1x128x128xbf16>
    %142 = vector.shape_cast %141 : vector<1x128x128xbf16> to vector<128x128xbf16>
    %cst_167 = arith.constant dense<0.000000e+00> : vector<80x128xf32>
    %143 = tpu.matmul %140, %142, %cst_167 {dimension_numbers = #tpu.dot_dimension_numbers<[1], [0], [0], [1], [0, 0, 1, 1], [], []>} : vector<80x128xbf16>, vector<128x128xbf16>, vector<80x128xf32> -> vector<80x128xf32>
    %144 = arith.addf %138, %143 : vector<80x128xf32>
    %c0_168 = arith.constant 0 : index
    %c0_169 = arith.constant 0 : index
    %c20_170 = arith.constant 20 : index
    %c0_171 = arith.constant 0 : index
    %145 = vector.load %arg4[%c0_168, %c0_169, %c20_170, %c0_171] : memref<1x1x110x128xbf16, #tpu.memory_space<vmem>>, vector<1x1x80x128xbf16>
    %146 = vector.shape_cast %145 : vector<1x1x80x128xbf16> to vector<80x128xbf16>
    %c24 = arith.constant 24 : index
    %c0_172 = arith.constant 0 : index
    %c0_173 = arith.constant 0 : index
    %147 = vector.load %arg5[%c24, %c0_172, %c0_173] : memref<27x128x128xbf16, #tpu.memory_space<vmem>>, vector<1x128x128xbf16>
    %148 = vector.shape_cast %147 : vector<1x128x128xbf16> to vector<128x128xbf16>
    %cst_174 = arith.constant dense<0.000000e+00> : vector<80x128xf32>
    %149 = tpu.matmul %146, %148, %cst_174 {dimension_numbers = #tpu.dot_dimension_numbers<[1], [0], [0], [1], [0, 0, 1, 1], [], []>} : vector<80x128xbf16>, vector<128x128xbf16>, vector<80x128xf32> -> vector<80x128xf32>
    %150 = arith.addf %144, %149 : vector<80x128xf32>
    %c0_175 = arith.constant 0 : index
    %c0_176 = arith.constant 0 : index
    %c21_177 = arith.constant 21 : index
    %c0_178 = arith.constant 0 : index
    %151 = vector.load %arg4[%c0_175, %c0_176, %c21_177, %c0_178] : memref<1x1x110x128xbf16, #tpu.memory_space<vmem>>, vector<1x1x80x128xbf16>
    %152 = vector.shape_cast %151 : vector<1x1x80x128xbf16> to vector<80x128xbf16>
    %c25 = arith.constant 25 : index
    %c0_179 = arith.constant 0 : index
    %c0_180 = arith.constant 0 : index
    %153 = vector.load %arg5[%c25, %c0_179, %c0_180] : memref<27x128x128xbf16, #tpu.memory_space<vmem>>, vector<1x128x128xbf16>
    %154 = vector.shape_cast %153 : vector<1x128x128xbf16> to vector<128x128xbf16>
    %cst_181 = arith.constant dense<0.000000e+00> : vector<80x128xf32>
    %155 = tpu.matmul %152, %154, %cst_181 {dimension_numbers = #tpu.dot_dimension_numbers<[1], [0], [0], [1], [0, 0, 1, 1], [], []>} : vector<80x128xbf16>, vector<128x128xbf16>, vector<80x128xf32> -> vector<80x128xf32>
    %156 = arith.addf %150, %155 : vector<80x128xf32>
    %c0_182 = arith.constant 0 : index
    %c0_183 = arith.constant 0 : index
    %c22_184 = arith.constant 22 : index
    %c0_185 = arith.constant 0 : index
    %157 = vector.load %arg4[%c0_182, %c0_183, %c22_184, %c0_185] : memref<1x1x110x128xbf16, #tpu.memory_space<vmem>>, vector<1x1x80x128xbf16>
    %158 = vector.shape_cast %157 : vector<1x1x80x128xbf16> to vector<80x128xbf16>
    %c26 = arith.constant 26 : index
    %c0_186 = arith.constant 0 : index
    %c0_187 = arith.constant 0 : index
    %159 = vector.load %arg5[%c26, %c0_186, %c0_187] : memref<27x128x128xbf16, #tpu.memory_space<vmem>>, vector<1x128x128xbf16>
    %160 = vector.shape_cast %159 : vector<1x128x128xbf16> to vector<128x128xbf16>
    %cst_188 = arith.constant dense<0.000000e+00> : vector<80x128xf32>
    %161 = tpu.matmul %158, %160, %cst_188 {dimension_numbers = #tpu.dot_dimension_numbers<[1], [0], [0], [1], [0, 0, 1, 1], [], []>} : vector<80x128xbf16>, vector<128x128xbf16>, vector<80x128xf32> -> vector<80x128xf32>
    %162 = arith.addf %156, %161 : vector<80x128xf32>
    %c0_189 = arith.constant 0 : index
    %c0_190 = arith.constant 0 : index
    %163 = vector.load %arg6[%c0_189, %c0_190] : memref<1x128xf32, #tpu.memory_space<vmem>>, vector<1x128xf32>
    %164 = vector.broadcast %163 : vector<1x128xf32> to vector<80x128xf32>
    %165 = arith.addf %162, %164 : vector<80x128xf32>
    %cst_191 = arith.constant 0.000000e+00 : f32
    %166 = vector.broadcast %cst_191 : f32 to vector<80x128xf32>
    %167 = arith.maximumf %165, %166 : vector<80x128xf32>
    %168 = arith.truncf %167 : vector<80x128xf32> to vector<80x128xbf16>
    %169 = vector.shape_cast %168 : vector<80x128xbf16> to vector<8x10x128xbf16>
    %170 = vector.extract_strided_slice %169 {offsets = [0, 0, 0], sizes = [8, 8, 128], strides = [1, 1, 1]} : vector<8x10x128xbf16> to vector<8x8x128xbf16>
    %171 = vector.shape_cast %170 : vector<8x8x128xbf16> to vector<1x1x8x8x128xbf16>
    %c0_192 = arith.constant 0 : index
    %c0_193 = arith.constant 0 : index
    %c0_194 = arith.constant 0 : index
    %c0_195 = arith.constant 0 : index
    %c0_196 = arith.constant 0 : index
    %172 = vector.load %arg7[%c0_192, %c0_193, %c0_194, %c0_195, %c0_196] : memref<1x1x8x8x128xbf16, #tpu.memory_space<vmem>>, vector<1x1x8x8x128xbf16>
    tpu.vector_store %arg7[%c0_192, %c0_193, %c0_194, %c0_195, %c0_196], %171 {strides = array<i32>} : memref<1x1x8x8x128xbf16, #tpu.memory_space<vmem>>, vector<1x1x8x8x128xbf16>,
    return
  }
  func.func @transform_0(%arg0: i32, %arg1: i32) -> (i32, i32, i32, i32) {
    %c0_i32 = arith.constant 0 : i32
    %0 = arith.addi %arg1, %c0_i32 : i32
    %c0_i32_0 = arith.constant 0 : i32
    %c0_i32_1 = arith.constant 0 : i32
    %c0_i32_2 = arith.constant 0 : i32
    return %arg0, %0, %c0_i32_0, %c0_i32_1 : i32, i32, i32, i32
  }
  func.func @transform_1(%arg0: i32, %arg1: i32) -> (i32, i32, i32, i32) {
    %c1_i32 = arith.constant 1 : i32
    %0 = arith.addi %arg1, %c1_i32 : i32
    %c0_i32 = arith.constant 0 : i32
    %c0_i32_0 = arith.constant 0 : i32
    %c0_i32_1 = arith.constant 0 : i32
    return %arg0, %0, %c0_i32, %c0_i32_0 : i32, i32, i32, i32
  }
  func.func @transform_2(%arg0: i32, %arg1: i32) -> (i32, i32, i32, i32) {
    %c2_i32 = arith.constant 2 : i32
    %0 = arith.addi %arg1, %c2_i32 : i32
    %c0_i32 = arith.constant 0 : i32
    %c0_i32_0 = arith.constant 0 : i32
    %c0_i32_1 = arith.constant 0 : i32
    return %arg0, %0, %c0_i32, %c0_i32_0 : i32, i32, i32, i32
  }
  func.func @transform_3(%arg0: i32, %arg1: i32) -> (i32, i32, i32) {
    %c0_i32 = arith.constant 0 : i32
    %c0_i32_0 = arith.constant 0 : i32
    %c0_i32_1 = arith.constant 0 : i32
    %c0_i32_2 = arith.constant 0 : i32
    return %c0_i32, %c0_i32_0, %c0_i32_1 : i32, i32, i32
  }
  func.func @transform_4(%arg0: i32, %arg1: i32) -> (i32, i32) {
    %c0_i32 = arith.constant 0 : i32
    %c0_i32_0 = arith.constant 0 : i32
    %c0_i32_1 = arith.constant 0 : i32
    return %c0_i32, %c0_i32_0 : i32, i32
  }
  func.func @transform_5(%arg0: i32, %arg1: i32) -> (i32, i32, i32, i32, i32) {
    %c0_i32 = arith.constant 0 : i32
    %c0_i32_0 = arith.constant 0 : i32
    %c0_i32_1 = arith.constant 0 : i32
    %c0_i32_2 = arith.constant 0 : i32
    return %arg0, %arg1, %c0_i32, %c0_i32_0, %c0_i32_1 : i32, i32, i32, i32, i32
  }
}

module attributes {stable_mosaic.version = 11 : i64} {
  func.func @_conv3d_relu_kernel(%arg0: i32, %arg1: i32, %arg2: memref<1x1x42x128xbf16, #tpu.memory_space<vmem>>, %arg3: memref<1x1x42x128xbf16, #tpu.memory_space<vmem>>, %arg4: memref<1x1x42x128xbf16, #tpu.memory_space<vmem>>, %arg5: memref<27x128x128xbf16, #tpu.memory_space<vmem>>, %arg6: memref<1x128xf32, #tpu.memory_space<vmem>>, %arg7: memref<1x1x4x4x128xbf16, #tpu.memory_space<vmem>>) attributes {dimension_semantics = [#tpu.dimension_semantics<parallel>, #tpu.dimension_semantics<parallel>], iteration_bounds = array<i64: 2, 4>, scalar_prefetch = 0 : i64, scratch_operands = 0 : i64, tpu.core_type = #tpu.core_type<tc>, window_params = [{transform_indices = @transform_0, window_bounds = array<i64: 1, 1, 42, 128>}, {transform_indices = @transform_1, window_bounds = array<i64: 1, 1, 42, 128>}, {transform_indices = @transform_2, window_bounds = array<i64: 1, 1, 42, 128>}, {pipeline_mode = #tpu.pipeline_mode<synchronous>, transform_indices = @transform_3, window_bounds = array<i64: 27, 128, 128>}, {pipeline_mode = #tpu.pipeline_mode<synchronous>, transform_indices = @transform_4, window_bounds = array<i64: 1, 128>}, {transform_indices = @transform_5, window_bounds = array<i64: 1, 1, 4, 4, 128>}]} {
    %cst = arith.constant 0.000000e+00 : f32
    %0 = vector.broadcast %cst : f32 to vector<24x128xf32>
    %c0 = arith.constant 0 : index
    %c0_0 = arith.constant 0 : index
    %c0_1 = arith.constant 0 : index
    %c0_2 = arith.constant 0 : index
    %1 = vector.load %arg2[%c0, %c0_0, %c0_1, %c0_2] : memref<1x1x42x128xbf16, #tpu.memory_space<vmem>>, vector<1x1x24x128xbf16>
    %2 = vector.shape_cast %1 : vector<1x1x24x128xbf16> to vector<24x128xbf16>
    %c0_3 = arith.constant 0 : index
    %c0_4 = arith.constant 0 : index
    %c0_5 = arith.constant 0 : index
    %3 = vector.load %arg5[%c0_3, %c0_4, %c0_5] : memref<27x128x128xbf16, #tpu.memory_space<vmem>>, vector<1x128x128xbf16>
    %4 = vector.shape_cast %3 : vector<1x128x128xbf16> to vector<128x128xbf16>
    %cst_6 = arith.constant dense<0.000000e+00> : vector<24x128xf32>
    %5 = tpu.matmul %2, %4, %cst_6 {dimension_numbers = #tpu.dot_dimension_numbers<[1], [0], [0], [1], [0, 0, 1, 1], [], []>} : vector<24x128xbf16>, vector<128x128xbf16>, vector<24x128xf32> -> vector<24x128xf32>
    %6 = arith.addf %0, %5 : vector<24x128xf32>
    %c0_7 = arith.constant 0 : index
    %c0_8 = arith.constant 0 : index
    %c1 = arith.constant 1 : index
    %c0_9 = arith.constant 0 : index
    %7 = vector.load %arg2[%c0_7, %c0_8, %c1, %c0_9] : memref<1x1x42x128xbf16, #tpu.memory_space<vmem>>, vector<1x1x24x128xbf16>
    %8 = vector.shape_cast %7 : vector<1x1x24x128xbf16> to vector<24x128xbf16>
    %c1_10 = arith.constant 1 : index
    %c0_11 = arith.constant 0 : index
    %c0_12 = arith.constant 0 : index
    %9 = vector.load %arg5[%c1_10, %c0_11, %c0_12] : memref<27x128x128xbf16, #tpu.memory_space<vmem>>, vector<1x128x128xbf16>
    %10 = vector.shape_cast %9 : vector<1x128x128xbf16> to vector<128x128xbf16>
    %cst_13 = arith.constant dense<0.000000e+00> : vector<24x128xf32>
    %11 = tpu.matmul %8, %10, %cst_13 {dimension_numbers = #tpu.dot_dimension_numbers<[1], [0], [0], [1], [0, 0, 1, 1], [], []>} : vector<24x128xbf16>, vector<128x128xbf16>, vector<24x128xf32> -> vector<24x128xf32>
    %12 = arith.addf %6, %11 : vector<24x128xf32>
    %c0_14 = arith.constant 0 : index
    %c0_15 = arith.constant 0 : index
    %c2 = arith.constant 2 : index
    %c0_16 = arith.constant 0 : index
    %13 = vector.load %arg2[%c0_14, %c0_15, %c2, %c0_16] : memref<1x1x42x128xbf16, #tpu.memory_space<vmem>>, vector<1x1x24x128xbf16>
    %14 = vector.shape_cast %13 : vector<1x1x24x128xbf16> to vector<24x128xbf16>
    %c2_17 = arith.constant 2 : index
    %c0_18 = arith.constant 0 : index
    %c0_19 = arith.constant 0 : index
    %15 = vector.load %arg5[%c2_17, %c0_18, %c0_19] : memref<27x128x128xbf16, #tpu.memory_space<vmem>>, vector<1x128x128xbf16>
    %16 = vector.shape_cast %15 : vector<1x128x128xbf16> to vector<128x128xbf16>
    %cst_20 = arith.constant dense<0.000000e+00> : vector<24x128xf32>
    %17 = tpu.matmul %14, %16, %cst_20 {dimension_numbers = #tpu.dot_dimension_numbers<[1], [0], [0], [1], [0, 0, 1, 1], [], []>} : vector<24x128xbf16>, vector<128x128xbf16>, vector<24x128xf32> -> vector<24x128xf32>
    %18 = arith.addf %12, %17 : vector<24x128xf32>
    %c0_21 = arith.constant 0 : index
    %c0_22 = arith.constant 0 : index
    %c6 = arith.constant 6 : index
    %c0_23 = arith.constant 0 : index
    %19 = vector.load %arg2[%c0_21, %c0_22, %c6, %c0_23] : memref<1x1x42x128xbf16, #tpu.memory_space<vmem>>, vector<1x1x24x128xbf16>
    %20 = vector.shape_cast %19 : vector<1x1x24x128xbf16> to vector<24x128xbf16>
    %c3 = arith.constant 3 : index
    %c0_24 = arith.constant 0 : index
    %c0_25 = arith.constant 0 : index
    %21 = vector.load %arg5[%c3, %c0_24, %c0_25] : memref<27x128x128xbf16, #tpu.memory_space<vmem>>, vector<1x128x128xbf16>
    %22 = vector.shape_cast %21 : vector<1x128x128xbf16> to vector<128x128xbf16>
    %cst_26 = arith.constant dense<0.000000e+00> : vector<24x128xf32>
    %23 = tpu.matmul %20, %22, %cst_26 {dimension_numbers = #tpu.dot_dimension_numbers<[1], [0], [0], [1], [0, 0, 1, 1], [], []>} : vector<24x128xbf16>, vector<128x128xbf16>, vector<24x128xf32> -> vector<24x128xf32>
    %24 = arith.addf %18, %23 : vector<24x128xf32>
    %c0_27 = arith.constant 0 : index
    %c0_28 = arith.constant 0 : index
    %c7 = arith.constant 7 : index
    %c0_29 = arith.constant 0 : index
    %25 = vector.load %arg2[%c0_27, %c0_28, %c7, %c0_29] : memref<1x1x42x128xbf16, #tpu.memory_space<vmem>>, vector<1x1x24x128xbf16>
    %26 = vector.shape_cast %25 : vector<1x1x24x128xbf16> to vector<24x128xbf16>
    %c4 = arith.constant 4 : index
    %c0_30 = arith.constant 0 : index
    %c0_31 = arith.constant 0 : index
    %27 = vector.load %arg5[%c4, %c0_30, %c0_31] : memref<27x128x128xbf16, #tpu.memory_space<vmem>>, vector<1x128x128xbf16>
    %28 = vector.shape_cast %27 : vector<1x128x128xbf16> to vector<128x128xbf16>
    %cst_32 = arith.constant dense<0.000000e+00> : vector<24x128xf32>
    %29 = tpu.matmul %26, %28, %cst_32 {dimension_numbers = #tpu.dot_dimension_numbers<[1], [0], [0], [1], [0, 0, 1, 1], [], []>} : vector<24x128xbf16>, vector<128x128xbf16>, vector<24x128xf32> -> vector<24x128xf32>
    %30 = arith.addf %24, %29 : vector<24x128xf32>
    %c0_33 = arith.constant 0 : index
    %c0_34 = arith.constant 0 : index
    %c8 = arith.constant 8 : index
    %c0_35 = arith.constant 0 : index
    %31 = vector.load %arg2[%c0_33, %c0_34, %c8, %c0_35] : memref<1x1x42x128xbf16, #tpu.memory_space<vmem>>, vector<1x1x24x128xbf16>
    %32 = vector.shape_cast %31 : vector<1x1x24x128xbf16> to vector<24x128xbf16>
    %c5 = arith.constant 5 : index
    %c0_36 = arith.constant 0 : index
    %c0_37 = arith.constant 0 : index
    %33 = vector.load %arg5[%c5, %c0_36, %c0_37] : memref<27x128x128xbf16, #tpu.memory_space<vmem>>, vector<1x128x128xbf16>
    %34 = vector.shape_cast %33 : vector<1x128x128xbf16> to vector<128x128xbf16>
    %cst_38 = arith.constant dense<0.000000e+00> : vector<24x128xf32>
    %35 = tpu.matmul %32, %34, %cst_38 {dimension_numbers = #tpu.dot_dimension_numbers<[1], [0], [0], [1], [0, 0, 1, 1], [], []>} : vector<24x128xbf16>, vector<128x128xbf16>, vector<24x128xf32> -> vector<24x128xf32>
    %36 = arith.addf %30, %35 : vector<24x128xf32>
    %c0_39 = arith.constant 0 : index
    %c0_40 = arith.constant 0 : index
    %c12 = arith.constant 12 : index
    %c0_41 = arith.constant 0 : index
    %37 = vector.load %arg2[%c0_39, %c0_40, %c12, %c0_41] : memref<1x1x42x128xbf16, #tpu.memory_space<vmem>>, vector<1x1x24x128xbf16>
    %38 = vector.shape_cast %37 : vector<1x1x24x128xbf16> to vector<24x128xbf16>
    %c6_42 = arith.constant 6 : index
    %c0_43 = arith.constant 0 : index
    %c0_44 = arith.constant 0 : index
    %39 = vector.load %arg5[%c6_42, %c0_43, %c0_44] : memref<27x128x128xbf16, #tpu.memory_space<vmem>>, vector<1x128x128xbf16>
    %40 = vector.shape_cast %39 : vector<1x128x128xbf16> to vector<128x128xbf16>
    %cst_45 = arith.constant dense<0.000000e+00> : vector<24x128xf32>
    %41 = tpu.matmul %38, %40, %cst_45 {dimension_numbers = #tpu.dot_dimension_numbers<[1], [0], [0], [1], [0, 0, 1, 1], [], []>} : vector<24x128xbf16>, vector<128x128xbf16>, vector<24x128xf32> -> vector<24x128xf32>
    %42 = arith.addf %36, %41 : vector<24x128xf32>
    %c0_46 = arith.constant 0 : index
    %c0_47 = arith.constant 0 : index
    %c13 = arith.constant 13 : index
    %c0_48 = arith.constant 0 : index
    %43 = vector.load %arg2[%c0_46, %c0_47, %c13, %c0_48] : memref<1x1x42x128xbf16, #tpu.memory_space<vmem>>, vector<1x1x24x128xbf16>
    %44 = vector.shape_cast %43 : vector<1x1x24x128xbf16> to vector<24x128xbf16>
    %c7_49 = arith.constant 7 : index
    %c0_50 = arith.constant 0 : index
    %c0_51 = arith.constant 0 : index
    %45 = vector.load %arg5[%c7_49, %c0_50, %c0_51] : memref<27x128x128xbf16, #tpu.memory_space<vmem>>, vector<1x128x128xbf16>
    %46 = vector.shape_cast %45 : vector<1x128x128xbf16> to vector<128x128xbf16>
    %cst_52 = arith.constant dense<0.000000e+00> : vector<24x128xf32>
    %47 = tpu.matmul %44, %46, %cst_52 {dimension_numbers = #tpu.dot_dimension_numbers<[1], [0], [0], [1], [0, 0, 1, 1], [], []>} : vector<24x128xbf16>, vector<128x128xbf16>, vector<24x128xf32> -> vector<24x128xf32>
    %48 = arith.addf %42, %47 : vector<24x128xf32>
    %c0_53 = arith.constant 0 : index
    %c0_54 = arith.constant 0 : index
    %c14 = arith.constant 14 : index
    %c0_55 = arith.constant 0 : index
    %49 = vector.load %arg2[%c0_53, %c0_54, %c14, %c0_55] : memref<1x1x42x128xbf16, #tpu.memory_space<vmem>>, vector<1x1x24x128xbf16>
    %50 = vector.shape_cast %49 : vector<1x1x24x128xbf16> to vector<24x128xbf16>
    %c8_56 = arith.constant 8 : index
    %c0_57 = arith.constant 0 : index
    %c0_58 = arith.constant 0 : index
    %51 = vector.load %arg5[%c8_56, %c0_57, %c0_58] : memref<27x128x128xbf16, #tpu.memory_space<vmem>>, vector<1x128x128xbf16>
    %52 = vector.shape_cast %51 : vector<1x128x128xbf16> to vector<128x128xbf16>
    %cst_59 = arith.constant dense<0.000000e+00> : vector<24x128xf32>
    %53 = tpu.matmul %50, %52, %cst_59 {dimension_numbers = #tpu.dot_dimension_numbers<[1], [0], [0], [1], [0, 0, 1, 1], [], []>} : vector<24x128xbf16>, vector<128x128xbf16>, vector<24x128xf32> -> vector<24x128xf32>
    %54 = arith.addf %48, %53 : vector<24x128xf32>
    %c0_60 = arith.constant 0 : index
    %c0_61 = arith.constant 0 : index
    %c0_62 = arith.constant 0 : index
    %c0_63 = arith.constant 0 : index
    %55 = vector.load %arg3[%c0_60, %c0_61, %c0_62, %c0_63] : memref<1x1x42x128xbf16, #tpu.memory_space<vmem>>, vector<1x1x24x128xbf16>
    %56 = vector.shape_cast %55 : vector<1x1x24x128xbf16> to vector<24x128xbf16>
    %c9 = arith.constant 9 : index
    %c0_64 = arith.constant 0 : index
    %c0_65 = arith.constant 0 : index
    %57 = vector.load %arg5[%c9, %c0_64, %c0_65] : memref<27x128x128xbf16, #tpu.memory_space<vmem>>, vector<1x128x128xbf16>
    %58 = vector.shape_cast %57 : vector<1x128x128xbf16> to vector<128x128xbf16>
    %cst_66 = arith.constant dense<0.000000e+00> : vector<24x128xf32>
    %59 = tpu.matmul %56, %58, %cst_66 {dimension_numbers = #tpu.dot_dimension_numbers<[1], [0], [0], [1], [0, 0, 1, 1], [], []>} : vector<24x128xbf16>, vector<128x128xbf16>, vector<24x128xf32> -> vector<24x128xf32>
    %60 = arith.addf %54, %59 : vector<24x128xf32>
    %c0_67 = arith.constant 0 : index
    %c0_68 = arith.constant 0 : index
    %c1_69 = arith.constant 1 : index
    %c0_70 = arith.constant 0 : index
    %61 = vector.load %arg3[%c0_67, %c0_68, %c1_69, %c0_70] : memref<1x1x42x128xbf16, #tpu.memory_space<vmem>>, vector<1x1x24x128xbf16>
    %62 = vector.shape_cast %61 : vector<1x1x24x128xbf16> to vector<24x128xbf16>
    %c10 = arith.constant 10 : index
    %c0_71 = arith.constant 0 : index
    %c0_72 = arith.constant 0 : index
    %63 = vector.load %arg5[%c10, %c0_71, %c0_72] : memref<27x128x128xbf16, #tpu.memory_space<vmem>>, vector<1x128x128xbf16>
    %64 = vector.shape_cast %63 : vector<1x128x128xbf16> to vector<128x128xbf16>
    %cst_73 = arith.constant dense<0.000000e+00> : vector<24x128xf32>
    %65 = tpu.matmul %62, %64, %cst_73 {dimension_numbers = #tpu.dot_dimension_numbers<[1], [0], [0], [1], [0, 0, 1, 1], [], []>} : vector<24x128xbf16>, vector<128x128xbf16>, vector<24x128xf32> -> vector<24x128xf32>
    %66 = arith.addf %60, %65 : vector<24x128xf32>
    %c0_74 = arith.constant 0 : index
    %c0_75 = arith.constant 0 : index
    %c2_76 = arith.constant 2 : index
    %c0_77 = arith.constant 0 : index
    %67 = vector.load %arg3[%c0_74, %c0_75, %c2_76, %c0_77] : memref<1x1x42x128xbf16, #tpu.memory_space<vmem>>, vector<1x1x24x128xbf16>
    %68 = vector.shape_cast %67 : vector<1x1x24x128xbf16> to vector<24x128xbf16>
    %c11 = arith.constant 11 : index
    %c0_78 = arith.constant 0 : index
    %c0_79 = arith.constant 0 : index
    %69 = vector.load %arg5[%c11, %c0_78, %c0_79] : memref<27x128x128xbf16, #tpu.memory_space<vmem>>, vector<1x128x128xbf16>
    %70 = vector.shape_cast %69 : vector<1x128x128xbf16> to vector<128x128xbf16>
    %cst_80 = arith.constant dense<0.000000e+00> : vector<24x128xf32>
    %71 = tpu.matmul %68, %70, %cst_80 {dimension_numbers = #tpu.dot_dimension_numbers<[1], [0], [0], [1], [0, 0, 1, 1], [], []>} : vector<24x128xbf16>, vector<128x128xbf16>, vector<24x128xf32> -> vector<24x128xf32>
    %72 = arith.addf %66, %71 : vector<24x128xf32>
    %c0_81 = arith.constant 0 : index
    %c0_82 = arith.constant 0 : index
    %c6_83 = arith.constant 6 : index
    %c0_84 = arith.constant 0 : index
    %73 = vector.load %arg3[%c0_81, %c0_82, %c6_83, %c0_84] : memref<1x1x42x128xbf16, #tpu.memory_space<vmem>>, vector<1x1x24x128xbf16>
    %74 = vector.shape_cast %73 : vector<1x1x24x128xbf16> to vector<24x128xbf16>
    %c12_85 = arith.constant 12 : index
    %c0_86 = arith.constant 0 : index
    %c0_87 = arith.constant 0 : index
    %75 = vector.load %arg5[%c12_85, %c0_86, %c0_87] : memref<27x128x128xbf16, #tpu.memory_space<vmem>>, vector<1x128x128xbf16>
    %76 = vector.shape_cast %75 : vector<1x128x128xbf16> to vector<128x128xbf16>
    %cst_88 = arith.constant dense<0.000000e+00> : vector<24x128xf32>
    %77 = tpu.matmul %74, %76, %cst_88 {dimension_numbers = #tpu.dot_dimension_numbers<[1], [0], [0], [1], [0, 0, 1, 1], [], []>} : vector<24x128xbf16>, vector<128x128xbf16>, vector<24x128xf32> -> vector<24x128xf32>
    %78 = arith.addf %72, %77 : vector<24x128xf32>
    %c0_89 = arith.constant 0 : index
    %c0_90 = arith.constant 0 : index
    %c7_91 = arith.constant 7 : index
    %c0_92 = arith.constant 0 : index
    %79 = vector.load %arg3[%c0_89, %c0_90, %c7_91, %c0_92] : memref<1x1x42x128xbf16, #tpu.memory_space<vmem>>, vector<1x1x24x128xbf16>
    %80 = vector.shape_cast %79 : vector<1x1x24x128xbf16> to vector<24x128xbf16>
    %c13_93 = arith.constant 13 : index
    %c0_94 = arith.constant 0 : index
    %c0_95 = arith.constant 0 : index
    %81 = vector.load %arg5[%c13_93, %c0_94, %c0_95] : memref<27x128x128xbf16, #tpu.memory_space<vmem>>, vector<1x128x128xbf16>
    %82 = vector.shape_cast %81 : vector<1x128x128xbf16> to vector<128x128xbf16>
    %cst_96 = arith.constant dense<0.000000e+00> : vector<24x128xf32>
    %83 = tpu.matmul %80, %82, %cst_96 {dimension_numbers = #tpu.dot_dimension_numbers<[1], [0], [0], [1], [0, 0, 1, 1], [], []>} : vector<24x128xbf16>, vector<128x128xbf16>, vector<24x128xf32> -> vector<24x128xf32>
    %84 = arith.addf %78, %83 : vector<24x128xf32>
    %c0_97 = arith.constant 0 : index
    %c0_98 = arith.constant 0 : index
    %c8_99 = arith.constant 8 : index
    %c0_100 = arith.constant 0 : index
    %85 = vector.load %arg3[%c0_97, %c0_98, %c8_99, %c0_100] : memref<1x1x42x128xbf16, #tpu.memory_space<vmem>>, vector<1x1x24x128xbf16>
    %86 = vector.shape_cast %85 : vector<1x1x24x128xbf16> to vector<24x128xbf16>
    %c14_101 = arith.constant 14 : index
    %c0_102 = arith.constant 0 : index
    %c0_103 = arith.constant 0 : index
    %87 = vector.load %arg5[%c14_101, %c0_102, %c0_103] : memref<27x128x128xbf16, #tpu.memory_space<vmem>>, vector<1x128x128xbf16>
    %88 = vector.shape_cast %87 : vector<1x128x128xbf16> to vector<128x128xbf16>
    %cst_104 = arith.constant dense<0.000000e+00> : vector<24x128xf32>
    %89 = tpu.matmul %86, %88, %cst_104 {dimension_numbers = #tpu.dot_dimension_numbers<[1], [0], [0], [1], [0, 0, 1, 1], [], []>} : vector<24x128xbf16>, vector<128x128xbf16>, vector<24x128xf32> -> vector<24x128xf32>
    %90 = arith.addf %84, %89 : vector<24x128xf32>
    %c0_105 = arith.constant 0 : index
    %c0_106 = arith.constant 0 : index
    %c12_107 = arith.constant 12 : index
    %c0_108 = arith.constant 0 : index
    %91 = vector.load %arg3[%c0_105, %c0_106, %c12_107, %c0_108] : memref<1x1x42x128xbf16, #tpu.memory_space<vmem>>, vector<1x1x24x128xbf16>
    %92 = vector.shape_cast %91 : vector<1x1x24x128xbf16> to vector<24x128xbf16>
    %c15 = arith.constant 15 : index
    %c0_109 = arith.constant 0 : index
    %c0_110 = arith.constant 0 : index
    %93 = vector.load %arg5[%c15, %c0_109, %c0_110] : memref<27x128x128xbf16, #tpu.memory_space<vmem>>, vector<1x128x128xbf16>
    %94 = vector.shape_cast %93 : vector<1x128x128xbf16> to vector<128x128xbf16>
    %cst_111 = arith.constant dense<0.000000e+00> : vector<24x128xf32>
    %95 = tpu.matmul %92, %94, %cst_111 {dimension_numbers = #tpu.dot_dimension_numbers<[1], [0], [0], [1], [0, 0, 1, 1], [], []>} : vector<24x128xbf16>, vector<128x128xbf16>, vector<24x128xf32> -> vector<24x128xf32>
    %96 = arith.addf %90, %95 : vector<24x128xf32>
    %c0_112 = arith.constant 0 : index
    %c0_113 = arith.constant 0 : index
    %c13_114 = arith.constant 13 : index
    %c0_115 = arith.constant 0 : index
    %97 = vector.load %arg3[%c0_112, %c0_113, %c13_114, %c0_115] : memref<1x1x42x128xbf16, #tpu.memory_space<vmem>>, vector<1x1x24x128xbf16>
    %98 = vector.shape_cast %97 : vector<1x1x24x128xbf16> to vector<24x128xbf16>
    %c16 = arith.constant 16 : index
    %c0_116 = arith.constant 0 : index
    %c0_117 = arith.constant 0 : index
    %99 = vector.load %arg5[%c16, %c0_116, %c0_117] : memref<27x128x128xbf16, #tpu.memory_space<vmem>>, vector<1x128x128xbf16>
    %100 = vector.shape_cast %99 : vector<1x128x128xbf16> to vector<128x128xbf16>
    %cst_118 = arith.constant dense<0.000000e+00> : vector<24x128xf32>
    %101 = tpu.matmul %98, %100, %cst_118 {dimension_numbers = #tpu.dot_dimension_numbers<[1], [0], [0], [1], [0, 0, 1, 1], [], []>} : vector<24x128xbf16>, vector<128x128xbf16>, vector<24x128xf32> -> vector<24x128xf32>
    %102 = arith.addf %96, %101 : vector<24x128xf32>
    %c0_119 = arith.constant 0 : index
    %c0_120 = arith.constant 0 : index
    %c14_121 = arith.constant 14 : index
    %c0_122 = arith.constant 0 : index
    %103 = vector.load %arg3[%c0_119, %c0_120, %c14_121, %c0_122] : memref<1x1x42x128xbf16, #tpu.memory_space<vmem>>, vector<1x1x24x128xbf16>
    %104 = vector.shape_cast %103 : vector<1x1x24x128xbf16> to vector<24x128xbf16>
    %c17 = arith.constant 17 : index
    %c0_123 = arith.constant 0 : index
    %c0_124 = arith.constant 0 : index
    %105 = vector.load %arg5[%c17, %c0_123, %c0_124] : memref<27x128x128xbf16, #tpu.memory_space<vmem>>, vector<1x128x128xbf16>
    %106 = vector.shape_cast %105 : vector<1x128x128xbf16> to vector<128x128xbf16>
    %cst_125 = arith.constant dense<0.000000e+00> : vector<24x128xf32>
    %107 = tpu.matmul %104, %106, %cst_125 {dimension_numbers = #tpu.dot_dimension_numbers<[1], [0], [0], [1], [0, 0, 1, 1], [], []>} : vector<24x128xbf16>, vector<128x128xbf16>, vector<24x128xf32> -> vector<24x128xf32>
    %108 = arith.addf %102, %107 : vector<24x128xf32>
    %c0_126 = arith.constant 0 : index
    %c0_127 = arith.constant 0 : index
    %c0_128 = arith.constant 0 : index
    %c0_129 = arith.constant 0 : index
    %109 = vector.load %arg4[%c0_126, %c0_127, %c0_128, %c0_129] : memref<1x1x42x128xbf16, #tpu.memory_space<vmem>>, vector<1x1x24x128xbf16>
    %110 = vector.shape_cast %109 : vector<1x1x24x128xbf16> to vector<24x128xbf16>
    %c18 = arith.constant 18 : index
    %c0_130 = arith.constant 0 : index
    %c0_131 = arith.constant 0 : index
    %111 = vector.load %arg5[%c18, %c0_130, %c0_131] : memref<27x128x128xbf16, #tpu.memory_space<vmem>>, vector<1x128x128xbf16>
    %112 = vector.shape_cast %111 : vector<1x128x128xbf16> to vector<128x128xbf16>
    %cst_132 = arith.constant dense<0.000000e+00> : vector<24x128xf32>
    %113 = tpu.matmul %110, %112, %cst_132 {dimension_numbers = #tpu.dot_dimension_numbers<[1], [0], [0], [1], [0, 0, 1, 1], [], []>} : vector<24x128xbf16>, vector<128x128xbf16>, vector<24x128xf32> -> vector<24x128xf32>
    %114 = arith.addf %108, %113 : vector<24x128xf32>
    %c0_133 = arith.constant 0 : index
    %c0_134 = arith.constant 0 : index
    %c1_135 = arith.constant 1 : index
    %c0_136 = arith.constant 0 : index
    %115 = vector.load %arg4[%c0_133, %c0_134, %c1_135, %c0_136] : memref<1x1x42x128xbf16, #tpu.memory_space<vmem>>, vector<1x1x24x128xbf16>
    %116 = vector.shape_cast %115 : vector<1x1x24x128xbf16> to vector<24x128xbf16>
    %c19 = arith.constant 19 : index
    %c0_137 = arith.constant 0 : index
    %c0_138 = arith.constant 0 : index
    %117 = vector.load %arg5[%c19, %c0_137, %c0_138] : memref<27x128x128xbf16, #tpu.memory_space<vmem>>, vector<1x128x128xbf16>
    %118 = vector.shape_cast %117 : vector<1x128x128xbf16> to vector<128x128xbf16>
    %cst_139 = arith.constant dense<0.000000e+00> : vector<24x128xf32>
    %119 = tpu.matmul %116, %118, %cst_139 {dimension_numbers = #tpu.dot_dimension_numbers<[1], [0], [0], [1], [0, 0, 1, 1], [], []>} : vector<24x128xbf16>, vector<128x128xbf16>, vector<24x128xf32> -> vector<24x128xf32>
    %120 = arith.addf %114, %119 : vector<24x128xf32>
    %c0_140 = arith.constant 0 : index
    %c0_141 = arith.constant 0 : index
    %c2_142 = arith.constant 2 : index
    %c0_143 = arith.constant 0 : index
    %121 = vector.load %arg4[%c0_140, %c0_141, %c2_142, %c0_143] : memref<1x1x42x128xbf16, #tpu.memory_space<vmem>>, vector<1x1x24x128xbf16>
    %122 = vector.shape_cast %121 : vector<1x1x24x128xbf16> to vector<24x128xbf16>
    %c20 = arith.constant 20 : index
    %c0_144 = arith.constant 0 : index
    %c0_145 = arith.constant 0 : index
    %123 = vector.load %arg5[%c20, %c0_144, %c0_145] : memref<27x128x128xbf16, #tpu.memory_space<vmem>>, vector<1x128x128xbf16>
    %124 = vector.shape_cast %123 : vector<1x128x128xbf16> to vector<128x128xbf16>
    %cst_146 = arith.constant dense<0.000000e+00> : vector<24x128xf32>
    %125 = tpu.matmul %122, %124, %cst_146 {dimension_numbers = #tpu.dot_dimension_numbers<[1], [0], [0], [1], [0, 0, 1, 1], [], []>} : vector<24x128xbf16>, vector<128x128xbf16>, vector<24x128xf32> -> vector<24x128xf32>
    %126 = arith.addf %120, %125 : vector<24x128xf32>
    %c0_147 = arith.constant 0 : index
    %c0_148 = arith.constant 0 : index
    %c6_149 = arith.constant 6 : index
    %c0_150 = arith.constant 0 : index
    %127 = vector.load %arg4[%c0_147, %c0_148, %c6_149, %c0_150] : memref<1x1x42x128xbf16, #tpu.memory_space<vmem>>, vector<1x1x24x128xbf16>
    %128 = vector.shape_cast %127 : vector<1x1x24x128xbf16> to vector<24x128xbf16>
    %c21 = arith.constant 21 : index
    %c0_151 = arith.constant 0 : index
    %c0_152 = arith.constant 0 : index
    %129 = vector.load %arg5[%c21, %c0_151, %c0_152] : memref<27x128x128xbf16, #tpu.memory_space<vmem>>, vector<1x128x128xbf16>
    %130 = vector.shape_cast %129 : vector<1x128x128xbf16> to vector<128x128xbf16>
    %cst_153 = arith.constant dense<0.000000e+00> : vector<24x128xf32>
    %131 = tpu.matmul %128, %130, %cst_153 {dimension_numbers = #tpu.dot_dimension_numbers<[1], [0], [0], [1], [0, 0, 1, 1], [], []>} : vector<24x128xbf16>, vector<128x128xbf16>, vector<24x128xf32> -> vector<24x128xf32>
    %132 = arith.addf %126, %131 : vector<24x128xf32>
    %c0_154 = arith.constant 0 : index
    %c0_155 = arith.constant 0 : index
    %c7_156 = arith.constant 7 : index
    %c0_157 = arith.constant 0 : index
    %133 = vector.load %arg4[%c0_154, %c0_155, %c7_156, %c0_157] : memref<1x1x42x128xbf16, #tpu.memory_space<vmem>>, vector<1x1x24x128xbf16>
    %134 = vector.shape_cast %133 : vector<1x1x24x128xbf16> to vector<24x128xbf16>
    %c22 = arith.constant 22 : index
    %c0_158 = arith.constant 0 : index
    %c0_159 = arith.constant 0 : index
    %135 = vector.load %arg5[%c22, %c0_158, %c0_159] : memref<27x128x128xbf16, #tpu.memory_space<vmem>>, vector<1x128x128xbf16>
    %136 = vector.shape_cast %135 : vector<1x128x128xbf16> to vector<128x128xbf16>
    %cst_160 = arith.constant dense<0.000000e+00> : vector<24x128xf32>
    %137 = tpu.matmul %134, %136, %cst_160 {dimension_numbers = #tpu.dot_dimension_numbers<[1], [0], [0], [1], [0, 0, 1, 1], [], []>} : vector<24x128xbf16>, vector<128x128xbf16>, vector<24x128xf32> -> vector<24x128xf32>
    %138 = arith.addf %132, %137 : vector<24x128xf32>
    %c0_161 = arith.constant 0 : index
    %c0_162 = arith.constant 0 : index
    %c8_163 = arith.constant 8 : index
    %c0_164 = arith.constant 0 : index
    %139 = vector.load %arg4[%c0_161, %c0_162, %c8_163, %c0_164] : memref<1x1x42x128xbf16, #tpu.memory_space<vmem>>, vector<1x1x24x128xbf16>
    %140 = vector.shape_cast %139 : vector<1x1x24x128xbf16> to vector<24x128xbf16>
    %c23 = arith.constant 23 : index
    %c0_165 = arith.constant 0 : index
    %c0_166 = arith.constant 0 : index
    %141 = vector.load %arg5[%c23, %c0_165, %c0_166] : memref<27x128x128xbf16, #tpu.memory_space<vmem>>, vector<1x128x128xbf16>
    %142 = vector.shape_cast %141 : vector<1x128x128xbf16> to vector<128x128xbf16>
    %cst_167 = arith.constant dense<0.000000e+00> : vector<24x128xf32>
    %143 = tpu.matmul %140, %142, %cst_167 {dimension_numbers = #tpu.dot_dimension_numbers<[1], [0], [0], [1], [0, 0, 1, 1], [], []>} : vector<24x128xbf16>, vector<128x128xbf16>, vector<24x128xf32> -> vector<24x128xf32>
    %144 = arith.addf %138, %143 : vector<24x128xf32>
    %c0_168 = arith.constant 0 : index
    %c0_169 = arith.constant 0 : index
    %c12_170 = arith.constant 12 : index
    %c0_171 = arith.constant 0 : index
    %145 = vector.load %arg4[%c0_168, %c0_169, %c12_170, %c0_171] : memref<1x1x42x128xbf16, #tpu.memory_space<vmem>>, vector<1x1x24x128xbf16>
    %146 = vector.shape_cast %145 : vector<1x1x24x128xbf16> to vector<24x128xbf16>
    %c24 = arith.constant 24 : index
    %c0_172 = arith.constant 0 : index
    %c0_173 = arith.constant 0 : index
    %147 = vector.load %arg5[%c24, %c0_172, %c0_173] : memref<27x128x128xbf16, #tpu.memory_space<vmem>>, vector<1x128x128xbf16>
    %148 = vector.shape_cast %147 : vector<1x128x128xbf16> to vector<128x128xbf16>
    %cst_174 = arith.constant dense<0.000000e+00> : vector<24x128xf32>
    %149 = tpu.matmul %146, %148, %cst_174 {dimension_numbers = #tpu.dot_dimension_numbers<[1], [0], [0], [1], [0, 0, 1, 1], [], []>} : vector<24x128xbf16>, vector<128x128xbf16>, vector<24x128xf32> -> vector<24x128xf32>
    %150 = arith.addf %144, %149 : vector<24x128xf32>
    %c0_175 = arith.constant 0 : index
    %c0_176 = arith.constant 0 : index
    %c13_177 = arith.constant 13 : index
    %c0_178 = arith.constant 0 : index
    %151 = vector.load %arg4[%c0_175, %c0_176, %c13_177, %c0_178] : memref<1x1x42x128xbf16, #tpu.memory_space<vmem>>, vector<1x1x24x128xbf16>
    %152 = vector.shape_cast %151 : vector<1x1x24x128xbf16> to vector<24x128xbf16>
    %c25 = arith.constant 25 : index
    %c0_179 = arith.constant 0 : index
    %c0_180 = arith.constant 0 : index
    %153 = vector.load %arg5[%c25, %c0_179, %c0_180] : memref<27x128x128xbf16, #tpu.memory_space<vmem>>, vector<1x128x128xbf16>
    %154 = vector.shape_cast %153 : vector<1x128x128xbf16> to vector<128x128xbf16>
    %cst_181 = arith.constant dense<0.000000e+00> : vector<24x128xf32>
    %155 = tpu.matmul %152, %154, %cst_181 {dimension_numbers = #tpu.dot_dimension_numbers<[1], [0], [0], [1], [0, 0, 1, 1], [], []>} : vector<24x128xbf16>, vector<128x128xbf16>, vector<24x128xf32> -> vector<24x128xf32>
    %156 = arith.addf %150, %155 : vector<24x128xf32>
    %c0_182 = arith.constant 0 : index
    %c0_183 = arith.constant 0 : index
    %c14_184 = arith.constant 14 : index
    %c0_185 = arith.constant 0 : index
    %157 = vector.load %arg4[%c0_182, %c0_183, %c14_184, %c0_185] : memref<1x1x42x128xbf16, #tpu.memory_space<vmem>>, vector<1x1x24x128xbf16>
    %158 = vector.shape_cast %157 : vector<1x1x24x128xbf16> to vector<24x128xbf16>
    %c26 = arith.constant 26 : index
    %c0_186 = arith.constant 0 : index
    %c0_187 = arith.constant 0 : index
    %159 = vector.load %arg5[%c26, %c0_186, %c0_187] : memref<27x128x128xbf16, #tpu.memory_space<vmem>>, vector<1x128x128xbf16>
    %160 = vector.shape_cast %159 : vector<1x128x128xbf16> to vector<128x128xbf16>
    %cst_188 = arith.constant dense<0.000000e+00> : vector<24x128xf32>
    %161 = tpu.matmul %158, %160, %cst_188 {dimension_numbers = #tpu.dot_dimension_numbers<[1], [0], [0], [1], [0, 0, 1, 1], [], []>} : vector<24x128xbf16>, vector<128x128xbf16>, vector<24x128xf32> -> vector<24x128xf32>
    %162 = arith.addf %156, %161 : vector<24x128xf32>
    %c0_189 = arith.constant 0 : index
    %c0_190 = arith.constant 0 : index
    %163 = vector.load %arg6[%c0_189, %c0_190] : memref<1x128xf32, #tpu.memory_space<vmem>>, vector<1x128xf32>
    %164 = vector.broadcast %163 : vector<1x128xf32> to vector<24x128xf32>
    %165 = arith.addf %162, %164 : vector<24x128xf32>
    %cst_191 = arith.constant 0.000000e+00 : f32
    %166 = vector.broadcast %cst_191 : f32 to vector<24x128xf32>
    %167 = arith.maximumf %165, %166 : vector<24x128xf32>
    %168 = arith.truncf %167 : vector<24x128xf32> to vector<24x128xbf16>
    %169 = vector.shape_cast %168 : vector<24x128xbf16> to vector<4x6x128xbf16>
    %170 = vector.extract_strided_slice %169 {offsets = [0, 0, 0], sizes = [4, 4, 128], strides = [1, 1, 1]} : vector<4x6x128xbf16> to vector<4x4x128xbf16>
    %171 = vector.shape_cast %170 : vector<4x4x128xbf16> to vector<1x1x4x4x128xbf16>
    %c0_192 = arith.constant 0 : index
    %c0_193 = arith.constant 0 : index
    %c0_194 = arith.constant 0 : index
    %c0_195 = arith.constant 0 : index
    %c0_196 = arith.constant 0 : index
    %172 = vector.load %arg7[%c0_192, %c0_193, %c0_194, %c0_195, %c0_196] : memref<1x1x4x4x128xbf16, #tpu.memory_space<vmem>>, vector<1x1x4x4x128xbf16>
    tpu.vector_store %arg7[%c0_192, %c0_193, %c0_194, %c0_195, %c0_196], %171 {strides = array<i32>} : memref<1x1x4x4x128xbf16, #tpu.memory_space<vmem>>, vector<1x1x4x4x128xbf16>,
    return
  }
  func.func @transform_0(%arg0: i32, %arg1: i32) -> (i32, i32, i32, i32) {
    %c0_i32 = arith.constant 0 : i32
    %0 = arith.addi %arg1, %c0_i32 : i32
    %c0_i32_0 = arith.constant 0 : i32
    %c0_i32_1 = arith.constant 0 : i32
    %c0_i32_2 = arith.constant 0 : i32
    return %arg0, %0, %c0_i32_0, %c0_i32_1 : i32, i32, i32, i32
  }
  func.func @transform_1(%arg0: i32, %arg1: i32) -> (i32, i32, i32, i32) {
    %c1_i32 = arith.constant 1 : i32
    %0 = arith.addi %arg1, %c1_i32 : i32
    %c0_i32 = arith.constant 0 : i32
    %c0_i32_0 = arith.constant 0 : i32
    %c0_i32_1 = arith.constant 0 : i32
    return %arg0, %0, %c0_i32, %c0_i32_0 : i32, i32, i32, i32
  }
  func.func @transform_2(%arg0: i32, %arg1: i32) -> (i32, i32, i32, i32) {
    %c2_i32 = arith.constant 2 : i32
    %0 = arith.addi %arg1, %c2_i32 : i32
    %c0_i32 = arith.constant 0 : i32
    %c0_i32_0 = arith.constant 0 : i32
    %c0_i32_1 = arith.constant 0 : i32
    return %arg0, %0, %c0_i32, %c0_i32_0 : i32, i32, i32, i32
  }
  func.func @transform_3(%arg0: i32, %arg1: i32) -> (i32, i32, i32) {
    %c0_i32 = arith.constant 0 : i32
    %c0_i32_0 = arith.constant 0 : i32
    %c0_i32_1 = arith.constant 0 : i32
    %c0_i32_2 = arith.constant 0 : i32
    return %c0_i32, %c0_i32_0, %c0_i32_1 : i32, i32, i32
  }
  func.func @transform_4(%arg0: i32, %arg1: i32) -> (i32, i32) {
    %c0_i32 = arith.constant 0 : i32
    %c0_i32_0 = arith.constant 0 : i32
    %c0_i32_1 = arith.constant 0 : i32
    return %c0_i32, %c0_i32_0 : i32, i32
  }
  func.func @transform_5(%arg0: i32, %arg1: i32) -> (i32, i32, i32, i32, i32) {
    %c0_i32 = arith.constant 0 : i32
    %c0_i32_0 = arith.constant 0 : i32
    %c0_i32_1 = arith.constant 0 : i32
    %c0_i32_2 = arith.constant 0 : i32
    return %arg0, %arg1, %c0_i32, %c0_i32_0, %c0_i32_1 : i32, i32, i32, i32, i32
  }
}

module attributes {stable_mosaic.version = 11 : i64} {
  func.func @_downsample_kernel(%arg0: i32, %arg1: i32, %arg2: memref<1x1x4x4x128xbf16, #tpu.memory_space<vmem>>, %arg3: memref<128x128xbf16, #tpu.memory_space<vmem>>, %arg4: memref<1x128xf32, #tpu.memory_space<vmem>>, %arg5: memref<1x1x2x2x128xbf16, #tpu.memory_space<vmem>>) attributes {dimension_semantics = [#tpu.dimension_semantics<parallel>, #tpu.dimension_semantics<parallel>], iteration_bounds = array<i64: 2, 2>, scalar_prefetch = 0 : i64, scratch_operands = 0 : i64, tpu.core_type = #tpu.core_type<tc>, window_params = [{transform_indices = @transform_0, window_bounds = array<i64: 1, 1, 4, 4, 128>}, {pipeline_mode = #tpu.pipeline_mode<synchronous>, transform_indices = @transform_1, window_bounds = array<i64: 128, 128>}, {pipeline_mode = #tpu.pipeline_mode<synchronous>, transform_indices = @transform_2, window_bounds = array<i64: 1, 128>}, {transform_indices = @transform_3, window_bounds = array<i64: 1, 1, 2, 2, 128>}]} {
    %c0 = arith.constant 0 : index
    %c0_0 = arith.constant 0 : index
    %c0_1 = arith.constant 0 : index
    %c0_2 = arith.constant 0 : index
    %c0_3 = arith.constant 0 : index
    %0 = vector.load %arg2[%c0, %c0_0, %c0_1, %c0_2, %c0_3] : memref<1x1x4x4x128xbf16, #tpu.memory_space<vmem>>, vector<1x1x4x4x128xbf16>
    %1 = vector.shape_cast %0 : vector<1x1x4x4x128xbf16> to vector<4x4x128xbf16>
    %2 = vector.shape_cast %1 : vector<4x4x128xbf16> to vector<2x2x2x2x128xbf16>
    %3 = vector.extract_strided_slice %2 {offsets = [0, 0, 0, 0, 0], sizes = [2, 1, 2, 1, 128], strides = [1, 1, 1, 1, 1]} : vector<2x2x2x2x128xbf16> to vector<2x1x2x1x128xbf16>
    %4 = vector.shape_cast %3 : vector<2x1x2x1x128xbf16> to vector<2x2x128xbf16>
    %5 = vector.shape_cast %4 : vector<2x2x128xbf16> to vector<4x128xbf16>
    %c0_4 = arith.constant 0 : index
    %c0_5 = arith.constant 0 : index
    %6 = vector.load %arg3[%c0_4, %c0_5] : memref<128x128xbf16, #tpu.memory_space<vmem>>, vector<128x128xbf16>
    %cst = arith.constant dense<0.000000e+00> : vector<4x128xf32>
    %7 = tpu.matmul %5, %6, %cst {dimension_numbers = #tpu.dot_dimension_numbers<[1], [0], [0], [1], [0, 0, 1, 1], [], []>} : vector<4x128xbf16>, vector<128x128xbf16>, vector<4x128xf32> -> vector<4x128xf32>
    %c0_6 = arith.constant 0 : index
    %c0_7 = arith.constant 0 : index
    %8 = vector.load %arg4[%c0_6, %c0_7] : memref<1x128xf32, #tpu.memory_space<vmem>>, vector<1x128xf32>
    %9 = vector.broadcast %8 : vector<1x128xf32> to vector<4x128xf32>
    %10 = arith.addf %7, %9 : vector<4x128xf32>
    %11 = vector.shape_cast %10 : vector<4x128xf32> to vector<1x1x2x2x128xf32>
    %12 = arith.truncf %11 : vector<1x1x2x2x128xf32> to vector<1x1x2x2x128xbf16>
    %c0_8 = arith.constant 0 : index
    %c0_9 = arith.constant 0 : index
    %c0_10 = arith.constant 0 : index
    %c0_11 = arith.constant 0 : index
    %c0_12 = arith.constant 0 : index
    %13 = vector.load %arg5[%c0_8, %c0_9, %c0_10, %c0_11, %c0_12] : memref<1x1x2x2x128xbf16, #tpu.memory_space<vmem>>, vector<1x1x2x2x128xbf16>
    tpu.vector_store %arg5[%c0_8, %c0_9, %c0_10, %c0_11, %c0_12], %12 {strides = array<i32>} : memref<1x1x2x2x128xbf16, #tpu.memory_space<vmem>>, vector<1x1x2x2x128xbf16>,
    return
  }
  func.func @transform_0(%arg0: i32, %arg1: i32) -> (i32, i32, i32, i32, i32) {
    %c2_i32 = arith.constant 2 : i32
    %0 = arith.muli %arg1, %c2_i32 : i32
    %c0_i32 = arith.constant 0 : i32
    %c0_i32_0 = arith.constant 0 : i32
    %c0_i32_1 = arith.constant 0 : i32
    %c0_i32_2 = arith.constant 0 : i32
    return %arg0, %0, %c0_i32, %c0_i32_0, %c0_i32_1 : i32, i32, i32, i32, i32
  }
  func.func @transform_1(%arg0: i32, %arg1: i32) -> (i32, i32) {
    %c0_i32 = arith.constant 0 : i32
    %c0_i32_0 = arith.constant 0 : i32
    %c0_i32_1 = arith.constant 0 : i32
    return %c0_i32, %c0_i32_0 : i32, i32
  }
  func.func @transform_2(%arg0: i32, %arg1: i32) -> (i32, i32) {
    %c0_i32 = arith.constant 0 : i32
    %c0_i32_0 = arith.constant 0 : i32
    %c0_i32_1 = arith.constant 0 : i32
    return %c0_i32, %c0_i32_0 : i32, i32
  }
  func.func @transform_3(%arg0: i32, %arg1: i32) -> (i32, i32, i32, i32, i32) {
    %c0_i32 = arith.constant 0 : i32
    %c0_i32_0 = arith.constant 0 : i32
    %c0_i32_1 = arith.constant 0 : i32
    %c0_i32_2 = arith.constant 0 : i32
    return %arg0, %arg1, %c0_i32, %c0_i32_0, %c0_i32_1 : i32, i32, i32, i32, i32
  }
}

module attributes {stable_mosaic.version = 11 : i64} {
  func.func @_downsample_kernel(%arg0: i32, %arg1: i32, %arg2: memref<1x1x2x2x128xbf16, #tpu.memory_space<vmem>>, %arg3: memref<128x128xbf16, #tpu.memory_space<vmem>>, %arg4: memref<1x128xf32, #tpu.memory_space<vmem>>, %arg5: memref<1x1x1x1x128xbf16, #tpu.memory_space<vmem>>) attributes {dimension_semantics = [#tpu.dimension_semantics<parallel>, #tpu.dimension_semantics<parallel>], iteration_bounds = array<i64: 2, 1>, scalar_prefetch = 0 : i64, scratch_operands = 0 : i64, tpu.core_type = #tpu.core_type<tc>, window_params = [{transform_indices = @transform_0, window_bounds = array<i64: 1, 1, 2, 2, 128>}, {pipeline_mode = #tpu.pipeline_mode<synchronous>, transform_indices = @transform_1, window_bounds = array<i64: 128, 128>}, {pipeline_mode = #tpu.pipeline_mode<synchronous>, transform_indices = @transform_2, window_bounds = array<i64: 1, 128>}, {transform_indices = @transform_3, window_bounds = array<i64: 1, 1, 1, 1, 128>}]} {
    %c0 = arith.constant 0 : index
    %c0_0 = arith.constant 0 : index
    %c0_1 = arith.constant 0 : index
    %c0_2 = arith.constant 0 : index
    %c0_3 = arith.constant 0 : index
    %0 = vector.load %arg2[%c0, %c0_0, %c0_1, %c0_2, %c0_3] : memref<1x1x2x2x128xbf16, #tpu.memory_space<vmem>>, vector<1x1x2x2x128xbf16>
    %1 = vector.shape_cast %0 : vector<1x1x2x2x128xbf16> to vector<2x2x128xbf16>
    %2 = vector.shape_cast %1 : vector<2x2x128xbf16> to vector<1x2x1x2x128xbf16>
    %3 = vector.extract_strided_slice %2 {offsets = [0, 0, 0, 0, 0], sizes = [1, 1, 1, 1, 128], strides = [1, 1, 1, 1, 1]} : vector<1x2x1x2x128xbf16> to vector<1x1x1x1x128xbf16>
    %4 = vector.shape_cast %3 : vector<1x1x1x1x128xbf16> to vector<1x1x128xbf16>
    %5 = vector.shape_cast %4 : vector<1x1x128xbf16> to vector<1x128xbf16>
    %c0_4 = arith.constant 0 : index
    %c0_5 = arith.constant 0 : index
    %6 = vector.load %arg3[%c0_4, %c0_5] : memref<128x128xbf16, #tpu.memory_space<vmem>>, vector<128x128xbf16>
    %cst = arith.constant dense<0.000000e+00> : vector<1x128xf32>
    %7 = tpu.matmul %5, %6, %cst {dimension_numbers = #tpu.dot_dimension_numbers<[1], [0], [0], [1], [0, 0, 1, 1], [], []>} : vector<1x128xbf16>, vector<128x128xbf16>, vector<1x128xf32> -> vector<1x128xf32>
    %c0_6 = arith.constant 0 : index
    %c0_7 = arith.constant 0 : index
    %8 = vector.load %arg4[%c0_6, %c0_7] : memref<1x128xf32, #tpu.memory_space<vmem>>, vector<1x128xf32>
    %9 = arith.addf %7, %8 : vector<1x128xf32>
    %10 = vector.shape_cast %9 : vector<1x128xf32> to vector<1x1x1x1x128xf32>
    %11 = arith.truncf %10 : vector<1x1x1x1x128xf32> to vector<1x1x1x1x128xbf16>
    %c0_8 = arith.constant 0 : index
    %c0_9 = arith.constant 0 : index
    %c0_10 = arith.constant 0 : index
    %c0_11 = arith.constant 0 : index
    %c0_12 = arith.constant 0 : index
    %12 = vector.load %arg5[%c0_8, %c0_9, %c0_10, %c0_11, %c0_12] : memref<1x1x1x1x128xbf16, #tpu.memory_space<vmem>>, vector<1x1x1x1x128xbf16>
    tpu.vector_store %arg5[%c0_8, %c0_9, %c0_10, %c0_11, %c0_12], %11 {strides = array<i32>} : memref<1x1x1x1x128xbf16, #tpu.memory_space<vmem>>, vector<1x1x1x1x128xbf16>,
    return
  }
  func.func @transform_0(%arg0: i32, %arg1: i32) -> (i32, i32, i32, i32, i32) {
    %c2_i32 = arith.constant 2 : i32
    %0 = arith.muli %arg1, %c2_i32 : i32
    %c0_i32 = arith.constant 0 : i32
    %c0_i32_0 = arith.constant 0 : i32
    %c0_i32_1 = arith.constant 0 : i32
    %c0_i32_2 = arith.constant 0 : i32
    return %arg0, %0, %c0_i32, %c0_i32_0, %c0_i32_1 : i32, i32, i32, i32, i32
  }
  func.func @transform_1(%arg0: i32, %arg1: i32) -> (i32, i32) {
    %c0_i32 = arith.constant 0 : i32
    %c0_i32_0 = arith.constant 0 : i32
    %c0_i32_1 = arith.constant 0 : i32
    return %c0_i32, %c0_i32_0 : i32, i32
  }
  func.func @transform_2(%arg0: i32, %arg1: i32) -> (i32, i32) {
    %c0_i32 = arith.constant 0 : i32
    %c0_i32_0 = arith.constant 0 : i32
    %c0_i32_1 = arith.constant 0 : i32
    return %c0_i32, %c0_i32_0 : i32, i32
  }
  func.func @transform_3(%arg0: i32, %arg1: i32) -> (i32, i32, i32, i32, i32) {
    %c0_i32 = arith.constant 0 : i32
    %c0_i32_0 = arith.constant 0 : i32
    %c0_i32_1 = arith.constant 0 : i32
    %c0_i32_2 = arith.constant 0 : i32
    return %arg0, %arg1, %c0_i32, %c0_i32_0, %c0_i32_1 : i32, i32, i32, i32, i32
  }
}

module attributes {stable_mosaic.version = 11 : i64} {
  func.func @_conv3d_relu_kernel(%arg0: i32, %arg1: i32, %arg2: memref<1x1x20x128xbf16, #tpu.memory_space<vmem>>, %arg3: memref<1x1x20x128xbf16, #tpu.memory_space<vmem>>, %arg4: memref<1x1x20x128xbf16, #tpu.memory_space<vmem>>, %arg5: memref<27x128x128xbf16, #tpu.memory_space<vmem>>, %arg6: memref<1x128xf32, #tpu.memory_space<vmem>>, %arg7: memref<1x1x2x2x128xbf16, #tpu.memory_space<vmem>>) attributes {dimension_semantics = [#tpu.dimension_semantics<parallel>, #tpu.dimension_semantics<parallel>], iteration_bounds = array<i64: 2, 2>, scalar_prefetch = 0 : i64, scratch_operands = 0 : i64, tpu.core_type = #tpu.core_type<tc>, window_params = [{transform_indices = @transform_0, window_bounds = array<i64: 1, 1, 20, 128>}, {transform_indices = @transform_1, window_bounds = array<i64: 1, 1, 20, 128>}, {transform_indices = @transform_2, window_bounds = array<i64: 1, 1, 20, 128>}, {pipeline_mode = #tpu.pipeline_mode<synchronous>, transform_indices = @transform_3, window_bounds = array<i64: 27, 128, 128>}, {pipeline_mode = #tpu.pipeline_mode<synchronous>, transform_indices = @transform_4, window_bounds = array<i64: 1, 128>}, {transform_indices = @transform_5, window_bounds = array<i64: 1, 1, 2, 2, 128>}]} {
    %cst = arith.constant 0.000000e+00 : f32
    %0 = vector.broadcast %cst : f32 to vector<8x128xf32>
    %c0 = arith.constant 0 : index
    %c0_0 = arith.constant 0 : index
    %c0_1 = arith.constant 0 : index
    %c0_2 = arith.constant 0 : index
    %1 = vector.load %arg2[%c0, %c0_0, %c0_1, %c0_2] : memref<1x1x20x128xbf16, #tpu.memory_space<vmem>>, vector<1x1x8x128xbf16>
    %2 = vector.shape_cast %1 : vector<1x1x8x128xbf16> to vector<8x128xbf16>
    %c0_3 = arith.constant 0 : index
    %c0_4 = arith.constant 0 : index
    %c0_5 = arith.constant 0 : index
    %3 = vector.load %arg5[%c0_3, %c0_4, %c0_5] : memref<27x128x128xbf16, #tpu.memory_space<vmem>>, vector<1x128x128xbf16>
    %4 = vector.shape_cast %3 : vector<1x128x128xbf16> to vector<128x128xbf16>
    %cst_6 = arith.constant dense<0.000000e+00> : vector<8x128xf32>
    %5 = tpu.matmul %2, %4, %cst_6 {dimension_numbers = #tpu.dot_dimension_numbers<[1], [0], [0], [1], [0, 0, 1, 1], [], []>} : vector<8x128xbf16>, vector<128x128xbf16>, vector<8x128xf32> -> vector<8x128xf32>
    %6 = arith.addf %0, %5 : vector<8x128xf32>
    %c0_7 = arith.constant 0 : index
    %c0_8 = arith.constant 0 : index
    %c1 = arith.constant 1 : index
    %c0_9 = arith.constant 0 : index
    %7 = vector.load %arg2[%c0_7, %c0_8, %c1, %c0_9] : memref<1x1x20x128xbf16, #tpu.memory_space<vmem>>, vector<1x1x8x128xbf16>
    %8 = vector.shape_cast %7 : vector<1x1x8x128xbf16> to vector<8x128xbf16>
    %c1_10 = arith.constant 1 : index
    %c0_11 = arith.constant 0 : index
    %c0_12 = arith.constant 0 : index
    %9 = vector.load %arg5[%c1_10, %c0_11, %c0_12] : memref<27x128x128xbf16, #tpu.memory_space<vmem>>, vector<1x128x128xbf16>
    %10 = vector.shape_cast %9 : vector<1x128x128xbf16> to vector<128x128xbf16>
    %cst_13 = arith.constant dense<0.000000e+00> : vector<8x128xf32>
    %11 = tpu.matmul %8, %10, %cst_13 {dimension_numbers = #tpu.dot_dimension_numbers<[1], [0], [0], [1], [0, 0, 1, 1], [], []>} : vector<8x128xbf16>, vector<128x128xbf16>, vector<8x128xf32> -> vector<8x128xf32>
    %12 = arith.addf %6, %11 : vector<8x128xf32>
    %c0_14 = arith.constant 0 : index
    %c0_15 = arith.constant 0 : index
    %c2 = arith.constant 2 : index
    %c0_16 = arith.constant 0 : index
    %13 = vector.load %arg2[%c0_14, %c0_15, %c2, %c0_16] : memref<1x1x20x128xbf16, #tpu.memory_space<vmem>>, vector<1x1x8x128xbf16>
    %14 = vector.shape_cast %13 : vector<1x1x8x128xbf16> to vector<8x128xbf16>
    %c2_17 = arith.constant 2 : index
    %c0_18 = arith.constant 0 : index
    %c0_19 = arith.constant 0 : index
    %15 = vector.load %arg5[%c2_17, %c0_18, %c0_19] : memref<27x128x128xbf16, #tpu.memory_space<vmem>>, vector<1x128x128xbf16>
    %16 = vector.shape_cast %15 : vector<1x128x128xbf16> to vector<128x128xbf16>
    %cst_20 = arith.constant dense<0.000000e+00> : vector<8x128xf32>
    %17 = tpu.matmul %14, %16, %cst_20 {dimension_numbers = #tpu.dot_dimension_numbers<[1], [0], [0], [1], [0, 0, 1, 1], [], []>} : vector<8x128xbf16>, vector<128x128xbf16>, vector<8x128xf32> -> vector<8x128xf32>
    %18 = arith.addf %12, %17 : vector<8x128xf32>
    %c0_21 = arith.constant 0 : index
    %c0_22 = arith.constant 0 : index
    %c4 = arith.constant 4 : index
    %c0_23 = arith.constant 0 : index
    %19 = vector.load %arg2[%c0_21, %c0_22, %c4, %c0_23] : memref<1x1x20x128xbf16, #tpu.memory_space<vmem>>, vector<1x1x8x128xbf16>
    %20 = vector.shape_cast %19 : vector<1x1x8x128xbf16> to vector<8x128xbf16>
    %c3 = arith.constant 3 : index
    %c0_24 = arith.constant 0 : index
    %c0_25 = arith.constant 0 : index
    %21 = vector.load %arg5[%c3, %c0_24, %c0_25] : memref<27x128x128xbf16, #tpu.memory_space<vmem>>, vector<1x128x128xbf16>
    %22 = vector.shape_cast %21 : vector<1x128x128xbf16> to vector<128x128xbf16>
    %cst_26 = arith.constant dense<0.000000e+00> : vector<8x128xf32>
    %23 = tpu.matmul %20, %22, %cst_26 {dimension_numbers = #tpu.dot_dimension_numbers<[1], [0], [0], [1], [0, 0, 1, 1], [], []>} : vector<8x128xbf16>, vector<128x128xbf16>, vector<8x128xf32> -> vector<8x128xf32>
    %24 = arith.addf %18, %23 : vector<8x128xf32>
    %c0_27 = arith.constant 0 : index
    %c0_28 = arith.constant 0 : index
    %c5 = arith.constant 5 : index
    %c0_29 = arith.constant 0 : index
    %25 = vector.load %arg2[%c0_27, %c0_28, %c5, %c0_29] : memref<1x1x20x128xbf16, #tpu.memory_space<vmem>>, vector<1x1x8x128xbf16>
    %26 = vector.shape_cast %25 : vector<1x1x8x128xbf16> to vector<8x128xbf16>
    %c4_30 = arith.constant 4 : index
    %c0_31 = arith.constant 0 : index
    %c0_32 = arith.constant 0 : index
    %27 = vector.load %arg5[%c4_30, %c0_31, %c0_32] : memref<27x128x128xbf16, #tpu.memory_space<vmem>>, vector<1x128x128xbf16>
    %28 = vector.shape_cast %27 : vector<1x128x128xbf16> to vector<128x128xbf16>
    %cst_33 = arith.constant dense<0.000000e+00> : vector<8x128xf32>
    %29 = tpu.matmul %26, %28, %cst_33 {dimension_numbers = #tpu.dot_dimension_numbers<[1], [0], [0], [1], [0, 0, 1, 1], [], []>} : vector<8x128xbf16>, vector<128x128xbf16>, vector<8x128xf32> -> vector<8x128xf32>
    %30 = arith.addf %24, %29 : vector<8x128xf32>
    %c0_34 = arith.constant 0 : index
    %c0_35 = arith.constant 0 : index
    %c6 = arith.constant 6 : index
    %c0_36 = arith.constant 0 : index
    %31 = vector.load %arg2[%c0_34, %c0_35, %c6, %c0_36] : memref<1x1x20x128xbf16, #tpu.memory_space<vmem>>, vector<1x1x8x128xbf16>
    %32 = vector.shape_cast %31 : vector<1x1x8x128xbf16> to vector<8x128xbf16>
    %c5_37 = arith.constant 5 : index
    %c0_38 = arith.constant 0 : index
    %c0_39 = arith.constant 0 : index
    %33 = vector.load %arg5[%c5_37, %c0_38, %c0_39] : memref<27x128x128xbf16, #tpu.memory_space<vmem>>, vector<1x128x128xbf16>
    %34 = vector.shape_cast %33 : vector<1x128x128xbf16> to vector<128x128xbf16>
    %cst_40 = arith.constant dense<0.000000e+00> : vector<8x128xf32>
    %35 = tpu.matmul %32, %34, %cst_40 {dimension_numbers = #tpu.dot_dimension_numbers<[1], [0], [0], [1], [0, 0, 1, 1], [], []>} : vector<8x128xbf16>, vector<128x128xbf16>, vector<8x128xf32> -> vector<8x128xf32>
    %36 = arith.addf %30, %35 : vector<8x128xf32>
    %c0_41 = arith.constant 0 : index
    %c0_42 = arith.constant 0 : index
    %c8 = arith.constant 8 : index
    %c0_43 = arith.constant 0 : index
    %37 = vector.load %arg2[%c0_41, %c0_42, %c8, %c0_43] : memref<1x1x20x128xbf16, #tpu.memory_space<vmem>>, vector<1x1x8x128xbf16>
    %38 = vector.shape_cast %37 : vector<1x1x8x128xbf16> to vector<8x128xbf16>
    %c6_44 = arith.constant 6 : index
    %c0_45 = arith.constant 0 : index
    %c0_46 = arith.constant 0 : index
    %39 = vector.load %arg5[%c6_44, %c0_45, %c0_46] : memref<27x128x128xbf16, #tpu.memory_space<vmem>>, vector<1x128x128xbf16>
    %40 = vector.shape_cast %39 : vector<1x128x128xbf16> to vector<128x128xbf16>
    %cst_47 = arith.constant dense<0.000000e+00> : vector<8x128xf32>
    %41 = tpu.matmul %38, %40, %cst_47 {dimension_numbers = #tpu.dot_dimension_numbers<[1], [0], [0], [1], [0, 0, 1, 1], [], []>} : vector<8x128xbf16>, vector<128x128xbf16>, vector<8x128xf32> -> vector<8x128xf32>
    %42 = arith.addf %36, %41 : vector<8x128xf32>
    %c0_48 = arith.constant 0 : index
    %c0_49 = arith.constant 0 : index
    %c9 = arith.constant 9 : index
    %c0_50 = arith.constant 0 : index
    %43 = vector.load %arg2[%c0_48, %c0_49, %c9, %c0_50] : memref<1x1x20x128xbf16, #tpu.memory_space<vmem>>, vector<1x1x8x128xbf16>
    %44 = vector.shape_cast %43 : vector<1x1x8x128xbf16> to vector<8x128xbf16>
    %c7 = arith.constant 7 : index
    %c0_51 = arith.constant 0 : index
    %c0_52 = arith.constant 0 : index
    %45 = vector.load %arg5[%c7, %c0_51, %c0_52] : memref<27x128x128xbf16, #tpu.memory_space<vmem>>, vector<1x128x128xbf16>
    %46 = vector.shape_cast %45 : vector<1x128x128xbf16> to vector<128x128xbf16>
    %cst_53 = arith.constant dense<0.000000e+00> : vector<8x128xf32>
    %47 = tpu.matmul %44, %46, %cst_53 {dimension_numbers = #tpu.dot_dimension_numbers<[1], [0], [0], [1], [0, 0, 1, 1], [], []>} : vector<8x128xbf16>, vector<128x128xbf16>, vector<8x128xf32> -> vector<8x128xf32>
    %48 = arith.addf %42, %47 : vector<8x128xf32>
    %c0_54 = arith.constant 0 : index
    %c0_55 = arith.constant 0 : index
    %c10 = arith.constant 10 : index
    %c0_56 = arith.constant 0 : index
    %49 = vector.load %arg2[%c0_54, %c0_55, %c10, %c0_56] : memref<1x1x20x128xbf16, #tpu.memory_space<vmem>>, vector<1x1x8x128xbf16>
    %50 = vector.shape_cast %49 : vector<1x1x8x128xbf16> to vector<8x128xbf16>
    %c8_57 = arith.constant 8 : index
    %c0_58 = arith.constant 0 : index
    %c0_59 = arith.constant 0 : index
    %51 = vector.load %arg5[%c8_57, %c0_58, %c0_59] : memref<27x128x128xbf16, #tpu.memory_space<vmem>>, vector<1x128x128xbf16>
    %52 = vector.shape_cast %51 : vector<1x128x128xbf16> to vector<128x128xbf16>
    %cst_60 = arith.constant dense<0.000000e+00> : vector<8x128xf32>
    %53 = tpu.matmul %50, %52, %cst_60 {dimension_numbers = #tpu.dot_dimension_numbers<[1], [0], [0], [1], [0, 0, 1, 1], [], []>} : vector<8x128xbf16>, vector<128x128xbf16>, vector<8x128xf32> -> vector<8x128xf32>
    %54 = arith.addf %48, %53 : vector<8x128xf32>
    %c0_61 = arith.constant 0 : index
    %c0_62 = arith.constant 0 : index
    %c0_63 = arith.constant 0 : index
    %c0_64 = arith.constant 0 : index
    %55 = vector.load %arg3[%c0_61, %c0_62, %c0_63, %c0_64] : memref<1x1x20x128xbf16, #tpu.memory_space<vmem>>, vector<1x1x8x128xbf16>
    %56 = vector.shape_cast %55 : vector<1x1x8x128xbf16> to vector<8x128xbf16>
    %c9_65 = arith.constant 9 : index
    %c0_66 = arith.constant 0 : index
    %c0_67 = arith.constant 0 : index
    %57 = vector.load %arg5[%c9_65, %c0_66, %c0_67] : memref<27x128x128xbf16, #tpu.memory_space<vmem>>, vector<1x128x128xbf16>
    %58 = vector.shape_cast %57 : vector<1x128x128xbf16> to vector<128x128xbf16>
    %cst_68 = arith.constant dense<0.000000e+00> : vector<8x128xf32>
    %59 = tpu.matmul %56, %58, %cst_68 {dimension_numbers = #tpu.dot_dimension_numbers<[1], [0], [0], [1], [0, 0, 1, 1], [], []>} : vector<8x128xbf16>, vector<128x128xbf16>, vector<8x128xf32> -> vector<8x128xf32>
    %60 = arith.addf %54, %59 : vector<8x128xf32>
    %c0_69 = arith.constant 0 : index
    %c0_70 = arith.constant 0 : index
    %c1_71 = arith.constant 1 : index
    %c0_72 = arith.constant 0 : index
    %61 = vector.load %arg3[%c0_69, %c0_70, %c1_71, %c0_72] : memref<1x1x20x128xbf16, #tpu.memory_space<vmem>>, vector<1x1x8x128xbf16>
    %62 = vector.shape_cast %61 : vector<1x1x8x128xbf16> to vector<8x128xbf16>
    %c10_73 = arith.constant 10 : index
    %c0_74 = arith.constant 0 : index
    %c0_75 = arith.constant 0 : index
    %63 = vector.load %arg5[%c10_73, %c0_74, %c0_75] : memref<27x128x128xbf16, #tpu.memory_space<vmem>>, vector<1x128x128xbf16>
    %64 = vector.shape_cast %63 : vector<1x128x128xbf16> to vector<128x128xbf16>
    %cst_76 = arith.constant dense<0.000000e+00> : vector<8x128xf32>
    %65 = tpu.matmul %62, %64, %cst_76 {dimension_numbers = #tpu.dot_dimension_numbers<[1], [0], [0], [1], [0, 0, 1, 1], [], []>} : vector<8x128xbf16>, vector<128x128xbf16>, vector<8x128xf32> -> vector<8x128xf32>
    %66 = arith.addf %60, %65 : vector<8x128xf32>
    %c0_77 = arith.constant 0 : index
    %c0_78 = arith.constant 0 : index
    %c2_79 = arith.constant 2 : index
    %c0_80 = arith.constant 0 : index
    %67 = vector.load %arg3[%c0_77, %c0_78, %c2_79, %c0_80] : memref<1x1x20x128xbf16, #tpu.memory_space<vmem>>, vector<1x1x8x128xbf16>
    %68 = vector.shape_cast %67 : vector<1x1x8x128xbf16> to vector<8x128xbf16>
    %c11 = arith.constant 11 : index
    %c0_81 = arith.constant 0 : index
    %c0_82 = arith.constant 0 : index
    %69 = vector.load %arg5[%c11, %c0_81, %c0_82] : memref<27x128x128xbf16, #tpu.memory_space<vmem>>, vector<1x128x128xbf16>
    %70 = vector.shape_cast %69 : vector<1x128x128xbf16> to vector<128x128xbf16>
    %cst_83 = arith.constant dense<0.000000e+00> : vector<8x128xf32>
    %71 = tpu.matmul %68, %70, %cst_83 {dimension_numbers = #tpu.dot_dimension_numbers<[1], [0], [0], [1], [0, 0, 1, 1], [], []>} : vector<8x128xbf16>, vector<128x128xbf16>, vector<8x128xf32> -> vector<8x128xf32>
    %72 = arith.addf %66, %71 : vector<8x128xf32>
    %c0_84 = arith.constant 0 : index
    %c0_85 = arith.constant 0 : index
    %c4_86 = arith.constant 4 : index
    %c0_87 = arith.constant 0 : index
    %73 = vector.load %arg3[%c0_84, %c0_85, %c4_86, %c0_87] : memref<1x1x20x128xbf16, #tpu.memory_space<vmem>>, vector<1x1x8x128xbf16>
    %74 = vector.shape_cast %73 : vector<1x1x8x128xbf16> to vector<8x128xbf16>
    %c12 = arith.constant 12 : index
    %c0_88 = arith.constant 0 : index
    %c0_89 = arith.constant 0 : index
    %75 = vector.load %arg5[%c12, %c0_88, %c0_89] : memref<27x128x128xbf16, #tpu.memory_space<vmem>>, vector<1x128x128xbf16>
    %76 = vector.shape_cast %75 : vector<1x128x128xbf16> to vector<128x128xbf16>
    %cst_90 = arith.constant dense<0.000000e+00> : vector<8x128xf32>
    %77 = tpu.matmul %74, %76, %cst_90 {dimension_numbers = #tpu.dot_dimension_numbers<[1], [0], [0], [1], [0, 0, 1, 1], [], []>} : vector<8x128xbf16>, vector<128x128xbf16>, vector<8x128xf32> -> vector<8x128xf32>
    %78 = arith.addf %72, %77 : vector<8x128xf32>
    %c0_91 = arith.constant 0 : index
    %c0_92 = arith.constant 0 : index
    %c5_93 = arith.constant 5 : index
    %c0_94 = arith.constant 0 : index
    %79 = vector.load %arg3[%c0_91, %c0_92, %c5_93, %c0_94] : memref<1x1x20x128xbf16, #tpu.memory_space<vmem>>, vector<1x1x8x128xbf16>
    %80 = vector.shape_cast %79 : vector<1x1x8x128xbf16> to vector<8x128xbf16>
    %c13 = arith.constant 13 : index
    %c0_95 = arith.constant 0 : index
    %c0_96 = arith.constant 0 : index
    %81 = vector.load %arg5[%c13, %c0_95, %c0_96] : memref<27x128x128xbf16, #tpu.memory_space<vmem>>, vector<1x128x128xbf16>
    %82 = vector.shape_cast %81 : vector<1x128x128xbf16> to vector<128x128xbf16>
    %cst_97 = arith.constant dense<0.000000e+00> : vector<8x128xf32>
    %83 = tpu.matmul %80, %82, %cst_97 {dimension_numbers = #tpu.dot_dimension_numbers<[1], [0], [0], [1], [0, 0, 1, 1], [], []>} : vector<8x128xbf16>, vector<128x128xbf16>, vector<8x128xf32> -> vector<8x128xf32>
    %84 = arith.addf %78, %83 : vector<8x128xf32>
    %c0_98 = arith.constant 0 : index
    %c0_99 = arith.constant 0 : index
    %c6_100 = arith.constant 6 : index
    %c0_101 = arith.constant 0 : index
    %85 = vector.load %arg3[%c0_98, %c0_99, %c6_100, %c0_101] : memref<1x1x20x128xbf16, #tpu.memory_space<vmem>>, vector<1x1x8x128xbf16>
    %86 = vector.shape_cast %85 : vector<1x1x8x128xbf16> to vector<8x128xbf16>
    %c14 = arith.constant 14 : index
    %c0_102 = arith.constant 0 : index
    %c0_103 = arith.constant 0 : index
    %87 = vector.load %arg5[%c14, %c0_102, %c0_103] : memref<27x128x128xbf16, #tpu.memory_space<vmem>>, vector<1x128x128xbf16>
    %88 = vector.shape_cast %87 : vector<1x128x128xbf16> to vector<128x128xbf16>
    %cst_104 = arith.constant dense<0.000000e+00> : vector<8x128xf32>
    %89 = tpu.matmul %86, %88, %cst_104 {dimension_numbers = #tpu.dot_dimension_numbers<[1], [0], [0], [1], [0, 0, 1, 1], [], []>} : vector<8x128xbf16>, vector<128x128xbf16>, vector<8x128xf32> -> vector<8x128xf32>
    %90 = arith.addf %84, %89 : vector<8x128xf32>
    %c0_105 = arith.constant 0 : index
    %c0_106 = arith.constant 0 : index
    %c8_107 = arith.constant 8 : index
    %c0_108 = arith.constant 0 : index
    %91 = vector.load %arg3[%c0_105, %c0_106, %c8_107, %c0_108] : memref<1x1x20x128xbf16, #tpu.memory_space<vmem>>, vector<1x1x8x128xbf16>
    %92 = vector.shape_cast %91 : vector<1x1x8x128xbf16> to vector<8x128xbf16>
    %c15 = arith.constant 15 : index
    %c0_109 = arith.constant 0 : index
    %c0_110 = arith.constant 0 : index
    %93 = vector.load %arg5[%c15, %c0_109, %c0_110] : memref<27x128x128xbf16, #tpu.memory_space<vmem>>, vector<1x128x128xbf16>
    %94 = vector.shape_cast %93 : vector<1x128x128xbf16> to vector<128x128xbf16>
    %cst_111 = arith.constant dense<0.000000e+00> : vector<8x128xf32>
    %95 = tpu.matmul %92, %94, %cst_111 {dimension_numbers = #tpu.dot_dimension_numbers<[1], [0], [0], [1], [0, 0, 1, 1], [], []>} : vector<8x128xbf16>, vector<128x128xbf16>, vector<8x128xf32> -> vector<8x128xf32>
    %96 = arith.addf %90, %95 : vector<8x128xf32>
    %c0_112 = arith.constant 0 : index
    %c0_113 = arith.constant 0 : index
    %c9_114 = arith.constant 9 : index
    %c0_115 = arith.constant 0 : index
    %97 = vector.load %arg3[%c0_112, %c0_113, %c9_114, %c0_115] : memref<1x1x20x128xbf16, #tpu.memory_space<vmem>>, vector<1x1x8x128xbf16>
    %98 = vector.shape_cast %97 : vector<1x1x8x128xbf16> to vector<8x128xbf16>
    %c16 = arith.constant 16 : index
    %c0_116 = arith.constant 0 : index
    %c0_117 = arith.constant 0 : index
    %99 = vector.load %arg5[%c16, %c0_116, %c0_117] : memref<27x128x128xbf16, #tpu.memory_space<vmem>>, vector<1x128x128xbf16>
    %100 = vector.shape_cast %99 : vector<1x128x128xbf16> to vector<128x128xbf16>
    %cst_118 = arith.constant dense<0.000000e+00> : vector<8x128xf32>
    %101 = tpu.matmul %98, %100, %cst_118 {dimension_numbers = #tpu.dot_dimension_numbers<[1], [0], [0], [1], [0, 0, 1, 1], [], []>} : vector<8x128xbf16>, vector<128x128xbf16>, vector<8x128xf32> -> vector<8x128xf32>
    %102 = arith.addf %96, %101 : vector<8x128xf32>
    %c0_119 = arith.constant 0 : index
    %c0_120 = arith.constant 0 : index
    %c10_121 = arith.constant 10 : index
    %c0_122 = arith.constant 0 : index
    %103 = vector.load %arg3[%c0_119, %c0_120, %c10_121, %c0_122] : memref<1x1x20x128xbf16, #tpu.memory_space<vmem>>, vector<1x1x8x128xbf16>
    %104 = vector.shape_cast %103 : vector<1x1x8x128xbf16> to vector<8x128xbf16>
    %c17 = arith.constant 17 : index
    %c0_123 = arith.constant 0 : index
    %c0_124 = arith.constant 0 : index
    %105 = vector.load %arg5[%c17, %c0_123, %c0_124] : memref<27x128x128xbf16, #tpu.memory_space<vmem>>, vector<1x128x128xbf16>
    %106 = vector.shape_cast %105 : vector<1x128x128xbf16> to vector<128x128xbf16>
    %cst_125 = arith.constant dense<0.000000e+00> : vector<8x128xf32>
    %107 = tpu.matmul %104, %106, %cst_125 {dimension_numbers = #tpu.dot_dimension_numbers<[1], [0], [0], [1], [0, 0, 1, 1], [], []>} : vector<8x128xbf16>, vector<128x128xbf16>, vector<8x128xf32> -> vector<8x128xf32>
    %108 = arith.addf %102, %107 : vector<8x128xf32>
    %c0_126 = arith.constant 0 : index
    %c0_127 = arith.constant 0 : index
    %c0_128 = arith.constant 0 : index
    %c0_129 = arith.constant 0 : index
    %109 = vector.load %arg4[%c0_126, %c0_127, %c0_128, %c0_129] : memref<1x1x20x128xbf16, #tpu.memory_space<vmem>>, vector<1x1x8x128xbf16>
    %110 = vector.shape_cast %109 : vector<1x1x8x128xbf16> to vector<8x128xbf16>
    %c18 = arith.constant 18 : index
    %c0_130 = arith.constant 0 : index
    %c0_131 = arith.constant 0 : index
    %111 = vector.load %arg5[%c18, %c0_130, %c0_131] : memref<27x128x128xbf16, #tpu.memory_space<vmem>>, vector<1x128x128xbf16>
    %112 = vector.shape_cast %111 : vector<1x128x128xbf16> to vector<128x128xbf16>
    %cst_132 = arith.constant dense<0.000000e+00> : vector<8x128xf32>
    %113 = tpu.matmul %110, %112, %cst_132 {dimension_numbers = #tpu.dot_dimension_numbers<[1], [0], [0], [1], [0, 0, 1, 1], [], []>} : vector<8x128xbf16>, vector<128x128xbf16>, vector<8x128xf32> -> vector<8x128xf32>
    %114 = arith.addf %108, %113 : vector<8x128xf32>
    %c0_133 = arith.constant 0 : index
    %c0_134 = arith.constant 0 : index
    %c1_135 = arith.constant 1 : index
    %c0_136 = arith.constant 0 : index
    %115 = vector.load %arg4[%c0_133, %c0_134, %c1_135, %c0_136] : memref<1x1x20x128xbf16, #tpu.memory_space<vmem>>, vector<1x1x8x128xbf16>
    %116 = vector.shape_cast %115 : vector<1x1x8x128xbf16> to vector<8x128xbf16>
    %c19 = arith.constant 19 : index
    %c0_137 = arith.constant 0 : index
    %c0_138 = arith.constant 0 : index
    %117 = vector.load %arg5[%c19, %c0_137, %c0_138] : memref<27x128x128xbf16, #tpu.memory_space<vmem>>, vector<1x128x128xbf16>
    %118 = vector.shape_cast %117 : vector<1x128x128xbf16> to vector<128x128xbf16>
    %cst_139 = arith.constant dense<0.000000e+00> : vector<8x128xf32>
    %119 = tpu.matmul %116, %118, %cst_139 {dimension_numbers = #tpu.dot_dimension_numbers<[1], [0], [0], [1], [0, 0, 1, 1], [], []>} : vector<8x128xbf16>, vector<128x128xbf16>, vector<8x128xf32> -> vector<8x128xf32>
    %120 = arith.addf %114, %119 : vector<8x128xf32>
    %c0_140 = arith.constant 0 : index
    %c0_141 = arith.constant 0 : index
    %c2_142 = arith.constant 2 : index
    %c0_143 = arith.constant 0 : index
    %121 = vector.load %arg4[%c0_140, %c0_141, %c2_142, %c0_143] : memref<1x1x20x128xbf16, #tpu.memory_space<vmem>>, vector<1x1x8x128xbf16>
    %122 = vector.shape_cast %121 : vector<1x1x8x128xbf16> to vector<8x128xbf16>
    %c20 = arith.constant 20 : index
    %c0_144 = arith.constant 0 : index
    %c0_145 = arith.constant 0 : index
    %123 = vector.load %arg5[%c20, %c0_144, %c0_145] : memref<27x128x128xbf16, #tpu.memory_space<vmem>>, vector<1x128x128xbf16>
    %124 = vector.shape_cast %123 : vector<1x128x128xbf16> to vector<128x128xbf16>
    %cst_146 = arith.constant dense<0.000000e+00> : vector<8x128xf32>
    %125 = tpu.matmul %122, %124, %cst_146 {dimension_numbers = #tpu.dot_dimension_numbers<[1], [0], [0], [1], [0, 0, 1, 1], [], []>} : vector<8x128xbf16>, vector<128x128xbf16>, vector<8x128xf32> -> vector<8x128xf32>
    %126 = arith.addf %120, %125 : vector<8x128xf32>
    %c0_147 = arith.constant 0 : index
    %c0_148 = arith.constant 0 : index
    %c4_149 = arith.constant 4 : index
    %c0_150 = arith.constant 0 : index
    %127 = vector.load %arg4[%c0_147, %c0_148, %c4_149, %c0_150] : memref<1x1x20x128xbf16, #tpu.memory_space<vmem>>, vector<1x1x8x128xbf16>
    %128 = vector.shape_cast %127 : vector<1x1x8x128xbf16> to vector<8x128xbf16>
    %c21 = arith.constant 21 : index
    %c0_151 = arith.constant 0 : index
    %c0_152 = arith.constant 0 : index
    %129 = vector.load %arg5[%c21, %c0_151, %c0_152] : memref<27x128x128xbf16, #tpu.memory_space<vmem>>, vector<1x128x128xbf16>
    %130 = vector.shape_cast %129 : vector<1x128x128xbf16> to vector<128x128xbf16>
    %cst_153 = arith.constant dense<0.000000e+00> : vector<8x128xf32>
    %131 = tpu.matmul %128, %130, %cst_153 {dimension_numbers = #tpu.dot_dimension_numbers<[1], [0], [0], [1], [0, 0, 1, 1], [], []>} : vector<8x128xbf16>, vector<128x128xbf16>, vector<8x128xf32> -> vector<8x128xf32>
    %132 = arith.addf %126, %131 : vector<8x128xf32>
    %c0_154 = arith.constant 0 : index
    %c0_155 = arith.constant 0 : index
    %c5_156 = arith.constant 5 : index
    %c0_157 = arith.constant 0 : index
    %133 = vector.load %arg4[%c0_154, %c0_155, %c5_156, %c0_157] : memref<1x1x20x128xbf16, #tpu.memory_space<vmem>>, vector<1x1x8x128xbf16>
    %134 = vector.shape_cast %133 : vector<1x1x8x128xbf16> to vector<8x128xbf16>
    %c22 = arith.constant 22 : index
    %c0_158 = arith.constant 0 : index
    %c0_159 = arith.constant 0 : index
    %135 = vector.load %arg5[%c22, %c0_158, %c0_159] : memref<27x128x128xbf16, #tpu.memory_space<vmem>>, vector<1x128x128xbf16>
    %136 = vector.shape_cast %135 : vector<1x128x128xbf16> to vector<128x128xbf16>
    %cst_160 = arith.constant dense<0.000000e+00> : vector<8x128xf32>
    %137 = tpu.matmul %134, %136, %cst_160 {dimension_numbers = #tpu.dot_dimension_numbers<[1], [0], [0], [1], [0, 0, 1, 1], [], []>} : vector<8x128xbf16>, vector<128x128xbf16>, vector<8x128xf32> -> vector<8x128xf32>
    %138 = arith.addf %132, %137 : vector<8x128xf32>
    %c0_161 = arith.constant 0 : index
    %c0_162 = arith.constant 0 : index
    %c6_163 = arith.constant 6 : index
    %c0_164 = arith.constant 0 : index
    %139 = vector.load %arg4[%c0_161, %c0_162, %c6_163, %c0_164] : memref<1x1x20x128xbf16, #tpu.memory_space<vmem>>, vector<1x1x8x128xbf16>
    %140 = vector.shape_cast %139 : vector<1x1x8x128xbf16> to vector<8x128xbf16>
    %c23 = arith.constant 23 : index
    %c0_165 = arith.constant 0 : index
    %c0_166 = arith.constant 0 : index
    %141 = vector.load %arg5[%c23, %c0_165, %c0_166] : memref<27x128x128xbf16, #tpu.memory_space<vmem>>, vector<1x128x128xbf16>
    %142 = vector.shape_cast %141 : vector<1x128x128xbf16> to vector<128x128xbf16>
    %cst_167 = arith.constant dense<0.000000e+00> : vector<8x128xf32>
    %143 = tpu.matmul %140, %142, %cst_167 {dimension_numbers = #tpu.dot_dimension_numbers<[1], [0], [0], [1], [0, 0, 1, 1], [], []>} : vector<8x128xbf16>, vector<128x128xbf16>, vector<8x128xf32> -> vector<8x128xf32>
    %144 = arith.addf %138, %143 : vector<8x128xf32>
    %c0_168 = arith.constant 0 : index
    %c0_169 = arith.constant 0 : index
    %c8_170 = arith.constant 8 : index
    %c0_171 = arith.constant 0 : index
    %145 = vector.load %arg4[%c0_168, %c0_169, %c8_170, %c0_171] : memref<1x1x20x128xbf16, #tpu.memory_space<vmem>>, vector<1x1x8x128xbf16>
    %146 = vector.shape_cast %145 : vector<1x1x8x128xbf16> to vector<8x128xbf16>
    %c24 = arith.constant 24 : index
    %c0_172 = arith.constant 0 : index
    %c0_173 = arith.constant 0 : index
    %147 = vector.load %arg5[%c24, %c0_172, %c0_173] : memref<27x128x128xbf16, #tpu.memory_space<vmem>>, vector<1x128x128xbf16>
    %148 = vector.shape_cast %147 : vector<1x128x128xbf16> to vector<128x128xbf16>
    %cst_174 = arith.constant dense<0.000000e+00> : vector<8x128xf32>
    %149 = tpu.matmul %146, %148, %cst_174 {dimension_numbers = #tpu.dot_dimension_numbers<[1], [0], [0], [1], [0, 0, 1, 1], [], []>} : vector<8x128xbf16>, vector<128x128xbf16>, vector<8x128xf32> -> vector<8x128xf32>
    %150 = arith.addf %144, %149 : vector<8x128xf32>
    %c0_175 = arith.constant 0 : index
    %c0_176 = arith.constant 0 : index
    %c9_177 = arith.constant 9 : index
    %c0_178 = arith.constant 0 : index
    %151 = vector.load %arg4[%c0_175, %c0_176, %c9_177, %c0_178] : memref<1x1x20x128xbf16, #tpu.memory_space<vmem>>, vector<1x1x8x128xbf16>
    %152 = vector.shape_cast %151 : vector<1x1x8x128xbf16> to vector<8x128xbf16>
    %c25 = arith.constant 25 : index
    %c0_179 = arith.constant 0 : index
    %c0_180 = arith.constant 0 : index
    %153 = vector.load %arg5[%c25, %c0_179, %c0_180] : memref<27x128x128xbf16, #tpu.memory_space<vmem>>, vector<1x128x128xbf16>
    %154 = vector.shape_cast %153 : vector<1x128x128xbf16> to vector<128x128xbf16>
    %cst_181 = arith.constant dense<0.000000e+00> : vector<8x128xf32>
    %155 = tpu.matmul %152, %154, %cst_181 {dimension_numbers = #tpu.dot_dimension_numbers<[1], [0], [0], [1], [0, 0, 1, 1], [], []>} : vector<8x128xbf16>, vector<128x128xbf16>, vector<8x128xf32> -> vector<8x128xf32>
    %156 = arith.addf %150, %155 : vector<8x128xf32>
    %c0_182 = arith.constant 0 : index
    %c0_183 = arith.constant 0 : index
    %c10_184 = arith.constant 10 : index
    %c0_185 = arith.constant 0 : index
    %157 = vector.load %arg4[%c0_182, %c0_183, %c10_184, %c0_185] : memref<1x1x20x128xbf16, #tpu.memory_space<vmem>>, vector<1x1x8x128xbf16>
    %158 = vector.shape_cast %157 : vector<1x1x8x128xbf16> to vector<8x128xbf16>
    %c26 = arith.constant 26 : index
    %c0_186 = arith.constant 0 : index
    %c0_187 = arith.constant 0 : index
    %159 = vector.load %arg5[%c26, %c0_186, %c0_187] : memref<27x128x128xbf16, #tpu.memory_space<vmem>>, vector<1x128x128xbf16>
    %160 = vector.shape_cast %159 : vector<1x128x128xbf16> to vector<128x128xbf16>
    %cst_188 = arith.constant dense<0.000000e+00> : vector<8x128xf32>
    %161 = tpu.matmul %158, %160, %cst_188 {dimension_numbers = #tpu.dot_dimension_numbers<[1], [0], [0], [1], [0, 0, 1, 1], [], []>} : vector<8x128xbf16>, vector<128x128xbf16>, vector<8x128xf32> -> vector<8x128xf32>
    %162 = arith.addf %156, %161 : vector<8x128xf32>
    %c0_189 = arith.constant 0 : index
    %c0_190 = arith.constant 0 : index
    %163 = vector.load %arg6[%c0_189, %c0_190] : memref<1x128xf32, #tpu.memory_space<vmem>>, vector<1x128xf32>
    %164 = vector.broadcast %163 : vector<1x128xf32> to vector<8x128xf32>
    %165 = arith.addf %162, %164 : vector<8x128xf32>
    %cst_191 = arith.constant 0.000000e+00 : f32
    %166 = vector.broadcast %cst_191 : f32 to vector<8x128xf32>
    %167 = arith.maximumf %165, %166 : vector<8x128xf32>
    %168 = arith.truncf %167 : vector<8x128xf32> to vector<8x128xbf16>
    %169 = vector.shape_cast %168 : vector<8x128xbf16> to vector<2x4x128xbf16>
    %170 = vector.extract_strided_slice %169 {offsets = [0, 0, 0], sizes = [2, 2, 128], strides = [1, 1, 1]} : vector<2x4x128xbf16> to vector<2x2x128xbf16>
    %171 = vector.shape_cast %170 : vector<2x2x128xbf16> to vector<1x1x2x2x128xbf16>
    %c0_192 = arith.constant 0 : index
    %c0_193 = arith.constant 0 : index
    %c0_194 = arith.constant 0 : index
    %c0_195 = arith.constant 0 : index
    %c0_196 = arith.constant 0 : index
    %172 = vector.load %arg7[%c0_192, %c0_193, %c0_194, %c0_195, %c0_196] : memref<1x1x2x2x128xbf16, #tpu.memory_space<vmem>>, vector<1x1x2x2x128xbf16>
    tpu.vector_store %arg7[%c0_192, %c0_193, %c0_194, %c0_195, %c0_196], %171 {strides = array<i32>} : memref<1x1x2x2x128xbf16, #tpu.memory_space<vmem>>, vector<1x1x2x2x128xbf16>,
    return
  }
  func.func @transform_0(%arg0: i32, %arg1: i32) -> (i32, i32, i32, i32) {
    %c0_i32 = arith.constant 0 : i32
    %0 = arith.addi %arg1, %c0_i32 : i32
    %c0_i32_0 = arith.constant 0 : i32
    %c0_i32_1 = arith.constant 0 : i32
    %c0_i32_2 = arith.constant 0 : i32
    return %arg0, %0, %c0_i32_0, %c0_i32_1 : i32, i32, i32, i32
  }
  func.func @transform_1(%arg0: i32, %arg1: i32) -> (i32, i32, i32, i32) {
    %c1_i32 = arith.constant 1 : i32
    %0 = arith.addi %arg1, %c1_i32 : i32
    %c0_i32 = arith.constant 0 : i32
    %c0_i32_0 = arith.constant 0 : i32
    %c0_i32_1 = arith.constant 0 : i32
    return %arg0, %0, %c0_i32, %c0_i32_0 : i32, i32, i32, i32
  }
  func.func @transform_2(%arg0: i32, %arg1: i32) -> (i32, i32, i32, i32) {
    %c2_i32 = arith.constant 2 : i32
    %0 = arith.addi %arg1, %c2_i32 : i32
    %c0_i32 = arith.constant 0 : i32
    %c0_i32_0 = arith.constant 0 : i32
    %c0_i32_1 = arith.constant 0 : i32
    return %arg0, %0, %c0_i32, %c0_i32_0 : i32, i32, i32, i32
  }
  func.func @transform_3(%arg0: i32, %arg1: i32) -> (i32, i32, i32) {
    %c0_i32 = arith.constant 0 : i32
    %c0_i32_0 = arith.constant 0 : i32
    %c0_i32_1 = arith.constant 0 : i32
    %c0_i32_2 = arith.constant 0 : i32
    return %c0_i32, %c0_i32_0, %c0_i32_1 : i32, i32, i32
  }
  func.func @transform_4(%arg0: i32, %arg1: i32) -> (i32, i32) {
    %c0_i32 = arith.constant 0 : i32
    %c0_i32_0 = arith.constant 0 : i32
    %c0_i32_1 = arith.constant 0 : i32
    return %c0_i32, %c0_i32_0 : i32, i32
  }
  func.func @transform_5(%arg0: i32, %arg1: i32) -> (i32, i32, i32, i32, i32) {
    %c0_i32 = arith.constant 0 : i32
    %c0_i32_0 = arith.constant 0 : i32
    %c0_i32_1 = arith.constant 0 : i32
    %c0_i32_2 = arith.constant 0 : i32
    return %arg0, %arg1, %c0_i32, %c0_i32_0, %c0_i32_1 : i32, i32, i32, i32, i32
  }
}

</mosaic_0001>

<bundles_post_ra>
// kernel: unet_encoder_forward.8
= control target key start
LH: loop header
LB: loop body
LE: loop exit
PB: predicated region body
PF: predicated region fallthrough
CT: control target
= control target key end

     0   :  { %s736_s12 = smov 0   ;;  %s738_s13 = smov 0   ;;  %s882_s0 = inlined_call_operand.vmem [shape: bf16[2,8,8,8,128], index: 0, kind: input, shape index: {}]   ;;  %s883_s1 = inlined_call_operand.vmem [shape: bf16[128,128], index: 1, kind: input, shape index: {}]   ;;  %s884_s2 = inlined_call_operand.vmem [shape: f32[1,128], index: 2, kind: input, shape index: {}]   ;;  %s885_s3 = inlined_call_operand.vmem [shape: bf16[2,4,4,4,128], index: 3, kind: output, shape index: {}]  }
   0x1   :  { %s740_s14 = smov 0   ;;  %s742_s15 = smov 0  }
   0x2   :  { %s744_s16 = smov 0  }
   0x3 LB: > { %s22_s17 = sadd.s32 1, %s706_s14  ;;  %s25_s18 = sadd.s32 1, %s710_s15  ;;  %s714_s16 = sphi %s744_s16, %s13_s16   ;;  %s710_s15 = sphi %s742_s15, %s889_s15   ;;  %s706_s14 = sphi %s740_s14, %s888_s14   ;;  %s702_s13 = sphi %s738_s13, %s887_s13   ;;  %s698_s12 = sphi %s736_s12, %s886_s12  }
   0x4   : > { %p23_p0 = scmp.ge.s32.totalorder %s22_s17, 4  ;;  %p585_p1 = scmp.ge.s32.totalorder %s714_s16, 1 }
   0x5   : > { %p161_p2 = scmp.lt.s32.totalorder %s714_s16, 9 }
   0x6   : > { %s891_s17 = smov (%p23_p0, %s22_s17), 0  ;;  %s893_s18 = smov (!%p23_p0, %s25_s18), %s710_s15 }
   0x7   : > { %p162_p3 = pnand %p585_p1, %p161_p2  ;;  %p27_p4 = scmp.ge.s32.totalorder %s893_s18, 2 }
   0x8   : > { %s586_s21 = sshll.u32 (!%p162_p3), %s698_s12, 1  ;;  %p195_p5 = scmp.lt.s32.totalorder (!%p162_p3), %s702_s13, 1 }
   0x9   : > { %s895_s18 = smov (%p27_p4, %s893_s18), 0  ;;  %165 = sbr.rel (%p162_p3) target bundleno = 299 (0x12b), region = 32 }
   0xa   : > { %p197_p6 = scmp.lt.s32.totalorder (!%p162_p3), %s586_s21, 7  ;;  %p207_p7 = scmp.lt.s32.totalorder (!%p162_p3), %s698_s12, 3 }
   0xe   : > { %v634_v0 = vld [vmem:[%s883_s1 + $0x38] sm:$0xff]  ;;  %v633_v1 = vld [vmem:[%s883_s1 + $0x30] sm:$0xff]  ;;  %s897_s13 = smov (!%p195_p5, %s702_s13), 1  ;;  %s899_s21 = smov (!%p197_p6, %s586_s21), 7  ;;  %v632_v2 = vld [vmem:[%s883_s1 + $0x28] sm:$0xff]  ;;  %vm226_vm0 = vcmask 1040384  }
   0xf   : > { %456 = vmatpush.bf16.msra.mxu0 %v634_v0  ;;  %s588_s24 = sshll.u32 %s897_s13, 6  ;;  %s587_s25 = sshll.u32 %s899_s21, 3  ;;  %v631_v5 = vld [vmem:[%s883_s1 + $0x20] sm:$0xff]  ;;  %vm230_vm1 = vcmask 1041409   ;;  %v630_v11 = vld [vmem:[%s883_s1 + $0x18] sm:$0xff]  ;;  %v629_v16 = vld [vmem:[%s883_s1 + $0x10] sm:$0xff] }
  0x10   : > { %s201_s28 = sadd.s32 %s588_s24, %s587_s25  ;;  %vm234_vm2 = vcmask 1042434   ;;  %v628_v18 = vld [vmem:[%s883_s1 + $0x8] sm:$0xff]  ;;  %v627_v21 = vld [vmem:[%s883_s1] sm:$0xff]  ;;  %vm238_vm3 = vcmask 1043459   ;;  %vm381_vm4 = vcmask 1044484   ;;  %vm384_vm5 = vcmask 1045509  }
  0x11   : > { %s589_s29 = sshll.u32 %s201_s28, 2  ;;  %vm387_vm6 = vcmask 1046534   ;;  %vm390_vm7 = vcmask 1047559   ;;  %s901_s12 = smov (!%p207_p7, %s698_s12), 3 }
  0x12   : > { %s784_s5 = scalar_lea.vmem %s882_s0, %s589_s29  ;;  %s590_s23 = sshll.u32 %s901_s12, 2 }
  0x13   : > { %457 = vmatpush.bf16.msra.mxu0 %v633_v1  ;;  %v214_v3 = vld [vmem:[%s784_s5] sm:$0xf]  ;;  %v788_v4 = vld [vmem:[%s784_s5 + $0x10] sm:$0xf]  ;;  %v794_v6 = vld [vmem:[%s784_s5 + $0x18] sm:$0xf] }
  0x14   : > { %v222_v7 = vrot.slane %v214_v3, 3  ;;  %v224_v8 = vrot.slane %v788_v4, 3  ;;  %v798_v9 = vrot.slane %v794_v6, 3  ;;  %v215_v25 = vld [vmem:[%s784_s5 + $0x8] sm:$0xf]  ;;  %s591_s24 = sshll.u32 %s897_s13, 4 }
  0x15   : > { %v223_v27 = vrot.slane %v215_v25, 3  ;;  %s211_s25 = sadd.s32 %s591_s24, %s590_s23 }
  0x16   : > { %v229_v10 = vsel %vm226_vm0, %v214_v3, %v222_v7  ;;  %v231_v12 = vsel %vm230_vm1, %v214_v3, %v222_v7  ;;  %v256_v13 = vsel %vm226_vm0, %v788_v4, %v224_v8  ;;  %v810_v14 = vsel %vm226_vm0, %v794_v6, %v798_v9  ;;  %s592_s28 = sshll.u32 %s211_s25, 1 }
  0x17   : > { %458 = vmatpush.bf16.msra.mxu0 %v632_v2  ;;  %298 = vst [vmem:[#allocation1] ss:$9 sm:$0xff] %v229_v10  ;;  %v233_v15 = vrot.slane %v231_v12, 1  ;;  %v235_v19 = vsel %vm234_vm2, %v214_v3, %v222_v7  ;;  %v239_v23 = vsel %vm238_vm3, %v214_v3, %v222_v7  ;;  %v244_v28 = vsel %vm226_vm0, %v215_v25, %v223_v27  ;;  %s213_s4 = scalar_lea.vmem %s885_s3, %s592_s28 }
  0x18   : > { %v237_v20 = vrot.slane %v235_v19, 2  ;;  %v241_v24 = vrot.slane %v239_v23, 3  ;;  %v245_v30 = vsel %vm230_vm1, %v215_v25, %v223_v27  ;;  %v248_v33 = vsel %vm234_vm2, %v215_v25, %v223_v27 }
  0x19   : > { %v247_v31 = vrot.slane %v245_v30, 1  ;;  %v250_v34 = vrot.slane %v248_v33, 2  ;;  %v251_v36 = vsel %vm238_vm3, %v215_v25, %v223_v27  ;;  %v257_v40 = vsel %vm230_vm1, %v788_v4, %v224_v8 }
  0x1a   : > { %v253_v37 = vrot.slane %v251_v36, 3  ;;  %v259_v41 = vrot.slane %v257_v40, 1  ;;  %v260_v43 = vsel %vm234_vm2, %v788_v4, %v224_v8  ;;  %v263_v46 = vsel %vm238_vm3, %v788_v4, %v224_v8 }
  0x1b   : > { %459 = vmatpush.bf16.msra.mxu0 %v631_v5  ;;  %v262_v44 = vrot.slane %v260_v43, 2  ;;  %v265_v47 = vrot.slane %v263_v46, 3  ;;  %v269_v0 = vsel %vm230_vm1, %v794_v6, %v798_v9 }
  0x1c   : > { %v271_v10 = vrot.slane %v269_v0, 1 }
  0x1e   : > { %v299_v17 = vld [vmem:[#allocation1] sm:$0xf] }
  0x1f   : > { %460 = vmatpush.bf16.msra.mxu0 %v630_v11  ;;  %302 = vst [vmem:[#allocation1] ss:$9 sm:$0xff] %v233_v15  ;;  %v358_v51 = vunpack.c.l.b16 %v299_v17 }
  0x23   : > { %461 = vmatpush.bf16.msra.mxu0 %v629_v16 }
  0x26   : > { %v303_v22 = vld [vmem:[#allocation1] sm:$0xf] }
  0x27   : > { %462 = vmatpush.bf16.msra.mxu0 %v628_v18  ;;  %306 = vst [vmem:[#allocation1] ss:$9 sm:$0xff] %v237_v20  ;;  %v359_v49 = vunpack.c.l.b16 %v303_v22 }
  0x29   : > { %v374_v53 = vrot.slane %v359_v49, 7 }
  0x2b   : > { %463 = vmatpush.bf16.msra.mxu0 %v627_v21  ;;  %v375_v57 = vsel %vm230_vm1, %v374_v53, %v358_v51  ;;  %v275_v21 = vsel %vm238_vm3, %v794_v6, %v798_v9 }
  0x2c   : > { %v277_v25 = vrot.slane %v275_v21, 3 }
  0x2e   : > { %v307_v26 = vld [vmem:[#allocation1] sm:$0xf] }
  0x2f   : > { %310 = vst [vmem:[#allocation1] ss:$9 sm:$0xff] %v241_v24  ;;  %v360_v50 = vunpack.c.l.b16 %v307_v26 }
  0x31   : > { %v376_v55 = vrot.slane %v360_v50, 6 }
  0x33   : > { %v377_v62 = vsel %vm234_vm2, %v376_v55, %v375_v57 }
  0x36   : > { %v311_v29 = vld [vmem:[#allocation1] sm:$0xf] }
  0x37   : > { %313 = vst [vmem:[#allocation1] ss:$9 sm:$0xff] %v244_v28  ;;  %v361_v52 = vunpack.c.l.b16 %v311_v29 }
  0x39   : > { %v378_v58 = vrot.slane %v361_v52, 5 }
  0x3b   : > { %v379_v1 = vsel %vm238_vm3, %v378_v58, %v377_v62 }
  0x3e   : > { %v314_v32 = vld [vmem:[#allocation1] sm:$0xf] }
  0x3f   : > { %317 = vst [vmem:[#allocation1] ss:$9 sm:$0xff] %v247_v31  ;;  %v362_v54 = vunpack.c.l.b16 %v314_v32 }
  0x41   : > { %v380_v63 = vrot.slane %v362_v54, 4 }
  0x43   : > { %v382_v3 = vsel %vm381_vm4, %v380_v63, %v379_v1 }
  0x46   : > { %v318_v35 = vld [vmem:[#allocation1] sm:$0xf] }
  0x47   : > { %321 = vst [vmem:[#allocation1] ss:$9 sm:$0xff] %v250_v34  ;;  %v363_v56 = vunpack.c.l.b16 %v318_v35 }
  0x49   : > { %v383_v2 = vrot.slane %v363_v56, 3 }
  0x4b   : > { %v385_v5 = vsel %vm384_vm5, %v383_v2, %v382_v3 }
  0x4e   : > { %v322_v38 = vld [vmem:[#allocation1] sm:$0xf] }
  0x4f   : > { %325 = vst [vmem:[#allocation1] ss:$9 sm:$0xff] %v253_v37  ;;  %v364_v60 = vunpack.c.l.b16 %v322_v38 }
  0x51   : > { %v386_v4 = vrot.slane %v364_v60, 2 }
  0x53   : > { %v388_v8 = vsel %vm387_vm6, %v386_v4, %v385_v5 }
  0x56   : > { %v326_v39 = vld [vmem:[#allocation1] sm:$0xf] }
  0x57   : > { %328 = vst [vmem:[#allocation1] ss:$9 sm:$0xff] %v256_v13  ;;  %v365_v61 = vunpack.c.l.b16 %v326_v39  ;;  %v272_v13 = vsel %vm234_vm2, %v794_v6, %v798_v9 }
  0x58   : > { %v274_v15 = vrot.slane %v272_v13, 2 }
  0x59   : > { %v389_v7 = vrot.slane %v365_v61, 1 }
  0x5b   : > { %v391_v11 = vsel %vm390_vm7, %v389_v7, %v388_v8 }
  0x5e   : > { %v329_v42 = vld [vmem:[#allocation1] sm:$0xf] }
  0x5f   : > { %332 = vst [vmem:[#allocation1] ss:$9 sm:$0xff] %v259_v41  ;;  %v366_v17 = vunpack.c.l.b16 %v329_v42  ;;  %v675_v41 = vld [vmem:[%s884_s2] ss:$0 sm:$0xff] }
  0x66   : > { %v333_v45 = vld [vmem:[#allocation1] sm:$0xf] }
  0x67   : > { %336 = vst [vmem:[#allocation1] ss:$9 sm:$0xff] %v262_v44 }
  0x6e   : > { %v337_v48 = vld [vmem:[#allocation1] sm:$0xf] }
  0x6f   : > { %340 = vst [vmem:[#allocation1] ss:$9 sm:$0xff] %v265_v47  ;;  %v368_v16 = vunpack.c.l.b16 %v337_v48 }
  0x71   : > { %v394_v22 = vrot.slane %v368_v16, 6 }
  0x76   : > { %v341_v59 = vld [vmem:[#allocation1] sm:$0xf] }
  0x77   : > { %343 = vst [vmem:[#allocation1] ss:$9 sm:$0xff] %v810_v14  ;;  %v367_v14 = vunpack.c.l.b16 %v333_v45  ;;  %v369_v20 = vunpack.c.l.b16 %v341_v59 }
  0x79   : > { %v392_v18 = vrot.slane %v367_v14, 7  ;;  %v396_v26 = vrot.slane %v369_v20, 5 }
  0x7b   : > { %v393_v23 = vsel %vm230_vm1, %v392_v18, %v366_v17 }
  0x7c   : > { %v395_v27 = vsel %vm234_vm2, %v394_v22, %v393_v23 }
  0x7d   : > { %v397_v31 = vsel %vm238_vm3, %v396_v26, %v395_v27 }
  0x7e   : > { %v344_v12 = vld [vmem:[#allocation1] sm:$0xf] }
  0x7f   : > { %347 = vst [vmem:[#allocation1] ss:$9 sm:$0xff] %v271_v10  ;;  %v370_v24 = vunpack.c.l.b16 %v344_v12 }
  0x81   : > { %v398_v30 = vrot.slane %v370_v24, 4 }
  0x83   : > { %v399_v6 = vsel %vm381_vm4, %v398_v30, %v397_v31 }
  0x86   : > { %v348_v19 = vld [vmem:[#allocation1] sm:$0xf] }
  0x87   : > { %351 = vst [vmem:[#allocation1] ss:$9 sm:$0xff] %v274_v15  ;;  %v371_v28 = vunpack.c.l.b16 %v348_v19 }
  0x89   : > { %v400_v33 = vrot.slane %v371_v28, 3 }
  0x8b   : > { %v401_v34 = vsel %vm384_vm5, %v400_v33, %v399_v6 }
  0x8e   : > { %v352_v29 = vld [vmem:[#allocation1] sm:$0xf] }
  0x8f   : > { %355 = vst [vmem:[#allocation1] ss:$9 sm:$0xff] %v277_v25  ;;  %v372_v32 = vunpack.c.l.b16 %v352_v29 }
  0x91   : > { %v402_v9 = vrot.slane %v372_v32, 2 }
  0x93   : > { %v403_v37 = vsel %vm387_vm6, %v402_v9, %v401_v34 }
  0x96   : > { %v356_v35 = vld [vmem:[#allocation1] sm:$0xf] }
  0x97   : > { %v373_v36 = vunpack.c.l.b16 %v356_v35 }
  0x99   : > { %v404_v38 = vrot.slane %v373_v36, 1 }
  0x9b   : > { %v405_v39 = vsel %vm390_vm7, %v404_v38, %v403_v37 }
  0x9c   : > { %v406_v40 = vpack.c.b16 %v405_v39, %v391_v11 }
  0x9e   : > { %464 = vmatmul.bf16.vlgmr.msra.gmra.mxu0 %v406_v40 }
 0x11b   : > { %v465_v42 = vpop.f32.mrf.mxu0 }
 0x11c   : > { %v466_v43 = vadd.f32 %v675_v41, %v465_v42 }
 0x11e   : > { %v472_v44 = vrot.slane %v466_v43, 4  ;;  %v476_v45 = vpack.c.bf16 %v466_v43, %v466_v43 }
 0x120   : > { %v477_v46 = vpack.c.bf16 %v472_v44, %v472_v44  ;;  %480 = vst [vmem:[%s213_s4] sm:$0x3] %v476_v45 }
 0x122   : > { %481 = vst [vmem:[%s213_s4 + $0x2] sm:$0x3] %v477_v46 }
 0x123   : > { %v467_v47 = vpop.f32.mrf.mxu0 }
 0x124   : > { %v468_v48 = vadd.f32 %v675_v41, %v467_v47 }
 0x126   : > { %v473_v49 = vrot.slane %v468_v48, 4  ;;  %v478_v50 = vpack.c.bf16 %v468_v48, %v468_v48 }
 0x128   : > { %v479_v51 = vpack.c.bf16 %v473_v49, %v473_v49  ;;  %482 = vst [vmem:[%s213_s4 + $0x4] sm:$0x3] %v478_v50 }
 0x12a   : > { %483 = vst [vmem:[%s213_s4 + $0x6] sm:$0x3] %v479_v51 }
 0x12b PF: > { %s13_s16 = sadd.s32 1, %s714_s16   ;;  %s886_s12 = smov %s706_s14 }
 0x12c   : > { %p10_p8 = scmp.ge.s32.totalorder %s13_s16, 10   ;;  %s887_s13 = smov %s710_s15 }
 0x12d   : > { %s888_s14 = smov %s891_s17  ;;  %s889_s15 = smov %s895_s18 }
 0x12e   :  { %12 = sbr.rel (!%p10_p8) target bundleno = 3 (0x3), region = 62 }

// kernel: unet_encoder_forward.10
= control target key start
LH: loop header
LB: loop body
LE: loop exit
PB: predicated region body
PF: predicated region fallthrough
CT: control target
= control target key end

     0   :  { %s611_s12 = smov 0   ;;  %s613_s13 = smov 0   ;;  %s713_s0 = inlined_call_operand.vmem [shape: bf16[2,4,4,4,128], index: 0, kind: input, shape index: {}]   ;;  %s714_s1 = inlined_call_operand.vmem [shape: bf16[128,128], index: 1, kind: input, shape index: {}]   ;;  %s715_s2 = inlined_call_operand.vmem [shape: f32[1,128], index: 2, kind: input, shape index: {}]   ;;  %s716_s3 = inlined_call_operand.vmem [shape: bf16[2,2,2,2,128], index: 3, kind: output, shape index: {}]  }
   0x1   :  { %s615_s14 = smov 0   ;;  %s617_s15 = smov 0  }
   0x2   :  { %s619_s16 = smov 0  }
   0x3 LB: > { %s22_s17 = sadd.s32 1, %s581_s14  ;;  %s25_s18 = sadd.s32 1, %s585_s15  ;;  %s589_s16 = sphi %s619_s16, %s13_s16   ;;  %s585_s15 = sphi %s617_s15, %s720_s15   ;;  %s581_s14 = sphi %s615_s14, %s719_s14   ;;  %s577_s13 = sphi %s613_s13, %s718_s13   ;;  %s573_s12 = sphi %s611_s12, %s717_s12  }
   0x4   : > { %p23_p0 = scmp.ge.s32.totalorder %s22_s17, 2  ;;  %p461_p1 = scmp.ge.s32.totalorder %s589_s16, 1 }
   0x5   : > { %p161_p2 = scmp.lt.s32.totalorder %s589_s16, 5 }
   0x6   : > { %s722_s17 = smov (%p23_p0, %s22_s17), 0  ;;  %s724_s18 = smov (!%p23_p0, %s25_s18), %s585_s15 }
   0x7   : > { %p162_p3 = pnand %p461_p1, %p161_p2  ;;  %p27_p4 = scmp.ge.s32.totalorder %s724_s18, 2 }
   0x8   : > { %s462_s21 = sshll.u32 (!%p162_p3), %s573_s12, 1  ;;  %p194_p5 = scmp.lt.s32.totalorder (!%p162_p3), %s577_s13, 1 }
   0x9   : > { %s726_s18 = smov (%p27_p4, %s724_s18), 0  ;;  %165 = sbr.rel (%p162_p3) target bundleno = 197 (0xc5), region = 32 }
   0xa   : > { %p196_p6 = scmp.lt.s32.totalorder (!%p162_p3), %s462_s21, 3  ;;  %p206_p7 = scmp.lt.s32.totalorder (!%p162_p3), %s573_s12, 1 }
   0xe   : > { %v509_v0 = vld [vmem:[%s714_s1 + $0x38] sm:$0xff]  ;;  %v508_v1 = vld [vmem:[%s714_s1 + $0x30] sm:$0xff]  ;;  %s728_s13 = smov (!%p194_p5, %s577_s13), 1  ;;  %s730_s21 = smov (!%p196_p6, %s462_s21), 3  ;;  %v507_v2 = vld [vmem:[%s714_s1 + $0x28] sm:$0xff]  ;;  %vm222_vm0 = vcmask 1040384  }
   0xf   : > { %346 = vmatpush.bf16.msra.mxu0 %v509_v0  ;;  %s464_s24 = sshll.u32 %s728_s13, 4  ;;  %s463_s25 = sshll.u32 %s730_s21, 2  ;;  %vm226_vm1 = vcmask 1042434   ;;  %vm232_vm2 = vcmask 1041409   ;;  %vm234_vm3 = vcmask 1043459   ;;  %v506_v4 = vld [vmem:[%s714_s1 + $0x20] sm:$0xff] }
  0x10   : > { %s200_s28 = sadd.s32 %s464_s24, %s463_s25  ;;  %vm230_vm4 = vcmask 1041408   ;;  %vm236_vm5 = vcmask 1042433   ;;  %v505_v13 = vld [vmem:[%s714_s1 + $0x18] sm:$0xff]  ;;  %v504_v16 = vld [vmem:[%s714_s1 + $0x10] sm:$0xff]  ;;  %v503_v22 = vld [vmem:[%s714_s1 + $0x8] sm:$0xff]  ;;  %s732_s12 = smov (!%p206_p7, %s573_s12), 1 }
  0x11   : > { %s465_s29 = sshll.u32 %s200_s28, 1  ;;  %v502_v25 = vld [vmem:[%s714_s1] sm:$0xff]  ;;  %s466_s23 = sshll.u32 %s732_s12, 1 }
  0x12   : > { %s202_s5 = scalar_lea.vmem %s713_s0, %s465_s29  ;;  %s467_s24 = sshll.u32 %s728_s13, 2  ;;  %v550_v45 = vld [vmem:[%s715_s2] ss:$0 sm:$0xff] }
  0x13   : > { %347 = vmatpush.bf16.msra.mxu0 %v508_v1  ;;  %v212_v3 = vld [vmem:[%s202_s5] sm:$0x3]  ;;  %v213_v15 = vld [vmem:[%s202_s5 + $0x4] sm:$0x3]  ;;  %s210_s27 = sadd.s32 %s467_s24, %s466_s23 }
  0x14   : > { %v216_v5 = vrot.slane %v212_v3, 1  ;;  %v217_v6 = vrot.slane %v212_v3, 2  ;;  %v218_v7 = vrot.slane %v212_v3, 3  ;;  %v219_v18 = vrot.slane %v213_v15, 1  ;;  %s211_s30 = scalar_lea.vmem %s716_s3, %s210_s27 }
  0x15   : > { %v220_v19 = vrot.slane %v213_v15, 2  ;;  %v221_v20 = vrot.slane %v213_v15, 3 }
  0x16   : > { %v225_v8 = vsel %vm222_vm0, %v212_v3, %v216_v5  ;;  %v229_v9 = vsel %vm226_vm1, %v217_v6, %v218_v7  ;;  %v233_v10 = vsel %vm232_vm2, %v212_v3, %v216_v5  ;;  %v235_v11 = vsel %vm234_vm3, %v217_v6, %v218_v7 }
  0x17   : > { %348 = vmatpush.bf16.msra.mxu0 %v507_v2  ;;  %v231_v12 = vsel %vm230_vm4, %v225_v8, %v229_v9  ;;  %v237_v14 = vsel %vm236_vm5, %v233_v10, %v235_v11  ;;  %v242_v23 = vsel %vm222_vm0, %v213_v15, %v219_v18  ;;  %v245_v24 = vsel %vm226_vm1, %v220_v19, %v221_v20 }
  0x18   : > { %272 = vst [vmem:[#allocation1] ss:$9 sm:$0xff] %v231_v12  ;;  %v239_v17 = vrot.slane %v237_v14, 1  ;;  %v246_v26 = vsel %vm230_vm4, %v242_v23, %v245_v24  ;;  %v247_v27 = vsel %vm232_vm2, %v213_v15, %v219_v18  ;;  %v248_v28 = vsel %vm234_vm3, %v220_v19, %v221_v20 }
  0x19   : > { %v249_v30 = vsel %vm236_vm5, %v247_v27, %v248_v28 }
  0x1a   : > { %v251_v31 = vrot.slane %v249_v30, 1 }
  0x1b   : > { %349 = vmatpush.bf16.msra.mxu0 %v506_v4 }
  0x1f   : > { %350 = vmatpush.bf16.msra.mxu0 %v505_v13  ;;  %v273_v21 = vld [vmem:[#allocation1] sm:$0xf] }
  0x20   : > { %276 = vst [vmem:[#allocation1] ss:$9 sm:$0xff] %v239_v17  ;;  %v286_v35 = vunpack.c.l.b16 %v273_v21 }
  0x23   : > { %351 = vmatpush.bf16.msra.mxu0 %v504_v16 }
  0x27   : > { %352 = vmatpush.bf16.msra.mxu0 %v503_v22  ;;  %v277_v29 = vld [vmem:[#allocation1] sm:$0xf] }
  0x28   : > { %279 = vst [vmem:[#allocation1] ss:$9 sm:$0xff] %v246_v26  ;;  %v287_v32 = vunpack.c.l.b16 %v277_v29 }
  0x2a   : > { %v290_v36 = vrot.slane %v287_v32, 7 }
  0x2b   : > { %353 = vmatpush.bf16.msra.mxu0 %v502_v25 }
  0x2c   : > { %v291_v38 = vsel %vm232_vm2, %v290_v36, %v286_v35 }
  0x2f   : > { %v280_v33 = vld [vmem:[#allocation1] sm:$0xf] }
  0x30   : > { %283 = vst [vmem:[#allocation1] ss:$9 sm:$0xff] %v251_v31  ;;  %v288_v34 = vunpack.c.l.b16 %v280_v33 }
  0x32   : > { %v292_v37 = vrot.slane %v288_v34, 6 }
  0x34   : > { %v293_v41 = vsel %vm226_vm1, %v292_v37, %v291_v38 }
  0x37   : > { %v284_v39 = vld [vmem:[#allocation1] sm:$0xf] }
  0x38   : > { %v289_v40 = vunpack.c.l.b16 %v284_v39 }
  0x3a   : > { %v294_v42 = vrot.slane %v289_v40, 5 }
  0x3c   : > { %v295_v43 = vsel %vm234_vm3, %v294_v42, %v293_v41 }
  0x3d   : > { %v296_v44 = vpack.c.b16 %v295_v43, %v295_v43 }
  0x3f   : > { %354 = vmatmul.bf16.vlgmr.msra.gmra.mxu0 %v296_v44 }
  0xbc   : > { %v355_v46 = vpop.f32.mrf.mxu0 }
  0xbd   : > { %v356_v47 = vadd.f32 %v550_v45, %v355_v46 }
  0xbf   : > { %v360_v48 = vrot.slane %v356_v47, 2  ;;  %v362_v49 = vpack.c.bf16 %v356_v47, %v356_v47 }
  0xc1   : > { %v363_v50 = vpack.c.bf16 %v360_v48, %v360_v48  ;;  %364 = vst [vmem:[%s211_s30] sm:$0x1] %v362_v49 }
  0xc3   : > { %365 = vst [vmem:[%s211_s30 + $0x1] sm:$0x1] %v363_v50 }
  0xc4   : > { %v357_v51 = vpop.f32.mrf.mxu0 }
  0xc5 PF: > { %s13_s16 = sadd.s32 1, %s589_s16   ;;  %s717_s12 = smov %s581_s14 }
  0xc6   : > { %p10_p8 = scmp.ge.s32.totalorder %s13_s16, 6   ;;  %s718_s13 = smov %s585_s15 }
  0xc7   : > { %s719_s14 = smov %s722_s17  ;;  %s720_s15 = smov %s726_s18 }
  0xc8   :  { %12 = sbr.rel (!%p10_p8) target bundleno = 3 (0x3), region = 62 }

// kernel: unet_encoder_forward.13
= control target key start
LH: loop header
LB: loop body
LE: loop exit
PB: predicated region body
PF: predicated region fallthrough
CT: control target
= control target key end

     0   :  { %s478_s12 = smov 0   ;;  %s480_s13 = smov 0   ;;  %s538_s0 = inlined_call_operand.vmem [shape: bf16[2,2,2,2,128], index: 0, kind: input, shape index: {}]   ;;  %s539_s1 = inlined_call_operand.vmem [shape: bf16[128,128], index: 1, kind: input, shape index: {}]   ;;  %s540_s2 = inlined_call_operand.vmem [shape: f32[1,128], index: 2, kind: input, shape index: {}]   ;;  %s541_s3 = inlined_call_operand.vmem [shape: bf16[2,1,1,1,128], index: 3, kind: output, shape index: {}]  }
   0x1   :  { %s482_s14 = smov 0  }
   0x2 LB: > { %s25_s15 = sadd.s32 1, %s452_s13  ;;  %p366_p0 = scmp.ge.s32.totalorder %s456_s14, 1  ;;  %s456_s14 = sphi %s482_s14, %s13_s14   ;;  %s452_s13 = sphi %s480_s13, %s543_s13   ;;  %s448_s12 = sphi %s478_s12, %s542_s12  }
   0x3   : > { %p27_p1 = scmp.ge.s32.totalorder %s25_s15, 2  ;;  %p160_p2 = scmp.lt.s32.totalorder %s456_s14, 3 }
   0x5   : > { %s545_s15 = smov (%p27_p1, %s25_s15), 0  ;;  %p161_p3 = pnand %p366_p0, %p160_p2 }
   0x6   : > { %p190_p4 = scmp.lt.s32.totalorder (!%p161_p3), %s448_s12, 1 }
   0x7   : > { %164 = sbr.rel (%p161_p3) target bundleno = 178 (0xb2), region = 32 }
   0xc   : > { %v409_v0 = vld [vmem:[%s539_s1 + $0x38] sm:$0xff]  ;;  %v408_v1 = vld [vmem:[%s539_s1 + $0x30] sm:$0xff]  ;;  %v407_v2 = vld [vmem:[%s539_s1 + $0x28] sm:$0xff]  ;;  %s547_s12 = smov (!%p190_p4, %s448_s12), 1  ;;  %vm285_vm0 = vcmask 1040384  }
   0xd   : > { %271 = vmatpush.bf16.msra.mxu0 %v409_v0  ;;  %v406_v3 = vld [vmem:[%s539_s1 + $0x20] sm:$0xff]  ;;  %v405_v4 = vld [vmem:[%s539_s1 + $0x18] sm:$0xff]  ;;  %v404_v5 = vld [vmem:[%s539_s1 + $0x10] sm:$0xff]  ;;  %s367_s30 = sshll.u32 %s547_s12, 2  ;;  %s204_s17 = scalar_lea.vmem %s541_s3, %s547_s12  ;;  %vm286_vm1 = vsmask.f32 256 }
   0xe   : > { %v403_v6 = vld [vmem:[%s539_s1 + $0x8] sm:$0xff]  ;;  %v402_v7 = vld [vmem:[%s539_s1] sm:$0xff]  ;;  %s197_s8 = scalar_lea.vmem %s538_s0, %s367_s30  ;;  %vm287_vm2 = vmand %vm285_vm0, %vm286_vm1 }
   0xf   : > { %v205_v8 = vld [vmem:[%s197_s8] sm:$0x1] }
  0x10   : > { %v222_v9 = vld [vmem:[%s540_s2] sm:$0x1] }
  0x11   : > { %272 = vmatpush.bf16.msra.mxu0 %v408_v1  ;;  %v288_v12 = vld [vmem:[%s204_s17] sm:$0x1] }
  0x15   : > { %273 = vmatpush.bf16.msra.mxu0 %v407_v2 }
  0x19   : > { %274 = vmatpush.bf16.msra.mxu0 %v406_v3 }
  0x1d   : > { %275 = vmatpush.bf16.msra.mxu0 %v405_v4 }
  0x21   : > { %276 = vmatpush.bf16.msra.mxu0 %v404_v5 }
  0x25   : > { %277 = vmatpush.bf16.msra.mxu0 %v403_v6 }
  0x29   : > { %278 = vmatpush.bf16.msra.mxu0 %v402_v7 }
  0x2c   : > { %279 = vmatmul.bf16.vlgmr.msra.gmra.mxu0 %v205_v8 }
  0xa9   : > { %v280_v10 = vpop.f32.mrf.mxu0 }
  0xaa   : > { %v281_v11 = vadd.f32 %v280_v10, %v222_v9 }
  0xac   : > { %v284_v13 = vpack.c.bf16 %v281_v11, %v281_v11 }
  0xae   : > { %v289_v14 = vsel %vm287_vm2, %v284_v13, %v288_v12 }
  0xaf   : > { %290 = vst [vmem:[%s204_s17] sm:$0x1] %v289_v14 }
  0xb1   : > { %v282_v15 = vpop.f32.mrf.mxu0 }
  0xb2 PF: > { %s13_s14 = sadd.s32 1, %s456_s14   ;;  %s542_s12 = smov %s452_s13 }
  0xb3   : > { %p10_p5 = scmp.ge.s32.totalorder %s13_s14, 4   ;;  %s543_s13 = smov %s545_s15 }
  0xb5   :  { %12 = sbr.rel (!%p10_p5) target bundleno = 2 (0x2), region = 62 }

// kernel: unet_encoder_forward.7
= control target key start
LH: loop header
LB: loop body
LE: loop exit
PB: predicated region body
PF: predicated region fallthrough
CT: control target
= control target key end

     0   :  { %s6775_s18 = smov 0   ;;  %s6777_s19 = smov 0   ;;  %s8613_s0 = inlined_call_operand.vmem [shape: bf16[2,10,110,128], index: 0, kind: input, shape index: {}, may-alias: {0,1,2}]   ;;  %s8614_s1 = inlined_call_operand.vmem [shape: bf16[2,10,110,128], index: 1, kind: input, shape index: {}, may-alias: {0,1,2}]   ;;  %s8615_s2 = inlined_call_operand.vmem [shape: bf16[2,10,110,128], index: 2, kind: input, shape index: {}, may-alias: {0,1,2}]   ;;  %s8616_s3 = inlined_call_operand.vmem [shape: bf16[27,128,128], index: 3, kind: input, shape index: {}]   ;;  %s8617_s4 = inlined_call_operand.vmem [shape: f32[1,128], index: 4, kind: input, shape index: {}]   ;;  %s8618_s5 = inlined_call_operand.vmem [shape: bf16[2,8,8,8,128], index: 5, kind: output, shape index: {}]  }
   0x1   :  { %s6779_s20 = smov 0   ;;  %s6781_s21 = smov 0  }
   0x2   :  { %s6783_s22 = smov 0  }
   0x3 LB: > { %s24_s23 = sadd.s32 1, %s6735_s20  ;;  %s27_s24 = sadd.s32 1, %s6739_s21  ;;  %s6743_s22 = sphi %s6783_s22, %s15_s22   ;;  %s6739_s21 = sphi %s6781_s21, %s8622_s21   ;;  %s6735_s20 = sphi %s6779_s20, %s8621_s20   ;;  %s6731_s19 = sphi %s6777_s19, %s8620_s19   ;;  %s6727_s18 = sphi %s6775_s18, %s8619_s18  }
   0x4   : > { %p25_p0 = scmp.ge.s32.totalorder %s24_s23, 8  ;;  %p4888_p1 = scmp.ge.s32.totalorder %s6743_s22, 1 }
   0x5   : > { %p247_p2 = scmp.lt.s32.totalorder %s6743_s22, 17 }
   0x6   : > { %s8624_s23 = smov (%p25_p0, %s24_s23), 0  ;;  %s8626_s24 = smov (!%p25_p0, %s27_s24), %s6739_s21 }
   0x7   : > { %p248_p3 = pnand %p4888_p1, %p247_p2  ;;  %p29_p4 = scmp.ge.s32.totalorder %s8626_s24, 2 }
   0x8   : > { %p303_p5 = scmp.lt.s32.totalorder (!%p248_p3), %s6731_s19, 1  ;;  %p305_p6 = scmp.lt.s32.totalorder (!%p248_p3), %s6727_s18, 9 }
   0x9   : > { %s8628_s24 = smov (%p29_p4, %s8626_s24), 0  ;;  %251 = sbr.rel (%p248_p3) target bundleno = 757 (0x2f5), region = 40 }
   0xa   : > { %s312_s30 = sadd.s32 (!%p248_p3), 1, %s6727_s18  ;;  %p336_p9 = scmp.lt.s32.totalorder (!%p248_p3), %s6727_s18, 7 }
   0xb   : > { %p315_p7 = scmp.lt.s32.totalorder (!%p248_p3), %s312_s30, 9 }
   0xe   : > { %v6380_v0 = vld [vmem:[%s8616_s3 + $0x78] sm:$0xff]  ;;  %v6379_v3 = vld [vmem:[%s8616_s3 + $0x70] sm:$0xff]  ;;  %s8630_s19 = smov (!%p303_p5, %s6731_s19), 1  ;;  %v6378_v6 = vld [vmem:[%s8616_s3 + $0x68] sm:$0xff]  ;;  %vm415_vm0 = vsmask.f32 7424 }
   0xf   : > { %v6372_v1 = vld [vmem:[%s8616_s3 + $0x38] sm:$0xff]  ;;  %513 = vmatpush.bf16.msra.mxu0 %v6380_v0  ;;  %6644 = vmatpush.bf16.msra.mxu3 %v6380_v0  ;;  %v6371_v4 = vld [vmem:[%s8616_s3 + $0x30] sm:$0xff]  ;;  %s306_s12 = scalar_select %p305_p6, %s6727_s18, 9  ;;  %v6370_v7 = vld [vmem:[%s8616_s3 + $0x28] sm:$0xff]  ;;  %vm655_vm1 = vcmask 1046528   ;;  %vm1121_vm3 = vcmask 1045504  }
  0x10   : > { %v6388_v2 = vld [vmem:[%s8616_s3 + $0xb8] sm:$0xff]  ;;  %600 = vmatpush.bf16.msra.mxu1 %v6372_v1  ;;  %v6387_v5 = vld [vmem:[%s8616_s3 + $0xb0] sm:$0xff]  ;;  %s6830_s13 = smul.u32 140, %s8630_s19  ;;  %v6386_v8 = vld [vmem:[%s8616_s3 + $0xa8] sm:$0xff]  ;;  %vm949_vm2 = vsmask.f32 6400 }
  0x11   : > { %720 = vmatpush.bf16.msra.mxu2 %v6388_v2  ;;  %s6660_s14 = smul.u32 14, %s306_s12  ;;  %v6377_v9 = vld [vmem:[%s8616_s3 + $0x60] sm:$0xff]  ;;  %v6376_v12 = vld [vmem:[%s8616_s3 + $0x58] sm:$0xff]  ;;  %v6375_v18 = vld [vmem:[%s8616_s3 + $0x50] sm:$0xff]  ;;  %vm1587_vm4 = vcmask 1044480   ;;  %s8632_s30 = smov (!%p315_p7, %s312_s30), 9 }
  0x12   : > { %v6369_v10 = vld [vmem:[%s8616_s3 + $0x20] sm:$0xff]  ;;  %v6368_v14 = vld [vmem:[%s8616_s3 + $0x18] sm:$0xff]  ;;  %v6367_v22 = vld [vmem:[%s8616_s3 + $0x10] sm:$0xff]  ;;  %vm1415_vm5 = vsmask.f32 5376  ;;  %s6662_s27 = smul.u32 14, %s8632_s30 }
  0x13   : > { %514 = vmatpush.bf16.msra.mxu0 %v6379_v3  ;;  %6645 = vmatpush.bf16.msra.mxu3 %v6379_v3  ;;  %s309_s28 = sadd.s32 %s6830_s13, %s6660_s14  ;;  %v6385_v11 = vld [vmem:[%s8616_s3 + $0xa0] sm:$0xff]  ;;  %v6384_v15 = vld [vmem:[%s8616_s3 + $0x98] sm:$0xff]  ;;  %v6383_v23 = vld [vmem:[%s8616_s3 + $0x90] sm:$0xff]  ;;  %s323_s30 = sadd.s32 2, %s6727_s18  ;;  %vm4556_vm6 = vcmask 1040384   ;;  %vm4564_vm7 = vcmask 1042434  }
  0x14   : > { %601 = vmatpush.bf16.msra.mxu1 %v6371_v4  ;;  %s4889_s29 = sshll.u32 %s309_s28, 2  ;;  %v6374_v28 = vld [vmem:[%s8616_s3 + $0x48] sm:$0xff]  ;;  %v6373_v36 = vld [vmem:[%s8616_s3 + $0x40] sm:$0xff]  ;;  %v6428_v45 = vld [vmem:[%s8616_s3 + $0x1b8] sm:$0xff]  ;;  %s319_s8 = sadd.s32 %s6662_s27, %s6830_s13  ;;  %vm4568_vm8 = vcmask 1043459   ;;  %vm4560_vm9 = vcmask 1041409  }
  0x15   : > { %721 = vmatpush.bf16.msra.mxu2 %v6387_v5  ;;  %s6854_s14 = scalar_lea.vmem %s8613_s0, %s4889_s29  ;;  %v6366_v33 = vld [vmem:[%s8616_s3 + $0x8] sm:$0xff]  ;;  %v6365_v41 = vld [vmem:[%s8616_s3] sm:$0xff]  ;;  %v6408_v46 = vld [vmem:[%s8616_s3 + $0x138] sm:$0xff]  ;;  %s4890_s10 = sshll.u32 %s319_s8, 2 }
  0x16   : > { %v6860_v13 = vld [vmem:[%s6854_s14 + $0x10] sm:$0xff]  ;;  %v6624_v16 = vld [vmem:[%s6854_s14] sm:$0xff]   ;;  %v6870_v17 = vld [vmem:[%s6854_s14 + $0x8] sm:$0xff]  ;;  %s7287_s15 = scalar_lea.vmem %s8614_s1, %s4890_s10  ;;  %p326_p8 = scmp.lt.s32.totalorder %s323_s30, 9 }
  0x17   : > { %515 = vmatpush.bf16.msra.mxu0 %v6378_v6  ;;  %6646 = vmatpush.bf16.msra.mxu3 %v6378_v6  ;;  %v419_v19 = vshll.u32 %v6624_v16, 16  ;;  %v6876_v20 = vld [vmem:[%s6854_s14 + $0x18] sm:$0xff]  ;;  %v432_v21 = vshll.u32 %v6860_v13, 16  ;;  %v6635_v24 = vld [vmem:[%s6854_s14] sm:$0xf0]  ;;  %v417_v26 = vshrl.u32 %v6624_v16, 16 }
  0x18   : > { %602 = vmatpush.bf16.msra.mxu1 %v6370_v7  ;;  %v6636_v25 = vld [vmem:[%s6854_s14] sm:$0xe]  ;;  %v424_v27 = vshll.u32 %v6870_v17, 16  ;;  %v436_v31 = vshrl.u32 %v6860_v13, 16  ;;  %v440_v32 = vshll.u32 %v6876_v20, 16  ;;  %v6382_v34 = vld [vmem:[%s8616_s3 + $0x88] sm:$0xff] }
  0x19   : > { %722 = vmatpush.bf16.msra.mxu2 %v6386_v8  ;;  %v421_v29 = vrot.slane %v419_v19, 1  ;;  %v6891_v30 = vrot.slane %v432_v21, 1  ;;  %v6637_v35 = vor.u32 %v6636_v25, %v6635_v24  ;;  %v6381_v42 = vld [vmem:[%s8616_s3 + $0x80] sm:$0xff]  ;;  %v657_v44 = vrot.slane %v6870_v17, 1  ;;  %v6400_v50 = vld [vmem:[%s8616_s3 + $0xf8] sm:$0xff]  ;;  %v6407_v52 = vld [vmem:[%s8616_s3 + $0x130] sm:$0xff] }
  0x1a   : > { %v426_v38 = vrot.slane %v424_v27, 1  ;;  %v442_v40 = vrot.slane %v440_v32, 1  ;;  %v6416_v51 = vld [vmem:[%s8616_s3 + $0x178] sm:$0xff]  ;;  %v6427_v53 = vld [vmem:[%s8616_s3 + $0x1b0] sm:$0xff]  ;;  %v6936_v54 = vld [vmem:[%s6854_s14 + $0x20] sm:$0xff]  ;;  %v428_v59 = vshrl.u32 %v6870_v17, 16 }
  0x1b   : > { %516 = vmatpush.bf16.msra.mxu0 %v6377_v9  ;;  %6647 = vmatpush.bf16.msra.mxu3 %v6377_v9  ;;  %v422_v37 = vor.u32 %v421_v29, %v417_v26  ;;  %v438_v39 = vor.u32 %v436_v31, %v6891_v30  ;;  %v656_v43 = vrot.slane %v6637_v35, 1  ;;  %v6399_v55 = vld [vmem:[%s8616_s3 + $0xf0] sm:$0xff]  ;;  %v6406_v57 = vld [vmem:[%s8616_s3 + $0x128] sm:$0xff]  ;;  %v444_v60 = vshrl.u32 %v6876_v20, 16  ;;  %v764_v63 = vld [vmem:[%s6854_s14 + $0x4] sm:$0xe] }
  0x1c   : > { %603 = vmatpush.bf16.msra.mxu1 %v6369_v10  ;;  %v6415_v56 = vld [vmem:[%s8616_s3 + $0x170] sm:$0xff]  ;;  %v6426_v58 = vld [vmem:[%s8616_s3 + $0x1a8] sm:$0xff]  ;;  %v448_v61 = vshll.u32 %v6936_v54, 16  ;;  %v6405_v2 = vld [vmem:[%s8616_s3 + $0x120] sm:$0xff]  ;;  %v430_v4 = vor.u32 %v428_v59, %v426_v38  ;;  %v803_v8 = vunpack.c.l.b16 %v764_v63  ;;  %v659_v10 = vrot.slane %v6860_v13, 1  ;;  %s8634_s30 = smov (!%p326_p8, %s323_s30), 9 }
  0x1d   : > { %723 = vmatpush.bf16.msra.mxu2 %v6385_v11  ;;  %v427_v47 = vsel %vm415_vm0, %v422_v37, %v426_v38  ;;  %v443_v48 = vsel %vm415_vm0, %v438_v39, %v442_v40  ;;  %v658_v49 = vsel %vm655_vm1, %v656_v43, %v657_v44  ;;  %v6398_v62 = vld [vmem:[%s8616_s3 + $0xe8] sm:$0xff]  ;;  %v6425_v3 = vld [vmem:[%s8616_s3 + $0x1a0] sm:$0xff]  ;;  %v446_v5 = vor.u32 %v444_v60, %v442_v40  ;;  %v6403_v24 = vld [vmem:[%s8616_s3 + $0x110] sm:$0xff]  ;;  %s6663_s28 = smul.u32 14, %s8634_s30  ;;  %s8636_s18 = smov (!%p336_p9, %s6727_s18), 7 }
  0x1e   : > { %v6958_v0 = vld [vmem:[%s6854_s14 + $0x8] sm:$0xff]   ;;  %v450_v6 = vrot.slane %v448_v61, 1  ;;  %v6397_v11 = vld [vmem:[%s8616_s3 + $0xe0] sm:$0xff]  ;;  %v6423_v31 = vld [vmem:[%s8616_s3 + $0x190] sm:$0xff]  ;;  %s4892_s16 = sshll.u32 %s8636_s18, 3  ;;  %s4893_s17 = sshll.u32 %s8630_s19, 6 }
  0x1f   : > { %517 = vmatpush.bf16.msra.mxu0 %v6376_v12  ;;  %6648 = vmatpush.bf16.msra.mxu3 %v6376_v12  ;;  %v6414_v1 = vld [vmem:[%s8616_s3 + $0x168] sm:$0xff]  ;;  %v804_v9 = vunpack.c.l.b16 %v6958_v0  ;;  %v6404_v12 = vld [vmem:[%s8616_s3 + $0x118] sm:$0xff]  ;;  %v6421_v59 = vld [vmem:[%s8616_s3 + $0x180] sm:$0xff]  ;;  %s330_s29 = sadd.s32 %s6663_s28, %s6830_s13  ;;  %s340_s26 = sadd.s32 %s4893_s17, %s4892_s16 }
  0x20   : > { %604 = vmatpush.bf16.msra.mxu1 %v6368_v14  ;;  %v369_v7 = vld [vmem:[%s6854_s14 + $0x28] sm:$0x1]  ;;  %v6424_v14 = vld [vmem:[%s8616_s3 + $0x198] sm:$0xff]  ;;  %v6985_v19 = vld [vmem:[%s6854_s14 + $0xc] sm:$0xff]  ;;  %s4891_s13 = sshll.u32 %s330_s29, 2  ;;  %s4894_s18 = sshll.u32 %s340_s26, 2 }
  0x21   : > { %724 = vmatpush.bf16.msra.mxu2 %v6384_v15  ;;  %v408_v15 = vunpack.c.l.b16 %v369_v7  ;;  %v6989_v21 = vpack.c.b16 %v804_v9, %v803_v8  ;;  %v962_v29 = vshll.u32 %v6985_v19, 16  ;;  %v6402_v32 = vld [vmem:[%s8616_s3 + $0x108] sm:$0xff]  ;;  %v6444_v43 = vld [vmem:[%s8616_s3 + $0x238] sm:$0xff]  ;;  %s7926_s25 = scalar_lea.vmem %s8615_s2, %s4891_s13 }
  0x22   : > { %v6442_v60 = vld [vmem:[%s8616_s3 + $0x228] sm:$0xff] }
  0x23   : > { %518 = vmatpush.bf16.msra.mxu0 %v6375_v18  ;;  %6649 = vmatpush.bf16.msra.mxu3 %v6375_v18  ;;  %v451_v18 = vsel %vm415_vm0, %v446_v5, %v450_v6  ;;  %v7002_v25 = vpack.c.b16 %v408_v15, %v408_v15  ;;  %v951_v26 = vshrl.u32 %v6989_v21, 16  ;;  %v954_v27 = vshll.u32 %v6989_v21, 16  ;;  %v6410_v61 = vld [vmem:[%s8616_s3 + $0x148] sm:$0xff]  ;;  %v6469_v15 = vld [vmem:[%s8616_s3 + $0x2b8] sm:$0xff] }
  0x24   : > { %605 = vmatpush.bf16.msra.mxu1 %v6367_v22  ;;  %v660_v22 = vsel %vm655_vm1, %v657_v44, %v659_v10  ;;  %v964_v40 = vrot.slane %v962_v29, 2 }
  0x25   : > { %725 = vmatpush.bf16.msra.mxu2 %v6383_v23  ;;  %v6396_v23 = vld [vmem:[%s8616_s3 + $0xd8] sm:$0xff]  ;;  %v456_v35 = vshll.u32 %v7002_v25, 16  ;;  %v953_v37 = vrot.slane %v951_v26, 1  ;;  %v956_v38 = vrot.slane %v954_v27, 2 }
  0x27   : > { %519 = vmatpush.bf16.msra.mxu0 %v6374_v28  ;;  %6650 = vmatpush.bf16.msra.mxu3 %v6374_v28  ;;  %v959_v28 = vshrl.u32 %v6985_v19, 16 }
  0x28   : > { %606 = vmatpush.bf16.msra.mxu1 %v6366_v33  ;;  %v6412_v33 = vld [vmem:[%s8616_s3 + $0x158] sm:$0xff] }
  0x29   : > { %726 = vmatpush.bf16.msra.mxu2 %v6382_v34  ;;  %v452_v34 = vshrl.u32 %v6936_v54, 16  ;;  %v961_v39 = vrot.slane %v959_v28, 1  ;;  %v665_v28 = vrot.slane %v7002_v25, 1  ;;  %v6457_v25 = vld [vmem:[%s8616_s3 + $0x278] sm:$0xff] }
  0x2b   : > { %520 = vmatpush.bf16.msra.mxu0 %v6373_v36  ;;  %6651 = vmatpush.bf16.msra.mxu3 %v6373_v36  ;;  %v6422_v36 = vld [vmem:[%s8616_s3 + $0x188] sm:$0xff]  ;;  %v454_v44 = vor.u32 %v452_v34, %v450_v6  ;;  %v663_v6 = vrot.slane %v6936_v54, 1 }
  0x2c   : > { %607 = vmatpush.bf16.msra.mxu1 %v6365_v41  ;;  %v6394_v41 = vld [vmem:[%s8616_s3 + $0xc8] sm:$0xff] }
  0x2d   : > { %727 = vmatpush.bf16.msra.mxu2 %v6381_v42  ;;  %v6401_v42 = vld [vmem:[%s8616_s3 + $0x100] sm:$0xff] }
  0x2e   : > { %521 = vmatmul.bf16.vlgmr.msra.gmra.mxu0 %v427_v47  ;;  %531 = vmatmul.bf16.vlgmr.msra.gmra.mxu3 %v443_v48  ;;  %v965_v47 = vor.u32 %v964_v40, %v961_v39  ;;  %v661_v48 = vrot.slane %v6876_v20, 1  ;;  %v1270_v39 = vunpack.c.h.b16 %v6958_v0  ;;  %v6438_v40 = vld [vmem:[%s8616_s3 + $0x208] sm:$0xff] }
  0x2f   : > { %1056 = vmatpush.bf16.msrb.mxu0 %v6408_v46  ;;  %608 = vmatmul.bf16.vlgmr.msra.gmra.mxu1 %v6624_v16  ;;  %v435_v16 = vsel %vm415_vm0, %v430_v4, %v6891_v30  ;;  %v6413_v30 = vld [vmem:[%s8616_s3 + $0x160] sm:$0xff]  ;;  %v957_v46 = vor.u32 %v956_v38, %v953_v37  ;;  %v821_v4 = vrot.slane %v6985_v19, 1 }
  0x30   : > { %728 = vmatmul.bf16.vlgmr.msra.gmra.mxu2 %v658_v49  ;;  %884 = vmatpush.bf16.msrb.mxu3 %v6400_v50  ;;  %v6393_v49 = vld [vmem:[%s8616_s3 + $0xc0] sm:$0xff] }
  0x31   : > { %1350 = vmatpush.bf16.msrb.mxu2 %v6428_v45  ;;  %1186 = vmatpush.bf16.msrb.mxu1 %v6416_v51  ;;  %v458_v45 = vrot.slane %v456_v35, 1  ;;  %v966_v51 = vsel %vm949_vm2, %v957_v46, %v965_v47  ;;  %v6433_v37 = vld [vmem:[%s8616_s3 + $0x1e0] sm:$0xff] }
  0x33   : > { %1057 = vmatpush.bf16.msrb.mxu0 %v6407_v52  ;;  %v459_v50 = vsel %vm415_vm0, %v454_v44, %v458_v45  ;;  %v7045_v52 = vld [vmem:[%s6854_s14 + $0x14] sm:$0xff] }
  0x34   : > { %885 = vmatpush.bf16.msrb.mxu3 %v6399_v55  ;;  %v6443_v55 = vld [vmem:[%s8616_s3 + $0x230] sm:$0xff]  ;;  %v823_v26 = vrot.slane %v7045_v52, 1 }
  0x35   : > { %1351 = vmatpush.bf16.msrb.mxu2 %v6427_v53  ;;  %1187 = vmatpush.bf16.msrb.mxu1 %v6415_v56  ;;  %v662_v53 = vsel %vm655_vm1, %v659_v10, %v661_v48  ;;  %v968_v56 = vshrl.u32 %v7045_v52, 16  ;;  %v7083_v10 = vld [vmem:[%s6854_s14 + $0x1c] sm:$0xff] }
  0x36   : > { %v824_v29 = vsel %vm655_vm1, %v821_v4, %v823_v26 }
  0x37   : > { %1058 = vmatpush.bf16.msrb.mxu0 %v6406_v57  ;;  %v971_v57 = vshll.u32 %v7045_v52, 16 }
  0x38   : > { %886 = vmatpush.bf16.msrb.mxu3 %v6398_v62  ;;  %v970_v62 = vrot.slane %v968_v56, 1  ;;  %v1123_v56 = vrot.slane %v6985_v19, 2  ;;  %v6432_v19 = vld [vmem:[%s8616_s3 + $0x1d8] sm:$0xff] }
  0x39   : > { %1352 = vmatpush.bf16.msrb.mxu2 %v6426_v58  ;;  %1188 = vmatpush.bf16.msrb.mxu1 %v6414_v1  ;;  %v6411_v58 = vld [vmem:[%s8616_s3 + $0x150] sm:$0xff]  ;;  %v973_v63 = vrot.slane %v971_v57, 2  ;;  %v6441_v1 = vld [vmem:[%s8616_s3 + $0x220] sm:$0xff] }
  0x3b   : > { %1059 = vmatpush.bf16.msrb.mxu0 %v6405_v2  ;;  %v6409_v2 = vld [vmem:[%s8616_s3 + $0x140] sm:$0xff]  ;;  %v974_v5 = vor.u32 %v973_v63, %v970_v62 }
  0x3c   : > { %887 = vmatpush.bf16.msrb.mxu3 %v6397_v11  ;;  %v664_v11 = vsel %vm655_vm1, %v661_v48, %v663_v6 }
  0x3d   : > { %1353 = vmatpush.bf16.msrb.mxu2 %v6425_v3  ;;  %1189 = vmatpush.bf16.msrb.mxu1 %v6413_v30  ;;  %v820_v3 = vrot.slane %v6989_v21, 1  ;;  %v975_v8 = vsel %vm949_vm2, %v965_v47, %v974_v5  ;;  %v6434_v21 = vld [vmem:[%s8616_s3 + $0x1e8] sm:$0xff]  ;;  %v7145_v47 = vld [vmem:[%s6854_s14 + $0x10] sm:$0xff] }
  0x3e   : > { %526 = vmatmul.bf16.gmra.mxu0 %v435_v16  ;;  %536 = vmatmul.bf16.gmra.mxu3 %v451_v18  ;;  %v6435_v16 = vld [vmem:[%s8616_s3 + $0x1f0] sm:$0xff]  ;;  %v6440_v18 = vld [vmem:[%s8616_s3 + $0x218] sm:$0xff] }
  0x3f   : > { %1060 = vmatpush.bf16.msrb.mxu0 %v6404_v12  ;;  %613 = vmatmul.bf16.gmra.mxu1 %v6870_v17  ;;  %v6395_v17 = vld [vmem:[%s8616_s3 + $0xd0] sm:$0xff]  ;;  %v822_v7 = vsel %vm655_vm1, %v820_v3, %v821_v4  ;;  %v977_v12 = vshrl.u32 %v7083_v10, 16  ;;  %v6489_v4 = vld [vmem:[%s8616_s3 + $0x338] sm:$0xff] }
  0x40   : > { %733 = vmatmul.bf16.gmra.mxu2 %v660_v22  ;;  %888 = vmatpush.bf16.msrb.mxu3 %v6396_v23  ;;  %v6439_v22 = vld [vmem:[%s8616_s3 + $0x210] sm:$0xff] }
  0x41   : > { %1354 = vmatpush.bf16.msrb.mxu2 %v6424_v14  ;;  %1190 = vmatpush.bf16.msrb.mxu1 %v6412_v33  ;;  %v980_v14 = vshll.u32 %v7083_v10, 16  ;;  %v979_v23 = vrot.slane %v977_v12, 1  ;;  %v1230_v33 = vld [vmem:[%s6854_s14 + $0x8] sm:$0xc]  ;;  %v6431_v3 = vld [vmem:[%s8616_s3 + $0x1d0] sm:$0xff] }
  0x43   : > { %1061 = vmatpush.bf16.msrb.mxu0 %v6403_v24  ;;  %v982_v24 = vrot.slane %v980_v14, 2  ;;  %v1125_v14 = vrot.slane %v7045_v52, 2 }
  0x44   : > { %889 = vmatpush.bf16.msrb.mxu3 %v6395_v17  ;;  %v666_v17 = vsel %vm655_vm1, %v663_v6, %v665_v28  ;;  %v6464_v28 = vld [vmem:[%s8616_s3 + $0x290] sm:$0xff] }
  0x45   : > { %1355 = vmatpush.bf16.msrb.mxu2 %v6423_v31  ;;  %1191 = vmatpush.bf16.msrb.mxu1 %v6411_v58  ;;  %v983_v27 = vor.u32 %v982_v24, %v979_v23  ;;  %v7112_v31 = vld [vmem:[%s6854_s14 + $0x24] sm:$0xff]  ;;  %v774_v23 = vld [vmem:[%s6854_s14 + $0x2c] sm:$0x1] }
  0x46   : > { %v986_v34 = vshrl.u32 %v7112_v31, 16  ;;  %v989_v35 = vshll.u32 %v7112_v31, 16  ;;  %v1566_v24 = vld [vmem:[%s6854_s14 + $0x8] sm:$0x8]  ;;  %v813_v52 = vunpack.c.l.b16 %v774_v23 }
  0x47   : > { %1062 = vmatpush.bf16.msrb.mxu0 %v6402_v32  ;;  %v984_v30 = vsel %vm949_vm2, %v974_v5, %v983_v27  ;;  %v1100_v32 = vld [vmem:[%s6854_s14 + $0x4] sm:$0xc] }
  0x48   : > { %890 = vmatpush.bf16.msrb.mxu3 %v6394_v41  ;;  %v1119_v38 = vunpack.c.l.b16 %v1100_v32  ;;  %v6456_v41 = vld [vmem:[%s8616_s3 + $0x270] sm:$0xff]  ;;  %v988_v44 = vrot.slane %v986_v34, 1  ;;  %v991_v45 = vrot.slane %v989_v35, 2  ;;  %v1589_v35 = vrot.slane %v7145_v47, 3 }
  0x49   : > { %1356 = vmatpush.bf16.msrb.mxu2 %v6422_v36  ;;  %1192 = vmatpush.bf16.msrb.mxu1 %v6410_v61  ;;  %v6467_v36 = vld [vmem:[%s8616_s3 + $0x2a8] sm:$0xff]  ;;  %v6488_v32 = vld [vmem:[%s8616_s3 + $0x330] sm:$0xff] }
  0x4a   : > { %v1120_v46 = vpack.c.b16 %v804_v9, %v1119_v38  ;;  %v1287_v9 = vrot.slane %v7145_v47, 2  ;;  %v6453_v38 = vld [vmem:[%s8616_s3 + $0x258] sm:$0xff] }
  0x4b   : > { %1063 = vmatpush.bf16.msrb.mxu0 %v6401_v42  ;;  %v6466_v42 = vld [vmem:[%s8616_s3 + $0x2a0] sm:$0xff] }
  0x4c   : > { %891 = vmatpush.bf16.msrb.mxu3 %v6393_v49  ;;  %v928_v49 = vld [vmem:[%s6854_s14 + $0x2c] sm:$0x3] }
  0x4d   : > { %1357 = vmatpush.bf16.msrb.mxu2 %v6421_v59  ;;  %1193 = vmatpush.bf16.msrb.mxu1 %v6409_v2  ;;  %v6465_v2 = vld [vmem:[%s8616_s3 + $0x298] sm:$0xff] }
  0x4e   : > { %541 = vmatmul.bf16.gmra.mxu3 %v459_v50  ;;  %1064 = vmatmul.bf16.vlgmr.msrb.gmra.mxu0 %v966_v51  ;;  %v825_v50 = vrot.slane %v7083_v10, 1  ;;  %v992_v51 = vor.u32 %v991_v45, %v988_v44  ;;  %v6487_v44 = vld [vmem:[%s8616_s3 + $0x328] sm:$0xff]  ;;  %v6452_v45 = vld [vmem:[%s8616_s3 + $0x250] sm:$0xff] }
  0x4f   : > { %1652 = vmatpush.bf16.msra.mxu0 %v6444_v43  ;;  %618 = vmatmul.bf16.gmra.mxu1 %v6860_v13  ;;  %v6436_v13 = vld [vmem:[%s8616_s3 + $0x1f8] sm:$0xff]  ;;  %v6437_v43 = vld [vmem:[%s8616_s3 + $0x200] sm:$0xff] }
  0x50   : > { %738 = vmatmul.bf16.gmra.mxu2 %v662_v53  ;;  %1522 = vmatpush.bf16.msra.mxu3 %v6436_v13  ;;  %v947_v53 = vunpack.c.l.b16 %v928_v49  ;;  %v826_v58 = vsel %vm655_vm1, %v823_v26, %v825_v50  ;;  %v993_v59 = vsel %vm949_vm2, %v983_v27, %v992_v51  ;;  %v1585_v26 = vunpack.c.l.b16 %v1566_v24  ;;  %v6454_v27 = vld [vmem:[%s8616_s3 + $0x260] sm:$0xff] }
  0x51   : > { %1998 = vmatpush.bf16.msra.mxu2 %v6469_v15  ;;  %1801 = vmatpush.bf16.msra.mxu1 %v6457_v25  ;;  %v1127_v25 = vrot.slane %v7083_v10, 2 }
  0x53   : > { %1653 = vmatpush.bf16.msra.mxu0 %v6443_v55  ;;  %v1122_v55 = vrot.slane %v1120_v46, 2 }
  0x54   : > { %1523 = vmatpush.bf16.msra.mxu3 %v6435_v16  ;;  %v6429_v16 = vld [vmem:[%s8616_s3 + $0x1c0] sm:$0xff] }
  0x55   : > { %1802 = vmatpush.bf16.msra.mxu1 %v6456_v41  ;;  %v1124_v13 = vsel %vm1121_vm3, %v1122_v55, %v1123_v56  ;;  %v6477_v55 = vld [vmem:[%s8616_s3 + $0x2f8] sm:$0xff] }
  0x57   : > { %1654 = vmatpush.bf16.msra.mxu0 %v6442_v60  ;;  %v7158_v60 = vpack.c.b16 %v947_v53, %v947_v53  ;;  %v7235_v53 = vld [vmem:[%s6854_s14 + $0x28] sm:$0xff] }
  0x58   : > { %1524 = vmatpush.bf16.msra.mxu3 %v6434_v21  ;;  %v1126_v21 = vsel %vm1121_vm3, %v1123_v56, %v1125_v14  ;;  %v6486_v56 = vld [vmem:[%s8616_s3 + $0x320] sm:$0xff] }
  0x59   : > { %v995_v62 = vshrl.u32 %v7158_v60, 16  ;;  %v998_v63 = vshll.u32 %v7158_v60, 16 }
  0x5b   : > { %1655 = vmatpush.bf16.msra.mxu0 %v6441_v1  ;;  %v6455_v1 = vld [vmem:[%s8616_s3 + $0x268] sm:$0xff]  ;;  %v997_v5 = vrot.slane %v995_v62, 1  ;;  %v1000_v6 = vrot.slane %v998_v63, 2 }
  0x5c   : > { %1525 = vmatpush.bf16.msra.mxu3 %v6433_v37  ;;  %1803 = vmatpush.bf16.msra.mxu1 %v6455_v1 }
  0x5d   : > { %v1001_v12 = vor.u32 %v1000_v6, %v997_v5 }
  0x5e   : > { %892 = vmatmul.bf16.vlgmr.msrb.gmra.mxu3 %v822_v7  ;;  %1069 = vmatmul.bf16.gmra.mxu0 %v975_v8  ;;  %v7180_v7 = vld [vmem:[%s6854_s14 + $0x18] sm:$0xff]  ;;  %v6430_v8 = vld [vmem:[%s8616_s3 + $0x1c8] sm:$0xff] }
  0x5f   : > { %623 = vmatmul.bf16.gmra.mxu1 %v6876_v20  ;;  %v6468_v20 = vld [vmem:[%s8616_s3 + $0x2b0] sm:$0xff]  ;;  %1656 = vmatpush.bf16.msra.mxu0 %v6440_v18  ;;  %v1289_v15 = vrot.slane %v7180_v7, 2  ;;  %v1434_v5 = vshrl.u32 %v7180_v7, 16  ;;  %v1437_v6 = vshll.u32 %v7180_v7, 16 }
  0x60   : > { %743 = vmatmul.bf16.gmra.mxu2 %v664_v11  ;;  %1526 = vmatpush.bf16.msra.mxu3 %v6432_v19  ;;  %v827_v11 = vrot.slane %v7112_v31, 1 }
  0x61   : > { %1999 = vmatpush.bf16.msra.mxu2 %v6468_v20  ;;  %v1002_v20 = vsel %vm949_vm2, %v992_v51, %v1001_v12  ;;  %1804 = vmatpush.bf16.msra.mxu1 %v6454_v27 }
  0x62   : > { %v828_v18 = vsel %vm655_vm1, %v825_v50, %v827_v11 }
  0x63   : > { %1657 = vmatpush.bf16.msra.mxu0 %v6439_v22  ;;  %v1290_v22 = vsel %vm1121_vm3, %v1287_v9, %v1289_v15 }
  0x64   : > { %1527 = vmatpush.bf16.msra.mxu3 %v6431_v3 }
  0x65   : > { %2000 = vmatpush.bf16.msra.mxu2 %v6467_v36  ;;  %1805 = vmatpush.bf16.msra.mxu1 %v6453_v38  ;;  %v6628_v38 = vld [vmem:[%s7287_s15] sm:$0xff]  }
  0x67   : > { %1658 = vmatpush.bf16.msra.mxu0 %v6438_v40 }
  0x68   : > { %1528 = vmatpush.bf16.msra.mxu3 %v6430_v8  ;;  %v6505_v8 = vld [vmem:[%s8616_s3 + $0x3b8] sm:$0xff] }
  0x69   : > { %2001 = vmatpush.bf16.msra.mxu2 %v6466_v42  ;;  %v1425_v42 = vshrl.u32 %v7145_v47, 16  ;;  %1806 = vmatpush.bf16.msra.mxu1 %v6452_v45 }
  0x6b   : > { %1659 = vmatpush.bf16.msra.mxu0 %v6437_v43  ;;  %v1428_v43 = vshll.u32 %v7145_v47, 16  ;;  %v1427_v50 = vrot.slane %v1425_v42, 2  ;;  %v6462_v47 = vld [vmem:[%s8616_s3 + $0x280] sm:$0xff]  ;;  %v1904_v42 = vshll.u32 %v6628_v38, 16 }
  0x6c   : > { %1529 = vmatpush.bf16.msra.mxu3 %v6429_v16 }
  0x6d   : > { %2002 = vmatpush.bf16.msra.mxu2 %v6465_v2  ;;  %v1430_v51 = vrot.slane %v1428_v43, 3 }
  0x6e   : > { %897 = vmatmul.bf16.gmra.mxu3 %v824_v29  ;;  %1074 = vmatmul.bf16.gmra.mxu0 %v984_v30  ;;  %v819_v29 = vpack.c.b16 %v813_v52, %v813_v52  ;;  %v1586_v30 = vpack.c.b16 %v1270_v39, %v1585_v26  ;;  %v6504_v52 = vld [vmem:[%s8616_s3 + $0x3b0] sm:$0xff] }
  0x6f   : > { %628 = vmatmul.bf16.gmra.mxu1 %v6936_v54  ;;  %v1269_v54 = vunpack.c.l.b16 %v1230_v33  ;;  %2291 = vmatpush.bf16.msrb.mxu0 %v6489_v4  ;;  %v1240_v4 = vld [vmem:[%s6854_s14 + $0x30] sm:$0x3] }
  0x70   : > { %748 = vmatmul.bf16.gmra.mxu2 %v666_v17  ;;  %v7206_v17 = vld [vmem:[%s6854_s14 + $0x20] sm:$0xff]  ;;  %v829_v33 = vrot.slane %v819_v29, 1  ;;  %v1588_v34 = vrot.slane %v1586_v30, 3  ;;  %2127 = vmatpush.bf16.msrb.mxu3 %v6477_v55  ;;  %v1906_v55 = vrot.slane %v1904_v42, 1 }
  0x71   : > { %v7149_v48 = vpack.c.b16 %v1270_v39, %v1269_v54  ;;  %2003 = vmatpush.bf16.msra.mxu2 %v6464_v28  ;;  %v1291_v36 = vrot.slane %v7206_v17, 2  ;;  %v6463_v54 = vld [vmem:[%s8616_s3 + $0x288] sm:$0xff]  ;;  %v1128_v39 = vsel %vm1121_vm3, %v1125_v14, %v1127_v25  ;;  %v1593_v27 = vrot.slane %v7206_v17, 3 }
  0x72   : > { %v830_v37 = vsel %vm655_vm1, %v827_v11, %v829_v33  ;;  %v1590_v0 = vsel %vm1587_vm4, %v1588_v34, %v1589_v35  ;;  %v1279_v11 = vunpack.c.l.b16 %v1240_v4  ;;  %v1131_v28 = vrot.slane %v7158_v60, 2 }
  0x73   : > { %v1286_v57 = vrot.slane %v7149_v48, 2  ;;  %2292 = vmatpush.bf16.msrb.mxu0 %v6488_v32  ;;  %v1292_v40 = vsel %vm1121_vm3, %v1289_v15, %v1291_v36  ;;  %v1417_v10 = vshrl.u32 %v7149_v48, 16  ;;  %v1420_v41 = vshll.u32 %v7149_v48, 16  ;;  %v6451_v48 = vld [vmem:[%s8616_s3 + $0x248] sm:$0xff] }
  0x74   : > { %1807 = vmatpush.bf16.msra.mxu1 %v6451_v48  ;;  %v1285_v23 = vpack.c.b16 %v1279_v11, %v1279_v11  ;;  %v1902_v48 = vshrl.u32 %v6628_v38, 16  ;;  %v1394_v11 = vld [vmem:[%s6854_s14 + $0x30] sm:$0x7]  ;;  %s8559_s14 = scalar_lea.vmem %s8618_s5, %s4894_s18 }
  0x75   : > { %v1288_v61 = vsel %vm1121_vm3, %v1286_v57, %v1287_v9  ;;  %2004 = vmatpush.bf16.msra.mxu2 %v6463_v54  ;;  %v1419_v46 = vrot.slane %v1417_v10, 2  ;;  %v1422_v49 = vrot.slane %v1420_v41, 3  ;;  %v1431_v9 = vor.u32 %v1430_v51, %v1427_v50  ;;  %v6475_v54 = vld [vmem:[%s8616_s3 + $0x2e8] sm:$0xff]  ;;  %v6497_v51 = vld [vmem:[%s8616_s3 + $0x378] sm:$0xff] }
  0x76   : > { %v1295_v29 = vrot.slane %v1285_v23, 2  ;;  %v1446_v10 = vshll.u32 %v7206_v17, 16  ;;  %v7305_v41 = vld [vmem:[%s7287_s15 + $0x8] sm:$0xff] }
  0x77   : > { %2293 = vmatpush.bf16.msrb.mxu0 %v6487_v44  ;;  %v1423_v57 = vor.u32 %v1422_v49, %v1419_v46 }
  0x78   : > { %v1448_v50 = vrot.slane %v1446_v10, 3  ;;  %v6470_v10 = vld [vmem:[%s8616_s3 + $0x2c0] sm:$0xff] }
  0x79   : > { %2005 = vmatpush.bf16.msra.mxu2 %v6462_v47  ;;  %v1432_v62 = vsel %vm1415_vm5, %v1423_v57, %v1431_v9 }
  0x7b   : > { %2294 = vmatpush.bf16.msrb.mxu0 %v6486_v56  ;;  %v1909_v56 = vshll.u32 %v7305_v41, 16 }
  0x7e   : > { %902 = vmatmul.bf16.gmra.mxu3 %v826_v58  ;;  %1079 = vmatmul.bf16.gmra.mxu0 %v993_v59  ;;  %v1591_v58 = vrot.slane %v7180_v7, 3  ;;  %v1129_v59 = vrot.slane %v7112_v31, 2  ;;  %v6485_v7 = vld [vmem:[%s8616_s3 + $0x318] sm:$0xff] }
  0x7f   : > { %1194 = vmatmul.bf16.vlgmr.msrb.gmra.mxu1 %v1124_v13  ;;  %v1293_v13 = vrot.slane %v7235_v53, 2  ;;  %2295 = vmatpush.bf16.msrb.mxu0 %v6485_v7  ;;  %v1413_v7 = vunpack.c.l.b16 %v1394_v11 }
  0x80   : > { %1358 = vmatmul.bf16.vlgmr.msrb.gmra.mxu2 %v1288_v61  ;;  %v6450_v61 = vld [vmem:[%s8616_s3 + $0x240] sm:$0xff]  ;;  %v1592_v63 = vsel %vm1587_vm4, %v1589_v35, %v1591_v58  ;;  %v1130_v2 = vsel %vm1121_vm3, %v1127_v25, %v1129_v59  ;;  %v1594_v25 = vsel %vm1587_vm4, %v1591_v58, %v1593_v27  ;;  %v1132_v60 = vsel %vm1121_vm3, %v1129_v59, %v1131_v28  ;;  %v6483_v58 = vld [vmem:[%s8616_s3 + $0x308] sm:$0xff] }
  0x81   : > { %v1294_v31 = vsel %vm1121_vm3, %v1291_v36, %v1293_v13  ;;  %1808 = vmatpush.bf16.msra.mxu1 %v6450_v61  ;;  %2591 = vmatpush.bf16.msrb.mxu2 %v6505_v8  ;;  %v1907_v61 = vor.u32 %v1906_v55, %v1902_v48  ;;  %v2171_v48 = vld [vmem:[%s7287_s15 + $0x4] sm:$0xe]  ;;  %v7396_v55 = vld [vmem:[%s7287_s15 + $0x8] sm:$0xff]  }
  0x85   : > { %2592 = vmatpush.bf16.msrb.mxu2 %v6504_v52  ;;  %2462 = vmatpush.bf16.msrb.mxu1 %v6497_v51  ;;  %v6472_v52 = vld [vmem:[%s8616_s3 + $0x2d0] sm:$0xff]  ;;  %v6525_v51 = vld [vmem:[%s8616_s3 + $0x438] sm:$0xff] }
  0x8e   : > { %907 = vmatmul.bf16.gmra.mxu3 %v828_v18  ;;  %1084 = vmatmul.bf16.gmra.mxu0 %v1002_v20  ;;  %v1436_v18 = vrot.slane %v1434_v5, 2  ;;  %v1439_v20 = vrot.slane %v1437_v6, 3  ;;  %v6445_v5 = vld [vmem:[%s7287_s15] sm:$0xff] }
  0x8f   : > { %1199 = vmatmul.bf16.gmra.mxu1 %v1126_v21  ;;  %v6476_v21 = vld [vmem:[%s8616_s3 + $0x2f0] sm:$0xff] }
  0x90   : > { %1363 = vmatmul.bf16.gmra.mxu2 %v1290_v22  ;;  %2128 = vmatpush.bf16.msrb.mxu3 %v6476_v21  ;;  %v1440_v26 = vor.u32 %v1439_v20, %v1436_v18  ;;  %v6502_v18 = vld [vmem:[%s8616_s3 + $0x3a0] sm:$0xff]  ;;  %v6473_v20 = vld [vmem:[%s8616_s3 + $0x2d8] sm:$0xff]  ;;  %v1452_v21 = vshrl.u32 %v7235_v53, 16 }
  0x92   : > { %v1441_v35 = vsel %vm1415_vm5, %v1431_v9, %v1440_v26  ;;  %v6474_v9 = vld [vmem:[%s8616_s3 + $0x2e0] sm:$0xff]  ;;  %v1454_v28 = vrot.slane %v1452_v21, 2  ;;  %v6524_v21 = vld [vmem:[%s8616_s3 + $0x430] sm:$0xff] }
  0x94   : > { %2129 = vmatpush.bf16.msrb.mxu3 %v6475_v54 }
  0x98   : > { %2130 = vmatpush.bf16.msrb.mxu3 %v6474_v9 }
  0x9c   : > { %2131 = vmatpush.bf16.msrb.mxu3 %v6473_v20 }
  0x9e   : > { %912 = vmatmul.bf16.gmra.mxu3 %v830_v37  ;;  %1660 = vmatmul.bf16.vlgmr.msra.gmra.mxu0 %v1590_v0  ;;  %v1296_v37 = vsel %vm1121_vm3, %v1293_v13, %v1295_v29  ;;  %v1595_v13 = vrot.slane %v7235_v53, 3 }
  0x9f   : > { %1204 = vmatmul.bf16.gmra.mxu1 %v1128_v39  ;;  %v6484_v39 = vld [vmem:[%s8616_s3 + $0x310] sm:$0xff] }
  0xa0   : > { %1368 = vmatmul.bf16.gmra.mxu2 %v1292_v40  ;;  %v1443_v40 = vshrl.u32 %v7206_v17, 16  ;;  %2296 = vmatpush.bf16.msrb.mxu0 %v6484_v39  ;;  %v6503_v17 = vld [vmem:[%s8616_s3 + $0x3a8] sm:$0xff]  ;;  %v1596_v4 = vsel %vm1587_vm4, %v1593_v27, %v1595_v13 }
  0xa1   : > { %2593 = vmatpush.bf16.msrb.mxu2 %v6503_v17  ;;  %2132 = vmatpush.bf16.msrb.mxu3 %v6472_v52 }
  0xa2   : > { %v1445_v49 = vrot.slane %v1443_v40, 2 }
  0xa4   : > { %v1449_v59 = vor.u32 %v1448_v50, %v1445_v49  ;;  %2297 = vmatpush.bf16.msrb.mxu0 %v6483_v58  ;;  %v6446_v50 = vld [vmem:[%s7287_s15 + $0x8] sm:$0xff]  ;;  %v2210_v58 = vunpack.c.l.b16 %v2171_v48 }
  0xa5   : > { %2594 = vmatpush.bf16.msrb.mxu2 %v6502_v18 }
  0xab   : > { %v522_v19 = vpop.f32.mrf.mxu0 }
  0xac   : > { %v609_v1 = vpop.f32.mrf.mxu1 }
  0xad   : > { %v610_v3 = vadd.f32 %v609_v1, %v522_v19  ;;  %v1911_v19 = vrot.slane %v1909_v56, 1  ;;  %v6482_v1 = vld [vmem:[%s8616_s3 + $0x300] sm:$0xff] }
  0xae   : > { %1530 = vmatmul.bf16.vlgmr.msra.gmra.mxu3 %v1432_v62  ;;  %1665 = vmatmul.bf16.gmra.mxu0 %v1592_v63 }
  0xaf   : > { %1209 = vmatmul.bf16.gmra.mxu1 %v1130_v2  ;;  %v1912_v8 = vsel %vm415_vm0, %v1907_v61, %v1911_v19  ;;  %2298 = vmatpush.bf16.msrb.mxu0 %v6482_v1  ;;  %v7407_v61 = vld [vmem:[%s7287_s15 + $0x18] sm:$0xff] }
  0xb0   : > { %1373 = vmatmul.bf16.gmra.mxu2 %v1294_v31  ;;  %v1925_v18 = vshll.u32 %v7407_v61, 16 }
  0xb1   : > { %v7266_v12 = vpop.f32.mrf.mxu3 }
  0xb3   : > { %v729_v14 = vpop.f32.mrf.mxu2  ;;  %v524_v16 = vpop.f32.mrf.mxu0  ;;  %2926 = vmatpush.bf16.msra.mxu0 %v6525_v51 }
  0xb4   : > { %v7268_v15 = vadd.f32 %v729_v14, %v610_v3  ;;  %v611_v22 = vpop.f32.mrf.mxu1  ;;  %v1450_v3 = vsel %vm1415_vm5, %v1440_v26, %v1449_v59 }
  0xb5   : > { %v612_v24 = vadd.f32 %v611_v22, %v524_v16  ;;  %v6496_v16 = vld [vmem:[%s8616_s3 + $0x370] sm:$0xff] }
  0xb6   : > { %v7352_v22 = vld [vmem:[%s7287_s15 + $0x10] sm:$0xff]  ;;  %2463 = vmatpush.bf16.msrb.mxu1 %v6496_v16 }
  0xb7   : > { %v1921_v16 = vshrl.u32 %v7352_v22, 16  ;;  %2927 = vmatpush.bf16.msra.mxu0 %v6524_v21 }
  0xb9   : > { %v7282_v30 = vpop.f32.mrf.mxu3 }
  0xbb   : > { %v731_v32 = vpop.f32.mrf.mxu2  ;;  %v527_v34 = vpop.f32.mrf.mxu0 }
  0xbc   : > { %v7289_v33 = vadd.f32 %v731_v32, %v612_v24  ;;  %v614_v36 = vpop.f32.mrf.mxu1 }
  0xbd   : > { %v615_v0 = vadd.f32 %v614_v36, %v527_v34  ;;  %v1913_v34 = vshrl.u32 %v7305_v41, 16  ;;  %v6495_v36 = vld [vmem:[%s8616_s3 + $0x368] sm:$0xff] }
  0xbe   : > { %1535 = vmatmul.bf16.gmra.mxu3 %v1441_v35  ;;  %1670 = vmatmul.bf16.gmra.mxu0 %v1594_v25  ;;  %v1917_v35 = vshll.u32 %v7352_v22, 16 }
  0xbf   : > { %1214 = vmatmul.bf16.gmra.mxu1 %v1132_v60  ;;  %v6501_v60 = vld [vmem:[%s8616_s3 + $0x398] sm:$0xff] }
  0xc0   : > { %1378 = vmatmul.bf16.gmra.mxu2 %v1296_v37  ;;  %v6471_v37 = vld [vmem:[%s8616_s3 + $0x2c8] sm:$0xff]  ;;  %2464 = vmatpush.bf16.msrb.mxu1 %v6495_v36  ;;  %v1919_v54 = vrot.slane %v1917_v35, 1  ;;  %v6447_v35 = vld [vmem:[%s7287_s15 + $0x10] sm:$0xff]  ;;  %v6493_v36 = vld [vmem:[%s8616_s3 + $0x358] sm:$0xff] }
  0xc1   : > { %v7307_v43 = vpop.f32.mrf.mxu3  ;;  %2595 = vmatpush.bf16.msrb.mxu2 %v6501_v60  ;;  %2133 = vmatpush.bf16.msrb.mxu3 %v6471_v37 }
  0xc2   : > { %v1923_v52 = vor.u32 %v1921_v16, %v1919_v54 }
  0xc3   : > { %v734_v44 = vpop.f32.mrf.mxu2  ;;  %v529_v46 = vpop.f32.mrf.mxu0 }
  0xc4   : > { %v7309_v45 = vadd.f32 %v734_v44, %v615_v0  ;;  %v616_v47 = vpop.f32.mrf.mxu1 }
  0xc5   : > { %v617_v57 = vadd.f32 %v616_v47, %v529_v46  ;;  %2134 = vmatpush.bf16.msrb.mxu3 %v6470_v10  ;;  %v6639_v10 = vld [vmem:[%s7287_s15] sm:$0xe] }
  0xc9   : > { %v7325_v62 = vpop.f32.mrf.mxu3 }
  0xcb   : > { %v736_v63 = vpop.f32.mrf.mxu2  ;;  %v7332_v31 = vpop.f32.mrf.mxu0 }
  0xcc   : > { %v7330_v2 = vadd.f32 %v736_v63, %v617_v57  ;;  %v619_v6 = vpop.f32.mrf.mxu1 }
  0xcd   : > { %v620_v14 = vadd.f32 %v619_v6, %v7266_v12  ;;  %v1455_v12 = vshll.u32 %v7235_v53, 16  ;;  %v1414_v53 = vpack.c.b16 %v1413_v7, %v1413_v7 }
  0xce   : > { %1540 = vmatmul.bf16.gmra.mxu3 %v1450_v3  ;;  %1675 = vmatmul.bf16.gmra.mxu0 %v1596_v4 }
  0xcf   : > { %1809 = vmatmul.bf16.vlgmr.msra.gmra.mxu1 %v6445_v5  ;;  %v1457_v29 = vrot.slane %v1455_v12, 3  ;;  %v1597_v38 = vrot.slane %v1414_v53, 3  ;;  %v1461_v57 = vshrl.u32 %v1414_v53, 16  ;;  %v1464_v9 = vshll.u32 %v1414_v53, 16 }
  0xd0   : > { %2006 = vmatmul.bf16.vlgmr.msra.gmra.mxu2 %v1912_v8  ;;  %v7415_v8 = vld [vmem:[%s7287_s15 + $0xc] sm:$0xff] }
  0xd1   : > { %v7354_v23 = vpop.f32.mrf.mxu3  ;;  %v7375_v0 = vor.u32 %v1457_v29, %v1454_v28  ;;  %v1598_v49 = vsel %vm1587_vm4, %v1595_v13, %v1597_v38  ;;  %v6494_v13 = vld [vmem:[%s8616_s3 + $0x360] sm:$0xff]  ;;  %v1463_v5 = vrot.slane %v1461_v57, 2  ;;  %v1466_v6 = vrot.slane %v1464_v9, 3 }
  0xd2   : > { %2465 = vmatpush.bf16.msrb.mxu1 %v6494_v13  ;;  %v1927_v28 = vrot.slane %v1925_v18, 1  ;;  %v6491_v13 = vld [vmem:[%s8616_s3 + $0x348] sm:$0xff] }
  0xd3   : > { %v739_v24 = vpop.f32.mrf.mxu2  ;;  %v7361_v27 = vpop.f32.mrf.mxu0  ;;  %v1459_v46 = vsel %vm1415_vm5, %v1449_v59, %v7375_v0  ;;  %v2211_v59 = vunpack.c.l.b16 %v7396_v55  ;;  %v1467_v12 = vor.u32 %v1466_v6, %v1463_v5 }
  0xd4   : > { %v7359_v26 = vadd.f32 %v739_v24, %v620_v14  ;;  %v621_v32 = vpop.f32.mrf.mxu1  ;;  %v2228_v24 = vrot.slane %v7415_v8, 1  ;;  %v1928_v37 = vsel %vm415_vm0, %v1923_v52, %v1927_v28 }
  0xd5   : > { %v622_v25 = vadd.f32 %v621_v32, %v7282_v30  ;;  %v1915_v30 = vor.u32 %v1913_v34, %v1911_v19  ;;  %v7419_v11 = vpack.c.b16 %v2211_v59, %v2210_v58  ;;  %v6498_v58 = vld [vmem:[%s8616_s3 + $0x380] sm:$0xff] }
  0xd6   : > { %2466 = vmatpush.bf16.msrb.mxu1 %v6493_v36 }
  0xd7   : > { %v1920_v47 = vsel %vm415_vm0, %v1915_v30, %v1919_v54  ;;  %v2227_v7 = vrot.slane %v7419_v11, 1  ;;  %v6523_v30 = vld [vmem:[%s8616_s3 + $0x428] sm:$0xff]  ;;  %v7458_v54 = vld [vmem:[%s7287_s15 + $0x20] sm:$0xff] }
  0xd8   : > { %2928 = vmatpush.bf16.msra.mxu0 %v6523_v30  ;;  %v1933_v57 = vshll.u32 %v7458_v54, 16  ;;  %v1937_v30 = vshrl.u32 %v7458_v54, 16 }
  0xd9   : > { %v7377_v39 = vpop.f32.mrf.mxu3 }
  0xda   : > { %v1935_v5 = vrot.slane %v1933_v57, 1 }
  0xdb   : > { %v741_v40 = vpop.f32.mrf.mxu2  ;;  %v7384_v44 = vpop.f32.mrf.mxu0 }
  0xdc   : > { %v7382_v42 = vadd.f32 %v741_v40, %v622_v25  ;;  %v624_v17 = vpop.f32.mrf.mxu1  ;;  %v2229_v25 = vsel %vm655_vm1, %v2227_v7, %v2228_v24  ;;  %v6638_v40 = vld [vmem:[%s7287_s15] sm:$0xf0] }
  0xdd   : > { %v625_v56 = vadd.f32 %v624_v17, %v7307_v43  ;;  %v6500_v43 = vld [vmem:[%s8616_s3 + $0x390] sm:$0xff]  ;;  %v6640_v17 = vor.u32 %v6639_v10, %v6638_v40 }
  0xde   : > { %1545 = vmatmul.bf16.gmra.mxu3 %v1459_v46  ;;  %1680 = vmatmul.bf16.gmra.mxu0 %v1598_v49  ;;  %v6492_v49 = vld [vmem:[%s8616_s3 + $0x350] sm:$0xff] }
  0xdf   : > { %1814 = vmatmul.bf16.gmra.mxu1 %v6446_v50  ;;  %2596 = vmatpush.bf16.msrb.mxu2 %v6500_v43  ;;  %v6517_v43 = vld [vmem:[%s8616_s3 + $0x3f8] sm:$0xff] }
  0xe0   : > { %2011 = vmatmul.bf16.gmra.mxu2 %v1920_v47  ;;  %v7471_v47 = vld [vmem:[%s7287_s15 + $0x14] sm:$0xff]  ;;  %2467 = vmatpush.bf16.msrb.mxu1 %v6492_v49  ;;  %v1939_v49 = vor.u32 %v1937_v30, %v1935_v5 }
  0xe1   : > { %v893_v19 = vpop.f32.mrf.mxu3  ;;  %2755 = vmatpush.bf16.msra.mxu3 %v6517_v43 }
  0xe2   : > { %v918_v1 = vadd.f32 %v893_v19, %v7268_v15  ;;  %v2063_v19 = vrot.slane %v6640_v17, 1 }
  0xe3   : > { %v744_v63 = vpop.f32.mrf.mxu2  ;;  %v7412_v4 = vpop.f32.mrf.mxu0 }
  0xe4   : > { %v7410_v3 = vadd.f32 %v744_v63, %v625_v56  ;;  %v626_v14 = vpop.f32.mrf.mxu1  ;;  %v7424_v15 = vadd.f32 %v7332_v31, %v918_v1  ;;  %v1929_v56 = vshrl.u32 %v7407_v61, 16  ;;  %v2230_v63 = vrot.slane %v7471_v47, 1  ;;  %2468 = vmatpush.bf16.msrb.mxu1 %v6491_v13 }
  0xe5   : > { %v627_v20 = vadd.f32 %v626_v14, %v7325_v62  ;;  %v1468_v62 = vsel %vm1415_vm5, %v7375_v0, %v1467_v12  ;;  %v1855_v14 = vld [vmem:[%s7287_s15 + $0x28] sm:$0x1]  ;;  %v6448_v12 = vld [vmem:[%s7287_s15 + $0x18] sm:$0xff] }
  0xe6   : > { %v1931_v1 = vor.u32 %v1929_v56, %v1927_v28  ;;  %v2231_v52 = vsel %vm655_vm1, %v2228_v24, %v2230_v63 }
  0xe9   : > { %v895_v29 = vpop.f32.mrf.mxu3 }
  0xea   : > { %v919_v32 = vadd.f32 %v895_v29, %v7289_v33  ;;  %v6499_v33 = vld [vmem:[%s8616_s3 + $0x388] sm:$0xff]  ;;  %v1936_v29 = vsel %vm415_vm0, %v1931_v1, %v1935_v5  ;;  %v2506_v1 = vld [vmem:[%s7287_s15 + $0x4] sm:$0xc] }
  0xeb   : > { %v746_v53 = vpop.f32.mrf.mxu2  ;;  %v7435_v34 = vpop.f32.mrf.mxu0  ;;  %2597 = vmatpush.bf16.msrb.mxu2 %v6499_v33  ;;  %v6515_v5 = vld [vmem:[%s8616_s3 + $0x3e8] sm:$0xff] }
  0xec   : > { %v7433_v31 = vadd.f32 %v746_v53, %v627_v20  ;;  %v629_v60 = vpop.f32.mrf.mxu1  ;;  %v7451_v0 = vadd.f32 %v7361_v27, %v919_v32  ;;  %v6490_v20 = vld [vmem:[%s8616_s3 + $0x340] sm:$0xff]  ;;  %v1894_v53 = vunpack.c.l.b16 %v1855_v14  ;;  %v2525_v14 = vunpack.c.l.b16 %v2506_v1 }
  0xed   : > { %v630_v38 = vadd.f32 %v629_v60, %v7354_v23  ;;  %2469 = vmatpush.bf16.msrb.mxu1 %v6490_v20  ;;  %v6516_v60 = vld [vmem:[%s8616_s3 + $0x3f0] sm:$0xff]  ;;  %v2377_v1 = vshll.u32 %v7471_v47, 16 }
  0xee   : > { %1550 = vmatmul.bf16.gmra.mxu3 %v1468_v62  ;;  %2299 = vmatmul.bf16.vlgmr.msrb.gmra.mxu0 %v2229_v25  ;;  %v6546_v62 = vld [vmem:[%s8616_s3 + $0x4b8] sm:$0xff]  ;;  %v7515_v24 = vpack.c.b16 %v1894_v53, %v1894_v53  ;;  %v6544_v53 = vld [vmem:[%s8616_s3 + $0x4a8] sm:$0xff] }
  0xef   : > { %1819 = vmatmul.bf16.gmra.mxu1 %v6447_v35  ;;  %2598 = vmatpush.bf16.msrb.mxu2 %v6498_v58 }
  0xf0   : > { %2016 = vmatmul.bf16.gmra.mxu2 %v1928_v37  ;;  %v6521_v37 = vld [vmem:[%s8616_s3 + $0x418] sm:$0xff]  ;;  %2756 = vmatpush.bf16.msra.mxu3 %v6516_v60  ;;  %v6514_v60 = vld [vmem:[%s8616_s3 + $0x3e0] sm:$0xff] }
  0xf1   : > { %v898_v46 = vpop.f32.mrf.mxu3 }
  0xf2   : > { %v920_v23 = vadd.f32 %v898_v46, %v7309_v45  ;;  %v6545_v46 = vld [vmem:[%s8616_s3 + $0x4b0] sm:$0xff] }
  0xf3   : > { %v749_v27 = vpop.f32.mrf.mxu2  ;;  %v7468_v51 = vpop.f32.mrf.mxu0  ;;  %3204 = vmatpush.bf16.msra.mxu2 %v6546_v62 }
  0xf4   : > { %v7466_v50 = vadd.f32 %v749_v27, %v630_v38  ;;  %v631_v48 = vpop.f32.mrf.mxu1  ;;  %v7476_v9 = vadd.f32 %v7384_v44, %v920_v23  ;;  %v6522_v44 = vld [vmem:[%s8616_s3 + $0x420] sm:$0xff]  ;;  %v2066_v27 = vrot.slane %v7352_v22, 1  ;;  %2757 = vmatpush.bf16.msra.mxu3 %v6515_v5 }
  0xf5   : > { %v632_v45 = vadd.f32 %v631_v48, %v7377_v39  ;;  %v2064_v39 = vrot.slane %v7305_v41, 1  ;;  %2929 = vmatpush.bf16.msra.mxu0 %v6522_v44 }
  0xf7   : > { %v2065_v7 = vsel %vm655_vm1, %v2063_v19, %v2064_v39  ;;  %3205 = vmatpush.bf16.msra.mxu2 %v6545_v46  ;;  %v2067_v58 = vsel %vm655_vm1, %v2064_v39, %v2066_v27  ;;  %v6520_v39 = vld [vmem:[%s8616_s3 + $0x410] sm:$0xff] }
  0xf8   : > { %2758 = vmatpush.bf16.msra.mxu3 %v6514_v60 }
  0xf9   : > { %v900_v6 = vpop.f32.mrf.mxu3  ;;  %2930 = vmatpush.bf16.msra.mxu0 %v6521_v37  ;;  %v6519_v37 = vld [vmem:[%s8616_s3 + $0x408] sm:$0xff] }
  0xfa   : > { %v921_v18 = vadd.f32 %v900_v6, %v7330_v2  ;;  %v2368_v6 = vshll.u32 %v7415_v8, 16 }
  0xfb   : > { %v751_v16 = vpop.f32.mrf.mxu2  ;;  %v7500_v41 = vpop.f32.mrf.mxu0  ;;  %3206 = vmatpush.bf16.msra.mxu2 %v6544_v53  ;;  %v6542_v53 = vld [vmem:[%s8616_s3 + $0x498] sm:$0xff] }
  0xfc   : > { %v7498_v21 = vadd.f32 %v751_v16, %v632_v45  ;;  %v1195_v28 = vpop.f32.mrf.mxu1  ;;  %v7509_v2 = vadd.f32 %v7412_v4, %v921_v18  ;;  %v6449_v45 = vld [vmem:[%s7287_s15 + $0x20] sm:$0xff] }
  0xfd   : > { %v1220_v32 = vadd.f32 %v1195_v28, %v7424_v15  ;;  %v7523_v15 = vld [vmem:[%s7287_s15 + $0x1c] sm:$0xff]  ;;  %2931 = vmatpush.bf16.msra.mxu0 %v6520_v39 }
  0xfe   : > { %2135 = vmatmul.bf16.vlgmr.msrb.gmra.mxu3 %v2065_v7  ;;  %2304 = vmatmul.bf16.gmra.mxu0 %v2231_v52  ;;  %v2232_v23 = vrot.slane %v7523_v15, 1  ;;  %v7576_v52 = vld [vmem:[%s7287_s15 + $0x24] sm:$0xff] }
  0xff   : > { %1824 = vmatmul.bf16.gmra.mxu1 %v6448_v12  ;;  %v2234_v30 = vrot.slane %v7576_v52, 1 }
 0x100   : > { %2021 = vmatmul.bf16.gmra.mxu2 %v1936_v29  ;;  %v2233_v13 = vsel %vm655_vm1, %v2230_v63, %v2232_v23  ;;  %v2357_v63 = vshrl.u32 %v7419_v11, 16 }
 0x101   : > { %v903_v35 = vpop.f32.mrf.mxu3  ;;  %2932 = vmatpush.bf16.msra.mxu0 %v6519_v37 }
 0x102   : > { %v922_v25 = vadd.f32 %v903_v35, %v7359_v26  ;;  %v1941_v26 = vshll.u32 %v7515_v24, 16  ;;  %v2359_v28 = vrot.slane %v2357_v63, 1  ;;  %v2526_v35 = vpack.c.b16 %v2211_v59, %v2525_v14 }
 0x103   : > { %v1359_v36 = vpop.f32.mrf.mxu2  ;;  %v7520_v33 = vpop.f32.mrf.mxu0 }
 0x104   : > { %v7518_v4 = vadd.f32 %v1359_v36, %v1220_v32  ;;  %v1197_v38 = vpop.f32.mrf.mxu1  ;;  %v7534_v40 = vadd.f32 %v7435_v34, %v922_v25  ;;  %v1943_v17 = vrot.slane %v1941_v26, 1  ;;  %v2528_v26 = vrot.slane %v7415_v8, 2 }
 0x105   : > { %v1221_v10 = vadd.f32 %v1197_v38, %v7451_v0  ;;  %v2068_v38 = vrot.slane %v7407_v61, 1 }
 0x106   : > { %v1944_v44 = vsel %vm415_vm0, %v1939_v49, %v1943_v17  ;;  %v6518_v17 = vld [vmem:[%s8616_s3 + $0x400] sm:$0xff] }
 0x107   : > { %2933 = vmatpush.bf16.msra.mxu0 %v6518_v17 }
 0x109   : > { %v905_v48 = vpop.f32.mrf.mxu3 }
 0x10a   : > { %v923_v34 = vadd.f32 %v905_v48, %v7382_v42 }
 0x10b   : > { %v1361_v56 = vpop.f32.mrf.mxu2  ;;  %v7545_v0 = vpop.f32.mrf.mxu0 }
 0x10c   : > { %v7543_v57 = vadd.f32 %v1361_v56, %v1221_v10  ;;  %v1200_v43 = vpop.f32.mrf.mxu1  ;;  %v7556_v19 = vadd.f32 %v7468_v51, %v923_v34  ;;  %v2360_v51 = vshll.u32 %v7419_v11, 16  ;;  %v6533_v11 = vld [vmem:[%s8616_s3 + $0x478] sm:$0xff]  ;;  %v2069_v56 = vsel %vm655_vm1, %v2066_v27, %v2068_v38  ;;  %v6532_v27 = vld [vmem:[%s8616_s3 + $0x470] sm:$0xff] }
 0x10d   : > { %v1222_v42 = vadd.f32 %v1200_v43, %v7476_v9  ;;  %v2365_v9 = vshrl.u32 %v7415_v8, 16  ;;  %3055 = vmatpush.bf16.msra.mxu1 %v6533_v11  ;;  %v2181_v43 = vld [vmem:[%s7287_s15 + $0x2c] sm:$0x1] }
 0x10e   : > { %2140 = vmatmul.bf16.gmra.mxu3 %v2067_v58  ;;  %2309 = vmatmul.bf16.gmra.mxu0 %v2233_v13  ;;  %v2362_v29 = vrot.slane %v2360_v51, 2  ;;  %v6512_v51 = vld [vmem:[%s8616_s3 + $0x3d0] sm:$0xff] }
 0x10f   : > { %1829 = vmatmul.bf16.gmra.mxu1 %v6449_v45  ;;  %v2367_v62 = vrot.slane %v2365_v9, 1 }
 0x110   : > { %2026 = vmatmul.bf16.gmra.mxu2 %v1944_v44  ;;  %v2363_v59 = vor.u32 %v2362_v29, %v2359_v28  ;;  %v2379_v28 = vrot.slane %v2377_v1, 2 }
 0x111   : > { %v908_v16 = vpop.f32.mrf.mxu3  ;;  %3056 = vmatpush.bf16.msra.mxu1 %v6532_v27 }
 0x112   : > { %v924_v18 = vadd.f32 %v908_v16, %v7410_v3  ;;  %v2370_v3 = vrot.slane %v2368_v6, 2  ;;  %v2635_v16 = vld [vmem:[%s7287_s15 + $0x8] sm:$0xc] }
 0x113   : > { %v1364_v20 = vpop.f32.mrf.mxu2  ;;  %v7573_v7 = vpop.f32.mrf.mxu0 }
 0x114   : > { %v7571_v12 = vadd.f32 %v1364_v20, %v1222_v42  ;;  %v1202_v32 = vpop.f32.mrf.mxu1  ;;  %v7587_v25 = vadd.f32 %v7500_v41, %v924_v18  ;;  %v7598_v41 = vor.u32 %v2370_v3, %v2367_v62  ;;  %v6513_v42 = vld [vmem:[%s8616_s3 + $0x3d8] sm:$0xff]  ;;  %v2674_v62 = vunpack.c.l.b16 %v2635_v16 }
 0x115   : > { %v1223_v36 = vadd.f32 %v1202_v32, %v7509_v2  ;;  %v2527_v2 = vrot.slane %v2526_v35, 2  ;;  %2759 = vmatpush.bf16.msra.mxu3 %v6513_v42  ;;  %v6511_v32 = vld [vmem:[%s8616_s3 + $0x3c8] sm:$0xff]  ;;  %v2675_v3 = vunpack.c.h.b16 %v7396_v55 }
 0x116   : > { %v2372_v58 = vsel %vm949_vm2, %v2363_v59, %v7598_v41 }
 0x117   : > { %v2529_v13 = vsel %vm1121_vm3, %v2527_v2, %v2528_v26  ;;  %v7670_v2 = vpack.c.b16 %v2675_v3, %v2674_v62 }
 0x119   : > { %v910_v10 = vpop.f32.mrf.mxu3  ;;  %2760 = vmatpush.bf16.msra.mxu3 %v6512_v51 }
 0x11a   : > { %v925_v46 = vadd.f32 %v910_v10, %v7433_v31  ;;  %v2235_v31 = vsel %vm655_vm1, %v2232_v23, %v2234_v30  ;;  %v6543_v23 = vld [vmem:[%s8616_s3 + $0x4a0] sm:$0xff] }
 0x11b   : > { %v1366_v49 = vpop.f32.mrf.mxu2  ;;  %v7607_v34 = vpop.f32.mrf.mxu0  ;;  %3207 = vmatpush.bf16.msra.mxu2 %v6543_v23  ;;  %v6510_v10 = vld [vmem:[%s8616_s3 + $0x3c0] sm:$0xff] }
 0x11c   : > { %v7605_v48 = vadd.f32 %v1366_v49, %v1223_v36  ;;  %v1205_v45 = vpop.f32.mrf.mxu1  ;;  %v7626_v44 = vadd.f32 %v7520_v33, %v925_v46  ;;  %v2220_v33 = vunpack.c.l.b16 %v2181_v43  ;;  %v2530_v36 = vrot.slane %v7471_v47, 2 }
 0x11d   : > { %v1224_v22 = vadd.f32 %v1205_v45, %v7534_v40  ;;  %v2374_v40 = vshrl.u32 %v7471_v47, 16  ;;  %2761 = vmatpush.bf16.msra.mxu3 %v6511_v32  ;;  %v2532_v32 = vrot.slane %v7523_v15, 2  ;;  %v6564_v47 = vld [vmem:[%s8616_s3 + $0x528] sm:$0xff] }
 0x11e   : > { %2145 = vmatmul.bf16.gmra.mxu3 %v2069_v56  ;;  %2314 = vmatmul.bf16.gmra.mxu0 %v2235_v31  ;;  %v2226_v14 = vpack.c.b16 %v2220_v33, %v2220_v33  ;;  %v7688_v56 = vld [vmem:[%s7287_s15 + $0x10] sm:$0xff]  ;;  %v6566_v31 = vld [vmem:[%s8616_s3 + $0x538] sm:$0xff]  ;;  %v2531_v61 = vsel %vm1121_vm3, %v2528_v26, %v2530_v36  ;;  %v2383_v26 = vshrl.u32 %v7523_v15, 16 }
 0x11f   : > { %2470 = vmatmul.bf16.vlgmr.msrb.gmra.mxu1 %v2372_v58  ;;  %v2376_v20 = vrot.slane %v2374_v40, 1  ;;  %3208 = vmatpush.bf16.msra.mxu2 %v6542_v53  ;;  %v2829_v43 = vshrl.u32 %v7688_v56, 16  ;;  %v2832_v8 = vshll.u32 %v7688_v56, 16 }
 0x120   : > { %2599 = vmatmul.bf16.vlgmr.msrb.gmra.mxu2 %v2529_v13  ;;  %3530 = vmatpush.bf16.msrb.mxu0 %v6566_v31  ;;  %v2821_v13 = vshrl.u32 %v7670_v2, 16 }
 0x121   : > { %v913_v5 = vpop.f32.mrf.mxu3  ;;  %v7664_v35 = vor.u32 %v2379_v28, %v2376_v20  ;;  %2762 = vmatpush.bf16.msra.mxu3 %v6510_v10  ;;  %v2072_v28 = vrot.slane %v7515_v24, 1  ;;  %v6529_v10 = vld [vmem:[%s8616_s3 + $0x458] sm:$0xff] }
 0x122   : > { %v926_v39 = vadd.f32 %v913_v5, %v7466_v50  ;;  %v6531_v50 = vld [vmem:[%s8616_s3 + $0x468] sm:$0xff]  ;;  %v2823_v33 = vrot.slane %v2821_v13, 2 }
 0x123   : > { %v1369_v63 = vpop.f32.mrf.mxu2  ;;  %v7646_v6 = vpop.f32.mrf.mxu0  ;;  %3057 = vmatpush.bf16.msra.mxu1 %v6531_v50  ;;  %v2381_v58 = vsel %vm949_vm2, %v7598_v41, %v7664_v35  ;;  %v2824_v41 = vshll.u32 %v7670_v2, 16 }
 0x124   : > { %v7644_v9 = vadd.f32 %v1369_v63, %v1224_v22  ;;  %v1207_v18 = vpop.f32.mrf.mxu1  ;;  %v7650_v29 = vadd.f32 %v7545_v0, %v926_v39  ;;  %v2070_v0 = vrot.slane %v7458_v54, 1  ;;  %v2386_v22 = vshll.u32 %v7523_v15, 16  ;;  %v6586_v15 = vld [vmem:[%s8616_s3 + $0x5b8] sm:$0xff] }
 0x125   : > { %v1225_v11 = vadd.f32 %v1207_v18, %v7556_v19  ;;  %v2236_v19 = vrot.slane %v2226_v14, 1  ;;  %v2826_v5 = vrot.slane %v2824_v41, 3  ;;  %v2831_v39 = vrot.slane %v2829_v43, 2 }
 0x126   : > { %v2071_v17 = vsel %vm655_vm1, %v2068_v38, %v2070_v0  ;;  %v2834_v63 = vrot.slane %v2832_v8, 3  ;;  %v2385_v14 = vrot.slane %v2383_v26, 1  ;;  %v2388_v16 = vrot.slane %v2386_v22, 2 }
 0x127   : > { %v2073_v24 = vsel %vm655_vm1, %v2070_v0, %v2072_v28  ;;  %v2533_v0 = vsel %vm1121_vm3, %v2530_v36, %v2532_v32  ;;  %v2395_v36 = vshll.u32 %v7576_v52, 16 }
 0x128   : > { %v7730_v50 = vor.u32 %v2834_v63, %v2831_v39  ;;  %v7732_v53 = vor.u32 %v2388_v16, %v2385_v14 }
 0x129   : > { %v915_v60 = vpop.f32.mrf.mxu3  ;;  %v2397_v26 = vrot.slane %v2395_v36, 2  ;;  %v6562_v36 = vld [vmem:[%s8616_s3 + $0x518] sm:$0xff] }
 0x12a   : > { %v927_v37 = vadd.f32 %v915_v60, %v7498_v21  ;;  %v2237_v21 = vsel %vm655_vm1, %v2234_v30, %v2236_v19  ;;  %v2390_v54 = vsel %vm949_vm2, %v7664_v35, %v7732_v53 }
 0x12b   : > { %v1371_v59 = vpop.f32.mrf.mxu2  ;;  %v7677_v49 = vpop.f32.mrf.mxu0 }
 0x12c   : > { %v7675_v46 = vadd.f32 %v1371_v59, %v1225_v11  ;;  %v1210_v45 = vpop.f32.mrf.mxu1  ;;  %v7702_v38 = vadd.f32 %v7573_v7, %v927_v37  ;;  %v6530_v7 = vld [vmem:[%s8616_s3 + $0x460] sm:$0xff]  ;;  %v2827_v11 = vor.u32 %v2826_v5, %v2823_v33  ;;  %v7746_v59 = vld [vmem:[%s7287_s15 + $0x18] sm:$0xff]  ;;  %v2691_v5 = vrot.slane %v7670_v2, 2 }
 0x12d   : > { %v1226_v30 = vadd.f32 %v1210_v45, %v7587_v25  ;;  %v6541_v25 = vld [vmem:[%s8616_s3 + $0x490] sm:$0xff]  ;;  %3058 = vmatpush.bf16.msra.mxu1 %v6530_v7  ;;  %v2838_v45 = vshrl.u32 %v7746_v59, 16  ;;  %v2841_v35 = vshll.u32 %v7746_v59, 16  ;;  %v6558_v33 = vld [vmem:[%s8616_s3 + $0x4f8] sm:$0xff]  ;;  %v6526_v2 = vld [vmem:[%s8616_s3 + $0x440] sm:$0xff] }
 0x12e   : > { %2150 = vmatmul.bf16.gmra.mxu3 %v2071_v17  ;;  %2319 = vmatmul.bf16.gmra.mxu0 %v2237_v21  ;;  %v2836_v37 = vsel %vm1415_vm5, %v2827_v11, %v7730_v50 }
 0x12f   : > { %2475 = vmatmul.bf16.gmra.mxu1 %v2381_v58  ;;  %3209 = vmatpush.bf16.msra.mxu2 %v6541_v25  ;;  %v2840_v43 = vrot.slane %v2838_v45, 2  ;;  %v2843_v8 = vrot.slane %v2841_v35, 3 }
 0x130   : > { %2604 = vmatmul.bf16.gmra.mxu2 %v2531_v61  ;;  %3401 = vmatpush.bf16.msrb.mxu3 %v6558_v33 }
 0x131   : > { %v1531_v27 = vpop.f32.mrf.mxu3  ;;  %3059 = vmatpush.bf16.msra.mxu1 %v6529_v10  ;;  %v7800_v39 = vor.u32 %v2843_v8, %v2840_v43  ;;  %v6585_v43 = vld [vmem:[%s8616_s3 + $0x5b0] sm:$0xff]  ;;  %v2694_v8 = vrot.slane %v7746_v59, 2 }
 0x132   : > { %v1556_v42 = vadd.f32 %v1531_v27, %v7518_v4  ;;  %v6565_v4 = vld [vmem:[%s8616_s3 + $0x530] sm:$0xff]  ;;  %v2335_v27 = vld [vmem:[%s7287_s15 + $0x2c] sm:$0x3] }
 0x133   : > { %v1374_v23 = vpop.f32.mrf.mxu2  ;;  %v7720_v1 = vpop.f32.mrf.mxu0  ;;  %3531 = vmatpush.bf16.msrb.mxu0 %v6565_v4  ;;  %v2354_v14 = vunpack.c.l.b16 %v2335_v27 }
 0x134   : > { %v7718_v40 = vadd.f32 %v1374_v23, %v1226_v30  ;;  %v1212_v51 = vpop.f32.mrf.mxu1  ;;  %v7723_v18 = vadd.f32 %v7607_v34, %v1556_v42  ;;  %v6528_v30 = vld [vmem:[%s8616_s3 + $0x450] sm:$0xff]  ;;  %v6539_v23 = vld [vmem:[%s8616_s3 + $0x480] sm:$0xff]  ;;  %v6527_v42 = vld [vmem:[%s8616_s3 + $0x448] sm:$0xff] }
 0x135   : > { %v1227_v20 = vadd.f32 %v1212_v51, %v7626_v44  ;;  %3060 = vmatpush.bf16.msra.mxu1 %v6528_v30  ;;  %v2534_v51 = vrot.slane %v7576_v52, 2  ;;  %v2355_v10 = vpack.c.b16 %v2354_v14, %v2354_v14 }
 0x137   : > { %3532 = vmatpush.bf16.msrb.mxu0 %v6564_v47 }
 0x139   : > { %v1533_v62 = vpop.f32.mrf.mxu3  ;;  %3061 = vmatpush.bf16.msra.mxu1 %v6527_v42 }
 0x13a   : > { %v1557_v19 = vadd.f32 %v1533_v62, %v7543_v57  ;;  %v6540_v57 = vld [vmem:[%s8616_s3 + $0x488] sm:$0xff] }
 0x13b   : > { %v1376_v34 = vpop.f32.mrf.mxu2  ;;  %v7738_v44 = vpop.f32.mrf.mxu0  ;;  %3210 = vmatpush.bf16.msra.mxu2 %v6540_v57 }
 0x13c   : > { %v7736_v60 = vadd.f32 %v1376_v34, %v1227_v20  ;;  %v1215_v17 = vpop.f32.mrf.mxu1  ;;  %v7763_v21 = vadd.f32 %v7646_v6, %v1557_v19  ;;  %v2392_v6 = vshrl.u32 %v7576_v52, 16  ;;  %v2845_v34 = vsel %vm1415_vm5, %v7730_v50, %v7800_v39  ;;  %v7820_v19 = vld [vmem:[%s7287_s15 + $0x20] sm:$0xff] }
 0x13d   : > { %v1228_v31 = vadd.f32 %v1215_v17, %v7650_v29  ;;  %3062 = vmatpush.bf16.msra.mxu1 %v6526_v2  ;;  %v2850_v17 = vshll.u32 %v7820_v19, 16  ;;  %v2696_v55 = vrot.slane %v7820_v19, 2 }
 0x13e   : > { %2155 = vmatmul.bf16.gmra.mxu3 %v2073_v24  ;;  %2934 = vmatmul.bf16.vlgmr.msra.gmra.mxu0 %v2836_v37  ;;  %v2394_v25 = vrot.slane %v2392_v6, 1  ;;  %v2535_v37 = vsel %vm1121_vm3, %v2532_v32, %v2534_v51  ;;  %v2401_v32 = vshrl.u32 %v2355_v10, 16  ;;  %v6557_v6 = vld [vmem:[%s8616_s3 + $0x4f0] sm:$0xff] }
 0x13f   : > { %2480 = vmatmul.bf16.gmra.mxu1 %v2390_v54  ;;  %3211 = vmatpush.bf16.msra.mxu2 %v6539_v23  ;;  %v2404_v54 = vshll.u32 %v2355_v10, 16  ;;  %v2852_v47 = vrot.slane %v2850_v17, 3  ;;  %v2799_v17 = vld [vmem:[%s7287_s15 + $0x30] sm:$0x7] }
 0x140   : > { %2609 = vmatmul.bf16.gmra.mxu2 %v2533_v0  ;;  %v7802_v63 = vor.u32 %v2397_v26, %v2394_v25  ;;  %3402 = vmatpush.bf16.msrb.mxu3 %v6557_v6  ;;  %v2536_v26 = vrot.slane %v2355_v10, 2  ;;  %v6584_v10 = vld [vmem:[%s8616_s3 + $0x5a8] sm:$0xff] }
 0x141   : > { %v1536_v29 = vpop.f32.mrf.mxu3 }
 0x142   : > { %v1558_v61 = vadd.f32 %v1536_v29, %v7571_v12  ;;  %v2537_v14 = vsel %vm1121_vm3, %v2534_v51, %v2536_v26  ;;  %v6554_v26 = vld [vmem:[%s8616_s3 + $0x4d8] sm:$0xff] }
 0x143   : > { %v1379_v58 = vpop.f32.mrf.mxu2  ;;  %v7779_v41 = vpop.f32.mrf.mxu0  ;;  %3865 = vmatpush.bf16.msrb.mxu2 %v6586_v15 }
 0x144   : > { %v7777_v13 = vadd.f32 %v1379_v58, %v1228_v31  ;;  %v1217_v7 = vpop.f32.mrf.mxu1  ;;  %v7782_v22 = vadd.f32 %v7677_v49, %v1558_v61  ;;  %v6563_v49 = vld [vmem:[%s8616_s3 + $0x520] sm:$0xff]  ;;  %v2403_v58 = vrot.slane %v2401_v32, 1  ;;  %v2406_v61 = vrot.slane %v2404_v54, 2  ;;  %v6560_v54 = vld [vmem:[%s8616_s3 + $0x508] sm:$0xff] }
 0x145   : > { %v1229_v12 = vadd.f32 %v1217_v7, %v7702_v38  ;;  %v2692_v38 = vrot.slane %v7688_v56, 2  ;;  %3533 = vmatpush.bf16.msrb.mxu0 %v6563_v49  ;;  %v7875_v49 = vld [vmem:[%s7287_s15 + $0x28] sm:$0xff]  ;;  %v6555_v32 = vld [vmem:[%s8616_s3 + $0x4e0] sm:$0xff] }
 0x146   : > { %v2407_v25 = vor.u32 %v2406_v61, %v2403_v58  ;;  %v2856_v52 = vshrl.u32 %v7875_v49, 16 }
 0x147   : > { %v2693_v62 = vsel %vm1121_vm3, %v2691_v5, %v2692_v38  ;;  %3866 = vmatpush.bf16.msrb.mxu2 %v6585_v43  ;;  %v2695_v42 = vsel %vm1121_vm3, %v2692_v38, %v2694_v8 }
 0x149   : > { %v1538_v16 = vpop.f32.mrf.mxu3  ;;  %3534 = vmatpush.bf16.msrb.mxu0 %v6562_v36 }
 0x14a   : > { %v1559_v4 = vadd.f32 %v1538_v16, %v7605_v48  ;;  %v2399_v48 = vsel %vm949_vm2, %v7732_v53, %v7802_v63  ;;  %v2847_v53 = vshrl.u32 %v7820_v19, 16 }
 0x14b   : > { %v1381_v20 = vpop.f32.mrf.mxu2  ;;  %v7811_v11 = vpop.f32.mrf.mxu0  ;;  %3867 = vmatpush.bf16.msrb.mxu2 %v6584_v10  ;;  %v6535_v10 = vld [vmem:[%s7926_s25 + $0x8] sm:$0xff] }
 0x14c   : > { %v7809_v28 = vadd.f32 %v1381_v20, %v1229_v12  ;;  %v1810_v24 = vpop.f32.mrf.mxu1  ;;  %v7831_v57 = vadd.f32 %v7720_v1, %v1559_v4  ;;  %v2849_v35 = vrot.slane %v2847_v53, 2  ;;  %v2970_v20 = vld [vmem:[%s7287_s15 + $0x8] sm:$0x8]  ;;  %v6561_v4 = vld [vmem:[%s8616_s3 + $0x510] sm:$0xff] }
 0x14d   : > { %v1835_v50 = vadd.f32 %v1810_v24, %v7723_v18  ;;  %3535 = vmatpush.bf16.msrb.mxu0 %v6561_v4  ;;  %v2858_v24 = vrot.slane %v2856_v52, 2  ;;  %v6582_v4 = vld [vmem:[%s8616_s3 + $0x598] sm:$0xff]  ;;  %v6552_v52 = vld [vmem:[%s8616_s3 + $0x4c8] sm:$0xff] }
 0x14e   : > { %2763 = vmatmul.bf16.vlgmr.msra.gmra.mxu3 %v2693_v62  ;;  %2939 = vmatmul.bf16.gmra.mxu0 %v2845_v34  ;;  %v7859_v7 = vor.u32 %v2852_v47, %v2849_v35  ;;  %v6559_v47 = vld [vmem:[%s8616_s3 + $0x500] sm:$0xff] }
 0x14f   : > { %2485 = vmatmul.bf16.gmra.mxu1 %v2399_v48 }
 0x150   : > { %2614 = vmatmul.bf16.gmra.mxu2 %v2535_v37  ;;  %v2854_v33 = vsel %vm1415_vm5, %v7800_v39, %v7859_v7  ;;  %v6556_v39 = vld [vmem:[%s8616_s3 + $0x4e8] sm:$0xff]  ;;  %v6578_v37 = vld [vmem:[%s8616_s3 + $0x578] sm:$0xff] }
 0x151   : > { %v1541_v1 = vpop.f32.mrf.mxu3  ;;  %3403 = vmatpush.bf16.msrb.mxu3 %v6556_v39  ;;  %3694 = vmatpush.bf16.msrb.mxu1 %v6578_v37 }
 0x152   : > { %v1560_v0 = vadd.f32 %v1541_v1, %v7644_v9  ;;  %3536 = vmatpush.bf16.msrb.mxu0 %v6560_v54  ;;  %v2992_v1 = vrot.slane %v7688_v56, 3 }
 0x153   : > { %v2007_v31 = vpop.f32.mrf.mxu2  ;;  %v7843_v45 = vpop.f32.mrf.mxu0 }
 0x154   : > { %v7841_v18 = vadd.f32 %v2007_v31, %v1835_v50  ;;  %v1812_v29 = vpop.f32.mrf.mxu1  ;;  %v7852_v9 = vadd.f32 %v7738_v44, %v1560_v0 }
 0x155   : > { %v1836_v30 = vadd.f32 %v1812_v29, %v7763_v21  ;;  %3404 = vmatpush.bf16.msrb.mxu3 %v6555_v32  ;;  %v2697_v29 = vsel %vm1121_vm3, %v2694_v8, %v2696_v55  ;;  %v6577_v8 = vld [vmem:[%s8616_s3 + $0x570] sm:$0xff] }
 0x156   : > { %3537 = vmatpush.bf16.msrb.mxu0 %v6559_v47  ;;  %3695 = vmatpush.bf16.msrb.mxu1 %v6577_v8  ;;  %v8024_v47 = vld [vmem:[%s7926_s25 + $0x8] sm:$0xff] }
 0x157   : > { %v3467_v8 = vrot.slane %v8024_v47, 1 }
 0x159   : > { %v1543_v44 = vpop.f32.mrf.mxu3  ;;  %3405 = vmatpush.bf16.msrb.mxu3 %v6554_v26 }
 0x15a   : > { %v1561_v21 = vadd.f32 %v1543_v44, %v7675_v46  ;;  %v2408_v46 = vsel %vm949_vm2, %v7802_v63, %v2407_v25  ;;  %v2989_v63 = vunpack.c.l.b16 %v2970_v20 }
 0x15b   : > { %v2009_v27 = vpop.f32.mrf.mxu2  ;;  %v7864_v23 = vpop.f32.mrf.mxu0 }
 0x15c   : > { %v7862_v12 = vadd.f32 %v2009_v27, %v1836_v30  ;;  %v1815_v5 = vpop.f32.mrf.mxu1  ;;  %v7883_v16 = vadd.f32 %v7779_v41, %v1561_v21  ;;  %v2859_v41 = vshll.u32 %v7875_v49, 16  ;;  %v2990_v53 = vpack.c.b16 %v2675_v3, %v2989_v63 }
 0x15d   : > { %v1837_v38 = vadd.f32 %v1815_v5, %v7782_v22 }
 0x15e   : > { %2768 = vmatmul.bf16.gmra.mxu3 %v2695_v42  ;;  %2944 = vmatmul.bf16.gmra.mxu0 %v2854_v33  ;;  %v2861_v48 = vrot.slane %v2859_v41, 3  ;;  %v6553_v42 = vld [vmem:[%s8616_s3 + $0x4d0] sm:$0xff]  ;;  %v2698_v41 = vrot.slane %v7875_v49, 2 }
 0x15f   : > { %2490 = vmatmul.bf16.gmra.mxu1 %v2408_v46  ;;  %3406 = vmatpush.bf16.msrb.mxu3 %v6553_v42  ;;  %v6574_v42 = vld [vmem:[%s8616_s3 + $0x558] sm:$0xff] }
 0x160   : > { %2619 = vmatmul.bf16.gmra.mxu2 %v2537_v14  ;;  %v7921_v3 = vor.u32 %v2861_v48, %v2858_v24  ;;  %v2699_v37 = vsel %vm1121_vm3, %v2696_v55, %v2698_v41  ;;  %v6575_v55 = vld [vmem:[%s8616_s3 + $0x560] sm:$0xff] }
 0x161   : > { %v1546_v22 = vpop.f32.mrf.mxu3 }
 0x162   : > { %v1562_v51 = vadd.f32 %v1546_v22, %v7718_v40  ;;  %v2863_v56 = vsel %vm1415_vm5, %v7859_v7, %v7921_v3  ;;  %v6583_v7 = vld [vmem:[%s8616_s3 + $0x5a0] sm:$0xff] }
 0x163   : > { %v2012_v2 = vpop.f32.mrf.mxu2  ;;  %v7899_v34 = vpop.f32.mrf.mxu0  ;;  %3868 = vmatpush.bf16.msrb.mxu2 %v6583_v7  ;;  %3407 = vmatpush.bf16.msrb.mxu3 %v6552_v52  ;;  %v2996_v7 = vrot.slane %v7820_v19, 3  ;;  %v6580_v19 = vld [vmem:[%s8616_s3 + $0x588] sm:$0xff] }
 0x164   : > { %v7897_v62 = vadd.f32 %v2012_v2, %v1837_v38  ;;  %v1817_v50 = vpop.f32.mrf.mxu1  ;;  %v7910_v40 = vadd.f32 %v7811_v11, %v1562_v51  ;;  %v2818_v11 = vunpack.c.l.b16 %v2799_v17  ;;  %v6551_v2 = vld [vmem:[%s8616_s3 + $0x4c0] sm:$0xff]  ;;  %v2645_v17 = vld [vmem:[%s7287_s15 + $0x30] sm:$0x3] }
 0x165   : > { %v1838_v15 = vadd.f32 %v1817_v50, %v7831_v57  ;;  %v2991_v57 = vrot.slane %v2990_v53, 3  ;;  %v2684_v54 = vunpack.c.l.b16 %v2645_v17 }
 0x166   : > { %v7946_v58 = vpack.c.b16 %v2818_v11, %v2818_v11  ;;  %v6642_v11 = vld [vmem:[%s7926_s25] sm:$0xe] }
 0x167   : > { %v2993_v30 = vsel %vm1587_vm4, %v2991_v57, %v2992_v1  ;;  %3869 = vmatpush.bf16.msrb.mxu2 %v6582_v4  ;;  %3408 = vmatpush.bf16.msrb.mxu3 %v6551_v2  ;;  %v6604_v4 = vld [vmem:[%s8616_s3 + $0x628] sm:$0xff]  ;;  %v8068_v2 = vld [vmem:[%s7926_s25 + $0x10] sm:$0xff] }
 0x169   : > { %v1548_v0 = vpop.f32.mrf.mxu3 }
 0x16a   : > { %v1563_v31 = vadd.f32 %v1548_v0, %v7736_v60  ;;  %v6534_v60 = vld [vmem:[%s7926_s25] sm:$0xff] }
 0x16b   : > { %v2014_v35 = vpop.f32.mrf.mxu2  ;;  %v7935_v36 = vpop.f32.mrf.mxu0 }
 0x16c   : > { %v7933_v6 = vadd.f32 %v2014_v35, %v1838_v15  ;;  %v1820_v61 = vpop.f32.mrf.mxu1  ;;  %v7950_v43 = vadd.f32 %v7843_v45, %v1563_v31  ;;  %v2865_v45 = vshrl.u32 %v7946_v58, 16  ;;  %v2690_v35 = vpack.c.b16 %v2684_v54, %v2684_v54 }
 0x16d   : > { %v1839_v25 = vadd.f32 %v1820_v61, %v7852_v9  ;;  %v2868_v9 = vshll.u32 %v7946_v58, 16 }
 0x16e   : > { %2773 = vmatmul.bf16.gmra.mxu3 %v2697_v29  ;;  %2949 = vmatmul.bf16.gmra.mxu0 %v2863_v56  ;;  %v2867_v46 = vrot.slane %v2865_v45, 2 }
 0x16f   : > { %3063 = vmatmul.bf16.vlgmr.msra.gmra.mxu1 %v2993_v30  ;;  %v2870_v14 = vrot.slane %v2868_v9, 3  ;;  %v6605_v30 = vld [vmem:[%s8616_s3 + $0x630] sm:$0xff] }
 0x170   : > { %3212 = vmatmul.bf16.vlgmr.msra.gmra.mxu2 %v6534_v60 }
 0x171   : > { %v1551_v44 = vpop.f32.mrf.mxu3 }
 0x172   : > { %v1564_v21 = vadd.f32 %v1551_v44, %v7777_v13  ;;  %v6576_v13 = vld [vmem:[%s8616_s3 + $0x568] sm:$0xff] }
 0x173   : > { %v2017_v27 = vpop.f32.mrf.mxu2  ;;  %v7970_v5 = vpop.f32.mrf.mxu0  ;;  %3696 = vmatpush.bf16.msrb.mxu1 %v6576_v13 }
 0x174   : > { %v7968_v33 = vadd.f32 %v2017_v27, %v1839_v25  ;;  %v1822_v38 = vpop.f32.mrf.mxu1  ;;  %v7973_v20 = vadd.f32 %v7864_v23, %v1564_v21  ;;  %v2871_v23 = vor.u32 %v2870_v14, %v2867_v46  ;;  %v6536_v21 = vld [vmem:[%s7926_s25 + $0x10] sm:$0xff]  ;;  %v6632_v14 = vld [vmem:[%s7926_s25] sm:$0xff]  }
 0x175   : > { %v1840_v39 = vadd.f32 %v1822_v38, %v7883_v16  ;;  %v2994_v16 = vrot.slane %v7746_v59, 3  ;;  %v3307_v13 = vshll.u32 %v6632_v14, 16 }
 0x176   : > { %v2872_v59 = vsel %vm1415_vm5, %v7921_v3, %v2871_v23  ;;  %v6581_v3 = vld [vmem:[%s8616_s3 + $0x590] sm:$0xff] }
 0x177   : > { %v2995_v53 = vsel %vm1587_vm4, %v2992_v1, %v2994_v16  ;;  %3697 = vmatpush.bf16.msrb.mxu1 %v6575_v55  ;;  %3870 = vmatpush.bf16.msrb.mxu2 %v6581_v3 }
 0x179   : > { %v1553_v63 = vpop.f32.mrf.mxu3 }
 0x17a   : > { %v1565_v22 = vadd.f32 %v1553_v63, %v7809_v28  ;;  %v6606_v28 = vld [vmem:[%s8616_s3 + $0x638] sm:$0xff]  ;;  %v3305_v63 = vshrl.u32 %v6632_v14, 16 }
 0x17b   : > { %v2019_v51 = vpop.f32.mrf.mxu2  ;;  %v7993_v48 = vpop.f32.mrf.mxu0  ;;  %4158 = vmatpush.bf16.msra.mxu0 %v6606_v28  ;;  %3698 = vmatpush.bf16.msrb.mxu1 %v6574_v42  ;;  %v6572_v28 = vld [vmem:[%s8616_s3 + $0x548] sm:$0xff]  ;;  %v6621_v42 = vld [vmem:[%s8616_s3 + $0x6b0] sm:$0xff] }
 0x17c   : > { %v7991_v24 = vadd.f32 %v2019_v51, %v1840_v39  ;;  %v1825_v50 = vpop.f32.mrf.mxu1  ;;  %v8007_v15 = vadd.f32 %v7899_v34, %v1565_v22  ;;  %v6641_v34 = vld [vmem:[%s7926_s25] sm:$0xf0]  ;;  %3871 = vmatpush.bf16.msrb.mxu2 %v6580_v19  ;;  %v3309_v22 = vrot.slane %v3307_v13, 1  ;;  %v3312_v51 = vshll.u32 %v8024_v47, 16 }
 0x17d   : > { %v1841_v32 = vadd.f32 %v1825_v50, %v7910_v40  ;;  %v6643_v29 = vor.u32 %v6642_v11, %v6641_v34  ;;  %v6594_v50 = vld [vmem:[%s8616_s3 + $0x5f8] sm:$0xff]  ;;  %v6571_v34 = vld [vmem:[%s8616_s3 + $0x540] sm:$0xff] }
 0x17e   : > { %2778 = vmatmul.bf16.gmra.mxu3 %v2699_v37  ;;  %2954 = vmatmul.bf16.gmra.mxu0 %v2872_v59  ;;  %v3314_v17 = vrot.slane %v3312_v51, 1 }
 0x17f   : > { %3068 = vmatmul.bf16.gmra.mxu1 %v2995_v53  ;;  %v3466_v25 = vrot.slane %v6643_v29, 1  ;;  %4159 = vmatpush.bf16.msra.mxu0 %v6605_v30  ;;  %v3310_v53 = vor.u32 %v3309_v22, %v3305_v63 }
 0x180   : > { %3217 = vmatmul.bf16.gmra.mxu2 %v6535_v10  ;;  %v6579_v10 = vld [vmem:[%s8616_s3 + $0x580] sm:$0xff]  ;;  %3994 = vmatpush.bf16.msra.mxu3 %v6594_v50 }
 0x181   : > { %v2136_v57 = vpop.f32.mrf.mxu3  ;;  %v3468_v27 = vsel %vm655_vm1, %v3466_v25, %v3467_v8  ;;  %3872 = vmatpush.bf16.msrb.mxu2 %v6579_v10  ;;  %v3316_v25 = vshrl.u32 %v8024_v47, 16  ;;  %v3574_v47 = vld [vmem:[%s7926_s25 + $0x4] sm:$0xe]  ;;  %v6592_v10 = vld [vmem:[%s8616_s3 + $0x5e8] sm:$0xff] }
 0x182   : > { %v2161_v1 = vadd.f32 %v2136_v57, %v7841_v18  ;;  %v2700_v18 = vrot.slane %v2690_v35, 2  ;;  %v3613_v14 = vunpack.c.l.b16 %v3574_v47 }
 0x183   : > { %v2022_v40 = vpop.f32.mrf.mxu2  ;;  %v8021_v31 = vpop.f32.mrf.mxu0  ;;  %4160 = vmatpush.bf16.msra.mxu0 %v6604_v4  ;;  %v3318_v19 = vor.u32 %v3316_v25, %v3314_v17 }
 0x184   : > { %v8019_v0 = vadd.f32 %v2022_v40, %v1841_v32  ;;  %v1827_v56 = vpop.f32.mrf.mxu1  ;;  %v8027_v60 = vadd.f32 %v7935_v36, %v2161_v1  ;;  %v2998_v32 = vrot.slane %v7875_v49, 3  ;;  %v6537_v40 = vld [vmem:[%s7926_s25 + $0x18] sm:$0xff]  ;;  %v3315_v1 = vsel %vm415_vm0, %v3310_v53, %v3314_v17 }
 0x185   : > { %v1842_v61 = vadd.f32 %v1827_v56, %v7950_v43  ;;  %v2701_v43 = vsel %vm1121_vm3, %v2698_v41, %v2700_v18 }
 0x186   : > { %v2999_v29 = vsel %vm1587_vm4, %v2996_v7, %v2998_v32 }
 0x189   : > { %v2138_v26 = vpop.f32.mrf.mxu3 }
 0x18a   : > { %v2162_v9 = vadd.f32 %v2138_v26, %v7862_v12  ;;  %v2997_v12 = vsel %vm1587_vm4, %v2994_v16, %v2996_v7  ;;  %v3320_v7 = vshll.u32 %v8068_v2, 16  ;;  %v8115_v26 = vld [vmem:[%s7926_s25 + $0x18] sm:$0xff] }
 0x18b   : > { %v2024_v45 = vpop.f32.mrf.mxu2  ;;  %v8038_v44 = vpop.f32.mrf.mxu0 }
 0x18c   : > { %v8036_v36 = vadd.f32 %v2024_v45, %v1842_v61  ;;  %v1830_v46 = vpop.f32.mrf.mxu1  ;;  %v8052_v38 = vadd.f32 %v7970_v5, %v2162_v9  ;;  %v6622_v61 = vld [vmem:[%s8616_s3 + $0x6b8] sm:$0xff]  ;;  %v6593_v45 = vld [vmem:[%s8616_s3 + $0x5f0] sm:$0xff] }
 0x18d   : > { %v1843_v39 = vadd.f32 %v1830_v46, %v7973_v20  ;;  %v6573_v20 = vld [vmem:[%s8616_s3 + $0x550] sm:$0xff]  ;;  %4458 = vmatpush.bf16.msra.mxu2 %v6622_v61  ;;  %v6602_v9 = vld [vmem:[%s8616_s3 + $0x618] sm:$0xff]  ;;  %3995 = vmatpush.bf16.msra.mxu3 %v6593_v45  ;;  %v3322_v46 = vrot.slane %v3320_v7, 1 }
 0x18e   : > { %2783 = vmatmul.bf16.gmra.mxu3 %v2701_v43  ;;  %3538 = vmatmul.bf16.vlgmr.msrb.gmra.mxu0 %v3468_v27 }
 0x18f   : > { %3073 = vmatmul.bf16.gmra.mxu1 %v2997_v12  ;;  %v3471_v12 = vrot.slane %v8115_v26, 1 }
 0x190   : > { %3222 = vmatmul.bf16.gmra.mxu2 %v6536_v21  ;;  %3699 = vmatpush.bf16.msrb.mxu1 %v6573_v20  ;;  %v8128_v21 = vld [vmem:[%s7926_s25 + $0x8] sm:$0xff]   ;;  %v3323_v20 = vsel %vm415_vm0, %v3318_v19, %v3322_v46 }
 0x191   : > { %v2141_v52 = vpop.f32.mrf.mxu3  ;;  %4459 = vmatpush.bf16.msra.mxu2 %v6621_v42  ;;  %3996 = vmatpush.bf16.msra.mxu3 %v6592_v10  ;;  %v6599_v42 = vld [vmem:[%s8616_s3 + $0x600] sm:$0xff] }
 0x192   : > { %v2163_v5 = vadd.f32 %v2141_v52, %v7897_v62 }
 0x193   : > { %v2027_v41 = vpop.f32.mrf.mxu2  ;;  %v8064_v16 = vpop.f32.mrf.mxu0 }
 0x194   : > { %v8062_v23 = vadd.f32 %v2027_v41, %v1843_v39  ;;  %v1832_v37 = vpop.f32.mrf.mxu1  ;;  %v8071_v59 = vadd.f32 %v7993_v48, %v2163_v5  ;;  %v6603_v48 = vld [vmem:[%s8616_s3 + $0x620] sm:$0xff]  ;;  %3700 = vmatpush.bf16.msrb.mxu1 %v6572_v28  ;;  %v3000_v39 = vrot.slane %v7946_v58, 3  ;;  %v6601_v28 = vld [vmem:[%s8616_s3 + $0x610] sm:$0xff] }
 0x195   : > { %v1844_v62 = vadd.f32 %v1832_v37, %v8007_v15  ;;  %v3469_v15 = vrot.slane %v8068_v2, 1  ;;  %4161 = vmatpush.bf16.msra.mxu0 %v6603_v48  ;;  %v6538_v5 = vld [vmem:[%s7926_s25 + $0x20] sm:$0xff]  ;;  %v8151_v37 = vld [vmem:[%s7926_s25 + $0xc] sm:$0xff] }
 0x196   : > { %v3001_v58 = vsel %vm1587_vm4, %v2998_v32, %v3000_v39  ;;  %v3771_v53 = vshll.u32 %v8151_v37, 16 }
 0x197   : > { %v3470_v35 = vsel %vm655_vm1, %v3467_v8, %v3469_v15  ;;  %v3472_v63 = vsel %vm655_vm1, %v3469_v15, %v3471_v12 }
 0x198   : > { %3701 = vmatpush.bf16.msrb.mxu1 %v6571_v34  ;;  %v8173_v34 = vld [vmem:[%s7926_s25 + $0x20] sm:$0xff] }
 0x199   : > { %v2143_v54 = vpop.f32.mrf.mxu3  ;;  %4162 = vmatpush.bf16.msra.mxu0 %v6602_v9  ;;  %v3473_v7 = vrot.slane %v8173_v34, 1 }
 0x19a   : > { %v2164_v3 = vadd.f32 %v2143_v54, %v7933_v6 }
 0x19b   : > { %v2029_v55 = vpop.f32.mrf.mxu2  ;;  %v8094_v57 = vpop.f32.mrf.mxu0  ;;  %v3474_v39 = vsel %vm655_vm1, %v3471_v12, %v3473_v7  ;;  %v6613_v12 = vld [vmem:[%s8616_s3 + $0x670] sm:$0xff] }
 0x19c   : > { %v8092_v11 = vadd.f32 %v2029_v55, %v1844_v62  ;;  %v2471_v49 = vpop.f32.mrf.mxu1  ;;  %v8101_v56 = vadd.f32 %v8021_v31, %v2164_v3  ;;  %v3324_v55 = vshrl.u32 %v8068_v2, 16  ;;  %v3328_v3 = vshll.u32 %v8115_v26, 16 }
 0x19d   : > { %v2496_v6 = vadd.f32 %v2471_v49, %v8027_v60  ;;  %4163 = vmatpush.bf16.msra.mxu0 %v6601_v28 }
 0x19e   : > { %3409 = vmatmul.bf16.vlgmr.msrb.gmra.mxu3 %v3315_v1  ;;  %3543 = vmatmul.bf16.gmra.mxu0 %v3470_v35  ;;  %v6614_v1 = vld [vmem:[%s8616_s3 + $0x678] sm:$0xff]  ;;  %v3330_v25 = vrot.slane %v3328_v3, 1 }
 0x19f   : > { %3078 = vmatmul.bf16.gmra.mxu1 %v2999_v29 }
 0x1a0   : > { %3227 = vmatmul.bf16.gmra.mxu2 %v6537_v40  ;;  %6652 = vmatpush.bf16.msra.mxu1 %v6614_v1 }
 0x1a1   : > { %v2146_v30 = vpop.f32.mrf.mxu3 }
 0x1a2   : > { %v2165_v18 = vadd.f32 %v2146_v30, %v7968_v33  ;;  %v6591_v30 = vld [vmem:[%s8616_s3 + $0x5e0] sm:$0xff] }
 0x1a3   : > { %v2600_v31 = vpop.f32.mrf.mxu2  ;;  %v8111_v60 = vpop.f32.mrf.mxu0  ;;  %3997 = vmatpush.bf16.msra.mxu3 %v6591_v30 }
 0x1a4   : > { %v8109_v8 = vadd.f32 %v2600_v31, %v2496_v6  ;;  %v2473_v33 = vpop.f32.mrf.mxu1  ;;  %v8124_v43 = vadd.f32 %v8038_v44, %v2165_v18  ;;  %v3614_v44 = vunpack.c.l.b16 %v8128_v21  ;;  %v3773_v6 = vrot.slane %v3771_v53, 2  ;;  %v6600_v18 = vld [vmem:[%s8616_s3 + $0x608] sm:$0xff]  ;;  %6653 = vmatpush.bf16.msra.mxu1 %v6613_v12 }
 0x1a5   : > { %v2497_v27 = vadd.f32 %v2473_v33, %v8052_v38  ;;  %v3326_v31 = vor.u32 %v3324_v55, %v3322_v46  ;;  %4164 = vmatpush.bf16.msra.mxu0 %v6600_v18  ;;  %v3332_v53 = vshrl.u32 %v8115_v26, 16  ;;  %v6618_v26 = vld [vmem:[%s8616_s3 + $0x698] sm:$0xff]  ;;  %v6587_v18 = vld [vmem:[%s8616_s3 + $0x5c0] sm:$0xff] }
 0x1a6   : > { %v3624_v22 = vpack.c.b16 %v3614_v44, %v3613_v14 }
 0x1a7   : > { %v3331_v14 = vsel %vm415_vm0, %v3326_v31, %v3330_v25 }
 0x1a8   : > { %v3760_v50 = vshrl.u32 %v3624_v22, 16  ;;  %v3763_v48 = vshll.u32 %v3624_v22, 16 }
 0x1a9   : > { %v2148_v13 = vpop.f32.mrf.mxu3  ;;  %4165 = vmatpush.bf16.msra.mxu0 %v6599_v42  ;;  %v4038_v42 = vld [vmem:[%s7926_s25 + $0x8] sm:$0xc] }
 0x1aa   : > { %v2166_v38 = vadd.f32 %v2148_v13, %v7991_v24  ;;  %v3762_v40 = vrot.slane %v3760_v50, 1  ;;  %v3765_v49 = vrot.slane %v3763_v48, 2  ;;  %v6589_v50 = vld [vmem:[%s8616_s3 + $0x5d0] sm:$0xff] }
 0x1ab   : > { %v2602_v4 = vpop.f32.mrf.mxu2  ;;  %v8140_v41 = vpop.f32.mrf.mxu0 }
 0x1ac   : > { %v8138_v52 = vadd.f32 %v2602_v4, %v2497_v27  ;;  %v2476_v51 = vpop.f32.mrf.mxu1  ;;  %v8154_v24 = vadd.f32 %v8064_v16, %v2166_v38  ;;  %v3768_v16 = vshrl.u32 %v8151_v37, 16  ;;  %v3766_v45 = vor.u32 %v3765_v49, %v3762_v40  ;;  %v3258_v4 = vld [vmem:[%s7926_s25 + $0x28] sm:$0x1] }
 0x1ad   : > { %v2498_v62 = vadd.f32 %v2476_v51, %v8071_v59  ;;  %4329 = vmatpush.bf16.msrb.mxu0 %v6614_v1  ;;  %v6590_v51 = vld [vmem:[%s8616_s3 + $0x5d8] sm:$0xff]  ;;  %v6612_v1 = vld [vmem:[%s8616_s3 + $0x668] sm:$0xff] }
 0x1ae   : > { %3414 = vmatmul.bf16.gmra.mxu3 %v3323_v20  ;;  %3548 = vmatmul.bf16.gmra.mxu0 %v3472_v63  ;;  %v3770_v29 = vrot.slane %v3768_v16, 1 }
 0x1af   : > { %3083 = vmatmul.bf16.gmra.mxu1 %v3001_v58  ;;  %3998 = vmatpush.bf16.msra.mxu3 %v6590_v51 }
 0x1b0   : > { %3232 = vmatmul.bf16.gmra.mxu2 %v6538_v5  ;;  %v8193_v9 = vor.u32 %v3773_v6, %v3770_v29  ;;  %v8216_v5 = vld [vmem:[%s7926_s25 + $0x14] sm:$0xff]  ;;  %6654 = vmatpush.bf16.msra.mxu1 %v6612_v1 }
 0x1b1   : > { %v2151_v59 = vpop.f32.mrf.mxu3  ;;  %v3780_v58 = vshll.u32 %v8216_v5, 16  ;;  %4330 = vmatpush.bf16.msrb.mxu0 %v6613_v12 }
 0x1b2   : > { %v2167_v17 = vadd.f32 %v2151_v59, %v8019_v0  ;;  %v6620_v0 = vld [vmem:[%s8616_s3 + $0x6a8] sm:$0xff]  ;;  %v3775_v38 = vsel %vm949_vm2, %v3766_v45, %v8193_v9  ;;  %v3336_v59 = vshll.u32 %v8173_v34, 16 }
 0x1b3   : > { %v2605_v15 = vpop.f32.mrf.mxu2  ;;  %v8168_v54 = vpop.f32.mrf.mxu0  ;;  %4460 = vmatpush.bf16.msra.mxu2 %v6620_v0  ;;  %v3782_v3 = vrot.slane %v3780_v58, 2  ;;  %3999 = vmatpush.bf16.msra.mxu3 %v6589_v50  ;;  %v6588_v0 = vld [vmem:[%s8616_s3 + $0x5c8] sm:$0xff] }
 0x1b4   : > { %v8166_v32 = vadd.f32 %v2605_v15, %v2498_v62  ;;  %v2478_v35 = vpop.f32.mrf.mxu1  ;;  %v8182_v61 = vadd.f32 %v8094_v57, %v2167_v17  ;;  %v3630_v57 = vrot.slane %v3624_v22, 1  ;;  %v6619_v22 = vld [vmem:[%s8616_s3 + $0x6a0] sm:$0xff]  ;;  %v3338_v49 = vrot.slane %v3336_v59, 1 }
 0x1b5   : > { %v2499_v2 = vadd.f32 %v2478_v35, %v8101_v56  ;;  %v3631_v56 = vrot.slane %v8151_v37, 1  ;;  %v3334_v35 = vor.u32 %v3332_v53, %v3330_v25  ;;  %4331 = vmatpush.bf16.msrb.mxu0 %v6612_v1 }
 0x1b7   : > { %4461 = vmatpush.bf16.msra.mxu2 %v6619_v22  ;;  %4000 = vmatpush.bf16.msra.mxu3 %v6588_v0  ;;  %v3340_v22 = vshrl.u32 %v8173_v34, 16  ;;  %v6610_v0 = vld [vmem:[%s8616_s3 + $0x658] sm:$0xff] }
 0x1b9   : > { %v2153_v33 = vpop.f32.mrf.mxu3  ;;  %v3342_v50 = vor.u32 %v3340_v22, %v3338_v49  ;;  %v3931_v22 = vrot.slane %v8151_v37, 2 }
 0x1ba   : > { %v2168_v47 = vadd.f32 %v2153_v33, %v8036_v36  ;;  %v3632_v36 = vsel %vm655_vm1, %v3630_v57, %v3631_v56  ;;  %v3339_v57 = vsel %vm415_vm0, %v3334_v35, %v3338_v49  ;;  %v6616_v35 = vld [vmem:[%s8616_s3 + $0x688] sm:$0xff] }
 0x1bb   : > { %v2607_v27 = vpop.f32.mrf.mxu2  ;;  %v8201_v46 = vpop.f32.mrf.mxu0  ;;  %4462 = vmatpush.bf16.msra.mxu2 %v6618_v26  ;;  %4001 = vmatpush.bf16.msra.mxu3 %v6587_v18 }
 0x1bc   : > { %v8199_v19 = vadd.f32 %v2607_v27, %v2499_v2  ;;  %v2481_v13 = vpop.f32.mrf.mxu1  ;;  %v8219_v20 = vadd.f32 %v8111_v60, %v2168_v47  ;;  %v3297_v60 = vunpack.c.l.b16 %v3258_v4  ;;  %v8283_v27 = vld [vmem:[%s7926_s25 + $0x1c] sm:$0xff] }
 0x1bd   : > { %v2500_v63 = vadd.f32 %v2481_v13, %v8124_v43  ;;  %v3777_v43 = vshrl.u32 %v8216_v5, 16  ;;  %v3786_v13 = vshrl.u32 %v8283_v27, 16 }
 0x1be   : > { %3419 = vmatmul.bf16.gmra.mxu3 %v3331_v14  ;;  %3553 = vmatmul.bf16.gmra.mxu0 %v3474_v39  ;;  %v8243_v17 = vpack.c.b16 %v3297_v60, %v3297_v60  ;;  %v8307_v60 = vld [vmem:[%s7926_s25 + $0x10] sm:$0xff] }
 0x1bf   : > { %3702 = vmatmul.bf16.vlgmr.msrb.gmra.mxu1 %v3632_v36  ;;  %v3779_v55 = vrot.slane %v3777_v43, 1  ;;  %v4095_v59 = vrot.slane %v8307_v60, 2 }
 0x1c0   : > { %3873 = vmatmul.bf16.vlgmr.msrb.gmra.mxu2 %v3775_v38  ;;  %v3344_v51 = vshll.u32 %v8243_v17, 16 }
 0x1c1   : > { %v2156_v62 = vpop.f32.mrf.mxu3  ;;  %v8260_v29 = vor.u32 %v3782_v3, %v3779_v55 }
 0x1c2   : > { %v2169_v10 = vadd.f32 %v2156_v62, %v8062_v23  ;;  %v3788_v62 = vrot.slane %v3786_v13, 1  ;;  %v3346_v53 = vrot.slane %v3344_v51, 1 }
 0x1c3   : > { %v2610_v28 = vpop.f32.mrf.mxu2  ;;  %v8239_v16 = vpop.f32.mrf.mxu0  ;;  %v3784_v47 = vsel %vm949_vm2, %v8193_v9, %v8260_v29  ;;  %v6611_v9 = vld [vmem:[%s8616_s3 + $0x660] sm:$0xff] }
 0x1c4   : > { %v8237_v48 = vadd.f32 %v2610_v28, %v2500_v63  ;;  %v2483_v15 = vpop.f32.mrf.mxu1  ;;  %v8246_v23 = vadd.f32 %v8140_v41, %v2169_v10  ;;  %v3475_v41 = vrot.slane %v8243_v17, 1  ;;  %6655 = vmatpush.bf16.msra.mxu1 %v6611_v9  ;;  %4332 = vmatpush.bf16.msrb.mxu0 %v6611_v9  ;;  %v3635_v17 = vrot.slane %v8283_v27, 1 }
 0x1c5   : > { %v2501_v40 = vadd.f32 %v2483_v15, %v8154_v24  ;;  %v3633_v24 = vrot.slane %v8216_v5, 1 }
 0x1c6   : > { %v3476_v45 = vsel %vm655_vm1, %v3473_v7, %v3475_v41  ;;  %v4077_v7 = vunpack.c.l.b16 %v4038_v42 }
 0x1c8   : > { %6656 = vmatpush.bf16.msra.mxu1 %v6610_v0  ;;  %4333 = vmatpush.bf16.msrb.mxu0 %v6610_v0 }
 0x1c9   : > { %v2158_v6 = vpop.f32.mrf.mxu3 }
 0x1ca   : > { %v2170_v2 = vadd.f32 %v2158_v6, %v8092_v11  ;;  %v3634_v11 = vsel %vm655_vm1, %v3631_v56, %v3633_v24  ;;  %v4078_v56 = vunpack.c.h.b16 %v8128_v21  ;;  %v8344_v6 = vld [vmem:[%s7926_s25 + $0x24] sm:$0xff] }
 0x1cb   : > { %v2612_v30 = vpop.f32.mrf.mxu2  ;;  %v8268_v25 = vpop.f32.mrf.mxu0 }
 0x1cc   : > { %v8266_v31 = vadd.f32 %v2612_v30, %v2501_v40  ;;  %v2486_v33 = vpop.f32.mrf.mxu1  ;;  %v8287_v14 = vadd.f32 %v8168_v54, %v2170_v2  ;;  %v6617_v54 = vld [vmem:[%s8616_s3 + $0x690] sm:$0xff]  ;;  %v8311_v43 = vpack.c.b16 %v4078_v56, %v4077_v7  ;;  %v3909_v2 = vld [vmem:[%s7926_s25 + $0x4] sm:$0xc] }
 0x1cd   : > { %v2502_v39 = vadd.f32 %v2486_v33, %v8182_v61  ;;  %v3789_v61 = vshll.u32 %v8283_v27, 16  ;;  %4463 = vmatpush.bf16.msra.mxu2 %v6617_v54 }
 0x1ce   : > { %3424 = vmatmul.bf16.gmra.mxu3 %v3339_v57  ;;  %3558 = vmatmul.bf16.gmra.mxu0 %v3476_v45  ;;  %v4094_v34 = vrot.slane %v8311_v43, 2  ;;  %v3795_v57 = vshrl.u32 %v8344_v6, 16 }
 0x1cf   : > { %3707 = vmatmul.bf16.gmra.mxu1 %v3634_v11  ;;  %v3791_v10 = vrot.slane %v3789_v61, 2  ;;  %v3738_v61 = vld [vmem:[%s7926_s25 + $0x2c] sm:$0x3] }
 0x1d0   : > { %3878 = vmatmul.bf16.gmra.mxu2 %v3784_v47  ;;  %v4096_v26 = vsel %vm1121_vm3, %v4094_v34, %v4095_v59  ;;  %v3797_v9 = vrot.slane %v3795_v57, 1 }
 0x1d1   : > { %v2764_v36 = vpop.f32.mrf.mxu3  ;;  %v8320_v15 = vor.u32 %v3791_v10, %v3788_v62  ;;  %4464 = vmatpush.bf16.msra.mxu2 %v6616_v35 }
 0x1d2   : > { %v2789_v4 = vadd.f32 %v2764_v36, %v8109_v8  ;;  %v6615_v36 = vld [vmem:[%s8616_s3 + $0x680] sm:$0xff] }
 0x1d3   : > { %v2615_v38 = vpop.f32.mrf.mxu2  ;;  %v8302_v12 = vpop.f32.mrf.mxu0  ;;  %v3793_v41 = vsel %vm949_vm2, %v8260_v29, %v8320_v15  ;;  %v3798_v29 = vshll.u32 %v8344_v6, 16 }
 0x1d4   : > { %v8300_v63 = vadd.f32 %v2615_v38, %v2502_v39  ;;  %v2488_v58 = vpop.f32.mrf.mxu1  ;;  %v8314_v8 = vadd.f32 %v8201_v46, %v2789_v4  ;;  %v8364_v39 = vld [vmem:[%s7926_s25 + $0x18] sm:$0xff]  ;;  %v3637_v38 = vrot.slane %v8344_v6, 1 }
 0x1d5   : > { %v2503_v28 = vadd.f32 %v2488_v58, %v8219_v20  ;;  %v3347_v20 = vsel %vm415_vm0, %v3342_v50, %v3346_v53  ;;  %v3800_v54 = vrot.slane %v3798_v29, 2  ;;  %4465 = vmatpush.bf16.msra.mxu2 %v6615_v36  ;;  %v3757_v58 = vunpack.c.l.b16 %v3738_v61 }
 0x1d6   : > { %v3638_v37 = vsel %vm655_vm1, %v3635_v17, %v3637_v38 }
 0x1d7   : > { %v3801_v51 = vor.u32 %v3800_v54, %v3797_v9 }
 0x1d9   : > { %v2766_v55 = vpop.f32.mrf.mxu3 }
 0x1da   : > { %v2790_v40 = vadd.f32 %v2766_v55, %v8138_v52  ;;  %v3636_v52 = vsel %vm655_vm1, %v3633_v24, %v3635_v17  ;;  %v3928_v24 = vunpack.c.l.b16 %v3909_v2  ;;  %v8410_v2 = vld [vmem:[%s7926_s25 + $0x20] sm:$0xff] }
 0x1db   : > { %v2617_v3 = vpop.f32.mrf.mxu2  ;;  %v8325_v1 = vpop.f32.mrf.mxu0 }
 0x1dc   : > { %v8323_v46 = vadd.f32 %v2617_v3, %v2503_v28  ;;  %v2491_v49 = vpop.f32.mrf.mxu1  ;;  %v8348_v30 = vadd.f32 %v8239_v16, %v2790_v40  ;;  %v3929_v42 = vpack.c.b16 %v3614_v44, %v3928_v24  ;;  %v6608_v44 = vld [vmem:[%s8616_s3 + $0x648] sm:$0xff]  ;;  %v6607_v28 = vld [vmem:[%s8616_s3 + $0x640] sm:$0xff]  ;;  %v8395_v40 = vpack.c.b16 %v3757_v58, %v3757_v58 }
 0x1dd   : > { %v2504_v18 = vadd.f32 %v2491_v49, %v8246_v23  ;;  %v6609_v23 = vld [vmem:[%s8616_s3 + $0x650] sm:$0xff]  ;;  %v4232_v58 = vshrl.u32 %v8307_v60, 16 }
 0x1de   : > { %3429 = vmatmul.bf16.gmra.mxu3 %v3347_v20  ;;  %4166 = vmatmul.bf16.vlgmr.msra.gmra.mxu0 %v4096_v26  ;;  %v3930_v4 = vrot.slane %v3929_v42, 2  ;;  %v3584_v26 = vld [vmem:[%s7926_s25 + $0x2c] sm:$0x1]  ;;  %v3804_v0 = vshrl.u32 %v8395_v40, 16 }
 0x1df   : > { %3712 = vmatmul.bf16.gmra.mxu1 %v3636_v52  ;;  %4334 = vmatpush.bf16.msrb.mxu0 %v6609_v23 }
 0x1e0   : > { %3883 = vmatmul.bf16.gmra.mxu2 %v3793_v41  ;;  %6657 = vmatpush.bf16.msra.mxu1 %v6609_v23  ;;  %v3932_v34 = vsel %vm1121_vm3, %v3930_v4, %v3931_v22  ;;  %v3806_v24 = vrot.slane %v3804_v0, 1 }
 0x1e1   : > { %v2769_v45 = vpop.f32.mrf.mxu3 }
 0x1e2   : > { %v2791_v16 = vadd.f32 %v2769_v45, %v8166_v32 }
 0x1e3   : > { %v2620_v33 = vpop.f32.mrf.mxu2  ;;  %v8359_v47 = vpop.f32.mrf.mxu0  ;;  %4335 = vmatpush.bf16.msrb.mxu0 %v6608_v44 }
 0x1e4   : > { %v8357_v11 = vadd.f32 %v2620_v33, %v2504_v18  ;;  %v2493_v7 = vpop.f32.mrf.mxu1  ;;  %v8367_v13 = vadd.f32 %v8268_v25, %v2791_v16  ;;  %v4097_v25 = vrot.slane %v8364_v39, 2  ;;  %6658 = vmatpush.bf16.msra.mxu1 %v6608_v44  ;;  %v3933_v33 = vrot.slane %v8216_v5, 2 }
 0x1e5   : > { %v2505_v32 = vadd.f32 %v2493_v7, %v8287_v14 }
 0x1e6   : > { %v4098_v55 = vsel %vm1121_vm3, %v4095_v59, %v4097_v25  ;;  %v3623_v59 = vunpack.c.l.b16 %v3584_v26  ;;  %v3934_v61 = vsel %vm1121_vm3, %v3931_v22, %v3933_v33  ;;  %v4235_v22 = vshll.u32 %v8307_v60, 16 }
 0x1e7   : > { %4336 = vmatpush.bf16.msrb.mxu0 %v6607_v28 }
 0x1e8   : > { %6659 = vmatpush.bf16.msra.mxu1 %v6607_v28  ;;  %v3629_v18 = vpack.c.b16 %v3623_v59, %v3623_v59  ;;  %v8436_v28 = vld [vmem:[%s7926_s25 + $0x28] sm:$0xff] }
 0x1e9   : > { %v2771_v14 = vpop.f32.mrf.mxu3  ;;  %v4101_v0 = vrot.slane %v8436_v28, 2 }
 0x1ea   : > { %v2792_v10 = vadd.f32 %v2771_v14, %v8199_v19  ;;  %v3802_v19 = vsel %vm949_vm2, %v8320_v15, %v3801_v51  ;;  %v3807_v15 = vshll.u32 %v8395_v40, 16  ;;  %v3639_v16 = vrot.slane %v3629_v18, 1 }
 0x1eb   : > { %v2622_v62 = vpop.f32.mrf.mxu2  ;;  %v8386_v53 = vpop.f32.mrf.mxu0 }
 0x1ec   : > { %v8384_v50 = vadd.f32 %v2622_v62, %v2505_v32  ;;  %v3064_v3 = vpop.f32.mrf.mxu1  ;;  %v8398_v20 = vadd.f32 %v8302_v12, %v2792_v10  ;;  %v3809_v57 = vrot.slane %v3807_v15, 2  ;;  %v3640_v5 = vsel %vm655_vm1, %v3637_v38, %v3639_v16  ;;  %v4048_v16 = vld [vmem:[%s7926_s25 + $0x30] sm:$0x3] }
 0x1ed   : > { %v3089_v17 = vadd.f32 %v3064_v3, %v8314_v8  ;;  %v4244_v38 = vshll.u32 %v8364_v39, 16 }
 0x1ee   : > { %4002 = vmatmul.bf16.vlgmr.msra.gmra.mxu3 %v3932_v34  ;;  %4171 = vmatmul.bf16.gmra.mxu0 %v4098_v55  ;;  %v3810_v23 = vor.u32 %v3809_v57, %v3806_v24  ;;  %v4237_v34 = vrot.slane %v4235_v22, 3 }
 0x1ef   : > { %3717 = vmatmul.bf16.gmra.mxu1 %v3638_v37  ;;  %v4234_v37 = vrot.slane %v4232_v58, 2 }
 0x1f0   : > { %3888 = vmatmul.bf16.gmra.mxu2 %v3802_v19  ;;  %v3811_v36 = vsel %vm949_vm2, %v3801_v51, %v3810_v23  ;;  %v4246_v19 = vrot.slane %v4244_v38, 3 }
 0x1f1   : > { %v2774_v35 = vpop.f32.mrf.mxu3  ;;  %v8444_v15 = vor.u32 %v4237_v34, %v4234_v37 }
 0x1f2   : > { %v2793_v49 = vadd.f32 %v2774_v35, %v8237_v48  ;;  %v4099_v48 = vrot.slane %v8410_v2, 2 }
 0x1f3   : > { %v3213_v12 = vpop.f32.mrf.mxu2  ;;  %v8407_v41 = vpop.f32.mrf.mxu0 }
 0x1f4   : > { %v8405_v52 = vadd.f32 %v3213_v12, %v3089_v17  ;;  %v3066_v8 = vpop.f32.mrf.mxu1  ;;  %v2964_v29 = vadd.f32 %v8325_v1, %v2793_v49  ;;  %v4100_v1 = vsel %vm1121_vm3, %v4097_v25, %v4099_v48  ;;  %v4241_v25 = vshrl.u32 %v8364_v39, 16 }
 0x1f5   : > { %v3090_v45 = vadd.f32 %v3066_v8, %v8348_v30  ;;  %v4395_v12 = vrot.slane %v8307_v60, 3 }
 0x1f6   : > { %v4243_v3 = vrot.slane %v4241_v25, 2  ;;  %v4397_v25 = vrot.slane %v8364_v39, 3  ;;  %v4224_v39 = vshrl.u32 %v8311_v43, 16 }
 0x1f8   : > { %v4247_v35 = vor.u32 %v4246_v19, %v4243_v3  ;;  %v4259_v3 = vshrl.u32 %v8436_v28, 16  ;;  %v4262_v19 = vshll.u32 %v8436_v28, 16 }
 0x1f9   : > { %v2776_v42 = vpop.f32.mrf.mxu3 }
 0x1fa   : > { %v2794_v7 = vadd.f32 %v2776_v42, %v8266_v31  ;;  %v4373_v31 = vld [vmem:[%s7926_s25 + $0x8] sm:$0x8]  ;;  %v4248_v57 = vsel %vm1415_vm5, %v8444_v15, %v4247_v35  ;;  %v4250_v42 = vshrl.u32 %v8410_v2, 16 }
 0x1fb   : > { %v3215_v9 = vpop.f32.mrf.mxu2  ;;  %v8419_v32 = vpop.f32.mrf.mxu0  ;;  %v4392_v14 = vunpack.c.l.b16 %v4373_v31  ;;  %v3937_v31 = vrot.slane %v8344_v6, 2  ;;  %v4398_v6 = vsel %vm1587_vm4, %v4395_v12, %v4397_v25 }
 0x1fc   : > { %v8417_v54 = vadd.f32 %v3215_v9, %v3090_v45  ;;  %v3069_v30 = vpop.f32.mrf.mxu1  ;;  %v2965_v44 = vadd.f32 %v8359_v47, %v2794_v7 }
 0x1fd   : > { %v3091_v4 = vadd.f32 %v3069_v30, %v8367_v13  ;;  %v4393_v17 = vpack.c.b16 %v4078_v56, %v4392_v14 }
 0x1fe   : > { %4007 = vmatmul.bf16.gmra.mxu3 %v3934_v61  ;;  %4176 = vmatmul.bf16.gmra.mxu0 %v4100_v1 }
 0x1ff   : > { %3722 = vmatmul.bf16.gmra.mxu1 %v3640_v5  ;;  %v4394_v49 = vrot.slane %v4393_v17, 3 }
 0x200   : > { %3893 = vmatmul.bf16.gmra.mxu2 %v3811_v36 }
 0x201   : > { %v2779_v51 = vpop.f32.mrf.mxu3  ;;  %v4396_v45 = vsel %vm1587_vm4, %v4394_v49, %v4395_v12  ;;  %v4261_v12 = vrot.slane %v4259_v3, 2 }
 0x202   : > { %v2795_v47 = vadd.f32 %v2779_v51, %v8300_v63  ;;  %v3935_v63 = vrot.slane %v8283_v27, 2  ;;  %v4102_v27 = vsel %vm1121_vm3, %v4099_v48, %v4101_v0 }
 0x203   : > { %v3218_v62 = vpop.f32.mrf.mxu2  ;;  %v2957_v10 = vpop.f32.mrf.mxu0 }
 0x204   : > { %v8433_v13 = vadd.f32 %v3218_v62, %v3091_v4  ;;  %v3071_v55 = vpop.f32.mrf.mxu1  ;;  %v2966_v26 = vadd.f32 %v8386_v53, %v2795_v47  ;;  %v3938_v62 = vsel %vm1121_vm3, %v3935_v63, %v3937_v31 }
 0x205   : > { %v3092_v59 = vadd.f32 %v3071_v55, %v8398_v20  ;;  %v3936_v20 = vsel %vm1121_vm3, %v3933_v33, %v3935_v63  ;;  %v4253_v33 = vshll.u32 %v8410_v2, 16 }
 0x209   : > { %v2781_v8 = vpop.f32.mrf.mxu3 }
 0x20a   : > { %v2796_v18 = vadd.f32 %v2781_v8, %v8323_v46  ;;  %v4087_v46 = vunpack.c.l.b16 %v4048_v16  ;;  %v4264_v8 = vrot.slane %v4262_v19, 3 }
 0x20b   : > { %v3220_v21 = vpop.f32.mrf.mxu2  ;;  %v3539_v53 = vpop.f32.mrf.mxu0 }
 0x20c   : > { %v8448_v56 = vadd.f32 %v3220_v21, %v3092_v59  ;;  %v3074_v24 = vpop.f32.mrf.mxu1  ;;  %v2967_v60 = vadd.f32 %v8407_v41, %v2796_v18  ;;  %v4093_v30 = vpack.c.b16 %v4087_v46, %v4087_v46  ;;  %v4252_v41 = vrot.slane %v4250_v42, 2 }
 0x20d   : > { %v3093_v23 = vadd.f32 %v3074_v24, %v2964_v29  ;;  %v4255_v29 = vrot.slane %v4253_v33, 3  ;;  %v4265_v24 = vor.u32 %v4264_v8, %v4261_v12 }
 0x20e   : > { %4012 = vmatmul.bf16.gmra.mxu3 %v3936_v20  ;;  %4181 = vmatmul.bf16.gmra.mxu0 %v4102_v27  ;;  %v4103_v58 = vrot.slane %v4093_v30, 2  ;;  %v4202_v20 = vld [vmem:[%s7926_s25 + $0x30] sm:$0x7] }
 0x20f   : > { %4342 = vmatmul.bf16.vlgmr.msra.gmra.mxu1 %v4248_v57  ;;  %v4256_v22 = vor.u32 %v4255_v29, %v4252_v41  ;;  %v4399_v57 = vrot.slane %v8410_v2, 3 }
 0x210   : > { %4466 = vmatmul.bf16.vlgmr.msra.gmra.mxu2 %v4396_v45  ;;  %v4104_v37 = vsel %vm1121_vm3, %v4101_v0, %v4103_v58  ;;  %v4221_v45 = vunpack.c.l.b16 %v4202_v20 }
 0x211   : > { %v2784_v48 = vpop.f32.mrf.mxu3 }
 0x212   : > { %v2797_v7 = vadd.f32 %v2784_v48, %v8357_v11  ;;  %v4400_v48 = vsel %vm1587_vm4, %v4397_v25, %v4399_v57 }
 0x213   : > { %v3223_v9 = vpop.f32.mrf.mxu2  ;;  %v3541_v1 = vpop.f32.mrf.mxu0 }
 0x214   : > { %v8460_v61 = vadd.f32 %v3223_v9, %v3093_v23  ;;  %v3076_v5 = vpop.f32.mrf.mxu1  ;;  %v2968_v36 = vadd.f32 %v8419_v32, %v2797_v7  ;;  %v4257_v32 = vsel %vm1415_vm5, %v4247_v35, %v4256_v22  ;;  %v4222_v7 = vpack.c.b16 %v4221_v45, %v4221_v45 }
 0x215   : > { %v3094_v4 = vadd.f32 %v3076_v5, %v2965_v44 }
 0x216   : > { %v4271_v30 = vshll.u32 %v4222_v7, 16 }
 0x219   : > { %v2786_v38 = vpop.f32.mrf.mxu3 }
 0x21a   : > { %v2798_v11 = vadd.f32 %v2786_v38, %v8384_v50  ;;  %v4227_v50 = vshll.u32 %v8311_v43, 16  ;;  %v3939_v43 = vrot.slane %v8395_v40, 2  ;;  %v4266_v40 = vsel %vm1415_vm5, %v4256_v22, %v4265_v24 }
 0x21b   : > { %v3225_v14 = vpop.f32.mrf.mxu2  ;;  %v3544_v47 = vpop.f32.mrf.mxu0  ;;  %v4273_v22 = vrot.slane %v4271_v30, 3 }
 0x21c   : > { %v8466_v51 = vadd.f32 %v3225_v14, %v3094_v4  ;;  %v3079_v34 = vpop.f32.mrf.mxu1  ;;  %v2969_v44 = vadd.f32 %v2957_v10, %v2798_v11  ;;  %v4229_v35 = vrot.slane %v4227_v50, 3  ;;  %v3940_v33 = vsel %vm1121_vm3, %v3937_v31, %v3939_v43 }
 0x21d   : > { %v3095_v55 = vadd.f32 %v3079_v34, %v2966_v26  ;;  %v4226_v26 = vrot.slane %v4224_v39, 2 }
 0x21e   : > { %4017 = vmatmul.bf16.gmra.mxu3 %v3938_v62  ;;  %4186 = vmatmul.bf16.gmra.mxu0 %v4104_v37 }
 0x21f   : > { %4347 = vmatmul.bf16.gmra.mxu1 %v4257_v32  ;;  %v4230_v27 = vor.u32 %v4229_v35, %v4226_v26 }
 0x220   : > { %4471 = vmatmul.bf16.gmra.mxu2 %v4398_v6 }
 0x221   : > { %v3410_v17 = vpop.f32.mrf.mxu3 }
 0x222   : > { %v3435_v63 = vadd.f32 %v3410_v17, %v8405_v52 }
 0x223   : > { %v3228_v59 = vpop.f32.mrf.mxu2  ;;  %v3546_v10 = vpop.f32.mrf.mxu0 }
 0x224   : > { %v8477_v0 = vadd.f32 %v3228_v59, %v3095_v55  ;;  %v3081_v49 = vpop.f32.mrf.mxu1  ;;  %v3564_v18 = vadd.f32 %v3539_v53, %v3435_v63  ;;  %v4239_v53 = vsel %vm1415_vm5, %v4230_v27, %v8444_v15  ;;  %v4403_v59 = vrot.slane %v4222_v7, 3 }
 0x225   : > { %v3096_v21 = vadd.f32 %v3081_v49, %v2967_v60 }
 0x229   : > { %v3412_v16 = vpop.f32.mrf.mxu3 }
 0x22a   : > { %v3436_v23 = vadd.f32 %v3412_v16, %v8417_v54  ;;  %v4268_v54 = vshrl.u32 %v4222_v7, 16 }
 0x22b   : > { %v3230_v52 = vpop.f32.mrf.mxu2  ;;  %v3549_v42 = vpop.f32.mrf.mxu0 }
 0x22c   : > { %v8483_v46 = vadd.f32 %v3230_v52, %v3096_v21  ;;  %v3084_v60 = vpop.f32.mrf.mxu1  ;;  %v3565_v2 = vadd.f32 %v3541_v1, %v3436_v23  ;;  %v4270_v58 = vrot.slane %v4268_v54, 2  ;;  %v4401_v1 = vrot.slane %v8436_v28, 3 }
 0x22d   : > { %v3097_v9 = vadd.f32 %v3084_v60, %v2968_v36 }
 0x22e   : > { %4022 = vmatmul.bf16.gmra.mxu3 %v3940_v33  ;;  %4337 = vmatmul.bf16.vlgmr.msrb.gmra.mxu0 %v4239_v53  ;;  %v4274_v11 = vor.u32 %v4273_v22, %v4270_v58  ;;  %v4404_v8 = vsel %vm1587_vm4, %v4401_v1, %v4403_v59 }
 0x22f   : > { %4352 = vmatmul.bf16.gmra.mxu1 %v4266_v40 }
 0x230   : > { %4476 = vmatmul.bf16.gmra.mxu2 %v4400_v48  ;;  %v4275_v6 = vsel %vm1415_vm5, %v4265_v24, %v4274_v11 }
 0x231   : > { %v3415_v5 = vpop.f32.mrf.mxu3 }
 0x232   : > { %v3437_v29 = vadd.f32 %v3415_v5, %v8433_v13  ;;  %v4402_v13 = vsel %vm1587_vm4, %v4399_v57, %v4401_v1 }
 0x233   : > { %v3233_v41 = vpop.f32.mrf.mxu2  ;;  %v3551_v15 = vpop.f32.mrf.mxu0 }
 0x234   : > { %v3246_v4 = vadd.f32 %v3233_v41, %v3097_v9  ;;  %v3086_v31 = vpop.f32.mrf.mxu1  ;;  %v3566_v38 = vadd.f32 %v3544_v47, %v3437_v29 }
 0x235   : > { %v3098_v25 = vadd.f32 %v3086_v31, %v2969_v44 }
 0x239   : > { %v3417_v36 = vpop.f32.mrf.mxu3 }
 0x23a   : > { %v3438_v62 = vadd.f32 %v3417_v36, %v8448_v56 }
 0x23b   : > { %v3235_v14 = vpop.f32.mrf.mxu2  ;;  %v3554_v34 = vpop.f32.mrf.mxu0 }
 0x23c   : > { %v3247_v37 = vadd.f32 %v3235_v14, %v3098_v25  ;;  %v3703_v32 = vpop.f32.mrf.mxu1  ;;  %v3567_v55 = vadd.f32 %v3546_v10, %v3438_v62 }
 0x23d   : > { %v3728_v39 = vadd.f32 %v3703_v32, %v3564_v18 }
 0x23f   : > { %4357 = vmatmul.bf16.gmra.mxu1 %v4275_v6 }
 0x240   : > { %4481 = vmatmul.bf16.gmra.mxu2 %v4402_v13 }
 0x241   : > { %v3420_v47 = vpop.f32.mrf.mxu3 }
 0x242   : > { %v3439_v44 = vadd.f32 %v3420_v47, %v8460_v61 }
 0x243   : > { %v3874_v50 = vpop.f32.mrf.mxu2  ;;  %v3556_v3 = vpop.f32.mrf.mxu0 }
 0x244   : > { %v3899_v28 = vadd.f32 %v3874_v50, %v3728_v39  ;;  %v3705_v19 = vpop.f32.mrf.mxu1  ;;  %v3568_v17 = vadd.f32 %v3549_v42, %v3439_v44 }
 0x245   : > { %v3729_v56 = vadd.f32 %v3705_v19, %v3565_v2 }
 0x249   : > { %v3422_v63 = vpop.f32.mrf.mxu3 }
 0x24a   : > { %v3440_v26 = vadd.f32 %v3422_v63, %v8466_v51 }
 0x24b   : > { %v3876_v35 = vpop.f32.mrf.mxu2  ;;  %v3559_v12 = vpop.f32.mrf.mxu0 }
 0x24c   : > { %v3900_v49 = vadd.f32 %v3876_v35, %v3729_v56  ;;  %v3708_v10 = vpop.f32.mrf.mxu1  ;;  %v3569_v18 = vadd.f32 %v3551_v15, %v3440_v26 }
 0x24d   : > { %v3730_v21 = vadd.f32 %v3708_v10, %v3566_v38 }
 0x250   : > { %4486 = vmatmul.bf16.gmra.mxu2 %v4404_v8 }
 0x251   : > { %v3425_v61 = vpop.f32.mrf.mxu3 }
 0x252   : > { %v3441_v20 = vadd.f32 %v3425_v61, %v8477_v0 }
 0x253   : > { %v3879_v43 = vpop.f32.mrf.mxu2  ;;  %v3561_v24 = vpop.f32.mrf.mxu0 }
 0x254   : > { %v8499_v27 = vadd.f32 %v3879_v43, %v3730_v21  ;;  %v3710_v57 = vpop.f32.mrf.mxu1  ;;  %v3570_v45 = vadd.f32 %v3554_v34, %v3441_v20 }
 0x255   : > { %v3731_v16 = vadd.f32 %v3710_v57, %v3567_v55 }
 0x259   : > { %v3427_v51 = vpop.f32.mrf.mxu3 }
 0x25a   : > { %v3442_v52 = vadd.f32 %v3427_v51, %v8483_v46 }
 0x25b   : > { %v3881_v23 = vpop.f32.mrf.mxu2  ;;  %v4167_v33 = vpop.f32.mrf.mxu0 }
 0x25c   : > { %v3902_v42 = vadd.f32 %v3881_v23, %v3731_v16  ;;  %v3713_v53 = vpop.f32.mrf.mxu1  ;;  %v3571_v60 = vadd.f32 %v3556_v3, %v3442_v52 }
 0x25d   : > { %v3732_v40 = vadd.f32 %v3713_v53, %v3568_v17 }
 0x261   : > { %v3430_v48 = vpop.f32.mrf.mxu3 }
 0x262   : > { %v3443_v7 = vadd.f32 %v3430_v48, %v3246_v4 }
 0x263   : > { %v3884_v2 = vpop.f32.mrf.mxu2  ;;  %v4169_v9 = vpop.f32.mrf.mxu0 }
 0x264   : > { %v3903_v0 = vadd.f32 %v3884_v2, %v3732_v40  ;;  %v3715_v54 = vpop.f32.mrf.mxu1  ;;  %v3572_v30 = vadd.f32 %v3559_v12, %v3443_v7 }
 0x265   : > { %v3733_v5 = vadd.f32 %v3715_v54, %v3569_v18 }
 0x269   : > { %v3432_v41 = vpop.f32.mrf.mxu3 }
 0x26a   : > { %v3444_v29 = vadd.f32 %v3432_v41, %v3247_v37 }
 0x26b   : > { %v3886_v15 = vpop.f32.mrf.mxu2  ;;  %v4172_v46 = vpop.f32.mrf.mxu0 }
 0x26c   : > { %v8502_v31 = vadd.f32 %v3886_v15, %v3733_v5  ;;  %v3718_v58 = vpop.f32.mrf.mxu1  ;;  %v3573_v22 = vadd.f32 %v3561_v24, %v3444_v29 }
 0x26d   : > { %v3734_v38 = vadd.f32 %v3718_v58, %v3570_v45 }
 0x271   : > { %v4003_v25 = vpop.f32.mrf.mxu3 }
 0x272   : > { %v4028_v1 = vadd.f32 %v4003_v25, %v3899_v28 }
 0x273   : > { %v3889_v11 = vpop.f32.mrf.mxu2  ;;  %v4174_v4 = vpop.f32.mrf.mxu0 }
 0x274   : > { %v3905_v36 = vadd.f32 %v3889_v11, %v3734_v38  ;;  %v3720_v14 = vpop.f32.mrf.mxu1  ;;  %v4192_v62 = vadd.f32 %v4167_v33, %v4028_v1 }
 0x275   : > { %v3735_v34 = vadd.f32 %v3720_v14, %v3571_v60 }
 0x279   : > { %v4005_v32 = vpop.f32.mrf.mxu3 }
 0x27a   : > { %v4029_v13 = vadd.f32 %v4005_v32, %v3900_v49 }
 0x27b   : > { %v3891_v6 = vpop.f32.mrf.mxu2  ;;  %v4177_v37 = vpop.f32.mrf.mxu0 }
 0x27c   : > { %v8504_v55 = vadd.f32 %v3891_v6, %v3735_v34  ;;  %v3723_v39 = vpop.f32.mrf.mxu1  ;;  %v4193_v47 = vadd.f32 %v4169_v9, %v4029_v13 }
 0x27d   : > { %v3736_v44 = vadd.f32 %v3723_v39, %v3572_v30 }
 0x281   : > { %v4008_v50 = vpop.f32.mrf.mxu3 }
 0x282   : > { %v4030_v45 = vadd.f32 %v4008_v50, %v8499_v27 }
 0x283   : > { %v3894_v3 = vpop.f32.mrf.mxu2  ;;  %v4179_v17 = vpop.f32.mrf.mxu0 }
 0x284   : > { %v8506_v19 = vadd.f32 %v3894_v3, %v3736_v44  ;;  %v3725_v28 = vpop.f32.mrf.mxu1  ;;  %v4194_v51 = vadd.f32 %v4172_v46, %v4030_v45 }
 0x285   : > { %v3737_v56 = vadd.f32 %v3725_v28, %v3573_v22 }
 0x289   : > { %v4010_v59 = vpop.f32.mrf.mxu3 }
 0x28a   : > { %v4031_v26 = vadd.f32 %v4010_v59, %v3902_v42  ;;  %v8518_v42 = vld [vmem:[%s8617_s4] ss:$0 sm:$0xff] }
 0x28b   : > { %v3896_v63 = vpop.f32.mrf.mxu2  ;;  %v4182_v12 = vpop.f32.mrf.mxu0 }
 0x28c   : > { %v8508_v35 = vadd.f32 %v3896_v63, %v3737_v56  ;;  %v4195_v49 = vadd.f32 %v4174_v4, %v4031_v26  ;;  %v4343_v10 = vpop.f32.mrf.mxu1 }
 0x28d   : > { %v4365_v52 = vadd.f32 %v4343_v10, %v4194_v51 }
 0x291   : > { %v4013_v8 = vpop.f32.mrf.mxu3 }
 0x292   : > { %v4032_v18 = vadd.f32 %v4013_v8, %v3903_v0 }
 0x293   : > { %v4467_v21 = vpop.f32.mrf.mxu2  ;;  %v8510_v61 = vpop.f32.mrf.mxu0 }
 0x294   : > { %v4196_v20 = vadd.f32 %v4177_v37, %v4032_v18  ;;  %v4345_v24 = vpop.f32.mrf.mxu1 }
 0x295   : > { %v4366_v41 = vadd.f32 %v4345_v24, %v4195_v49 }
 0x299   : > { %v4015_v43 = vpop.f32.mrf.mxu3 }
 0x29a   : > { %v4033_v11 = vadd.f32 %v4015_v43, %v8502_v31 }
 0x29b   : > { %v4469_v57 = vpop.f32.mrf.mxu2  ;;  %v8513_v16 = vpop.f32.mrf.mxu0 }
 0x29c   : > { %v4348_v48 = vpop.f32.mrf.mxu1  ;;  %v4197_v32 = vadd.f32 %v4179_v17, %v4033_v11 }
 0x29d   : > { %v4367_v17 = vadd.f32 %v4348_v48, %v4196_v20 }
 0x2a1   : > { %v4018_v23 = vpop.f32.mrf.mxu3 }
 0x2a2   : > { %v4034_v33 = vadd.f32 %v4018_v23, %v3905_v36 }
 0x2a3   : > { %v4472_v53 = vpop.f32.mrf.mxu2  ;;  %v8520_v40 = vpop.f32.mrf.mxu0 }
 0x2a4   : > { %v4494_v60 = vadd.f32 %v4472_v53, %v4365_v52  ;;  %v8522_v7 = vadd.f32 %v4182_v12, %v4034_v33  ;;  %v4350_v15 = vpop.f32.mrf.mxu1 }
 0x2a6   : > { %v4508_v27 = vadd.f32 %v8518_v42, %v4494_v60 }
 0x2a8   : > { %v4518_v2 = vmax.f32 %v4508_v27, 0.0 }
 0x2a9   : > { %v4020_v63 = vpop.f32.mrf.mxu3 }
 0x2aa   : > { %v4528_v0 = vpack.c.bf16 %v4518_v2, %v4518_v2  ;;  %v4035_v51 = vadd.f32 %v4020_v63, %v8504_v55 }
 0x2ab   : > { %v4474_v9 = vpop.f32.mrf.mxu2  ;;  %v4338_v30 = vpop.f32.mrf.mxu0 }
 0x2ac   : > { %v4548_v54 = vrot.slane %v4528_v0, 3  ;;  %v4363_v5 = vadd.f32 %v4338_v30, %v4192_v62  ;;  %v4495_v58 = vadd.f32 %v4474_v9, %v4366_v41  ;;  %v4353_v44 = vpop.f32.mrf.mxu1 }
 0x2ae   : > { %v4585_v29 = vsel %vm4556_vm6, %v4528_v0, %v4548_v54  ;;  %v4492_v46 = vadd.f32 %v4467_v21, %v4363_v5  ;;  %v4509_v1 = vadd.f32 %v8518_v42, %v4495_v58  ;;  %v4586_v21 = vsel %vm4564_vm7, %v4528_v0, %v4548_v54 }
 0x2af   : > { %4681 = vst [vmem:[#allocation1 + $0x23] ss:$4 sm:$0xff] %v4585_v29  ;;  %v4589_v43 = vsel %vm4568_vm8, %v4528_v0, %v4548_v54  ;;  %v4588_v53 = vrot.slane %v4586_v21, 2  ;;  %v4369_v0 = vadd.f32 %v4353_v44, %v8522_v7 }
 0x2b0   : > { %v4506_v22 = vadd.f32 %v8518_v42, %v4492_v46  ;;  %v4519_v6 = vmax.f32 %v4509_v1, 0.0  ;;  %v4591_v60 = vrot.slane %v4589_v43, 3 }
 0x2b1   : > { %v4023_v55 = vpop.f32.mrf.mxu3 }
 0x2b2   : > { %v4516_v38 = vmax.f32 %v4506_v22, 0.0  ;;  %v8535_v26 = vpack.c.bf16 %v4519_v6, %v4519_v6  ;;  %v4199_v22 = vadd.f32 %v8510_v61, %v4035_v51 }
 0x2b3   : > { %v4477_v25 = vpop.f32.mrf.mxu2  ;;  %v4340_v36 = vpop.f32.mrf.mxu0 }
 0x2b4   : > { %v4526_v4 = vpack.c.bf16 %v4516_v38, %v4516_v38  ;;  %v4364_v14 = vadd.f32 %v4340_v36, %v4193_v47  ;;  %v4368_v47 = vadd.f32 %v4350_v15, %v4197_v32  ;;  %v4496_v49 = vadd.f32 %v4477_v25, %v4367_v17  ;;  %v4355_v23 = vpop.f32.mrf.mxu1 }
 0x2b5   : > { %v4549_v20 = vrot.slane %v8535_v26, 3  ;;  %v4370_v25 = vadd.f32 %v4355_v23, %v4199_v22  ;;  %v4036_v36 = vadd.f32 %v4023_v55, %v8506_v19 }
 0x2b6   : > { %v4546_v62 = vrot.slane %v4526_v4, 3  ;;  %v4493_v34 = vadd.f32 %v4469_v57, %v4364_v14  ;;  %v4510_v24 = vadd.f32 %v8518_v42, %v4496_v49 }
 0x2b7   : > { %v4595_v48 = vsel %vm4560_vm9, %v8535_v26, %v4549_v20  ;;  %v4594_v41 = vsel %vm4556_vm6, %v8535_v26, %v4549_v20  ;;  %v4598_v6 = vsel %vm4568_vm8, %v8535_v26, %v4549_v20  ;;  %v4200_v44 = vadd.f32 %v8513_v16, %v4036_v36 }
 0x2b8   : > { %v4559_v13 = vsel %vm4556_vm6, %v4526_v4, %v4546_v62  ;;  %v4561_v37 = vsel %vm4560_vm9, %v4526_v4, %v4546_v62  ;;  %v4565_v39 = vsel %vm4564_vm7, %v4526_v4, %v4546_v62  ;;  %v4569_v31 = vsel %vm4568_vm8, %v4526_v4, %v4546_v62 }
 0x2b9   : > { %v4563_v50 = vrot.slane %v4561_v37, 1  ;;  %v4567_v3 = vrot.slane %v4565_v39, 2  ;;  %v4571_v28 = vrot.slane %v4569_v31, 3  ;;  %4660 = vst [vmem:[#allocation1] ss:$4 sm:$0xff] %v4559_v13  ;;  %v4507_v56 = vadd.f32 %v8518_v42, %v4493_v34  ;;  %v4025_v37 = vpop.f32.mrf.mxu3 }
 0x2ba   : > { %v4520_v9 = vmax.f32 %v4510_v24, 0.0  ;;  %v4597_v29 = vrot.slane %v4595_v48, 1  ;;  %v4037_v63 = vadd.f32 %v4025_v37, %v8508_v35 }
 0x2bb   : > { %v4479_v59 = vpop.f32.mrf.mxu2  ;;  %4663 = vst [vmem:[#allocation1 + $0x1] ss:$4 sm:$0xff] %v4563_v50  ;;  %v4517_v10 = vmax.f32 %v4507_v56, 0.0 }
 0x2bc   : > { %v4497_v12 = vadd.f32 %v4479_v59, %v4368_v47  ;;  %4666 = vst [vmem:[#allocation1 + $0x2] ss:$4 sm:$0xff] %v4567_v3  ;;  %v4530_v7 = vpack.c.bf16 %v4520_v9, %v4520_v9  ;;  %v4358_v62 = vpop.f32.mrf.mxu1 }
 0x2bd   : > { %4669 = vst [vmem:[#allocation1 + $0x3] ss:$4 sm:$0xff] %v4571_v28  ;;  %v4527_v18 = vpack.c.bf16 %v4517_v10, %v4517_v10  ;;  %v4600_v28 = vrot.slane %v4598_v6, 3  ;;  %v4371_v56 = vadd.f32 %v4358_v62, %v4200_v44 }
 0x2be   : > { %v4511_v8 = vadd.f32 %v8518_v42, %v4497_v12  ;;  %v4550_v61 = vrot.slane %v4530_v7, 3 }
 0x2bf   : > { %v4547_v57 = vrot.slane %v4527_v18, 3 }
 0x2c0   : > { %v4521_v45 = vmax.f32 %v4511_v8, 0.0  ;;  %v4604_v50 = vsel %vm4560_vm9, %v4530_v7, %v4550_v61  ;;  %v4607_v17 = vsel %vm4564_vm7, %v4530_v7, %v4550_v61  ;;  %v4603_v16 = vsel %vm4556_vm6, %v4530_v7, %v4550_v61 }
 0x2c1   : > { %v4574_v52 = vsel %vm4560_vm9, %v4527_v18, %v4547_v57  ;;  %v4577_v27 = vsel %vm4564_vm7, %v4527_v18, %v4547_v57  ;;  %v4580_v54 = vsel %vm4568_vm8, %v4527_v18, %v4547_v57  ;;  %v4606_v10 = vrot.slane %v4604_v50, 1 }
 0x2c2   : > { %v4531_v30 = vpack.c.bf16 %v4521_v45, %v4521_v45  ;;  %v4576_v5 = vrot.slane %v4574_v52, 1  ;;  %v4579_v15 = vrot.slane %v4577_v27, 2  ;;  %v4582_v58 = vrot.slane %v4580_v54, 3 }
 0x2c3   : > { %v4482_v33 = vpop.f32.mrf.mxu2  ;;  %v4609_v21 = vrot.slane %v4607_v17, 2  ;;  %v4201_v57 = vadd.f32 %v8520_v40, %v4037_v63 }
 0x2c4   : > { %v4670_v2 = vld [vmem:[#allocation1] sm:$0xff]  ;;  %v4498_v46 = vadd.f32 %v4482_v33, %v4369_v0  ;;  %v4551_v38 = vrot.slane %v4531_v30, 3  ;;  %4673 = vst [vmem:[#allocation1 + $0x20] ss:$4 sm:$0xff] %v4576_v5  ;;  %v4360_v24 = vpop.f32.mrf.mxu1 }
 0x2c5   : > { %4684 = vst [vmem:[#allocation1] ss:$4 sm:$0xff] %v4588_v53  ;;  %v4372_v52 = vadd.f32 %v4360_v24, %v4201_v57 }
 0x2c6   : > { %4686 = vst [vmem:[#allocation1 + $0x1] ss:$4 sm:$0xff] %v4591_v60  ;;  %v4512_v11 = vadd.f32 %v8518_v42, %v4498_v46  ;;  %v4613_v14 = vsel %vm4560_vm9, %v4531_v30, %v4551_v38  ;;  %v4619_v34 = vsel %vm4568_vm8, %v4531_v30, %v4551_v38  ;;  %v4612_v39 = vsel %vm4556_vm6, %v4531_v30, %v4551_v38 }
 0x2c7   : > { %4687 = vst [vmem:[#allocation1 + $0x2] ss:$4 sm:$0xff] %v4594_v41  ;;  %v4615_v31 = vrot.slane %v4613_v14, 1  ;;  %v4621_v3 = vrot.slane %v4619_v34, 3  ;;  %v4616_v26 = vsel %vm4564_vm7, %v4531_v30, %v4551_v38 }
 0x2c8   : > { %4689 = vst [vmem:[#allocation1 + $0x3] ss:$4 sm:$0xff] %v4597_v29  ;;  %v4522_v13 = vmax.f32 %v4512_v11, 0.0  ;;  %v4618_v20 = vrot.slane %v4616_v26, 2 }
 0x2c9   : > { %4676 = vst [vmem:[#allocation1 + $0x21] ss:$4 sm:$0xff] %v4579_v15 }
 0x2ca   : > { %4679 = vst [vmem:[#allocation1 + $0x22] ss:$4 sm:$0xff] %v4582_v58  ;;  %v4532_v12 = vpack.c.bf16 %v4522_v13, %v4522_v13 }
 0x2cb   : > { %v4484_v1 = vpop.f32.mrf.mxu2  ;;  %4739 = vst [vmem:[%s8559_s14] sm:$0xf] %v4670_v2 }
 0x2cc   : > { %v4499_v4 = vadd.f32 %v4484_v1, %v4370_v25  ;;  %v4552_v35 = vrot.slane %v4532_v12, 3 }
 0x2ce   : > { %v4513_v32 = vadd.f32 %v8518_v42, %v4499_v4  ;;  %v4624_v33 = vsel %vm4560_vm9, %v4532_v12, %v4552_v35  ;;  %v4627_v53 = vsel %vm4564_vm7, %v4532_v12, %v4552_v35  ;;  %v4630_v9 = vsel %vm4568_vm8, %v4532_v12, %v4552_v35 }
 0x2cf   : > { %v4690_v19 = vld [vmem:[#allocation1] sm:$0xff]  ;;  %v4626_v54 = vrot.slane %v4624_v33, 1  ;;  %v4629_v5 = vrot.slane %v4627_v53, 2  ;;  %v4632_v15 = vrot.slane %v4630_v9, 3 }
 0x2d0   : > { %v4523_v47 = vmax.f32 %v4513_v32, 0.0  ;;  %4699 = vst [vmem:[#allocation1] ss:$4 sm:$0xff] %v4612_v39 }
 0x2d1   : > { %4701 = vst [vmem:[#allocation1 + $0x1] ss:$4 sm:$0xff] %v4615_v31  ;;  %v4682_v59 = vld [vmem:[#allocation1 + $0x20] sm:$0xff] }
 0x2d2   : > { %4705 = vst [vmem:[#allocation1 + $0x3] ss:$4 sm:$0xff] %v4621_v3  ;;  %v4533_v8 = vpack.c.bf16 %v4523_v47, %v4523_v47 }
 0x2d3   : > { %v4487_v49 = vpop.f32.mrf.mxu2  ;;  %4692 = vst [vmem:[#allocation1 + $0x20] ss:$4 sm:$0xff] %v4600_v28 }
 0x2d4   : > { %v4500_v18 = vadd.f32 %v4487_v49, %v4371_v56  ;;  %4693 = vst [vmem:[#allocation1 + $0x21] ss:$4 sm:$0xff] %v4603_v16  ;;  %v4553_v45 = vrot.slane %v4533_v8, 3 }
 0x2d5   : > { %4695 = vst [vmem:[#allocation1 + $0x22] ss:$4 sm:$0xff] %v4606_v10 }
 0x2d6   : > { %v4514_v43 = vadd.f32 %v8518_v42, %v4500_v18  ;;  %4697 = vst [vmem:[#allocation1 + $0x23] ss:$4 sm:$0xff] %v4609_v21  ;;  %v4635_v48 = vsel %vm4556_vm6, %v4533_v8, %v4553_v45  ;;  %v4636_v27 = vsel %vm4564_vm7, %v4533_v8, %v4553_v45  ;;  %v4639_v40 = vsel %vm4568_vm8, %v4533_v8, %v4553_v45 }
 0x2d7   : > { %4703 = vst [vmem:[#allocation1 + $0x2] ss:$4 sm:$0xff] %v4618_v20  ;;  %v4638_v41 = vrot.slane %v4636_v27, 2  ;;  %v4641_v46 = vrot.slane %v4639_v40, 3 }
 0x2d8   : > { %v4524_v51 = vmax.f32 %v4514_v43, 0.0  ;;  %4740 = vst [vmem:[%s8559_s14 + $0x4] sm:$0xf] %v4682_v59 }
 0x2d9   : > { %4741 = vst [vmem:[%s8559_s14 + $0x8] sm:$0xf] %v4690_v19 }
 0x2da   : > { %v4534_v23 = vpack.c.bf16 %v4524_v51, %v4524_v51 }
 0x2db   : > { %v4489_v60 = vpop.f32.mrf.mxu2 }
 0x2dc   : > { %v4554_v2 = vrot.slane %v4534_v23, 3  ;;  %v4501_v0 = vadd.f32 %v4489_v60, %v4372_v52 }
 0x2dd   : > { %v4698_v30 = vld [vmem:[#allocation1 + $0x20] sm:$0xff] }
 0x2de   : > { %v4515_v55 = vadd.f32 %v8518_v42, %v4501_v0  ;;  %4713 = vst [vmem:[#allocation1 + $0x23] ss:$4 sm:$0xff] %v4635_v48  ;;  %v4645_v29 = vsel %vm4560_vm9, %v4534_v23, %v4554_v2  ;;  %v4644_v22 = vsel %vm4556_vm6, %v4534_v23, %v4554_v2  ;;  %v4706_v38 = vld [vmem:[#allocation1] sm:$0xff]  ;;  %v4648_v42 = vsel %vm4568_vm8, %v4534_v23, %v4554_v2 }
 0x2df   : > { %4708 = vst [vmem:[#allocation1 + $0x20] ss:$4 sm:$0xff] %v4626_v54  ;;  %v4647_v7 = vrot.slane %v4645_v29, 1  ;;  %v4650_v1 = vrot.slane %v4648_v42, 3 }
 0x2e0   : > { %v4525_v58 = vmax.f32 %v4515_v55, 0.0  ;;  %4710 = vst [vmem:[#allocation1 + $0x21] ss:$4 sm:$0xff] %v4629_v5 }
 0x2e1   : > { %4712 = vst [vmem:[#allocation1 + $0x22] ss:$4 sm:$0xff] %v4632_v15 }
 0x2e2   : > { %v4535_v25 = vpack.c.bf16 %v4525_v58, %v4525_v58  ;;  %4716 = vst [vmem:[#allocation1] ss:$4 sm:$0xff] %v4638_v41 }
 0x2e3   : > { %4718 = vst [vmem:[#allocation1 + $0x1] ss:$4 sm:$0xff] %v4641_v46 }
 0x2e4   : > { %v4555_v11 = vrot.slane %v4535_v25, 3  ;;  %4719 = vst [vmem:[#allocation1 + $0x2] ss:$4 sm:$0xff] %v4644_v22 }
 0x2e5   : > { %4721 = vst [vmem:[#allocation1 + $0x3] ss:$4 sm:$0xff] %v4647_v7 }
 0x2e6   : > { %v4654_v36 = vsel %vm4560_vm9, %v4535_v25, %v4555_v11  ;;  %v4657_v4 = vsel %vm4564_vm7, %v4535_v25, %v4555_v11  ;;  %4742 = vst [vmem:[%s8559_s14 + $0xc] sm:$0xf] %v4698_v30  ;;  %v4653_v61 = vsel %vm4556_vm6, %v4535_v25, %v4555_v11 }
 0x2e7   : > { %4743 = vst [vmem:[%s8559_s14 + $0x10] sm:$0xf] %v4706_v38  ;;  %v4656_v14 = vrot.slane %v4654_v36, 1  ;;  %v4659_v62 = vrot.slane %v4657_v4, 2 }
 0x2e8   : > { %v4714_v34 = vld [vmem:[#allocation1 + $0x20] sm:$0xff] }
 0x2e9   : > { %4724 = vst [vmem:[#allocation1 + $0x20] ss:$4 sm:$0xff] %v4650_v1 }
 0x2ea   : > { %4725 = vst [vmem:[#allocation1 + $0x21] ss:$4 sm:$0xff] %v4653_v61 }
 0x2eb   : > { %4727 = vst [vmem:[#allocation1 + $0x22] ss:$4 sm:$0xff] %v4656_v14 }
 0x2ec   : > { %v4722_v32 = vld [vmem:[#allocation1] sm:$0xff]  ;;  %4729 = vst [vmem:[#allocation1 + $0x23] ss:$4 sm:$0xff] %v4659_v62 }
 0x2ed   : > { %4745 = vst [vmem:[%s8559_s14 + $0x18] sm:$0xf] %v4722_v32 }
 0x2ee   : > { %4744 = vst [vmem:[%s8559_s14 + $0x14] sm:$0xf] %v4714_v34 }
 0x2f3   : > { %v4730_v6 = vld [vmem:[#allocation1 + $0x20] sm:$0xff] }
 0x2f4   : > { %4746 = vst [vmem:[%s8559_s14 + $0x1c] sm:$0xf] %v4730_v6 }
 0x2f5 PF: > { %s15_s22 = sadd.s32 1, %s6743_s22   ;;  %s8619_s18 = smov %s6735_s20 }
 0x2f6   : > { %p12_p10 = scmp.ge.s32.totalorder %s15_s22, 18   ;;  %s8620_s19 = smov %s6739_s21 }
 0x2f7   : > { %s8621_s20 = smov %s8624_s23  ;;  %s8622_s21 = smov %s8628_s24 }
 0x2f8   :  { %14 = sbr.rel (!%p12_p10) target bundleno = 3 (0x3), region = 109 }

// kernel: unet_encoder_forward.9
= control target key start
LH: loop header
LB: loop body
LE: loop exit
PB: predicated region body
PF: predicated region fallthrough
CT: control target
= control target key end

     0   :  { %s4974_s18 = smov 0   ;;  %s4976_s19 = smov 0   ;;  %s6038_s0 = inlined_call_operand.vmem [shape: bf16[2,6,42,128], index: 0, kind: input, shape index: {}, may-alias: {0,1,2}]   ;;  %s6039_s1 = inlined_call_operand.vmem [shape: bf16[2,6,42,128], index: 1, kind: input, shape index: {}, may-alias: {0,1,2}]   ;;  %s6040_s2 = inlined_call_operand.vmem [shape: bf16[2,6,42,128], index: 2, kind: input, shape index: {}, may-alias: {0,1,2}]   ;;  %s6041_s3 = inlined_call_operand.vmem [shape: bf16[27,128,128], index: 3, kind: input, shape index: {}]   ;;  %s6042_s4 = inlined_call_operand.vmem [shape: f32[1,128], index: 4, kind: input, shape index: {}]   ;;  %s6043_s5 = inlined_call_operand.vmem [shape: bf16[2,4,4,4,128], index: 5, kind: output, shape index: {}]  }
   0x1   :  { %s4978_s20 = smov 0   ;;  %s4980_s21 = smov 0  }
   0x2   :  { %s4982_s22 = smov 0  }
   0x3 LB: > { %s24_s23 = sadd.s32 1, %s4934_s20  ;;  %s27_s24 = sadd.s32 1, %s4938_s21  ;;  %s4942_s22 = sphi %s4982_s22, %s15_s22   ;;  %s4938_s21 = sphi %s4980_s21, %s6049_s21   ;;  %s4934_s20 = sphi %s4978_s20, %s6048_s20   ;;  %s4930_s19 = sphi %s4976_s19, %s6047_s19   ;;  %s4926_s18 = sphi %s4974_s18, %s6046_s18  }
   0x4   : > { %p25_p0 = scmp.ge.s32.totalorder %s24_s23, 4  ;;  %p3309_p1 = scmp.ge.s32.totalorder %s4942_s22, 1 }
   0x5   : > { %p247_p2 = scmp.lt.s32.totalorder %s4942_s22, 9 }
   0x6   : > { %s6051_s23 = smov (%p25_p0, %s24_s23), 0  ;;  %s6053_s24 = smov (!%p25_p0, %s27_s24), %s4938_s21 }
   0x7   : > { %p248_p3 = pnand %p3309_p1, %p247_p2  ;;  %p29_p4 = scmp.ge.s32.totalorder %s6053_s24, 2 }
   0x8   : > { %p303_p5 = scmp.lt.s32.totalorder (!%p248_p3), %s4930_s19, 1  ;;  %p305_p6 = scmp.lt.s32.totalorder (!%p248_p3), %s4926_s18, 5 }
   0x9   : > { %s6055_s24 = smov (%p29_p4, %s6053_s24), 0  ;;  %251 = sbr.rel (%p248_p3) target bundleno = 411 (0x19b), region = 40 }
   0xa   : > { %s312_s27 = sadd.s32 (!%p248_p3), 1, %s4926_s18  ;;  %s323_s8 = sadd.s32 (!%p248_p3), 2, %s4926_s18 }
   0xb   : > { %p5270_p7 = scmp.lt.s32.totalorder (!%p248_p3), %s312_s27, 5  ;;  %p5582_p8 = scmp.lt.s32.totalorder (!%p248_p3), %s323_s8, 5 }
   0xc   : > { %p336_p9 = scmp.lt.s32.totalorder (!%p248_p3), %s4926_s18, 3 }
   0xe   : > { %v4621_v0 = vld [vmem:[%s6041_s3 + $0x78] sm:$0xff]  ;;  %v4620_v4 = vld [vmem:[%s6041_s3 + $0x70] sm:$0xff]  ;;  %s6057_s19 = smov (!%p303_p5, %s4930_s19), 1  ;;  %v4619_v8 = vld [vmem:[%s6041_s3 + $0x68] sm:$0xff]  ;;  %vm390_vm0 = vsmask.f32 7424 }
   0xf   : > { %v4613_v1 = vld [vmem:[%s6041_s3 + $0x38] sm:$0xff]  ;;  %456 = vmatpush.bf16.msra.mxu0 %v4621_v0  ;;  %v4612_v5 = vld [vmem:[%s6041_s3 + $0x30] sm:$0xff]  ;;  %s306_s16 = scalar_select %p305_p6, %s4926_s18, 5  ;;  %v4611_v9 = vld [vmem:[%s6041_s3 + $0x28] sm:$0xff]  ;;  %vm564_vm1 = vcmask 1046528   ;;  %vm664_vm2 = vcmask 1044480  }
  0x10   : > { %v4629_v2 = vld [vmem:[%s6041_s3 + $0xb8] sm:$0xff]  ;;  %525 = vmatpush.bf16.msra.mxu1 %v4613_v1  ;;  %v4628_v6 = vld [vmem:[%s6041_s3 + $0xb0] sm:$0xff]  ;;  %s5035_s17 = smul.u32 36, %s6057_s19  ;;  %v4627_v10 = vld [vmem:[%s6041_s3 + $0xa8] sm:$0xff]  ;;  %s6059_s27 = smov (!%p5270_p7, %s312_s27), 5  ;;  %vm970_vm4 = vcmask 1045504  }
  0x11   : > { %v4637_v3 = vld [vmem:[%s6041_s3 + $0xf8] sm:$0xff]  ;;  %618 = vmatpush.bf16.msra.mxu2 %v4629_v2  ;;  %v4636_v7 = vld [vmem:[%s6041_s3 + $0xf0] sm:$0xff]  ;;  %s4859_s25 = smul.u32 6, %s306_s16  ;;  %v4635_v11 = vld [vmem:[%s6041_s3 + $0xe8] sm:$0xff]  ;;  %vm760_vm3 = vsmask.f32 4352 }
  0x12   : > { %718 = vmatpush.bf16.msra.mxu3 %v4637_v3  ;;  %v4618_v12 = vld [vmem:[%s6041_s3 + $0x60] sm:$0xff]  ;;  %v4617_v18 = vld [vmem:[%s6041_s3 + $0x58] sm:$0xff]  ;;  %v4616_v28 = vld [vmem:[%s6041_s3 + $0x50] sm:$0xff]  ;;  %vm1066_vm5 = vsmask.f32 5376  ;;  %s4861_s28 = smul.u32 6, %s6059_s27 }
  0x13   : > { %457 = vmatpush.bf16.msra.mxu0 %v4620_v4  ;;  %s309_s9 = sadd.s32 %s5035_s17, %s4859_s25  ;;  %v4610_v13 = vld [vmem:[%s6041_s3 + $0x20] sm:$0xff]  ;;  %v4609_v19 = vld [vmem:[%s6041_s3 + $0x18] sm:$0xff]  ;;  %v4608_v29 = vld [vmem:[%s6041_s3 + $0x10] sm:$0xff]  ;;  %s6061_s8 = smov (!%p5582_p8, %s323_s8), 5  ;;  %vm3105_vm6 = vcmask 1040384   ;;  %vm3113_vm7 = vcmask 1043459  }
  0x14   : > { %526 = vmatpush.bf16.msra.mxu1 %v4612_v5  ;;  %s3310_s10 = sshll.u32 %s309_s9, 2  ;;  %v4626_v14 = vld [vmem:[%s6041_s3 + $0xa0] sm:$0xff]  ;;  %v4625_v22 = vld [vmem:[%s6041_s3 + $0x98] sm:$0xff]  ;;  %v4624_v32 = vld [vmem:[%s6041_s3 + $0x90] sm:$0xff]  ;;  %s319_s12 = sadd.s32 %s4861_s28, %s5035_s17  ;;  %vm3109_vm8 = vcmask 1041409   ;;  %vm3120_vm9 = vcmask 1042434  }
  0x15   : > { %619 = vmatpush.bf16.msra.mxu2 %v4628_v6  ;;  %s5053_s13 = scalar_lea.vmem %s6038_s0, %s3310_s10  ;;  %v4634_v15 = vld [vmem:[%s6041_s3 + $0xe0] sm:$0xff]  ;;  %v4633_v23 = vld [vmem:[%s6041_s3 + $0xd8] sm:$0xff]  ;;  %v4632_v33 = vld [vmem:[%s6041_s3 + $0xd0] sm:$0xff]  ;;  %s3311_s28 = sshll.u32 %s319_s12, 2 }
  0x16   : > { %719 = vmatpush.bf16.msra.mxu3 %v4636_v7  ;;  %v5068_v16 = vld [vmem:[%s5053_s13 + $0x8] sm:$0xff]   ;;  %v5087_v24 = vld [vmem:[%s5053_s13] sm:$0xff]   ;;  %v4661_v58 = vld [vmem:[%s6041_s3 + $0x1b8] sm:$0xff]  ;;  %s5368_s15 = scalar_lea.vmem %s6039_s1, %s3311_s28  ;;  %s4862_s30 = smul.u32 6, %s6061_s8 }
  0x17   : > { %458 = vmatpush.bf16.msra.mxu0 %v4619_v8  ;;  %v362_v17 = vld [vmem:[%s5053_s13 + $0xc] sm:$0x1]  ;;  %v5078_v20 = vunpack.c.l.b16 %v5068_v16  ;;  %v543_v25 = vld [vmem:[%s5053_s13] sm:$0xe]  ;;  %v394_v31 = vshll.u32 %v5087_v24, 16  ;;  %v5109_v34 = vunpack.c.h.b16 %v5087_v24  ;;  %v392_v40 = vshrl.u32 %v5087_v24, 16 }
  0x18   : > { %527 = vmatpush.bf16.msra.mxu1 %v4611_v9  ;;  %v387_v21 = vunpack.c.l.b16 %v362_v17  ;;  %v639_v26 = vld [vmem:[%s5053_s13] sm:$0x8]  ;;  %v640_v27 = vld [vmem:[%s5053_s13 + $0xc] sm:$0x7]  ;;  %v562_v35 = vunpack.c.l.b16 %v543_v25  ;;  %v4645_v59 = vld [vmem:[%s6041_s3 + $0x138] sm:$0xff]  ;;  %s330_s14 = sadd.s32 %s4862_s30, %s5035_s17  ;;  %s6063_s18 = smov (!%p336_p9, %s4926_s18), 3 }
  0x19   : > { %620 = vmatpush.bf16.msra.mxu2 %v4627_v10  ;;  %v660_v36 = vunpack.c.l.b16 %v639_v26  ;;  %v661_v37 = vunpack.c.l.b16 %v640_v27  ;;  %v4615_v38 = vld [vmem:[%s6041_s3 + $0x48] sm:$0xff]  ;;  %v396_v41 = vrot.slane %v394_v31, 1  ;;  %v4614_v48 = vld [vmem:[%s6041_s3 + $0x40] sm:$0xff]  ;;  %v4653_v63 = vld [vmem:[%s6041_s3 + $0x178] sm:$0xff]  ;;  %v474_v27 = vpack.c.b16 %v5078_v20, %v5078_v20  ;;  %s3312_s28 = sshll.u32 %s330_s14, 2  ;;  %s3314_s26 = sshll.u32 %s6057_s19, 4 }
  0x1a   : > { %720 = vmatpush.bf16.msra.mxu3 %v4635_v11  ;;  %v5099_v30 = vpack.c.b16 %v387_v21, %v5078_v20  ;;  %v4607_v39 = vld [vmem:[%s6041_s3 + $0x8] sm:$0xff]  ;;  %v563_v45 = vpack.c.b16 %v5109_v34, %v562_v35  ;;  %v4606_v49 = vld [vmem:[%s6041_s3] sm:$0xff]  ;;  %v4669_v0 = vld [vmem:[%s6041_s3 + $0x1f8] sm:$0xff]  ;;  %s5676_s12 = scalar_lea.vmem %s6040_s2, %s3312_s28 }
  0x1b   : > { %459 = vmatpush.bf16.msra.mxu0 %v4618_v12  ;;  %v4623_v43 = vld [vmem:[%s6041_s3 + $0x88] sm:$0xff]  ;;  %v5127_v46 = vpack.c.b16 %v5109_v34, %v660_v36  ;;  %v5130_v47 = vpack.c.b16 %v661_v37, %v5078_v20  ;;  %v397_v50 = vor.u32 %v396_v41, %v392_v40  ;;  %v4622_v52 = vld [vmem:[%s6041_s3 + $0x80] sm:$0xff]  ;;  %v4660_v1 = vld [vmem:[%s6041_s3 + $0x1b0] sm:$0xff]  ;;  %v773_v40 = vshll.u32 %v5068_v16, 16 }
  0x1c   : > { %528 = vmatpush.bf16.msra.mxu1 %v4610_v13  ;;  %v399_v42 = vshll.u32 %v5099_v30, 16  ;;  %v4631_v44 = vld [vmem:[%s6041_s3 + $0xc8] sm:$0xff]  ;;  %v4630_v53 = vld [vmem:[%s6041_s3 + $0xc0] sm:$0xff]  ;;  %v565_v54 = vrot.slane %v563_v45, 1  ;;  %v566_v55 = vrot.slane %v5099_v30, 1  ;;  %v4644_v2 = vld [vmem:[%s6041_s3 + $0x130] sm:$0xff] }
  0x1d   : > { %621 = vmatpush.bf16.msra.mxu2 %v4626_v14  ;;  %v665_v56 = vrot.slane %v5127_v46, 3  ;;  %v666_v57 = vrot.slane %v5130_v47, 3  ;;  %v4652_v3 = vld [vmem:[%s6041_s3 + $0x170] sm:$0xff]  ;;  %v4659_v5 = vld [vmem:[%s6041_s3 + $0x1a8] sm:$0xff]  ;;  %v4658_v9 = vld [vmem:[%s6041_s3 + $0x1a0] sm:$0xff]  ;;  %v403_v11 = vshrl.u32 %v5099_v30, 16 }
  0x1e   : > { %721 = vmatpush.bf16.msra.mxu3 %v4634_v15  ;;  %v5138_v51 = vrot.slane %v399_v42, 1  ;;  %v567_v61 = vsel %vm564_vm1, %v565_v54, %v566_v55  ;;  %v4668_v4 = vld [vmem:[%s6041_s3 + $0x1f0] sm:$0xff]  ;;  %v4643_v6 = vld [vmem:[%s6041_s3 + $0x128] sm:$0xff]  ;;  %v4642_v10 = vld [vmem:[%s6041_s3 + $0x120] sm:$0xff]  ;;  %v758_v15 = vunpack.c.h.b16 %v5068_v16  ;;  %v762_v37 = vshrl.u32 %v5127_v46, 16 }
  0x1f   : > { %460 = vmatpush.bf16.msra.mxu0 %v4617_v18  ;;  %v667_v62 = vsel %vm664_vm2, %v665_v56, %v666_v57  ;;  %v4651_v7 = vld [vmem:[%s6041_s3 + $0x168] sm:$0xff]  ;;  %v939_v12 = vld [vmem:[%s5053_s13 + $0x4] sm:$0xc]  ;;  %v1045_v14 = vld [vmem:[%s5053_s13 + $0x10] sm:$0x7] }
  0x20   : > { %529 = vmatpush.bf16.msra.mxu1 %v4609_v19  ;;  %v402_v60 = vsel %vm390_vm0, %v397_v50, %v5138_v51  ;;  %v4667_v8 = vld [vmem:[%s6041_s3 + $0x1e8] sm:$0xff]  ;;  %v4650_v17 = vld [vmem:[%s6041_s3 + $0x160] sm:$0xff]  ;;  %v4657_v19 = vld [vmem:[%s6041_s3 + $0x198] sm:$0xff]  ;;  %v1064_v25 = vunpack.c.l.b16 %v1045_v14  ;;  %v405_v26 = vor.u32 %v403_v11, %v5138_v51 }
  0x21   : > { %622 = vmatpush.bf16.msra.mxu2 %v4625_v22  ;;  %v5203_v13 = vld [vmem:[%s5053_s13 + $0x8] sm:$0xff]   ;;  %v4666_v18 = vld [vmem:[%s6041_s3 + $0x1e0] sm:$0xff]  ;;  %v4641_v21 = vld [vmem:[%s6041_s3 + $0x118] sm:$0xff] }
  0x22   : > { %722 = vmatpush.bf16.msra.mxu3 %v4633_v23  ;;  %v4830_v22 = vunpack.c.l.b16 %v5203_v13  ;;  %v4831_v23 = vunpack.c.h.b16 %v5203_v13  ;;  %v4656_v31 = vld [vmem:[%s6041_s3 + $0x190] sm:$0xff]  ;;  %v4663_v54 = vld [vmem:[%s6041_s3 + $0x1c8] sm:$0xff]  ;;  %v4654_v56 = vld [vmem:[%s6041_s3 + $0x180] sm:$0xff] }
  0x23   : > { %461 = vmatpush.bf16.msra.mxu0 %v4616_v28  ;;  %v4649_v28 = vld [vmem:[%s6041_s3 + $0x158] sm:$0xff]  ;;  %v4648_v30 = vld [vmem:[%s6041_s3 + $0x150] sm:$0xff]  ;;  %v4679_v13 = vld [vmem:[%s6041_s3 + $0x240] sm:$0xff] }
  0x24   : > { %530 = vmatpush.bf16.msra.mxu1 %v4608_v29  ;;  %v4665_v29 = vld [vmem:[%s6041_s3 + $0x1d8] sm:$0xff]  ;;  %v5241_v36 = vpack.c.b16 %v1064_v25, %v4831_v23  ;;  %v4664_v41 = vld [vmem:[%s6041_s3 + $0x1d0] sm:$0xff]  ;;  %v4691_v25 = vld [vmem:[%s6041_s3 + $0x2a0] sm:$0xff] }
  0x25   : > { %623 = vmatpush.bf16.msra.mxu2 %v4624_v32  ;;  %v4640_v32 = vld [vmem:[%s6041_s3 + $0x110] sm:$0xff] }
  0x26   : > { %723 = vmatpush.bf16.msra.mxu3 %v4632_v33  ;;  %v942_v33 = vld [vmem:[%s5053_s13 + $0x10] sm:$0x3]  ;;  %v1076_v47 = vshrl.u32 %v5241_v36, 16 }
  0x27   : > { %462 = vmatpush.bf16.msra.mxu0 %v4615_v38  ;;  %v765_v38 = vshll.u32 %v5127_v46, 16  ;;  %v967_v42 = vunpack.c.l.b16 %v942_v33  ;;  %v4698_v33 = vld [vmem:[%s6041_s3 + $0x2d8] sm:$0xff] }
  0x28   : > { %531 = vmatpush.bf16.msra.mxu1 %v4607_v39  ;;  %v770_v39 = vshrl.u32 %v5068_v16, 16  ;;  %v4697_v16 = vld [vmem:[%s6041_s3 + $0x2d0] sm:$0xff] }
  0x29   : > { %624 = vmatpush.bf16.msra.mxu2 %v4623_v43  ;;  %v4655_v43 = vld [vmem:[%s6041_s3 + $0x188] sm:$0xff]  ;;  %v767_v50 = vrot.slane %v765_v38, 4  ;;  %v4689_v38 = vld [vmem:[%s6041_s3 + $0x290] sm:$0xff] }
  0x2a   : > { %724 = vmatpush.bf16.msra.mxu3 %v4631_v44  ;;  %v4639_v44 = vld [vmem:[%s6041_s3 + $0x108] sm:$0xff]  ;;  %v772_v51 = vrot.slane %v770_v39, 3  ;;  %v867_v39 = vpack.c.b16 %v758_v15, %v758_v15  ;;  %v4833_v15 = vld [vmem:[%s5368_s15] sm:$0xff]  }
  0x2b   : > { %463 = vmatpush.bf16.msra.mxu0 %v4614_v48  ;;  %v1079_v48 = vshll.u32 %v5241_v36, 16 }
  0x2c   : > { %532 = vmatpush.bf16.msra.mxu1 %v4606_v49  ;;  %v764_v49 = vrot.slane %v762_v37, 3  ;;  %v1352_v37 = vld [vmem:[%s5368_s15 + $0xc] sm:$0x1] }
  0x2d   : > { %625 = vmatpush.bf16.msra.mxu2 %v4622_v52  ;;  %v775_v52 = vrot.slane %v773_v40, 4  ;;  %v4672_v40 = vld [vmem:[%s6041_s3 + $0x210] sm:$0xff] }
  0x2e   : > { %725 = vmatpush.bf16.msra.mxu3 %v4630_v53  ;;  %464 = vmatmul.bf16.vlgmr.msra.gmra.mxu0 %v402_v60  ;;  %v4647_v53 = vld [vmem:[%s6041_s3 + $0x148] sm:$0xff]  ;;  %v1078_v60 = vrot.slane %v1076_v47, 2 }
  0x2f   : > { %828 = vmatpush.bf16.msrb.mxu0 %v4645_v59  ;;  %533 = vmatmul.bf16.vlgmr.msra.gmra.mxu1 %v5087_v24  ;;  %v964_v24 = vunpack.c.l.b16 %v939_v12  ;;  %v866_v12 = vpack.c.b16 %v5078_v20, %v5109_v34  ;;  %v4685_v20 = vld [vmem:[%s6041_s3 + $0x270] sm:$0xff]  ;;  %v4671_v47 = vld [vmem:[%s6041_s3 + $0x208] sm:$0xff] }
  0x30   : > { %626 = vmatmul.bf16.vlgmr.msra.gmra.mxu2 %v567_v61  ;;  %918 = vmatpush.bf16.msrb.mxu1 %v4653_v63  ;;  %v1081_v61 = vrot.slane %v1079_v48, 3  ;;  %v4677_v63 = vld [vmem:[%s6041_s3 + $0x238] sm:$0xff]  ;;  %v4701_v34 = vld [vmem:[%s6041_s3 + $0x2f0] sm:$0xff] }
  0x31   : > { %1024 = vmatpush.bf16.msrb.mxu2 %v4661_v58  ;;  %726 = vmatmul.bf16.vlgmr.msra.gmra.mxu3 %v667_v62  ;;  %v5239_v35 = vpack.c.b16 %v4830_v22, %v964_v24  ;;  %v4694_v62 = vld [vmem:[%s6041_s3 + $0x2b8] sm:$0xff]  ;;  %v4700_v24 = vld [vmem:[%s6041_s3 + $0x2e8] sm:$0xff] }
  0x32   : > { %1134 = vmatpush.bf16.msrb.mxu3 %v4669_v0  ;;  %v768_v0 = vor.u32 %v767_v50, %v764_v49  ;;  %v1383_v49 = vshll.u32 %v4833_v15, 16  ;;  %v4680_v50 = vld [vmem:[%s6041_s3 + $0x248] sm:$0xff] }
  0x33   : > { %829 = vmatpush.bf16.msrb.mxu0 %v4644_v2  ;;  %v1068_v45 = vshrl.u32 %v5239_v35, 16  ;;  %v1071_v46 = vshll.u32 %v5239_v35, 16  ;;  %v4646_v2 = vld [vmem:[%s6041_s3 + $0x140] sm:$0xff] }
  0x34   : > { %919 = vmatpush.bf16.msrb.mxu1 %v4652_v3  ;;  %v4662_v3 = vld [vmem:[%s6041_s3 + $0x1c0] sm:$0xff] }
  0x35   : > { %1025 = vmatpush.bf16.msrb.mxu2 %v4660_v1  ;;  %v1070_v58 = vrot.slane %v1068_v45, 2  ;;  %v1073_v59 = vrot.slane %v1071_v46, 3  ;;  %v5300_v1 = vor.u32 %v775_v52, %v772_v51  ;;  %v1466_v45 = vld [vmem:[%s5368_s15] sm:$0xe]  ;;  %v4696_v51 = vld [vmem:[%s6041_s3 + $0x2c8] sm:$0xff]  ;;  %v5426_v52 = vunpack.c.h.b16 %v4833_v15 }
  0x36   : > { %1135 = vmatpush.bf16.msrb.mxu3 %v4668_v4  ;;  %v971_v4 = vrot.slane %v5239_v35, 2  ;;  %v5383_v35 = vld [vmem:[%s5368_s15 + $0x8] sm:$0xff]  }
  0x37   : > { %830 = vmatpush.bf16.msrb.mxu0 %v4643_v6  ;;  %v1074_v6 = vor.u32 %v1073_v59, %v1070_v58  ;;  %v777_v11 = vsel %vm760_vm3, %v768_v0, %v5300_v1  ;;  %v1381_v58 = vshrl.u32 %v4833_v15, 16  ;;  %v1385_v59 = vrot.slane %v1383_v49, 1  ;;  %v1562_v15 = vld [vmem:[%s5368_s15 + $0xc] sm:$0x7]  ;;  %v1859_v49 = vld [vmem:[%s5368_s15 + $0x4] sm:$0xc] }
  0x38   : > { %920 = vmatpush.bf16.msrb.mxu1 %v4651_v7  ;;  %v5310_v7 = vor.u32 %v1081_v61, %v1078_v60 }
  0x39   : > { %1026 = vmatpush.bf16.msrb.mxu2 %v4659_v5 }
  0x3a   : > { %1136 = vmatpush.bf16.msrb.mxu3 %v4667_v8  ;;  %v4686_v8 = vld [vmem:[%s6041_s3 + $0x278] sm:$0xff] }
  0x3b   : > { %831 = vmatpush.bf16.msrb.mxu0 %v4642_v10  ;;  %v4693_v10 = vld [vmem:[%s6041_s3 + $0x2b0] sm:$0xff] }
  0x3c   : > { %921 = vmatpush.bf16.msrb.mxu1 %v4650_v17  ;;  %v4676_v17 = vld [vmem:[%s6041_s3 + $0x230] sm:$0xff] }
  0x3d   : > { %1027 = vmatpush.bf16.msrb.mxu2 %v4658_v9  ;;  %v4702_v9 = vld [vmem:[%s6041_s3 + $0x2f8] sm:$0xff] }
  0x3e   : > { %1137 = vmatpush.bf16.msrb.mxu3 %v4666_v18  ;;  %469 = vmatmul.bf16.gmra.mxu0 %v405_v26  ;;  %v1083_v18 = vsel %vm1066_vm5, %v1074_v6, %v5310_v7  ;;  %v4674_v26 = vld [vmem:[%s6041_s3 + $0x220] sm:$0xff] }
  0x3f   : > { %832 = vmatpush.bf16.msrb.mxu0 %v4641_v21  ;;  %538 = vmatmul.bf16.gmra.mxu1 %v474_v27  ;;  %v4675_v21 = vld [vmem:[%s6041_s3 + $0x228] sm:$0xff]  ;;  %v4683_v27 = vld [vmem:[%s6041_s3 + $0x260] sm:$0xff] }
  0x40   : > { %631 = vmatmul.bf16.gmra.mxu2 %v566_v55  ;;  %922 = vmatpush.bf16.msrb.mxu1 %v4649_v28  ;;  %v5280_v55 = vpack.c.b16 %v967_v42, %v4831_v23  ;;  %v4684_v23 = vld [vmem:[%s6041_s3 + $0x268] sm:$0xff]  ;;  %v4699_v28 = vld [vmem:[%s6041_s3 + $0x2e0] sm:$0xff]  ;;  %v1377_v42 = vunpack.c.l.b16 %v1352_v37 }
  0x41   : > { %1028 = vmatpush.bf16.msrb.mxu2 %v4657_v19  ;;  %731 = vmatmul.bf16.gmra.mxu3 %v666_v57  ;;  %v4638_v57 = vld [vmem:[%s6041_s3 + $0x100] sm:$0xff]  ;;  %v4692_v19 = vld [vmem:[%s6041_s3 + $0x2a8] sm:$0xff] }
  0x42   : > { %1138 = vmatpush.bf16.msrb.mxu3 %v4665_v29  ;;  %v972_v5 = vrot.slane %v5280_v55, 2  ;;  %v4690_v29 = vld [vmem:[%s6041_s3 + $0x298] sm:$0xff] }
  0x43   : > { %833 = vmatpush.bf16.msrb.mxu0 %v4640_v32  ;;  %v4682_v32 = vld [vmem:[%s6041_s3 + $0x258] sm:$0xff] }
  0x44   : > { %923 = vmatpush.bf16.msrb.mxu1 %v4648_v30  ;;  %v973_v14 = vsel %vm970_vm4, %v971_v4, %v972_v5  ;;  %v1155_v30 = vld [vmem:[%s5053_s13 + $0x4] sm:$0x8]  ;;  %v1386_v4 = vor.u32 %v1385_v59, %v1381_v58  ;;  %s3313_s13 = sshll.u32 %s6063_s18, 2 }
  0x45   : > { %1029 = vmatpush.bf16.msrb.mxu2 %v4656_v31  ;;  %v4673_v31 = vld [vmem:[%s6041_s3 + $0x218] sm:$0xff]  ;;  %v1174_v46 = vunpack.c.l.b16 %v1155_v30  ;;  %v4713_v30 = vld [vmem:[%s6041_s3 + $0x350] sm:$0xff]  ;;  %v4719_v58 = vld [vmem:[%s6041_s3 + $0x380] sm:$0xff]  ;;  %s340_s25 = sadd.s32 %s3314_s26, %s3313_s13 }
  0x46   : > { %1139 = vmatpush.bf16.msrb.mxu3 %v4664_v41  ;;  %v5397_v41 = vunpack.c.l.b16 %v5383_v35  ;;  %s3315_s29 = sshll.u32 %s340_s25, 1 }
  0x47   : > { %834 = vmatpush.bf16.msrb.mxu0 %v4639_v44  ;;  %v4688_v44 = vld [vmem:[%s6041_s3 + $0x288] sm:$0xff]  ;;  %v1175_v55 = vpack.c.b16 %v4830_v22, %v1174_v46  ;;  %v4695_v22 = vld [vmem:[%s6041_s3 + $0x2c0] sm:$0xff]  ;;  %s342_s6 = scalar_lea.vmem %s6043_s5, %s3315_s29 }
  0x48   : > { %924 = vmatpush.bf16.msrb.mxu1 %v4647_v53  ;;  %v5418_v48 = vpack.c.b16 %v1377_v42, %v5397_v41  ;;  %v1485_v53 = vunpack.c.l.b16 %v1466_v45  ;;  %v4729_v45 = vld [vmem:[%s6041_s3 + $0x3d0] sm:$0xff]  ;;  %v4720_v46 = vld [vmem:[%s6041_s3 + $0x388] sm:$0xff] }
  0x49   : > { %1030 = vmatpush.bf16.msrb.mxu2 %v4655_v43  ;;  %v4681_v43 = vld [vmem:[%s6041_s3 + $0x250] sm:$0xff]  ;;  %v1176_v0 = vrot.slane %v1175_v55, 3 }
  0x4a   : > { %1140 = vmatpush.bf16.msrb.mxu3 %v4663_v54  ;;  %v4687_v54 = vld [vmem:[%s6041_s3 + $0x280] sm:$0xff]  ;;  %v1388_v60 = vshll.u32 %v5418_v48, 16  ;;  %v1486_v61 = vpack.c.b16 %v5426_v52, %v1485_v53  ;;  %v1583_v53 = vunpack.c.l.b16 %v1562_v15  ;;  %v4754_v15 = vld [vmem:[%s6041_s3 + $0x490] sm:$0xff] }
  0x4b   : > { %835 = vmatpush.bf16.msrb.mxu0 %v4638_v57  ;;  %v4670_v57 = vld [vmem:[%s6041_s3 + $0x200] sm:$0xff] }
  0x4c   : > { %925 = vmatpush.bf16.msrb.mxu1 %v4646_v2  ;;  %v4734_v2 = vld [vmem:[%s6041_s3 + $0x3f8] sm:$0xff]  ;;  %v1487_v6 = vrot.slane %v1486_v61, 1  ;;  %v4711_v61 = vld [vmem:[%s6041_s3 + $0x340] sm:$0xff] }
  0x4d   : > { %1031 = vmatpush.bf16.msrb.mxu2 %v4654_v56  ;;  %v4726_v56 = vld [vmem:[%s6041_s3 + $0x3b8] sm:$0xff] }
  0x4e   : > { %1141 = vmatpush.bf16.msrb.mxu3 %v4662_v3  ;;  %836 = vmatmul.bf16.vlgmr.msrb.gmra.mxu0 %v777_v11  ;;  %v4725_v3 = vld [vmem:[%s6041_s3 + $0x3b0] sm:$0xff] }
  0x4f   : > { %1229 = vmatpush.bf16.msra.mxu0 %v4677_v63  ;;  %926 = vmatmul.bf16.vlgmr.msrb.gmra.mxu1 %v866_v12  ;;  %v4718_v63 = vld [vmem:[%s6041_s3 + $0x378] sm:$0xff]  ;;  %v4709_v12 = vld [vmem:[%s6041_s3 + $0x330] sm:$0xff] }
  0x50   : > { %1328 = vmatpush.bf16.msra.mxu1 %v4686_v8  ;;  %1032 = vmatmul.bf16.vlgmr.msrb.gmra.mxu2 %v973_v14  ;;  %v4717_v8 = vld [vmem:[%s6041_s3 + $0x370] sm:$0xff] }
  0x51   : > { %1445 = vmatpush.bf16.msra.mxu2 %v4694_v62  ;;  %1142 = vmatmul.bf16.vlgmr.msrb.gmra.mxu3 %v1083_v18  ;;  %v4710_v62 = vld [vmem:[%s6041_s3 + $0x338] sm:$0xff]  ;;  %v4724_v18 = vld [vmem:[%s6041_s3 + $0x3a8] sm:$0xff] }
  0x52   : > { %1540 = vmatpush.bf16.msra.mxu3 %v4702_v9 }
  0x53   : > { %1230 = vmatpush.bf16.msra.mxu0 %v4676_v17  ;;  %v4733_v17 = vld [vmem:[%s6041_s3 + $0x3f0] sm:$0xff] }
  0x54   : > { %1329 = vmatpush.bf16.msra.mxu1 %v4685_v20  ;;  %v4716_v20 = vld [vmem:[%s6041_s3 + $0x368] sm:$0xff] }
  0x55   : > { %1446 = vmatpush.bf16.msra.mxu2 %v4693_v10  ;;  %v4678_v10 = vld [vmem:[%s5368_s15] sm:$0xff] }
  0x56   : > { %1541 = vmatpush.bf16.msra.mxu3 %v4701_v34  ;;  %v4708_v34 = vld [vmem:[%s6041_s3 + $0x328] sm:$0xff] }
  0x57   : > { %1231 = vmatpush.bf16.msra.mxu0 %v4675_v21  ;;  %v4723_v21 = vld [vmem:[%s6041_s3 + $0x3a0] sm:$0xff] }
  0x58   : > { %1330 = vmatpush.bf16.msra.mxu1 %v4684_v23  ;;  %v4715_v23 = vld [vmem:[%s6041_s3 + $0x360] sm:$0xff] }
  0x59   : > { %1447 = vmatpush.bf16.msra.mxu2 %v4692_v19  ;;  %v4732_v19 = vld [vmem:[%s6041_s3 + $0x3e8] sm:$0xff] }
  0x5a   : > { %1542 = vmatpush.bf16.msra.mxu3 %v4700_v24  ;;  %v4707_v24 = vld [vmem:[%s6041_s3 + $0x320] sm:$0xff] }
  0x5b   : > { %1232 = vmatpush.bf16.msra.mxu0 %v4674_v26  ;;  %v4731_v26 = vld [vmem:[%s6041_s3 + $0x3e0] sm:$0xff] }
  0x5c   : > { %1331 = vmatpush.bf16.msra.mxu1 %v4683_v27  ;;  %v4722_v27 = vld [vmem:[%s6041_s3 + $0x398] sm:$0xff] }
  0x5d   : > { %1448 = vmatpush.bf16.msra.mxu2 %v4691_v25  ;;  %v1252_v25 = vld [vmem:[%s5368_s15 + $0x8] sm:$0xf] }
  0x5e   : > { %1543 = vmatpush.bf16.msra.mxu3 %v4699_v28  ;;  %841 = vmatmul.bf16.gmra.mxu0 %v5300_v1  ;;  %v1177_v1 = vrot.slane %v5241_v36, 3  ;;  %v1561_v28 = vld [vmem:[%s5368_s15] sm:$0x8] }
  0x5f   : > { %1233 = vmatpush.bf16.msra.mxu0 %v4673_v31  ;;  %931 = vmatmul.bf16.gmra.mxu1 %v867_v39  ;;  %v1275_v31 = vunpack.c.l.b16 %v1252_v25  ;;  %v1582_v37 = vunpack.c.l.b16 %v1561_v28  ;;  %v4730_v39 = vld [vmem:[%s6041_s3 + $0x3d8] sm:$0xff]  ;;  %v1786_v25 = vpack.c.b16 %v5397_v41, %v5426_v52 }
  0x60   : > { %1332 = vmatpush.bf16.msra.mxu1 %v4682_v32  ;;  %1037 = vmatmul.bf16.gmra.mxu2 %v972_v5  ;;  %v1390_v5 = vrot.slane %v1388_v60, 1  ;;  %v1178_v9 = vsel %vm664_vm2, %v1176_v0, %v1177_v1  ;;  %v1392_v32 = vshrl.u32 %v5418_v48, 16  ;;  %v4750_v0 = vld [vmem:[%s6041_s3 + $0x478] sm:$0xff] }
  0x61   : > { %1449 = vmatpush.bf16.msra.mxu2 %v4690_v29  ;;  %1147 = vmatmul.bf16.gmra.mxu3 %v5310_v7  ;;  %v1488_v7 = vrot.slane %v5418_v48, 1  ;;  %v4714_v29 = vld [vmem:[%s6041_s3 + $0x358] sm:$0xff]  ;;  %v1277_v42 = vpack.c.b16 %v1275_v31, %v1275_v31  ;;  %v4728_v48 = vld [vmem:[%s6041_s3 + $0x3c8] sm:$0xff]  ;;  %v4756_v31 = vld [vmem:[%s6041_s3 + $0x4a0] sm:$0xff] }
  0x62   : > { %1544 = vmatpush.bf16.msra.mxu3 %v4698_v33  ;;  %v1391_v11 = vsel %vm390_vm0, %v1386_v4, %v1390_v5  ;;  %v4706_v33 = vld [vmem:[%s6041_s3 + $0x318] sm:$0xff] }
  0x63   : > { %1234 = vmatpush.bf16.msra.mxu0 %v4672_v40  ;;  %v1489_v14 = vsel %vm564_vm1, %v1487_v6, %v1488_v7  ;;  %v4721_v40 = vld [vmem:[%s6041_s3 + $0x390] sm:$0xff]  ;;  %v4727_v6 = vld [vmem:[%s6041_s3 + $0x3c0] sm:$0xff] }
  0x64   : > { %1333 = vmatpush.bf16.msra.mxu1 %v4681_v43  ;;  %v1394_v43 = vor.u32 %v1392_v32, %v1390_v5  ;;  %v4739_v32 = vld [vmem:[%s6041_s3 + $0x420] sm:$0xff] }
  0x65   : > { %1450 = vmatpush.bf16.msra.mxu2 %v4689_v38  ;;  %v1679_v38 = vunpack.c.h.b16 %v5383_v35 }
  0x66   : > { %1545 = vmatpush.bf16.msra.mxu3 %v4697_v16  ;;  %v4705_v16 = vld [vmem:[%s6041_s3 + $0x310] sm:$0xff] }
  0x67   : > { %1235 = vmatpush.bf16.msra.mxu0 %v4671_v47  ;;  %v4712_v47 = vld [vmem:[%s6041_s3 + $0x348] sm:$0xff] }
  0x68   : > { %1334 = vmatpush.bf16.msra.mxu1 %v4680_v50  ;;  %v5544_v50 = vld [vmem:[%s5368_s15 + $0x8] sm:$0xff]  }
  0x69   : > { %1451 = vmatpush.bf16.msra.mxu2 %v4688_v44  ;;  %v5529_v44 = vpack.c.b16 %v5426_v52, %v1582_v37  ;;  %v4838_v59 = vunpack.c.l.b16 %v5544_v50  ;;  %v4839_v60 = vunpack.c.h.b16 %v5544_v50  ;;  %v4765_v52 = vld [vmem:[%s6041_s3 + $0x4e8] sm:$0xff]  ;;  %v4764_v37 = vld [vmem:[%s6041_s3 + $0x4e0] sm:$0xff] }
  0x6a   : > { %1546 = vmatpush.bf16.msra.mxu3 %v4696_v51  ;;  %v1862_v51 = vld [vmem:[%s5368_s15 + $0x10] sm:$0x3] }
  0x6b   : > { %1236 = vmatpush.bf16.msra.mxu0 %v4670_v57  ;;  %v1682_v36 = vshrl.u32 %v5529_v44, 16  ;;  %v1685_v55 = vshll.u32 %v5529_v44, 16  ;;  %v1693_v57 = vshll.u32 %v5383_v35, 16 }
  0x6c   : > { %1335 = vmatpush.bf16.msra.mxu1 %v4679_v13  ;;  %v1884_v13 = vunpack.c.l.b16 %v1859_v49  ;;  %v2270_v49 = vld [vmem:[%s5676_s12 + $0xc] sm:$0x1] }
  0x6d   : > { %1452 = vmatpush.bf16.msra.mxu2 %v4687_v54  ;;  %v4704_v54 = vld [vmem:[%s6041_s3 + $0x308] sm:$0xff]  ;;  %v1695_v5 = vrot.slane %v1693_v57, 4 }
  0x6e   : > { %1547 = vmatpush.bf16.msra.mxu3 %v4695_v22  ;;  %1237 = vmatmul.bf16.vlgmr.msra.gmra.mxu0 %v1178_v9  ;;  %v1887_v22 = vunpack.c.l.b16 %v1862_v51  ;;  %v4742_v9 = vld [vmem:[%s6041_s3 + $0x438] sm:$0xff]  ;;  %v4761_v57 = vld [vmem:[%s6041_s3 + $0x4c8] sm:$0xff] }
  0x6f   : > { %1639 = vmatpush.bf16.msrb.mxu0 %v4710_v62  ;;  %1336 = vmatmul.bf16.vlgmr.msra.gmra.mxu1 %v4678_v10  ;;  %v4759_v62 = vld [vmem:[%s6041_s3 + $0x4b8] sm:$0xff] }
  0x70   : > { %1748 = vmatpush.bf16.msrb.mxu1 %v4718_v63  ;;  %1453 = vmatmul.bf16.vlgmr.msra.gmra.mxu2 %v1391_v11  ;;  %v5572_v63 = vpack.c.b16 %v1583_v53, %v5397_v41  ;;  %v4767_v10 = vld [vmem:[%s6041_s3 + $0x4f8] sm:$0xff]  ;;  %v4758_v11 = vld [vmem:[%s6041_s3 + $0x4b0] sm:$0xff]  ;;  %v4748_v41 = vld [vmem:[%s6041_s3 + $0x468] sm:$0xff]  ;;  %v1787_v53 = vpack.c.b16 %v1679_v38, %v1679_v38  ;;  %v2295_v38 = vunpack.c.l.b16 %v2270_v49 }
  0x71   : > { %1838 = vmatpush.bf16.msrb.mxu2 %v4726_v56  ;;  %1548 = vmatmul.bf16.vlgmr.msra.gmra.mxu3 %v1489_v14  ;;  %v1690_v56 = vshrl.u32 %v5383_v35, 16 }
  0x72   : > { %1943 = vmatpush.bf16.msrb.mxu3 %v4734_v2  ;;  %v1684_v2 = vrot.slane %v1682_v36, 3  ;;  %v1587_v14 = vrot.slane %v5572_v63, 3  ;;  %v4736_v36 = vld [vmem:[%s6041_s3 + $0x408] sm:$0xff]  ;;  %v4735_v63 = vld [vmem:[%s6041_s3 + $0x400] sm:$0xff] }
  0x73   : > { %1640 = vmatpush.bf16.msrb.mxu0 %v4709_v12  ;;  %v1692_v4 = vrot.slane %v1690_v56, 3  ;;  %v1586_v12 = vrot.slane %v5529_v44, 3  ;;  %v4737_v44 = vld [vmem:[%s6041_s3 + $0x410] sm:$0xff]  ;;  %v2073_v56 = vld [vmem:[%s5368_s15 + $0x4] sm:$0x8] }
  0x74   : > { %1749 = vmatpush.bf16.msrb.mxu1 %v4717_v8  ;;  %v5595_v8 = vpack.c.b16 %v1887_v22, %v4839_v60 }
  0x75   : > { %1839 = vmatpush.bf16.msrb.mxu2 %v4725_v3  ;;  %v1687_v3 = vrot.slane %v1685_v55, 4  ;;  %v4744_v55 = vld [vmem:[%s6041_s3 + $0x448] sm:$0xff] }
  0x76   : > { %1944 = vmatpush.bf16.msrb.mxu3 %v4733_v17  ;;  %v4749_v17 = vld [vmem:[%s6041_s3 + $0x470] sm:$0xff] }
  0x77   : > { %1641 = vmatpush.bf16.msrb.mxu0 %v4708_v34 }
  0x78   : > { %1750 = vmatpush.bf16.msrb.mxu1 %v4716_v20  ;;  %v5611_v20 = vor.u32 %v1695_v5, %v1692_v4  ;;  %v4791_v4 = vld [vmem:[%s6041_s3 + $0x5b8] sm:$0xff] }
  0x79   : > { %1840 = vmatpush.bf16.msrb.mxu2 %v4724_v18  ;;  %v1688_v18 = vor.u32 %v1687_v3, %v1684_v2  ;;  %v4760_v3 = vld [vmem:[%s6041_s3 + $0x4c0] sm:$0xff] }
  0x7a   : > { %1945 = vmatpush.bf16.msrb.mxu3 %v4732_v19  ;;  %v1891_v19 = vrot.slane %v5595_v8, 2 }
  0x7b   : > { %1642 = vmatpush.bf16.msrb.mxu0 %v4707_v24  ;;  %v1588_v24 = vsel %vm664_vm2, %v1586_v12, %v1587_v14  ;;  %v4799_v12 = vld [vmem:[%s6041_s3 + $0x5f8] sm:$0xff] }
  0x7c   : > { %1751 = vmatpush.bf16.msrb.mxu1 %v4715_v23  ;;  %v4766_v23 = vld [vmem:[%s6041_s3 + $0x4f0] sm:$0xff] }
  0x7d   : > { %1841 = vmatpush.bf16.msrb.mxu2 %v4723_v21  ;;  %v4741_v21 = vld [vmem:[%s6041_s3 + $0x430] sm:$0xff] }
  0x7e   : > { %1946 = vmatpush.bf16.msrb.mxu3 %v4731_v26  ;;  %1242 = vmatmul.bf16.gmra.mxu0 %v1177_v1  ;;  %v4703_v1 = vld [vmem:[%s6041_s3 + $0x300] sm:$0xff]  ;;  %v1697_v26 = vsel %vm760_vm3, %v1688_v18, %v5611_v20 }
  0x7f   : > { %1643 = vmatpush.bf16.msrb.mxu0 %v4706_v33  ;;  %1341 = vmatmul.bf16.gmra.mxu1 %v1277_v42  ;;  %v4747_v33 = vld [vmem:[%s6041_s3 + $0x460] sm:$0xff]  ;;  %v4746_v42 = vld [vmem:[%s6041_s3 + $0x458] sm:$0xff] }
  0x80   : > { %1752 = vmatpush.bf16.msrb.mxu1 %v4714_v29  ;;  %1458 = vmatmul.bf16.gmra.mxu2 %v1394_v43  ;;  %v4740_v29 = vld [vmem:[%s6041_s3 + $0x428] sm:$0xff]  ;;  %v4763_v43 = vld [vmem:[%s6041_s3 + $0x4d8] sm:$0xff] }
  0x81   : > { %1842 = vmatpush.bf16.msrb.mxu2 %v4722_v27  ;;  %1553 = vmatmul.bf16.gmra.mxu3 %v1488_v7  ;;  %v5591_v7 = vpack.c.b16 %v4838_v59, %v1884_v13  ;;  %v4757_v27 = vld [vmem:[%s6041_s3 + $0x4a8] sm:$0xff] }
  0x82   : > { %1947 = vmatpush.bf16.msrb.mxu3 %v4730_v39  ;;  %v1964_v39 = vld [vmem:[%s5368_s15 + $0x10] sm:$0x7] }
  0x83   : > { %1644 = vmatpush.bf16.msrb.mxu0 %v4705_v16  ;;  %v1890_v34 = vrot.slane %v5591_v7, 2  ;;  %v1983_v16 = vunpack.c.l.b16 %v1964_v39  ;;  %v4781_v39 = vld [vmem:[%s6041_s3 + $0x568] sm:$0xff] }
  0x84   : > { %1753 = vmatpush.bf16.msrb.mxu1 %v4713_v30  ;;  %v4738_v30 = vld [vmem:[%s6041_s3 + $0x418] sm:$0xff] }
  0x85   : > { %1843 = vmatpush.bf16.msrb.mxu2 %v4721_v40  ;;  %v1892_v28 = vsel %vm970_vm4, %v1890_v34, %v1891_v19  ;;  %v4755_v40 = vld [vmem:[%s6041_s3 + $0x498] sm:$0xff]  ;;  %v5696_v51 = vpack.c.b16 %v1983_v16, %v4839_v60  ;;  %v1989_v60 = vshll.u32 %v5591_v7, 16  ;;  %v4796_v16 = vld [vmem:[%s6041_s3 + $0x5e0] sm:$0xff] }
  0x86   : > { %1948 = vmatpush.bf16.msrb.mxu3 %v4729_v45  ;;  %v4745_v45 = vld [vmem:[%s6041_s3 + $0x450] sm:$0xff] }
  0x87   : > { %1645 = vmatpush.bf16.msrb.mxu0 %v4704_v54  ;;  %v4753_v54 = vld [vmem:[%s6041_s3 + $0x488] sm:$0xff]  ;;  %v1994_v13 = vshrl.u32 %v5696_v51, 16  ;;  %v1997_v22 = vshll.u32 %v5696_v51, 16 }
  0x88   : > { %1754 = vmatpush.bf16.msrb.mxu1 %v4712_v47  ;;  %v5691_v47 = vld [vmem:[%s5676_s12 + $0x8] sm:$0xff]  }
  0x89   : > { %1844 = vmatpush.bf16.msrb.mxu2 %v4720_v46  ;;  %v4762_v46 = vld [vmem:[%s6041_s3 + $0x4d0] sm:$0xff]  ;;  %v5712_v35 = vunpack.c.l.b16 %v5691_v47  ;;  %v1999_v8 = vrot.slane %v1997_v22, 3 }
  0x8a   : > { %1949 = vmatpush.bf16.msrb.mxu3 %v4728_v48  ;;  %v5720_v48 = vld [vmem:[%s5676_s12] sm:$0xff]  }
  0x8b   : > { %1646 = vmatpush.bf16.msrb.mxu0 %v4703_v1  ;;  %v5739_v1 = vpack.c.b16 %v2295_v38, %v5712_v35  ;;  %v2301_v2 = vshll.u32 %v5720_v48, 16  ;;  %v4779_v38 = vld [vmem:[%s6041_s3 + $0x558] sm:$0xff] }
  0x8c   : > { %1755 = vmatpush.bf16.msrb.mxu1 %v4711_v61  ;;  %v4752_v61 = vld [vmem:[%s6041_s3 + $0x480] sm:$0xff] }
  0x8d   : > { %1845 = vmatpush.bf16.msrb.mxu2 %v4719_v58  ;;  %v1986_v58 = vshrl.u32 %v5591_v7, 16  ;;  %v1996_v7 = vrot.slane %v1994_v13, 2  ;;  %v2306_v18 = vshll.u32 %v5739_v1, 16  ;;  %v2310_v22 = vshrl.u32 %v5739_v1, 16 }
  0x8e   : > { %1950 = vmatpush.bf16.msrb.mxu3 %v4727_v6  ;;  %1647 = vmatmul.bf16.vlgmr.msrb.gmra.mxu0 %v1588_v24  ;;  %v1991_v6 = vrot.slane %v1989_v60, 3  ;;  %v4798_v24 = vld [vmem:[%s6041_s3 + $0x5f0] sm:$0xff] }
  0x8f   : > { %2052 = vmatpush.bf16.msra.mxu0 %v4742_v9  ;;  %1756 = vmatmul.bf16.vlgmr.msrb.gmra.mxu1 %v1697_v26  ;;  %v1988_v5 = vrot.slane %v1986_v58, 2  ;;  %v4775_v9 = vld [vmem:[%s6041_s3 + $0x538] sm:$0xff]  ;;  %v5764_v50 = vor.u32 %v1999_v8, %v1996_v7  ;;  %v5776_v26 = vrot.slane %v2306_v18, 1  ;;  %v2479_v58 = vld [vmem:[%s5676_s12] sm:$0x8]  ;;  %v4786_v60 = vld [vmem:[%s6041_s3 + $0x590] sm:$0xff] }
  0x90   : > { %2147 = vmatpush.bf16.msra.mxu1 %v4750_v0  ;;  %1846 = vmatmul.bf16.vlgmr.msrb.gmra.mxu2 %v1786_v25  ;;  %v4743_v0 = vld [vmem:[%s6041_s3 + $0x440] sm:$0xff] }
  0x91   : > { %2246 = vmatpush.bf16.msra.mxu2 %v4759_v62  ;;  %1951 = vmatmul.bf16.vlgmr.msrb.gmra.mxu3 %v1892_v28  ;;  %v2092_v62 = vunpack.c.l.b16 %v2073_v56  ;;  %v1992_v34 = vor.u32 %v1991_v6, %v1988_v5 }
  0x92   : > { %2363 = vmatpush.bf16.msra.mxu3 %v4767_v10  ;;  %v4783_v10 = vld [vmem:[%s6041_s3 + $0x578] sm:$0xff] }
  0x93   : > { %2053 = vmatpush.bf16.msra.mxu0 %v4741_v21 }
  0x94   : > { %2148 = vmatpush.bf16.msra.mxu1 %v4749_v17  ;;  %v2303_v17 = vrot.slane %v2301_v2, 1  ;;  %v4778_v2 = vld [vmem:[%s6041_s3 + $0x550] sm:$0xff] }
  0x95   : > { %2247 = vmatpush.bf16.msra.mxu2 %v4758_v11  ;;  %v2093_v11 = vpack.c.b16 %v4838_v59, %v2092_v62  ;;  %v4774_v59 = vld [vmem:[%s6041_s3 + $0x530] sm:$0xff]  ;;  %v5834_v62 = vunpack.c.h.b16 %v5720_v48 }
  0x96   : > { %2364 = vmatpush.bf16.msra.mxu3 %v4766_v23  ;;  %v2095_v23 = vrot.slane %v5696_v51, 3  ;;  %v2608_v51 = vshrl.u32 %v5691_v47, 16 }
  0x97   : > { %2054 = vmatpush.bf16.msra.mxu0 %v4740_v29  ;;  %v2094_v21 = vrot.slane %v2093_v11, 3  ;;  %v2312_v11 = vor.u32 %v2310_v22, %v5776_v26  ;;  %v4805_v22 = vld [vmem:[%s6041_s3 + $0x628] sm:$0xff] }
  0x98   : > { %2149 = vmatpush.bf16.msra.mxu1 %v4748_v41  ;;  %v2001_v41 = vsel %vm1066_vm5, %v1992_v34, %v5764_v50  ;;  %v4777_v34 = vld [vmem:[%s6041_s3 + $0x548] sm:$0xff] }
  0x99   : > { %2248 = vmatpush.bf16.msra.mxu2 %v4757_v27  ;;  %v4789_v27 = vld [vmem:[%s6041_s3 + $0x5a8] sm:$0xff] }
  0x9a   : > { %2365 = vmatpush.bf16.msra.mxu3 %v4765_v52  ;;  %v4751_v52 = vld [vmem:[%s5676_s12] sm:$0xff] }
  0x9b   : > { %2055 = vmatpush.bf16.msra.mxu0 %v4739_v32  ;;  %v2096_v32 = vsel %vm664_vm2, %v2094_v21, %v2095_v23 }
  0x9c   : > { %2150 = vmatpush.bf16.msra.mxu1 %v4747_v33  ;;  %v4773_v33 = vld [vmem:[%s6041_s3 + $0x528] sm:$0xff] }
  0x9d   : > { %2249 = vmatpush.bf16.msra.mxu2 %v4756_v31 }
  0x9e   : > { %2366 = vmatpush.bf16.msra.mxu3 %v4764_v37  ;;  %1652 = vmatmul.bf16.gmra.mxu0 %v1587_v14  ;;  %v2299_v14 = vshrl.u32 %v5720_v48, 16  ;;  %v4785_v48 = vld [vmem:[%s6041_s3 + $0x588] sm:$0xff] }
  0x9f   : > { %2056 = vmatpush.bf16.msra.mxu0 %v4738_v30  ;;  %1761 = vmatmul.bf16.gmra.mxu1 %v5611_v20  ;;  %v4790_v20 = vld [vmem:[%s6041_s3 + $0x5b0] sm:$0xff]  ;;  %v4788_v30 = vld [vmem:[%s6041_s3 + $0x5a0] sm:$0xff] }
  0xa0   : > { %2151 = vmatpush.bf16.msra.mxu1 %v4746_v42  ;;  %1851 = vmatmul.bf16.gmra.mxu2 %v1787_v53  ;;  %v2304_v25 = vor.u32 %v2303_v17, %v2299_v14  ;;  %v4772_v42 = vld [vmem:[%s6041_s3 + $0x520] sm:$0xff]  ;;  %v2480_v17 = vld [vmem:[%s5676_s12 + $0xc] sm:$0x7] }
  0xa1   : > { %2250 = vmatpush.bf16.msra.mxu2 %v4755_v40  ;;  %1956 = vmatmul.bf16.gmra.mxu3 %v1891_v19  ;;  %v4782_v19 = vld [vmem:[%s6041_s3 + $0x570] sm:$0xff]  ;;  %v4797_v40 = vld [vmem:[%s6041_s3 + $0x5e8] sm:$0xff]  ;;  %v2384_v14 = vld [vmem:[%s5676_s12] sm:$0xe] }
  0xa2   : > { %2367 = vmatpush.bf16.msra.mxu3 %v4763_v43  ;;  %v2309_v37 = vsel %vm390_vm0, %v2304_v25, %v5776_v26  ;;  %v4780_v43 = vld [vmem:[%s6041_s3 + $0x560] sm:$0xff]  ;;  %v2403_v21 = vunpack.c.l.b16 %v2384_v14  ;;  %v4823_v25 = vld [vmem:[%s6041_s3 + $0x6b8] sm:$0xff] }
  0xa3   : > { %2057 = vmatpush.bf16.msra.mxu0 %v4737_v44 }
  0xa4   : > { %2152 = vmatpush.bf16.msra.mxu1 %v4745_v45  ;;  %v4787_v45 = vld [vmem:[%s6041_s3 + $0x598] sm:$0xff] }
  0xa5   : > { %2251 = vmatpush.bf16.msra.mxu2 %v4754_v15 }
  0xa6   : > { %2368 = vmatpush.bf16.msra.mxu3 %v4762_v46 }
  0xa7   : > { %2058 = vmatpush.bf16.msra.mxu0 %v4736_v36  ;;  %v2170_v36 = vld [vmem:[%s5676_s12 + $0x8] sm:$0xf] }
  0xa8   : > { %2153 = vmatpush.bf16.msra.mxu1 %v4744_v55  ;;  %v4771_v55 = vld [vmem:[%s6041_s3 + $0x518] sm:$0xff]  ;;  %v2193_v13 = vunpack.c.l.b16 %v2170_v36  ;;  %v4821_v36 = vld [vmem:[%s6041_s3 + $0x6a8] sm:$0xff] }
  0xa9   : > { %2252 = vmatpush.bf16.msra.mxu2 %v4753_v54 }
  0xaa   : > { %2369 = vmatpush.bf16.msra.mxu3 %v4761_v57  ;;  %v4795_v57 = vld [vmem:[%s6041_s3 + $0x5d8] sm:$0xff] }
  0xab   : > { %2059 = vmatpush.bf16.msra.mxu0 %v4735_v63  ;;  %v465_v28 = vpop.f32.mrf.mxu0  ;;  %v2500_v63 = vunpack.c.l.b16 %v2479_v58 }
  0xac   : > { %2154 = vmatpush.bf16.msra.mxu1 %v4743_v0  ;;  %v534_v29 = vpop.f32.mrf.mxu1  ;;  %v2597_v0 = vunpack.c.h.b16 %v5691_v47 }
  0xad   : > { %2253 = vmatpush.bf16.msra.mxu2 %v4752_v61  ;;  %v535_v31 = vadd.f32 %v534_v29, %v465_v28  ;;  %v4770_v61 = vld [vmem:[%s6041_s3 + $0x510] sm:$0xff]  ;;  %v5853_v18 = vpack.c.b16 %v5834_v62, %v2500_v63  ;;  %v4776_v28 = vld [vmem:[%s6041_s3 + $0x540] sm:$0xff] }
  0xae   : > { %2370 = vmatpush.bf16.msra.mxu3 %v4760_v3  ;;  %2060 = vmatmul.bf16.vlgmr.msra.gmra.mxu0 %v2001_v41  ;;  %v4794_v3 = vld [vmem:[%s6041_s3 + $0x5d0] sm:$0xff]  ;;  %v4792_v29 = vld [vmem:[%s6041_s3 + $0x5c0] sm:$0xff] }
  0xaf   : > { %2458 = vmatpush.bf16.msrb.mxu0 %v4775_v9  ;;  %2155 = vmatmul.bf16.vlgmr.msra.gmra.mxu1 %v2096_v32  ;;  %v2195_v9 = vpack.c.b16 %v2193_v13, %v2193_v13  ;;  %v2600_v26 = vshrl.u32 %v5853_v18, 16 }
  0xb0   : > { %2557 = vmatpush.bf16.msrb.mxu1 %v4783_v10  ;;  %2254 = vmatmul.bf16.vlgmr.msra.gmra.mxu2 %v4751_v52 }
  0xb1   : > { %2666 = vmatpush.bf16.msrb.mxu2 %v4791_v4  ;;  %2371 = vmatmul.bf16.vlgmr.msra.gmra.mxu3 %v2309_v37 }
  0xb2   : > { %2756 = vmatpush.bf16.msrb.mxu3 %v4799_v12  ;;  %v4769_v12 = vld [vmem:[%s6041_s3 + $0x508] sm:$0xff] }
  0xb3   : > { %2459 = vmatpush.bf16.msrb.mxu0 %v4774_v59  ;;  %v627_v15 = vpop.f32.mrf.mxu2  ;;  %v467_v49 = vpop.f32.mrf.mxu0  ;;  %v4793_v59 = vld [vmem:[%s6041_s3 + $0x5c8] sm:$0xff] }
  0xb4   : > { %2558 = vmatpush.bf16.msrb.mxu1 %v4782_v19  ;;  %v727_v44 = vpop.f32.mrf.mxu3  ;;  %v636_v46 = vadd.f32 %v627_v15, %v535_v31  ;;  %v536_v53 = vpop.f32.mrf.mxu1  ;;  %v4784_v19 = vld [vmem:[%s6041_s3 + $0x580] sm:$0xff]  ;;  %v4807_v31 = vld [vmem:[%s6041_s3 + $0x638] sm:$0xff]  ;;  %v2610_v15 = vrot.slane %v2608_v51, 3 }
  0xb5   : > { %2667 = vmatpush.bf16.msrb.mxu2 %v4790_v20  ;;  %v537_v54 = vadd.f32 %v536_v53, %v467_v49  ;;  %v2406_v53 = vrot.slane %v5739_v1, 1 }
  0xb6   : > { %2757 = vmatpush.bf16.msrb.mxu3 %v4798_v24  ;;  %v5817_v56 = vadd.f32 %v727_v44, %v636_v46  ;;  %v2501_v24 = vunpack.c.l.b16 %v2480_v17  ;;  %v4806_v46 = vld [vmem:[%s6041_s3 + $0x630] sm:$0xff] }
  0xb7   : > { %2460 = vmatpush.bf16.msrb.mxu0 %v4773_v33 }
  0xb8   : > { %2559 = vmatpush.bf16.msrb.mxu1 %v4781_v39  ;;  %v2404_v39 = vpack.c.b16 %v5834_v62, %v2403_v21  ;;  %v4811_v21 = vld [vmem:[%s6041_s3 + $0x658] sm:$0xff] }
  0xb9   : > { %2668 = vmatpush.bf16.msrb.mxu2 %v4789_v27  ;;  %v2603_v27 = vshll.u32 %v5853_v18, 16 }
  0xba   : > { %2758 = vmatpush.bf16.msrb.mxu3 %v4797_v40  ;;  %v5890_v40 = vpack.c.b16 %v2501_v24, %v5712_v35  ;;  %v2405_v49 = vrot.slane %v2404_v39, 1  ;;  %v4818_v24 = vld [vmem:[%s6041_s3 + $0x690] sm:$0xff] }
  0xbb   : > { %2461 = vmatpush.bf16.msrb.mxu0 %v4772_v42  ;;  %v629_v4 = vpop.f32.mrf.mxu2  ;;  %v470_v7 = vpop.f32.mrf.mxu0  ;;  %v4822_v42 = vld [vmem:[%s6041_s3 + $0x6b0] sm:$0xff] }
  0xbc   : > { %2560 = vmatpush.bf16.msrb.mxu1 %v4780_v43  ;;  %v729_v5 = vpop.f32.mrf.mxu3  ;;  %v637_v6 = vadd.f32 %v629_v4, %v537_v54  ;;  %v539_v8 = vpop.f32.mrf.mxu1  ;;  %v2602_v43 = vrot.slane %v2600_v26, 3  ;;  %v4814_v54 = vld [vmem:[%s6041_s3 + $0x670] sm:$0xff]  ;;  %v2407_v63 = vsel %vm564_vm1, %v2405_v49, %v2406_v53 }
  0xbd   : > { %2669 = vmatpush.bf16.msrb.mxu2 %v4788_v30  ;;  %v540_v10 = vadd.f32 %v539_v8, %v470_v7  ;;  %v4815_v30 = vld [vmem:[%s6041_s3 + $0x678] sm:$0xff]  ;;  %v4820_v7 = vld [vmem:[%s6041_s3 + $0x6a0] sm:$0xff] }
  0xbe   : > { %2759 = vmatpush.bf16.msrb.mxu3 %v4796_v16  ;;  %v5855_v20 = vadd.f32 %v729_v5, %v637_v6  ;;  %2065 = vmatmul.bf16.gmra.mxu0 %v5764_v50  ;;  %v4768_v50 = vld [vmem:[%s6041_s3 + $0x500] sm:$0xff]  ;;  %v2605_v16 = vrot.slane %v2603_v27, 4  ;;  %v4813_v6 = vld [vmem:[%s6041_s3 + $0x668] sm:$0xff] }
  0xbf   : > { %2462 = vmatpush.bf16.msrb.mxu0 %v4771_v55  ;;  %2160 = vmatmul.bf16.gmra.mxu1 %v2095_v23  ;;  %v2611_v23 = vshll.u32 %v5691_v47, 16  ;;  %v2504_v55 = vrot.slane %v5853_v18, 3  ;;  %v4804_v8 = vld [vmem:[%s6041_s3 + $0x620] sm:$0xff] }
  0xc0   : > { %2561 = vmatpush.bf16.msrb.mxu1 %v4779_v38  ;;  %2259 = vmatmul.bf16.gmra.mxu2 %v2195_v9  ;;  %v2505_v38 = vrot.slane %v5890_v40, 3  ;;  %v4800_v47 = vld [vmem:[%s6041_s3 + $0x600] sm:$0xff] }
  0xc1   : > { %2670 = vmatpush.bf16.msrb.mxu2 %v4787_v45  ;;  %2376 = vmatmul.bf16.gmra.mxu3 %v2312_v11  ;;  %v2613_v44 = vrot.slane %v2611_v23, 4 }
  0xc2   : > { %2760 = vmatpush.bf16.msrb.mxu3 %v4795_v57  ;;  %v2606_v57 = vor.u32 %v2605_v16, %v2602_v43  ;;  %v2506_v4 = vsel %vm664_vm2, %v2504_v55, %v2505_v38  ;;  %v2780_v43 = vld [vmem:[%s5676_s12 + $0x10] sm:$0x3] }
  0xc3   : > { %2463 = vmatpush.bf16.msrb.mxu0 %v4770_v61  ;;  %v632_v41 = vpop.f32.mrf.mxu2  ;;  %v472_v33 = vpop.f32.mrf.mxu0  ;;  %v5912_v58 = vor.u32 %v2613_v44, %v2610_v15  ;;  %v4809_v44 = vld [vmem:[%s6041_s3 + $0x648] sm:$0xff] }
  0xc4   : > { %2562 = vmatpush.bf16.msrb.mxu1 %v4778_v2  ;;  %v732_v52 = vpop.f32.mrf.mxu3  ;;  %v638_v32 = vadd.f32 %v632_v41, %v540_v10  ;;  %v541_v37 = vpop.f32.mrf.mxu1  ;;  %v4803_v10 = vld [vmem:[%s6041_s3 + $0x618] sm:$0xff] }
  0xc5   : > { %2671 = vmatpush.bf16.msrb.mxu2 %v4786_v60  ;;  %v2615_v5 = vsel %vm760_vm3, %v2606_v57, %v5912_v58  ;;  %v4808_v57 = vld [vmem:[%s6041_s3 + $0x640] sm:$0xff] }
  0xc6   : > { %2761 = vmatpush.bf16.msrb.mxu3 %v4794_v3  ;;  %v5898_v45 = vadd.f32 %v732_v52, %v638_v32  ;;  %v4801_v52 = vld [vmem:[%s6041_s3 + $0x608] sm:$0xff] }
  0xc7   : > { %2464 = vmatpush.bf16.msrb.mxu0 %v4769_v12 }
  0xc8   : > { %2563 = vmatpush.bf16.msrb.mxu1 %v4777_v34  ;;  %v2777_v34 = vld [vmem:[%s5676_s12 + $0x4] sm:$0xc] }
  0xc9   : > { %2672 = vmatpush.bf16.msrb.mxu2 %v4785_v48  ;;  %v2704_v48 = vpack.c.b16 %v5712_v35, %v5834_v62  ;;  %v4812_v35 = vld [vmem:[%s6041_s3 + $0x660] sm:$0xff]  ;;  %v4819_v62 = vld [vmem:[%s6041_s3 + $0x698] sm:$0xff]  ;;  %v2802_v27 = vunpack.c.l.b16 %v2777_v34 }
  0xca   : > { %2762 = vmatpush.bf16.msrb.mxu3 %v4793_v59  ;;  %v5949_v59 = vld [vmem:[%s5676_s12 + $0x8] sm:$0xff]  }
  0xcb   : > { %2465 = vmatpush.bf16.msrb.mxu0 %v4768_v50  ;;  %v634_v60 = vpop.f32.mrf.mxu2  ;;  %v837_v61 = vpop.f32.mrf.mxu0  ;;  %v4846_v26 = vunpack.c.l.b16 %v5949_v59  ;;  %v4847_v51 = vunpack.c.h.b16 %v5949_v59 }
  0xcc   : > { %2564 = vmatpush.bf16.msrb.mxu1 %v4776_v28  ;;  %v734_v13 = vpop.f32.mrf.mxu3  ;;  %v846_v2 = vadd.f32 %v837_v61, %v5817_v56  ;;  %v927_v3 = vpop.f32.mrf.mxu1  ;;  %v4810_v28 = vld [vmem:[%s6041_s3 + $0x650] sm:$0xff] }
  0xcd   : > { %2673 = vmatpush.bf16.msrb.mxu2 %v4784_v19  ;;  %v2806_v37 = vpack.c.b16 %v4846_v26, %v2802_v27 }
  0xce   : > { %2763 = vmatpush.bf16.msrb.mxu3 %v4792_v29  ;;  %v936_v56 = vadd.f32 %v927_v3, %v846_v2  ;;  %2466 = vmatmul.bf16.vlgmr.msrb.gmra.mxu0 %v2407_v63  ;;  %v4817_v29 = vld [vmem:[%s6041_s3 + $0x688] sm:$0xff] }
  0xcf   : > { %2861 = vmatpush.bf16.msra.mxu0 %v4807_v31  ;;  %2565 = vmatmul.bf16.vlgmr.msrb.gmra.mxu1 %v2506_v4 }
  0xd0   : > { %2970 = vmatpush.bf16.msra.mxu1 %v4815_v30  ;;  %2674 = vmatmul.bf16.vlgmr.msrb.gmra.mxu2 %v2615_v5 }
  0xd1   : > { %3065 = vmatpush.bf16.msra.mxu2 %v4823_v25  ;;  %2764 = vmatmul.bf16.vlgmr.msrb.gmra.mxu3 %v2704_v48  ;;  %v2882_v25 = vld [vmem:[%s5676_s12 + $0x10] sm:$0x7]  ;;  %v2808_v48 = vrot.slane %v2806_v37, 2 }
  0xd2   : > { %4851 = vmatpush.bf16.msra.mxu3 %v4807_v31  ;;  %v2901_v23 = vunpack.c.l.b16 %v2882_v25 }
  0xd3   : > { %2862 = vmatpush.bf16.msra.mxu0 %v4806_v46  ;;  %v1033_v9 = vpop.f32.mrf.mxu2  ;;  %v839_v14 = vpop.f32.mrf.mxu0 }
  0xd4   : > { %2971 = vmatpush.bf16.msra.mxu1 %v4814_v54  ;;  %v1042_v11 = vadd.f32 %v1033_v9, %v936_v56  ;;  %v1143_v12 = vpop.f32.mrf.mxu3  ;;  %v847_v17 = vadd.f32 %v839_v14, %v5855_v20  ;;  %v929_v18 = vpop.f32.mrf.mxu1  ;;  %v4802_v20 = vld [vmem:[%s6041_s3 + $0x610] sm:$0xff]  ;;  %v5979_v16 = vpack.c.b16 %v2901_v23, %v4847_v51  ;;  %v2904_v54 = vshrl.u32 %v2806_v37, 16 }
  0xd5   : > { %3066 = vmatpush.bf16.msra.mxu2 %v4822_v42  ;;  %v2705_v42 = vpack.c.b16 %v2597_v0, %v2597_v0  ;;  %v2805_v0 = vunpack.c.l.b16 %v2780_v43 }
  0xd6   : > { %4852 = vmatpush.bf16.msra.mxu3 %v4806_v46  ;;  %v5951_v19 = vadd.f32 %v1143_v12, %v1042_v11  ;;  %v937_v50 = vadd.f32 %v929_v18, %v847_v17  ;;  %v2991_v46 = vld [vmem:[%s5676_s12 + $0x4] sm:$0x8]  ;;  %v2912_v55 = vshrl.u32 %v5979_v16, 16  ;;  %v2915_v1 = vshll.u32 %v5979_v16, 16 }
  0xd7   : > { %2863 = vmatpush.bf16.msra.mxu0 %v4805_v22  ;;  %v2807_v13 = vpack.c.b16 %v2805_v0, %v4847_v51 }
  0xd8   : > { %2972 = vmatpush.bf16.msra.mxu1 %v4813_v6  ;;  %v2914_v2 = vrot.slane %v2912_v55, 2  ;;  %v2917_v3 = vrot.slane %v2915_v1, 3 }
  0xd9   : > { %3067 = vmatpush.bf16.msra.mxu2 %v4821_v36  ;;  %v2907_v36 = vshll.u32 %v2806_v37, 16  ;;  %v2809_v6 = vrot.slane %v2807_v13, 2 }
  0xda   : > { %4853 = vmatpush.bf16.msra.mxu3 %v4805_v22  ;;  %v2906_v22 = vrot.slane %v2904_v54, 2  ;;  %v2918_v56 = vor.u32 %v2917_v3, %v2914_v2 }
  0xdb   : > { %2864 = vmatpush.bf16.msra.mxu0 %v4804_v8  ;;  %v1035_v41 = vpop.f32.mrf.mxu2  ;;  %v842_v33 = vpop.f32.mrf.mxu0  ;;  %v2909_v63 = vrot.slane %v2907_v36, 3  ;;  %v2810_v11 = vsel %vm970_vm4, %v2808_v48, %v2809_v6 }
  0xdc   : > { %2973 = vmatpush.bf16.msra.mxu1 %v4812_v35  ;;  %v1043_v31 = vadd.f32 %v1035_v41, %v937_v50  ;;  %v1145_v32 = vpop.f32.mrf.mxu3  ;;  %v848_v39 = vadd.f32 %v842_v33, %v5898_v45  ;;  %v932_v30 = vpop.f32.mrf.mxu1  ;;  %v4816_v45 = vld [vmem:[%s6041_s3 + $0x680] sm:$0xff]  ;;  %v3013_v35 = vrot.slane %v5979_v16, 3 }
  0xdd   : > { %3068 = vmatpush.bf16.msra.mxu2 %v4820_v7  ;;  %v2910_v7 = vor.u32 %v2909_v63, %v2906_v22 }
  0xde   : > { %4854 = vmatpush.bf16.msra.mxu3 %v4804_v8  ;;  %v1153_v15 = vadd.f32 %v1145_v32, %v1043_v31  ;;  %v938_v49 = vadd.f32 %v932_v30, %v848_v39  ;;  %2471 = vmatmul.bf16.gmra.mxu0 %v2406_v53  ;;  %v3010_v53 = vunpack.c.l.b16 %v2991_v46 }
  0xdf   : > { %2865 = vmatpush.bf16.msra.mxu0 %v4803_v10  ;;  %2570 = vmatmul.bf16.gmra.mxu1 %v2505_v38  ;;  %v2919_v17 = vsel %vm1066_vm5, %v2910_v7, %v2918_v56 }
  0xe0   : > { %2974 = vmatpush.bf16.msra.mxu1 %v4811_v21  ;;  %2679 = vmatmul.bf16.gmra.mxu2 %v5912_v58  ;;  %v3011_v4 = vpack.c.b16 %v4846_v26, %v3010_v53 }
  0xe1   : > { %3069 = vmatpush.bf16.msra.mxu2 %v4819_v62  ;;  %2769 = vmatmul.bf16.gmra.mxu3 %v2705_v42 }
  0xe2   : > { %4855 = vmatpush.bf16.msra.mxu3 %v4803_v10  ;;  %v3012_v8 = vrot.slane %v3011_v4, 3 }
  0xe3   : > { %2866 = vmatpush.bf16.msra.mxu0 %v4802_v20  ;;  %v1038_v40 = vpop.f32.mrf.mxu2  ;;  %v844_v60 = vpop.f32.mrf.mxu0 }
  0xe4   : > { %2975 = vmatpush.bf16.msra.mxu1 %v4810_v28  ;;  %v1044_v38 = vadd.f32 %v1038_v40, %v938_v49  ;;  %v1148_v58 = vpop.f32.mrf.mxu3  ;;  %v934_v61 = vpop.f32.mrf.mxu1  ;;  %v3014_v18 = vsel %vm664_vm2, %v3012_v8, %v3013_v35 }
  0xe5   : > { %3070 = vmatpush.bf16.msra.mxu2 %v4818_v24 }
  0xe6   : > { %4856 = vmatpush.bf16.msra.mxu3 %v4802_v20  ;;  %v1154_v5 = vadd.f32 %v1148_v58, %v1044_v38 }
  0xe7   : > { %2867 = vmatpush.bf16.msra.mxu0 %v4801_v52 }
  0xe8   : > { %2976 = vmatpush.bf16.msra.mxu1 %v4809_v44 }
  0xe9   : > { %3071 = vmatpush.bf16.msra.mxu2 %v4817_v29 }
  0xea   : > { %4857 = vmatpush.bf16.msra.mxu3 %v4801_v52 }
  0xeb   : > { %2868 = vmatpush.bf16.msra.mxu0 %v4800_v47  ;;  %v1040_v62 = vpop.f32.mrf.mxu2  ;;  %v1238_v10 = vpop.f32.mrf.mxu0 }
  0xec   : > { %2977 = vmatpush.bf16.msra.mxu1 %v4808_v57  ;;  %v1150_v9 = vpop.f32.mrf.mxu3  ;;  %v1247_v12 = vadd.f32 %v1238_v10, %v5951_v19  ;;  %v1337_v14 = vpop.f32.mrf.mxu1 }
  0xed   : > { %3072 = vmatpush.bf16.msra.mxu2 %v4816_v45 }
  0xee   : > { %4858 = vmatpush.bf16.msra.mxu3 %v4800_v47  ;;  %v1346_v34 = vadd.f32 %v1337_v14, %v1247_v12  ;;  %2869 = vmatmul.bf16.vlgmr.msra.gmra.mxu0 %v2810_v11 }
  0xef   : > { %2978 = vmatmul.bf16.vlgmr.msra.gmra.mxu1 %v2919_v17 }
  0xf0   : > { %3073 = vmatmul.bf16.vlgmr.msra.gmra.mxu2 %v3014_v18 }
  0xf1   : > { %2874 = vmatmul.bf16.vlgmr.msra.gmra.mxu3 %v2809_v6 }
  0xf3   : > { %v1454_v59 = vpop.f32.mrf.mxu2  ;;  %v1240_v25 = vpop.f32.mrf.mxu0 }
  0xf4   : > { %v1463_v21 = vadd.f32 %v1454_v59, %v1346_v34  ;;  %v1549_v24 = vpop.f32.mrf.mxu3  ;;  %v1248_v50 = vadd.f32 %v1240_v25, %v1153_v15  ;;  %v1339_v20 = vpop.f32.mrf.mxu1 }
  0xf6   : > { %v1558_v26 = vadd.f32 %v1549_v24, %v1463_v21  ;;  %v1347_v27 = vadd.f32 %v1339_v20, %v1248_v50 }
  0xfb   : > { %v1456_v51 = vpop.f32.mrf.mxu2  ;;  %v1243_v28 = vpop.f32.mrf.mxu0 }
  0xfc   : > { %v1464_v19 = vadd.f32 %v1456_v51, %v1347_v27  ;;  %v1551_v23 = vpop.f32.mrf.mxu3  ;;  %v1249_v29 = vadd.f32 %v1243_v28, %v1154_v5  ;;  %v1342_v41 = vpop.f32.mrf.mxu1 }
  0xfe   : > { %v1559_v52 = vadd.f32 %v1551_v23, %v1464_v19  ;;  %v1348_v31 = vadd.f32 %v1342_v41, %v1249_v29 }
  0xff   : > { %2983 = vmatmul.bf16.gmra.mxu1 %v2918_v56 }
 0x100   : > { %3078 = vmatmul.bf16.gmra.mxu2 %v3013_v35 }
 0x103   : > { %v1459_v32 = vpop.f32.mrf.mxu2  ;;  %v1245_v39 = vpop.f32.mrf.mxu0 }
 0x104   : > { %v1465_v33 = vadd.f32 %v1459_v32, %v1348_v31  ;;  %v1554_v37 = vpop.f32.mrf.mxu3  ;;  %v1344_v30 = vpop.f32.mrf.mxu1 }
 0x106   : > { %v1560_v42 = vadd.f32 %v1554_v37, %v1465_v33 }
 0x10b   : > { %v1461_v43 = vpop.f32.mrf.mxu2  ;;  %v1648_v15 = vpop.f32.mrf.mxu0 }
 0x10c   : > { %v1556_v16 = vpop.f32.mrf.mxu3  ;;  %v1657_v44 = vadd.f32 %v1648_v15, %v1558_v26  ;;  %v1757_v45 = vpop.f32.mrf.mxu1 }
 0x10e   : > { %v1766_v46 = vadd.f32 %v1757_v45, %v1657_v44 }
 0x113   : > { %v1847_v49 = vpop.f32.mrf.mxu2  ;;  %v1650_v54 = vpop.f32.mrf.mxu0 }
 0x114   : > { %v1856_v47 = vadd.f32 %v1847_v49, %v1766_v46  ;;  %v1952_v0 = vpop.f32.mrf.mxu3  ;;  %v1658_v36 = vadd.f32 %v1650_v54, %v1559_v52  ;;  %v1759_v55 = vpop.f32.mrf.mxu1 }
 0x116   : > { %v1961_v1 = vadd.f32 %v1952_v0, %v1856_v47  ;;  %v1767_v53 = vadd.f32 %v1759_v55, %v1658_v36 }
 0x11b   : > { %v1849_v57 = vpop.f32.mrf.mxu2  ;;  %v1653_v58 = vpop.f32.mrf.mxu0 }
 0x11c   : > { %v1857_v40 = vadd.f32 %v1849_v57, %v1767_v53  ;;  %v1954_v38 = vpop.f32.mrf.mxu3  ;;  %v1659_v60 = vadd.f32 %v1653_v58, %v1560_v42  ;;  %v1762_v13 = vpop.f32.mrf.mxu1 }
 0x11e   : > { %v1962_v22 = vadd.f32 %v1954_v38, %v1857_v40  ;;  %v1768_v61 = vadd.f32 %v1762_v13, %v1659_v60 }
 0x123   : > { %v1852_v63 = vpop.f32.mrf.mxu2  ;;  %v1655_v4 = vpop.f32.mrf.mxu0 }
 0x124   : > { %v1858_v2 = vadd.f32 %v1852_v63, %v1768_v61  ;;  %v1957_v3 = vpop.f32.mrf.mxu3  ;;  %v1764_v5 = vpop.f32.mrf.mxu1  ;;  %v4903_v61 = vld [vmem:[%s6042_s4] ss:$0 sm:$0xff] }
 0x126   : > { %v1963_v48 = vadd.f32 %v1957_v3, %v1858_v2 }
 0x12b   : > { %v1854_v6 = vpop.f32.mrf.mxu2  ;;  %v2061_v56 = vpop.f32.mrf.mxu0 }
 0x12c   : > { %v1959_v7 = vpop.f32.mrf.mxu3  ;;  %v2156_v8 = vpop.f32.mrf.mxu1  ;;  %v2070_v23 = vadd.f32 %v2061_v56, %v1961_v1 }
 0x12e   : > { %v2165_v28 = vadd.f32 %v2156_v8, %v2070_v23 }
 0x133   : > { %v2255_v35 = vpop.f32.mrf.mxu2  ;;  %v2063_v9 = vpop.f32.mrf.mxu0 }
 0x134   : > { %v2372_v62 = vpop.f32.mrf.mxu3  ;;  %v2158_v10 = vpop.f32.mrf.mxu1  ;;  %v2264_v41 = vadd.f32 %v2255_v35, %v2165_v28  ;;  %v2071_v33 = vadd.f32 %v2063_v9, %v1962_v22 }
 0x136   : > { %v2381_v37 = vadd.f32 %v2372_v62, %v2264_v41  ;;  %v2166_v39 = vadd.f32 %v2158_v10, %v2071_v33 }
 0x13b   : > { %v2257_v11 = vpop.f32.mrf.mxu2  ;;  %v2066_v14 = vpop.f32.mrf.mxu0 }
 0x13c   : > { %v2374_v12 = vpop.f32.mrf.mxu3  ;;  %v2161_v17 = vpop.f32.mrf.mxu1  ;;  %v2265_v43 = vadd.f32 %v2257_v11, %v2166_v39  ;;  %v2072_v49 = vadd.f32 %v2066_v14, %v1963_v48 }
 0x13e   : > { %v2382_v46 = vadd.f32 %v2374_v12, %v2265_v43  ;;  %v2167_v36 = vadd.f32 %v2161_v17, %v2072_v49 }
 0x143   : > { %v2260_v18 = vpop.f32.mrf.mxu2  ;;  %v2068_v59 = vpop.f32.mrf.mxu0 }
 0x144   : > { %v2377_v34 = vpop.f32.mrf.mxu3  ;;  %v2163_v21 = vpop.f32.mrf.mxu1  ;;  %v2266_v40 = vadd.f32 %v2260_v18, %v2167_v36 }
 0x146   : > { %v2383_v13 = vadd.f32 %v2377_v34, %v2266_v40 }
 0x14b   : > { %v2262_v24 = vpop.f32.mrf.mxu2  ;;  %v2467_v50 = vpop.f32.mrf.mxu0 }
 0x14c   : > { %v2379_v25 = vpop.f32.mrf.mxu3  ;;  %v2566_v20 = vpop.f32.mrf.mxu1  ;;  %v2476_v30 = vadd.f32 %v2467_v50, %v2381_v37 }
 0x14e   : > { %v2575_v45 = vadd.f32 %v2566_v20, %v2476_v30 }
 0x153   : > { %v2675_v26 = vpop.f32.mrf.mxu2  ;;  %v2469_v51 = vpop.f32.mrf.mxu0 }
 0x154   : > { %v2765_v27 = vpop.f32.mrf.mxu3  ;;  %v2568_v19 = vpop.f32.mrf.mxu1  ;;  %v2684_v47 = vadd.f32 %v2675_v26, %v2575_v45  ;;  %v2477_v0 = vadd.f32 %v2469_v51, %v2382_v46 }
 0x156   : > { %v2774_v55 = vadd.f32 %v2765_v27, %v2684_v47  ;;  %v2576_v38 = vadd.f32 %v2568_v19, %v2477_v0 }
 0x15b   : > { %v2677_v29 = vpop.f32.mrf.mxu2  ;;  %v2472_v31 = vpop.f32.mrf.mxu0 }
 0x15c   : > { %v2767_v52 = vpop.f32.mrf.mxu3  ;;  %v2571_v32 = vpop.f32.mrf.mxu1  ;;  %v2685_v60 = vadd.f32 %v2677_v29, %v2576_v38  ;;  %v2478_v3 = vadd.f32 %v2472_v31, %v2383_v13 }
 0x15e   : > { %v2775_v2 = vadd.f32 %v2767_v52, %v2685_v60  ;;  %v2577_v8 = vadd.f32 %v2571_v32, %v2478_v3 }
 0x163   : > { %v2680_v42 = vpop.f32.mrf.mxu2  ;;  %v2474_v15 = vpop.f32.mrf.mxu0 }
 0x164   : > { %v2770_v16 = vpop.f32.mrf.mxu3  ;;  %v2573_v44 = vpop.f32.mrf.mxu1  ;;  %v2686_v62 = vadd.f32 %v2680_v42, %v2577_v8 }
 0x166   : > { %v2776_v34 = vadd.f32 %v2770_v16, %v2686_v62 }
 0x16b   : > { %v2682_v54 = vpop.f32.mrf.mxu2  ;;  %v2870_v53 = vpop.f32.mrf.mxu0 }
 0x16c   : > { %v2772_v1 = vpop.f32.mrf.mxu3  ;;  %v2979_v57 = vpop.f32.mrf.mxu1  ;;  %v2879_v58 = vadd.f32 %v2870_v53, %v2774_v55 }
 0x16e   : > { %v2988_v22 = vadd.f32 %v2979_v57, %v2879_v58 }
 0x173   : > { %v3074_v63 = vpop.f32.mrf.mxu2  ;;  %v2872_v48 = vpop.f32.mrf.mxu0 }
 0x174   : > { %v2875_v4 = vpop.f32.mrf.mxu3  ;;  %v3083_v5 = vadd.f32 %v3074_v63, %v2988_v22  ;;  %v2981_v6 = vpop.f32.mrf.mxu1  ;;  %v2880_v56 = vadd.f32 %v2872_v48, %v2775_v2 }
 0x175   : > { %v2881_v20 = vadd.f32 %v2875_v4, %v2776_v34 }
 0x176   : > { %v3090_v7 = vadd.f32 %v4903_v61, %v3083_v5  ;;  %v2989_v10 = vadd.f32 %v2981_v6, %v2880_v56 }
 0x178   : > { %v3093_v35 = vmax.f32 %v3090_v7, 0.0 }
 0x17a   : > { %v3096_v9 = vpack.c.bf16 %v3093_v35, %v3093_v35 }
 0x17b   : > { %v3076_v11 = vpop.f32.mrf.mxu2 }
 0x17c   : > { %v3102_v12 = vrot.slane %v3096_v9, 3  ;;  %v3084_v14 = vadd.f32 %v3076_v11, %v2989_v10  ;;  %v2877_v17 = vpop.f32.mrf.mxu3  ;;  %v2984_v18 = vpop.f32.mrf.mxu1 }
 0x17d   : > { %v2990_v19 = vadd.f32 %v2984_v18, %v2881_v20 }
 0x17e   : > { %v3108_v59 = vsel %vm3105_vm6, %v3096_v9, %v3102_v12  ;;  %v3114_v21 = vsel %vm3113_vm7, %v3096_v9, %v3102_v12  ;;  %v3091_v24 = vadd.f32 %v4903_v61, %v3084_v14  ;;  %v3110_v50 = vsel %vm3109_vm8, %v3096_v9, %v3102_v12 }
 0x17f   : > { %v3116_v25 = vrot.slane %v3114_v21, 3  ;;  %3135 = vst [vmem:[#allocation1] ss:$2 sm:$0xff] %v3108_v59  ;;  %v3112_v27 = vrot.slane %v3110_v50, 1 }
 0x180   : > { %v3094_v26 = vmax.f32 %v3091_v24, 0.0 }
 0x181   : > { %3142 = vst [vmem:[#allocation1 + $0x10] ss:$2 sm:$0xff] %v3116_v25 }
 0x182   : > { %v3097_v51 = vpack.c.bf16 %v3094_v26, %v3094_v26  ;;  %3138 = vst [vmem:[#allocation1 + $0x1] ss:$2 sm:$0xff] %v3112_v27 }
 0x183   : > { %v3079_v23 = vpop.f32.mrf.mxu2 }
 0x184   : > { %v3103_v28 = vrot.slane %v3097_v51, 3  ;;  %v3085_v29 = vadd.f32 %v3079_v23, %v2990_v19  ;;  %v2986_v41 = vpop.f32.mrf.mxu1 }
 0x186   : > { %v3119_v52 = vsel %vm3105_vm6, %v3097_v51, %v3103_v28  ;;  %v3124_v31 = vsel %vm3113_vm7, %v3097_v51, %v3103_v28  ;;  %v3092_v32 = vadd.f32 %v4903_v61, %v3085_v29  ;;  %v3121_v33 = vsel %vm3120_vm9, %v3097_v51, %v3103_v28 }
 0x187   : > { %v3126_v37 = vrot.slane %v3124_v31, 3  ;;  %3144 = vst [vmem:[#allocation1 + $0x11] ss:$2 sm:$0xff] %v3119_v52  ;;  %v3123_v39 = vrot.slane %v3121_v33, 2 }
 0x188   : > { %v3095_v30 = vmax.f32 %v3092_v32, 0.0 }
 0x189   : > { %3151 = vst [vmem:[#allocation1 + $0x21] ss:$2 sm:$0xff] %v3126_v37  ;;  %v3139_v42 = vld [vmem:[#allocation1] sm:$0xff] }
 0x18a   : > { %v3098_v43 = vpack.c.bf16 %v3095_v30, %v3095_v30  ;;  %3148 = vst [vmem:[#allocation1 + $0x20] ss:$2 sm:$0xff] %v3123_v39 }
 0x18b   : > { %3164 = vst [vmem:[%s342_s6] sm:$0x3] %v3139_v42  ;;  %v3081_v16 = vpop.f32.mrf.mxu2 }
 0x18c   : > { %v3104_v15 = vrot.slane %v3098_v43, 3 }
 0x18e   : > { %v3145_v44 = vld [vmem:[#allocation1 + $0x10] sm:$0xff]  ;;  %v3129_v45 = vsel %vm3109_vm8, %v3098_v43, %v3104_v15  ;;  %v3132_v46 = vsel %vm3120_vm9, %v3098_v43, %v3104_v15 }
 0x18f   : > { %3165 = vst [vmem:[%s342_s6 + $0x2] sm:$0x3] %v3145_v44  ;;  %v3131_v49 = vrot.slane %v3129_v45, 1  ;;  %v3134_v47 = vrot.slane %v3132_v46, 2 }
 0x191   : > { %v3152_v0 = vld [vmem:[#allocation1 + $0x20] sm:$0xff]  ;;  %3155 = vst [vmem:[#allocation1 + $0x30] ss:$2 sm:$0xff] %v3131_v49 }
 0x192   : > { %3158 = vst [vmem:[#allocation1 + $0x31] ss:$2 sm:$0xff] %v3134_v47 }
 0x193   : > { %3166 = vst [vmem:[%s342_s6 + $0x4] sm:$0x3] %v3152_v0 }
 0x199   : > { %v3159_v54 = vld [vmem:[#allocation1 + $0x30] sm:$0xff] }
 0x19a   : > { %3167 = vst [vmem:[%s342_s6 + $0x6] sm:$0x3] %v3159_v54 }
 0x19b PF: > { %s15_s22 = sadd.s32 1, %s4942_s22   ;;  %s6046_s18 = smov %s4934_s20 }
 0x19c   : > { %p12_p10 = scmp.ge.s32.totalorder %s15_s22, 10   ;;  %s6047_s19 = smov %s4938_s21 }
 0x19d   : > { %s6048_s20 = smov %s6051_s23  ;;  %s6049_s21 = smov %s6055_s24 }
 0x19e   :  { %14 = sbr.rel (!%p12_p10) target bundleno = 3 (0x3), region = 109 }

// kernel: unet_encoder_forward.11
= control target key start
LH: loop header
LB: loop body
LE: loop exit
PB: predicated region body
PF: predicated region fallthrough
CT: control target
= control target key end

     0   :  { %s4461_s18 = smov 0   ;;  %s4463_s19 = smov 0   ;;  %s5269_s0 = inlined_call_operand.vmem [shape: bf16[2,4,20,128], index: 0, kind: input, shape index: {}, may-alias: {0,1,2}]   ;;  %s5270_s1 = inlined_call_operand.vmem [shape: bf16[2,4,20,128], index: 1, kind: input, shape index: {}, may-alias: {0,1,2}]   ;;  %s5271_s2 = inlined_call_operand.vmem [shape: bf16[2,4,20,128], index: 2, kind: input, shape index: {}, may-alias: {0,1,2}]   ;;  %s5272_s3 = inlined_call_operand.vmem [shape: bf16[27,128,128], index: 3, kind: input, shape index: {}]   ;;  %s5273_s4 = inlined_call_operand.vmem [shape: f32[1,128], index: 4, kind: input, shape index: {}]   ;;  %s5274_s5 = inlined_call_operand.vmem [shape: bf16[2,2,2,2,128], index: 5, kind: output, shape index: {}]  }
   0x1   :  { %s4465_s20 = smov 0   ;;  %s4467_s21 = smov 0  }
   0x2   :  { %s4469_s22 = smov 0  }
   0x3 LB: > { %s24_s23 = sadd.s32 1, %s4421_s20  ;;  %s27_s24 = sadd.s32 1, %s4425_s21  ;;  %s4429_s22 = sphi %s4469_s22, %s15_s22   ;;  %s4425_s21 = sphi %s4467_s21, %s5279_s21   ;;  %s4421_s20 = sphi %s4465_s20, %s5278_s20   ;;  %s4417_s19 = sphi %s4463_s19, %s5277_s19   ;;  %s4413_s18 = sphi %s4461_s18, %s5276_s18  }
   0x4   : > { %p25_p0 = scmp.ge.s32.totalorder %s24_s23, 2  ;;  %p2842_p1 = scmp.ge.s32.totalorder %s4429_s22, 1 }
   0x5   : > { %p247_p2 = scmp.lt.s32.totalorder %s4429_s22, 5 }
   0x6   : > { %s5281_s23 = smov (%p25_p0, %s24_s23), 0  ;;  %s5283_s24 = smov (!%p25_p0, %s27_s24), %s4425_s21 }
   0x7   : > { %p248_p3 = pnand %p2842_p1, %p247_p2  ;;  %p29_p4 = scmp.ge.s32.totalorder %s5283_s24, 2 }
   0x8   : > { %p302_p5 = scmp.lt.s32.totalorder (!%p248_p3), %s4417_s19, 1  ;;  %p304_p6 = scmp.lt.s32.totalorder (!%p248_p3), %s4413_s18, 3 }
   0x9   : > { %s5285_s24 = smov (%p29_p4, %s5283_s24), 0  ;;  %251 = sbr.rel (%p248_p3) target bundleno = 386 (0x182), region = 40 }
   0xa   : > { %s311_s13 = sadd.s32 (!%p248_p3), 1, %s4413_s18  ;;  %s322_s11 = sadd.s32 (!%p248_p3), 2, %s4413_s18 }
   0xb   : > { %p4690_p7 = scmp.lt.s32.totalorder (!%p248_p3), %s311_s13, 3  ;;  %p325_p8 = scmp.lt.s32.totalorder (!%p248_p3), %s322_s11, 3 }
   0xc   : > { %p335_p9 = scmp.lt.s32.totalorder (!%p248_p3), %s4413_s18, 1 }
   0xe   : > { %v4145_v0 = vld [vmem:[%s5272_s3 + $0x78] sm:$0xff]  ;;  %v4144_v4 = vld [vmem:[%s5272_s3 + $0x70] sm:$0xff]  ;;  %s5287_s19 = smov (!%p302_p5, %s4417_s19), 1  ;;  %v4143_v8 = vld [vmem:[%s5272_s3 + $0x68] sm:$0xff]  ;;  %s5289_s13 = smov (!%p4690_p7, %s311_s13), 3  ;;  %vm2695_vm0 = vcmask 1041408  }
   0xf   : > { %v4137_v1 = vld [vmem:[%s5272_s3 + $0x38] sm:$0xff]  ;;  %437 = vmatpush.bf16.msra.mxu0 %v4145_v0  ;;  %v4136_v5 = vld [vmem:[%s5272_s3 + $0x30] sm:$0xff]  ;;  %s305_s16 = scalar_select %p304_p6, %s4413_s18, 3  ;;  %v4135_v9 = vld [vmem:[%s5272_s3 + $0x28] sm:$0xff]  ;;  %vm2699_vm1 = vcmask 1043458  }
  0x10   : > { %v4153_v2 = vld [vmem:[%s5272_s3 + $0xb8] sm:$0xff]  ;;  %498 = vmatpush.bf16.msra.mxu1 %v4137_v1  ;;  %v4152_v6 = vld [vmem:[%s5272_s3 + $0xb0] sm:$0xff]  ;;  %s4522_s17 = smul.u32 12, %s5287_s19  ;;  %v4151_v10 = vld [vmem:[%s5272_s3 + $0xa8] sm:$0xff]  ;;  %s5291_s11 = smov (!%p325_p8, %s322_s11), 3 }
  0x11   : > { %v4161_v3 = vld [vmem:[%s5272_s3 + $0xf8] sm:$0xff]  ;;  %582 = vmatpush.bf16.msra.mxu2 %v4153_v2  ;;  %v4160_v7 = vld [vmem:[%s5272_s3 + $0xf0] sm:$0xff]  ;;  %s4346_s25 = smul.u32 3, %s305_s16  ;;  %v4159_v11 = vld [vmem:[%s5272_s3 + $0xe8] sm:$0xff]  ;;  %s5293_s18 = smov (!%p335_p9, %s4413_s18), 1 }
  0x12   : > { %670 = vmatpush.bf16.msra.mxu3 %v4161_v3  ;;  %v4142_v12 = vld [vmem:[%s5272_s3 + $0x60] sm:$0xff]  ;;  %v4141_v16 = vld [vmem:[%s5272_s3 + $0x58] sm:$0xff]  ;;  %v4140_v21 = vld [vmem:[%s5272_s3 + $0x50] sm:$0xff]  ;;  %s4348_s30 = smul.u32 3, %s5289_s13  ;;  %s2846_s13 = sshll.u32 %s5293_s18, 1 }
  0x13   : > { %438 = vmatpush.bf16.msra.mxu0 %v4144_v4  ;;  %s308_s9 = sadd.s32 %s4522_s17, %s4346_s25  ;;  %v4134_v13 = vld [vmem:[%s5272_s3 + $0x20] sm:$0xff]  ;;  %v4133_v17 = vld [vmem:[%s5272_s3 + $0x18] sm:$0xff]  ;;  %v4132_v22 = vld [vmem:[%s5272_s3 + $0x10] sm:$0xff]  ;;  %s2847_s16 = sshll.u32 %s5287_s19, 2 }
  0x14   : > { %499 = vmatpush.bf16.msra.mxu1 %v4136_v5  ;;  %v4150_v14 = vld [vmem:[%s5272_s3 + $0xa0] sm:$0xff]  ;;  %s2843_s25 = sshll.u32 %s308_s9, 2  ;;  %v4149_v18 = vld [vmem:[%s5272_s3 + $0x98] sm:$0xff]  ;;  %v4148_v23 = vld [vmem:[%s5272_s3 + $0x90] sm:$0xff]  ;;  %s318_s26 = sadd.s32 %s4348_s30, %s4522_s17 }
  0x15   : > { %583 = vmatpush.bf16.msra.mxu2 %v4152_v6  ;;  %v4158_v15 = vld [vmem:[%s5272_s3 + $0xe0] sm:$0xff]  ;;  %s4558_s8 = scalar_lea.vmem %s5269_s0, %s2843_s25  ;;  %v4157_v19 = vld [vmem:[%s5272_s3 + $0xd8] sm:$0xff]  ;;  %v4156_v25 = vld [vmem:[%s5272_s3 + $0xd0] sm:$0xff]  ;;  %s2844_s10 = sshll.u32 %s318_s26, 2 }
  0x16   : > { %671 = vmatpush.bf16.msra.mxu3 %v4160_v7  ;;  %v358_v20 = vld [vmem:[%s4558_s8 + $0x4] sm:$0x1]  ;;  %v511_v26 = vld [vmem:[%s4558_s8] sm:$0xe]  ;;  %v4139_v29 = vld [vmem:[%s5272_s3 + $0x48] sm:$0xff]  ;;  %s4767_s27 = scalar_lea.vmem %s5270_s1, %s2844_s10  ;;  %s4349_s9 = smul.u32 3, %s5291_s11 }
  0x17   : > { %439 = vmatpush.bf16.msra.mxu0 %v4143_v8  ;;  %v379_v24 = vunpack.c.l.b16 %v358_v20  ;;  %v341_v27 = vld [vmem:[%s4558_s8] sm:$0xf]  ;;  %v4131_v30 = vld [vmem:[%s5272_s3 + $0x8] sm:$0xff]  ;;  %v530_v31 = vunpack.c.l.b16 %v511_v26  ;;  %v597_v34 = vld [vmem:[%s4558_s8 + $0x4] sm:$0x3] }
  0x18   : > { %500 = vmatpush.bf16.msra.mxu1 %v4135_v9  ;;  %v378_v28 = vunpack.c.l.b16 %v341_v27  ;;  %v4588_v33 = vld [vmem:[%s4558_s8] sm:$0xc]  ;;  %v4147_v35 = vld [vmem:[%s5272_s3 + $0x88] sm:$0xff]  ;;  %v618_v40 = vunpack.c.l.b16 %v597_v34  ;;  %v4169_v46 = vld [vmem:[%s5272_s3 + $0x138] sm:$0xff]  ;;  %s329_s25 = sadd.s32 %s4349_s9, %s4522_s17 }
  0x19   : > { %584 = vmatpush.bf16.msra.mxu2 %v4151_v10  ;;  %v4155_v36 = vld [vmem:[%s5272_s3 + $0xc8] sm:$0xff]  ;;  %v617_v39 = vunpack.c.l.b16 %v4588_v33  ;;  %v4138_v41 = vld [vmem:[%s5272_s3 + $0x40] sm:$0xff]  ;;  %v531_v43 = vpack.c.b16 %v379_v24, %v530_v31  ;;  %v4177_v47 = vld [vmem:[%s5272_s3 + $0x178] sm:$0xff]  ;;  %s2845_s17 = sshll.u32 %s329_s25, 2 }
  0x1a   : > { %672 = vmatpush.bf16.msra.mxu3 %v4159_v11  ;;  %v380_v32 = vpack.c.b16 %v379_v24, %v378_v28  ;;  %v4130_v42 = vld [vmem:[%s5272_s3] sm:$0xff]  ;;  %v4185_v48 = vld [vmem:[%s5272_s3 + $0x1b8] sm:$0xff]  ;;  %v4168_v54 = vld [vmem:[%s5272_s3 + $0x130] sm:$0xff]  ;;  %s4990_s11 = scalar_lea.vmem %s5271_s2, %s2845_s17 }
  0x1b   : > { %440 = vmatpush.bf16.msra.mxu0 %v4142_v12  ;;  %v4146_v45 = vld [vmem:[%s5272_s3 + $0x80] sm:$0xff]  ;;  %v619_v51 = vpack.c.b16 %v618_v40, %v617_v39  ;;  %v4193_v52 = vld [vmem:[%s5272_s3 + $0x1f8] sm:$0xff]  ;;  %v532_v53 = vrot.slane %v531_v43, 1  ;;  %v4176_v55 = vld [vmem:[%s5272_s3 + $0x170] sm:$0xff] }
  0x1c   : > { %501 = vmatpush.bf16.msra.mxu1 %v4134_v13  ;;  %v384_v37 = vshll.u32 %v380_v32, 16  ;;  %v382_v38 = vshrl.u32 %v380_v32, 16  ;;  %v4154_v49 = vld [vmem:[%s5272_s3 + $0xc0] sm:$0xff]  ;;  %v4184_v56 = vld [vmem:[%s5272_s3 + $0x1b0] sm:$0xff]  ;;  %v4167_v59 = vld [vmem:[%s5272_s3 + $0x128] sm:$0xff] }
  0x1d   : > { %585 = vmatpush.bf16.msra.mxu2 %v4150_v14  ;;  %v620_v57 = vrot.slane %v619_v51, 2  ;;  %v4192_v58 = vld [vmem:[%s5272_s3 + $0x1f0] sm:$0xff]  ;;  %v4175_v60 = vld [vmem:[%s5272_s3 + $0x168] sm:$0xff]  ;;  %v4166_v63 = vld [vmem:[%s5272_s3 + $0x120] sm:$0xff] }
  0x1e   : > { %673 = vmatpush.bf16.msra.mxu3 %v4158_v15  ;;  %v386_v44 = vrot.slane %v384_v37, 1  ;;  %v4183_v61 = vld [vmem:[%s5272_s3 + $0x1a8] sm:$0xff]  ;;  %v4174_v0 = vld [vmem:[%s5272_s3 + $0x160] sm:$0xff]  ;;  %v4165_v4 = vld [vmem:[%s5272_s3 + $0x118] sm:$0xff] }
  0x1f   : > { %441 = vmatpush.bf16.msra.mxu0 %v4141_v16  ;;  %v4191_v62 = vld [vmem:[%s5272_s3 + $0x1e8] sm:$0xff]  ;;  %v4182_v1 = vld [vmem:[%s5272_s3 + $0x1a0] sm:$0xff]  ;;  %v4173_v7 = vld [vmem:[%s5272_s3 + $0x158] sm:$0xff] }
  0x20   : > { %502 = vmatpush.bf16.msra.mxu1 %v4133_v17  ;;  %v387_v50 = vor.u32 %v386_v44, %v382_v38  ;;  %v684_v2 = vld [vmem:[%s4558_s8 + $0x4] sm:$0x7]  ;;  %v4666_v6 = vld [vmem:[%s4558_s8 + $0x8] sm:$0x1]  ;;  %v4181_v8 = vld [vmem:[%s5272_s3 + $0x198] sm:$0xff] }
  0x21   : > { %586 = vmatpush.bf16.msra.mxu2 %v4149_v18  ;;  %v4190_v3 = vld [vmem:[%s5272_s3 + $0x1e0] sm:$0xff]  ;;  %v703_v9 = vunpack.c.l.b16 %v684_v2  ;;  %v4189_v10 = vld [vmem:[%s5272_s3 + $0x1d8] sm:$0xff]  ;;  %v963_v12 = vunpack.c.l.b16 %v4666_v6  ;;  %v4164_v13 = vld [vmem:[%s5272_s3 + $0x110] sm:$0xff] }
  0x22   : > { %674 = vmatpush.bf16.msra.mxu3 %v4157_v19  ;;  %v941_v5 = vld [vmem:[%s4558_s8 + $0x4] sm:$0xf]  ;;  %v4172_v14 = vld [vmem:[%s5272_s3 + $0x150] sm:$0xff]  ;;  %v776_v17 = vld [vmem:[%s4558_s8] sm:$0x8] }
  0x23   : > { %442 = vmatpush.bf16.msra.mxu0 %v4140_v21  ;;  %v962_v11 = vunpack.c.l.b16 %v941_v5  ;;  %v4180_v15 = vld [vmem:[%s5272_s3 + $0x190] sm:$0xff]  ;;  %v704_v16 = vpack.c.b16 %v703_v9, %v617_v39  ;;  %v4163_v20 = vld [vmem:[%s5272_s3 + $0x108] sm:$0xff]  ;;  %v4162_v28 = vld [vmem:[%s5272_s3 + $0x100] sm:$0xff] }
  0x24   : > { %503 = vmatpush.bf16.msra.mxu1 %v4132_v22  ;;  %v4188_v18 = vld [vmem:[%s5272_s3 + $0x1d0] sm:$0xff]  ;;  %v4171_v21 = vld [vmem:[%s5272_s3 + $0x148] sm:$0xff]  ;;  %v4201_v34 = vld [vmem:[%s5272_s3 + $0x238] sm:$0xff] }
  0x25   : > { %587 = vmatpush.bf16.msra.mxu2 %v4148_v23  ;;  %v964_v19 = vpack.c.b16 %v963_v12, %v962_v11  ;;  %v4179_v22 = vld [vmem:[%s5272_s3 + $0x188] sm:$0xff]  ;;  %v706_v23 = vshrl.u32 %v704_v16, 16  ;;  %v709_v24 = vshll.u32 %v704_v16, 16  ;;  %v4186_v37 = vld [vmem:[%s5272_s3 + $0x1c0] sm:$0xff]  ;;  %v4225_v40 = vld [vmem:[%s5272_s3 + $0x2f8] sm:$0xff] }
  0x26   : > { %675 = vmatpush.bf16.msra.mxu3 %v4156_v25  ;;  %v795_v25 = vunpack.c.l.b16 %v776_v17  ;;  %v4187_v26 = vld [vmem:[%s5272_s3 + $0x1c8] sm:$0xff]  ;;  %v4200_v44 = vld [vmem:[%s5272_s3 + $0x230] sm:$0xff]  ;;  %v4233_v6 = vld [vmem:[%s5272_s3 + $0x338] sm:$0xff] }
  0x27   : > { %443 = vmatpush.bf16.msra.mxu0 %v4139_v29  ;;  %v4170_v29 = vld [vmem:[%s5272_s3 + $0x140] sm:$0xff]  ;;  %v708_v31 = vrot.slane %v706_v23, 2  ;;  %v711_v32 = vrot.slane %v709_v24, 3  ;;  %v966_v38 = vshrl.u32 %v964_v19, 16  ;;  %v4215_v51 = vld [vmem:[%s5272_s3 + $0x2a8] sm:$0xff]  ;;  %v4204_v2 = vld [vmem:[%s5272_s3 + $0x250] sm:$0xff] }
  0x28   : > { %504 = vmatpush.bf16.msra.mxu1 %v4131_v30  ;;  %v4178_v30 = vld [vmem:[%s5272_s3 + $0x180] sm:$0xff]  ;;  %v796_v33 = vpack.c.b16 %v703_v9, %v795_v25  ;;  %v4212_v5 = vld [vmem:[%s5272_s3 + $0x290] sm:$0xff]  ;;  %v4203_v11 = vld [vmem:[%s5272_s3 + $0x248] sm:$0xff] }
  0x29   : > { %588 = vmatpush.bf16.msra.mxu2 %v4147_v35  ;;  %v4209_v35 = vld [vmem:[%s5272_s3 + $0x278] sm:$0xff]  ;;  %v1294_v9 = vld [vmem:[%s4767_s27] sm:$0xe] }
  0x2a   : > { %676 = vmatpush.bf16.msra.mxu3 %v4155_v36  ;;  %v4217_v36 = vld [vmem:[%s5272_s3 + $0x2b8] sm:$0xff]  ;;  %v797_v43 = vrot.slane %v796_v33, 3  ;;  %v1313_v16 = vunpack.c.l.b16 %v1294_v9  ;;  %v4218_v25 = vld [vmem:[%s5272_s3 + $0x2c0] sm:$0xff]  ;;  %v4248_v33 = vld [vmem:[%s5272_s3 + $0x3b0] sm:$0xff] }
  0x2b   : > { %444 = vmatpush.bf16.msra.mxu0 %v4138_v41  ;;  %v861_v41 = vld [vmem:[%s4558_s8 + $0x4] sm:$0xf]  ;;  %v4249_v23 = vld [vmem:[%s5272_s3 + $0x3b8] sm:$0xff] }
  0x2c   : > { %505 = vmatpush.bf16.msra.mxu1 %v4130_v42  ;;  %v712_v42 = vor.u32 %v711_v32, %v708_v31  ;;  %v4240_v32 = vld [vmem:[%s5272_s3 + $0x370] sm:$0xff] }
  0x2d   : > { %589 = vmatpush.bf16.msra.mxu2 %v4146_v45  ;;  %v4208_v45 = vld [vmem:[%s5272_s3 + $0x270] sm:$0xff] }
  0x2e   : > { %677 = vmatpush.bf16.msra.mxu3 %v4154_v49  ;;  %445 = vmatmul.bf16.vlgmr.msra.gmra.mxu0 %v387_v50  ;;  %v4199_v49 = vld [vmem:[%s5272_s3 + $0x228] sm:$0xff] }
  0x2f   : > { %762 = vmatpush.bf16.msrb.mxu0 %v4169_v46  ;;  %506 = vmatmul.bf16.vlgmr.msra.gmra.mxu1 %v341_v27  ;;  %v968_v27 = vshll.u32 %v964_v19, 16  ;;  %v4216_v46 = vld [vmem:[%s5272_s3 + $0x2b0] sm:$0xff]  ;;  %v4207_v50 = vld [vmem:[%s5272_s3 + $0x268] sm:$0xff]  ;;  %v4202_v19 = vld [vmem:[%s5272_s3 + $0x240] sm:$0xff] }
  0x30   : > { %847 = vmatpush.bf16.msrb.mxu1 %v4177_v47  ;;  %590 = vmatmul.bf16.vlgmr.msra.gmra.mxu2 %v532_v53  ;;  %v4198_v53 = vld [vmem:[%s5272_s3 + $0x220] sm:$0xff] }
  0x31   : > { %927 = vmatpush.bf16.msrb.mxu2 %v4185_v48  ;;  %678 = vmatmul.bf16.vlgmr.msra.gmra.mxu3 %v620_v57  ;;  %v970_v39 = vrot.slane %v968_v27, 1  ;;  %v4224_v48 = vld [vmem:[%s5272_s3 + $0x2f0] sm:$0xff]  ;;  %v1201_v57 = vld [vmem:[%s4767_s27 + $0x4] sm:$0x1] }
  0x32   : > { %1021 = vmatpush.bf16.msrb.mxu3 %v4193_v52  ;;  %v4223_v52 = vld [vmem:[%s5272_s3 + $0x2e8] sm:$0xff] }
  0x33   : > { %763 = vmatpush.bf16.msrb.mxu0 %v4168_v54  ;;  %v971_v47 = vor.u32 %v970_v39, %v966_v38  ;;  %v4206_v54 = vld [vmem:[%s5272_s3 + $0x260] sm:$0xff]  ;;  %v4255_v38 = vld [vmem:[%s5272_s3 + $0x3e8] sm:$0xff] }
  0x34   : > { %848 = vmatpush.bf16.msrb.mxu1 %v4176_v55  ;;  %v4214_v55 = vld [vmem:[%s5272_s3 + $0x2a0] sm:$0xff] }
  0x35   : > { %928 = vmatpush.bf16.msrb.mxu2 %v4184_v56  ;;  %v4782_v56 = vld [vmem:[%s4767_s27] sm:$0xff]  }
  0x36   : > { %1022 = vmatpush.bf16.msrb.mxu3 %v4192_v58  ;;  %v4222_v58 = vld [vmem:[%s5272_s3 + $0x2e0] sm:$0xff] }
  0x37   : > { %764 = vmatpush.bf16.msrb.mxu0 %v4167_v59  ;;  %v4197_v59 = vld [vmem:[%s5272_s3 + $0x218] sm:$0xff]  ;;  %v4230_v39 = vld [vmem:[%s5272_s3 + $0x320] sm:$0xff] }
  0x38   : > { %849 = vmatpush.bf16.msrb.mxu1 %v4175_v60  ;;  %v4205_v60 = vld [vmem:[%s5272_s3 + $0x258] sm:$0xff] }
  0x39   : > { %929 = vmatpush.bf16.msrb.mxu2 %v4183_v61  ;;  %v1221_v61 = vunpack.c.l.b16 %v4782_v56 }
  0x3a   : > { %1023 = vmatpush.bf16.msrb.mxu3 %v4191_v62  ;;  %v1222_v62 = vunpack.c.l.b16 %v1201_v57  ;;  %v1559_v57 = vld [vmem:[%s4767_s27] sm:$0x8] }
  0x3b   : > { %765 = vmatpush.bf16.msrb.mxu0 %v4166_v63  ;;  %v4213_v63 = vld [vmem:[%s5272_s3 + $0x298] sm:$0xff] }
  0x3c   : > { %850 = vmatpush.bf16.msrb.mxu1 %v4174_v0  ;;  %v4221_v0 = vld [vmem:[%s5272_s3 + $0x2d8] sm:$0xff]  ;;  %v1314_v24 = vpack.c.b16 %v1222_v62, %v1313_v16 }
  0x3d   : > { %930 = vmatpush.bf16.msrb.mxu2 %v4182_v1  ;;  %v4196_v1 = vld [vmem:[%s5272_s3 + $0x210] sm:$0xff] }
  0x3e   : > { %1024 = vmatpush.bf16.msrb.mxu3 %v4190_v3  ;;  %v1035_v3 = vld [vmem:[%s4558_s8 + $0x4] sm:$0xe]  ;;  %v1315_v31 = vrot.slane %v1314_v24, 1  ;;  %v4271_v24 = vld [vmem:[%s5272_s3 + $0x468] sm:$0xff]  ;;  %s339_s8 = sadd.s32 %s2847_s16, %s2846_s13 }
  0x3f   : > { %766 = vmatpush.bf16.msrb.mxu0 %v4165_v4  ;;  %v1223_v4 = vpack.c.b16 %v1222_v62, %v1221_v61  ;;  %v4235_v61 = vld [vmem:[%s5272_s3 + $0x348] sm:$0xff]  ;;  %v1578_v62 = vunpack.c.l.b16 %v1559_v57  ;;  %s340_s28 = scalar_lea.vmem %s5274_s5, %s339_s8 }
  0x40   : > { %851 = vmatpush.bf16.msrb.mxu1 %v4173_v7  ;;  %v4220_v7 = vld [vmem:[%s5272_s3 + $0x2d0] sm:$0xff] }
  0x41   : > { %931 = vmatpush.bf16.msrb.mxu2 %v4181_v8  ;;  %v1054_v8 = vunpack.c.l.b16 %v1035_v3  ;;  %v4226_v3 = vld [vmem:[%s5272_s3 + $0x300] sm:$0xff] }
  0x42   : > { %1025 = vmatpush.bf16.msrb.mxu3 %v4189_v10  ;;  %v4195_v10 = vld [vmem:[%s5272_s3 + $0x208] sm:$0xff] }
  0x43   : > { %767 = vmatpush.bf16.msrb.mxu0 %v4164_v13  ;;  %v1227_v13 = vshll.u32 %v1223_v4, 16  ;;  %v1055_v17 = vpack.c.b16 %v963_v12, %v1054_v8  ;;  %v4241_v12 = vld [vmem:[%s5272_s3 + $0x378] sm:$0xff] }
  0x44   : > { %852 = vmatpush.bf16.msrb.mxu1 %v4172_v14  ;;  %v4211_v14 = vld [vmem:[%s5272_s3 + $0x288] sm:$0xff] }
  0x45   : > { %932 = vmatpush.bf16.msrb.mxu2 %v4180_v15  ;;  %v4219_v15 = vld [vmem:[%s5272_s3 + $0x2c8] sm:$0xff] }
  0x46   : > { %1026 = vmatpush.bf16.msrb.mxu3 %v4188_v18  ;;  %v4194_v18 = vld [vmem:[%s5272_s3 + $0x200] sm:$0xff] }
  0x47   : > { %768 = vmatpush.bf16.msrb.mxu0 %v4163_v20  ;;  %v1225_v20 = vshrl.u32 %v1223_v4, 16 }
  0x48   : > { %853 = vmatpush.bf16.msrb.mxu1 %v4171_v21  ;;  %v1229_v21 = vrot.slane %v1227_v13, 1  ;;  %v4273_v13 = vld [vmem:[%s5272_s3 + $0x478] sm:$0xff] }
  0x49   : > { %933 = vmatpush.bf16.msrb.mxu2 %v4179_v22  ;;  %v4210_v22 = vld [vmem:[%s5272_s3 + $0x280] sm:$0xff] }
  0x4a   : > { %1027 = vmatpush.bf16.msrb.mxu3 %v4187_v26  ;;  %v1056_v26 = vrot.slane %v1055_v17, 1  ;;  %v1230_v27 = vor.u32 %v1229_v21, %v1225_v20  ;;  %v4289_v17 = vld [vmem:[%s5272_s3 + $0x4f8] sm:$0xff]  ;;  %v4264_v20 = vld [vmem:[%s5272_s3 + $0x430] sm:$0xff]  ;;  %v1644_v21 = vld [vmem:[%s4767_s27 + $0x4] sm:$0xf] }
  0x4b   : > { %769 = vmatpush.bf16.msrb.mxu0 %v4162_v28  ;;  %v4257_v28 = vld [vmem:[%s5272_s3 + $0x3f8] sm:$0xff] }
  0x4c   : > { %854 = vmatpush.bf16.msrb.mxu1 %v4170_v29  ;;  %v4232_v29 = vld [vmem:[%s5272_s3 + $0x330] sm:$0xff] }
  0x4d   : > { %934 = vmatpush.bf16.msrb.mxu2 %v4178_v30  ;;  %v1120_v30 = vld [vmem:[%s4767_s27] sm:$0xf] }
  0x4e   : > { %1028 = vmatpush.bf16.msrb.mxu3 %v4186_v37  ;;  %770 = vmatmul.bf16.vlgmr.msrb.gmra.mxu0 %v712_v42  ;;  %v4247_v37 = vld [vmem:[%s5272_s3 + $0x3a8] sm:$0xff]  ;;  %v1379_v42 = vld [vmem:[%s4767_s27] sm:$0xc] }
  0x4f   : > { %1106 = vmatpush.bf16.msra.mxu0 %v4201_v34  ;;  %855 = vmatmul.bf16.vlgmr.msrb.gmra.mxu1 %v797_v43  ;;  %v4256_v34 = vld [vmem:[%s5272_s3 + $0x3f0] sm:$0xff]  ;;  %v1467_v43 = vld [vmem:[%s4767_s27 + $0x4] sm:$0x7] }
  0x50   : > { %1186 = vmatpush.bf16.msra.mxu1 %v4209_v35  ;;  %935 = vmatmul.bf16.vlgmr.msrb.gmra.mxu2 %v861_v41  ;;  %v4231_v35 = vld [vmem:[%s5272_s3 + $0x328] sm:$0xff]  ;;  %v4246_v41 = vld [vmem:[%s5272_s3 + $0x3a0] sm:$0xff] }
  0x51   : > { %1280 = vmatpush.bf16.msra.mxu2 %v4217_v36  ;;  %1029 = vmatmul.bf16.vlgmr.msrb.gmra.mxu3 %v971_v47  ;;  %v4239_v36 = vld [vmem:[%s5272_s3 + $0x368] sm:$0xff]  ;;  %v1400_v47 = vunpack.c.l.b16 %v1379_v42 }
  0x52   : > { %1365 = vmatpush.bf16.msra.mxu3 %v4225_v40  ;;  %v4238_v40 = vld [vmem:[%s5272_s3 + $0x360] sm:$0xff] }
  0x53   : > { %1107 = vmatpush.bf16.msra.mxu0 %v4200_v44  ;;  %v4254_v44 = vld [vmem:[%s5272_s3 + $0x3e0] sm:$0xff] }
  0x54   : > { %1187 = vmatpush.bf16.msra.mxu1 %v4208_v45  ;;  %v4229_v45 = vld [vmem:[%s5272_s3 + $0x318] sm:$0xff] }
  0x55   : > { %1281 = vmatpush.bf16.msra.mxu2 %v4216_v46  ;;  %v4237_v46 = vld [vmem:[%s5272_s3 + $0x358] sm:$0xff] }
  0x56   : > { %1366 = vmatpush.bf16.msra.mxu3 %v4224_v48  ;;  %v1486_v48 = vunpack.c.l.b16 %v1467_v43  ;;  %v4268_v43 = vld [vmem:[%s5272_s3 + $0x450] sm:$0xff] }
  0x57   : > { %1108 = vmatpush.bf16.msra.mxu0 %v4199_v49  ;;  %v4245_v49 = vld [vmem:[%s5272_s3 + $0x398] sm:$0xff] }
  0x58   : > { %1188 = vmatpush.bf16.msra.mxu1 %v4207_v50  ;;  %v4253_v50 = vld [vmem:[%s5272_s3 + $0x3d8] sm:$0xff]  ;;  %v1579_v8 = vpack.c.b16 %v1486_v48, %v1578_v62 }
  0x59   : > { %1282 = vmatpush.bf16.msra.mxu2 %v4215_v51  ;;  %v4228_v51 = vld [vmem:[%s5272_s3 + $0x310] sm:$0xff]  ;;  %v4297_v62 = vld [vmem:[%s5272_s3 + $0x538] sm:$0xff] }
  0x5a   : > { %1367 = vmatpush.bf16.msra.mxu3 %v4223_v52  ;;  %v4236_v52 = vld [vmem:[%s5272_s3 + $0x350] sm:$0xff] }
  0x5b   : > { %1109 = vmatpush.bf16.msra.mxu0 %v4198_v53  ;;  %v1380_v53 = vld [vmem:[%s4767_s27 + $0x4] sm:$0x3] }
  0x5c   : > { %1189 = vmatpush.bf16.msra.mxu1 %v4206_v54  ;;  %v1487_v54 = vpack.c.b16 %v1486_v48, %v1400_v47  ;;  %v4259_v48 = vld [vmem:[%s5272_s3 + $0x408] sm:$0xff] }
  0x5d   : > { %1283 = vmatpush.bf16.msra.mxu2 %v4214_v55  ;;  %v4244_v55 = vld [vmem:[%s5272_s3 + $0x390] sm:$0xff] }
  0x5e   : > { %1368 = vmatpush.bf16.msra.mxu3 %v4222_v58  ;;  %v4252_v58 = vld [vmem:[%s5272_s3 + $0x3d0] sm:$0xff] }
  0x5f   : > { %1110 = vmatpush.bf16.msra.mxu0 %v4197_v59  ;;  %v4227_v59 = vld [vmem:[%s5272_s3 + $0x308] sm:$0xff] }
  0x60   : > { %1190 = vmatpush.bf16.msra.mxu1 %v4205_v60  ;;  %v1401_v60 = vunpack.c.l.b16 %v1380_v53  ;;  %v4283_v53 = vld [vmem:[%s5272_s3 + $0x4c8] sm:$0xff] }
  0x61   : > { %1284 = vmatpush.bf16.msra.mxu2 %v4213_v63  ;;  %v1489_v63 = vshrl.u32 %v1487_v54, 16 }
  0x62   : > { %1369 = vmatpush.bf16.msra.mxu3 %v4221_v0  ;;  %v1492_v0 = vshll.u32 %v1487_v54, 16  ;;  %v1402_v4 = vpack.c.b16 %v1401_v60, %v1400_v47  ;;  %v4274_v60 = vld [vmem:[%s5272_s3 + $0x480] sm:$0xff] }
  0x63   : > { %1111 = vmatpush.bf16.msra.mxu0 %v4196_v1  ;;  %v4243_v1 = vld [vmem:[%s5272_s3 + $0x388] sm:$0xff]  ;;  %v1491_v9 = vrot.slane %v1489_v63, 2  ;;  %v4305_v63 = vld [vmem:[%s5272_s3 + $0x578] sm:$0xff] }
  0x64   : > { %1191 = vmatpush.bf16.msra.mxu1 %v4204_v2  ;;  %v4251_v2 = vld [vmem:[%s5272_s3 + $0x3c8] sm:$0xff]  ;;  %v1403_v16 = vrot.slane %v1402_v4, 2 }
  0x65   : > { %1285 = vmatpush.bf16.msra.mxu2 %v4212_v5  ;;  %v4234_v5 = vld [vmem:[%s5272_s3 + $0x340] sm:$0xff] }
  0x66   : > { %1370 = vmatpush.bf16.msra.mxu3 %v4220_v7  ;;  %v4265_v7 = vld [vmem:[%s5272_s3 + $0x438] sm:$0xff] }
  0x67   : > { %1112 = vmatpush.bf16.msra.mxu0 %v4195_v10  ;;  %v1494_v10 = vrot.slane %v1492_v0, 3 }
  0x68   : > { %1192 = vmatpush.bf16.msra.mxu1 %v4203_v11  ;;  %v4242_v11 = vld [vmem:[%s5272_s3 + $0x380] sm:$0xff] }
  0x69   : > { %1286 = vmatpush.bf16.msra.mxu2 %v4211_v14  ;;  %v4281_v14 = vld [vmem:[%s5272_s3 + $0x4b8] sm:$0xff] }
  0x6a   : > { %1371 = vmatpush.bf16.msra.mxu3 %v4219_v15  ;;  %v4250_v15 = vld [vmem:[%s5272_s3 + $0x3c0] sm:$0xff] }
  0x6b   : > { %1113 = vmatpush.bf16.msra.mxu0 %v4194_v18  ;;  %v1580_v18 = vrot.slane %v1579_v8, 3 }
  0x6c   : > { %1193 = vmatpush.bf16.msra.mxu1 %v4202_v19  ;;  %v1495_v19 = vor.u32 %v1494_v10, %v1491_v9  ;;  %v4296_v10 = vld [vmem:[%s5272_s3 + $0x530] sm:$0xff] }
  0x6d   : > { %1287 = vmatpush.bf16.msra.mxu2 %v4210_v22  ;;  %v4272_v22 = vld [vmem:[%s5272_s3 + $0x470] sm:$0xff] }
  0x6e   : > { %1372 = vmatpush.bf16.msra.mxu3 %v4218_v25  ;;  %1114 = vmatmul.bf16.vlgmr.msra.gmra.mxu0 %v1056_v26  ;;  %v4279_v25 = vld [vmem:[%s5272_s3 + $0x4a8] sm:$0xff] }
  0x6f   : > { %1453 = vmatpush.bf16.msrb.mxu0 %v4233_v6  ;;  %1194 = vmatmul.bf16.vlgmr.msra.gmra.mxu1 %v1120_v30  ;;  %v4280_v6 = vld [vmem:[%s5272_s3 + $0x4b0] sm:$0xff]  ;;  %v4287_v26 = vld [vmem:[%s5272_s3 + $0x4e8] sm:$0xff] }
  0x70   : > { %1545 = vmatpush.bf16.msrb.mxu1 %v4241_v12  ;;  %1288 = vmatmul.bf16.vlgmr.msra.gmra.mxu2 %v1230_v27  ;;  %v4288_v12 = vld [vmem:[%s5272_s3 + $0x4f0] sm:$0xff]  ;;  %v4262_v27 = vld [vmem:[%s5272_s3 + $0x420] sm:$0xff]  ;;  %v1725_v30 = vld [vmem:[%s4767_s27 + $0x8] sm:$0x1] }
  0x71   : > { %1630 = vmatpush.bf16.msrb.mxu2 %v4249_v23  ;;  %1373 = vmatmul.bf16.vlgmr.msra.gmra.mxu3 %v1315_v31  ;;  %v4263_v23 = vld [vmem:[%s5272_s3 + $0x428] sm:$0xff]  ;;  %v4286_v31 = vld [vmem:[%s5272_s3 + $0x4e0] sm:$0xff] }
  0x72   : > { %1710 = vmatpush.bf16.msrb.mxu3 %v4257_v28  ;;  %v4270_v28 = vld [vmem:[%s5272_s3 + $0x460] sm:$0xff] }
  0x73   : > { %1454 = vmatpush.bf16.msrb.mxu0 %v4232_v29  ;;  %v4278_v29 = vld [vmem:[%s5272_s3 + $0x4a0] sm:$0xff] }
  0x74   : > { %1546 = vmatpush.bf16.msrb.mxu1 %v4240_v32  ;;  %v5003_v32 = vld [vmem:[%s4990_s11] sm:$0xff]  }
  0x75   : > { %1631 = vmatpush.bf16.msrb.mxu2 %v4248_v33  ;;  %v5006_v33 = vld [vmem:[%s4990_s11 + $0x4] sm:$0x1] }
  0x76   : > { %1711 = vmatpush.bf16.msrb.mxu3 %v4256_v34  ;;  %v4261_v34 = vld [vmem:[%s5272_s3 + $0x418] sm:$0xff] }
  0x77   : > { %1455 = vmatpush.bf16.msrb.mxu0 %v4231_v35  ;;  %v1745_v35 = vunpack.c.h.b16 %v4782_v56  ;;  %v2005_v56 = vunpack.c.l.b16 %v5006_v33  ;;  %v4337_v33 = vld [vmem:[%s5272_s3 + $0x678] sm:$0xff] }
  0x78   : > { %1547 = vmatpush.bf16.msrb.mxu1 %v4239_v36  ;;  %v1746_v36 = vunpack.c.l.b16 %v1725_v30  ;;  %v4309_v30 = vld [vmem:[%s5272_s3 + $0x598] sm:$0xff] }
  0x79   : > { %1632 = vmatpush.bf16.msrb.mxu2 %v4247_v37  ;;  %v4269_v37 = vld [vmem:[%s5272_s3 + $0x458] sm:$0xff] }
  0x7a   : > { %1712 = vmatpush.bf16.msrb.mxu3 %v4255_v38  ;;  %v4277_v38 = vld [vmem:[%s5272_s3 + $0x498] sm:$0xff]  ;;  %v1747_v42 = vpack.c.b16 %v1746_v36, %v1745_v35  ;;  %v4292_v35 = vld [vmem:[%s5272_s3 + $0x510] sm:$0xff] }
  0x7b   : > { %1456 = vmatpush.bf16.msrb.mxu0 %v4230_v39  ;;  %v4285_v39 = vld [vmem:[%s5272_s3 + $0x4d8] sm:$0xff] }
  0x7c   : > { %1548 = vmatpush.bf16.msrb.mxu1 %v4238_v40  ;;  %v2004_v40 = vunpack.c.l.b16 %v5003_v32  ;;  %v1749_v57 = vshrl.u32 %v1747_v42, 16 }
  0x7d   : > { %1633 = vmatpush.bf16.msrb.mxu2 %v4246_v41  ;;  %v4260_v41 = vld [vmem:[%s5272_s3 + $0x410] sm:$0xff] }
  0x7e   : > { %1713 = vmatpush.bf16.msrb.mxu3 %v4254_v44  ;;  %v4276_v44 = vld [vmem:[%s5272_s3 + $0x490] sm:$0xff]  ;;  %v2006_v47 = vpack.c.b16 %v2005_v56, %v2004_v40 }
  0x7f   : > { %1457 = vmatpush.bf16.msrb.mxu0 %v4229_v45  ;;  %v4284_v45 = vld [vmem:[%s5272_s3 + $0x4d0] sm:$0xff] }
  0x80   : > { %1549 = vmatpush.bf16.msrb.mxu1 %v4237_v46  ;;  %v1818_v46 = vld [vmem:[%s4767_s27 + $0x4] sm:$0xe]  ;;  %v2010_v54 = vshll.u32 %v2006_v47, 16  ;;  %v2008_v0 = vshrl.u32 %v2006_v47, 16  ;;  %v4308_v40 = vld [vmem:[%s5272_s3 + $0x590] sm:$0xff] }
  0x81   : > { %1634 = vmatpush.bf16.msrb.mxu2 %v4245_v49  ;;  %v1751_v49 = vshll.u32 %v1747_v42, 16  ;;  %v2163_v42 = vld [vmem:[%s4990_s11 + $0x4] sm:$0x3] }
  0x82   : > { %1714 = vmatpush.bf16.msrb.mxu3 %v4253_v50  ;;  %v4267_v50 = vld [vmem:[%s5272_s3 + $0x448] sm:$0xff] }
  0x83   : > { %1458 = vmatpush.bf16.msrb.mxu0 %v4228_v51  ;;  %v4275_v51 = vld [vmem:[%s5272_s3 + $0x488] sm:$0xff] }
  0x84   : > { %1550 = vmatpush.bf16.msrb.mxu1 %v4236_v52  ;;  %v1837_v52 = vunpack.c.l.b16 %v1818_v46  ;;  %v2342_v46 = vld [vmem:[%s4990_s11] sm:$0x8] }
  0x85   : > { %1635 = vmatpush.bf16.msrb.mxu2 %v4244_v55  ;;  %v4258_v55 = vld [vmem:[%s5272_s3 + $0x400] sm:$0xff] }
  0x86   : > { %1715 = vmatpush.bf16.msrb.mxu3 %v4252_v58  ;;  %v1753_v58 = vrot.slane %v1751_v49, 1 }
  0x87   : > { %1459 = vmatpush.bf16.msrb.mxu0 %v4227_v59  ;;  %v4266_v59 = vld [vmem:[%s5272_s3 + $0x440] sm:$0xff] }
  0x88   : > { %1551 = vmatpush.bf16.msrb.mxu1 %v4235_v61  ;;  %v1838_v61 = vpack.c.b16 %v1746_v36, %v1837_v52  ;;  %v1754_v4 = vor.u32 %v1753_v58, %v1749_v57  ;;  %v4299_v52 = vld [vmem:[%s5272_s3 + $0x548] sm:$0xff] }
  0x89   : > { %1636 = vmatpush.bf16.msrb.mxu2 %v4243_v1  ;;  %v2012_v1 = vrot.slane %v2010_v54, 1  ;;  %v2184_v54 = vunpack.c.l.b16 %v2163_v42  ;;  %v4315_v57 = vld [vmem:[%s5272_s3 + $0x5c8] sm:$0xff] }
  0x8a   : > { %1716 = vmatpush.bf16.msrb.mxu3 %v4251_v2  ;;  %v4313_v2 = vld [vmem:[%s5272_s3 + $0x5b8] sm:$0xff]  ;;  %v1839_v8 = vrot.slane %v1838_v61, 1 }
  0x8b   : > { %1460 = vmatpush.bf16.msrb.mxu0 %v4226_v3  ;;  %v4282_v3 = vld [vmem:[%s5272_s3 + $0x4c0] sm:$0xff]  ;;  %v2013_v9 = vor.u32 %v2012_v1, %v2008_v0 }
  0x8c   : > { %1552 = vmatpush.bf16.msrb.mxu1 %v4234_v5  ;;  %v1903_v5 = vld [vmem:[%s4990_s11] sm:$0xf] }
  0x8d   : > { %1637 = vmatpush.bf16.msrb.mxu2 %v4242_v11  ;;  %v4304_v11 = vld [vmem:[%s5272_s3 + $0x570] sm:$0xff]  ;;  %v4306_v0 = vld [vmem:[%s5272_s3 + $0x580] sm:$0xff] }
  0x8e   : > { %1717 = vmatpush.bf16.msrb.mxu3 %v4250_v15  ;;  %1461 = vmatmul.bf16.vlgmr.msrb.gmra.mxu0 %v1403_v16  ;;  %v4295_v15 = vld [vmem:[%s5272_s3 + $0x528] sm:$0xff] }
  0x8f   : > { %1804 = vmatpush.bf16.msra.mxu0 %v4265_v7  ;;  %1553 = vmatmul.bf16.vlgmr.msrb.gmra.mxu1 %v1495_v19  ;;  %v4321_v7 = vld [vmem:[%s5272_s3 + $0x5f8] sm:$0xff]  ;;  %v4303_v16 = vld [vmem:[%s5272_s3 + $0x568] sm:$0xff]  ;;  %v4294_v19 = vld [vmem:[%s5272_s3 + $0x520] sm:$0xff] }
  0x90   : > { %1889 = vmatpush.bf16.msra.mxu1 %v4273_v13  ;;  %1638 = vmatmul.bf16.vlgmr.msrb.gmra.mxu2 %v1580_v18  ;;  %v4312_v13 = vld [vmem:[%s5272_s3 + $0x5b0] sm:$0xff]  ;;  %v4319_v18 = vld [vmem:[%s5272_s3 + $0x5e8] sm:$0xff] }
  0x91   : > { %1969 = vmatpush.bf16.msra.mxu2 %v4281_v14  ;;  %1718 = vmatmul.bf16.vlgmr.msrb.gmra.mxu3 %v1644_v21  ;;  %v4320_v14 = vld [vmem:[%s5272_s3 + $0x5f0] sm:$0xff] }
  0x92   : > { %2063 = vmatpush.bf16.msra.mxu3 %v4289_v17  ;;  %v4311_v17 = vld [vmem:[%s5272_s3 + $0x5a8] sm:$0xff] }
  0x93   : > { %1805 = vmatpush.bf16.msra.mxu0 %v4264_v20  ;;  %v4302_v20 = vld [vmem:[%s5272_s3 + $0x560] sm:$0xff] }
  0x94   : > { %1890 = vmatpush.bf16.msra.mxu1 %v4272_v22  ;;  %v4310_v22 = vld [vmem:[%s5272_s3 + $0x5a0] sm:$0xff] }
  0x95   : > { %1970 = vmatpush.bf16.msra.mxu2 %v4280_v6  ;;  %v2162_v6 = vld [vmem:[%s4990_s11] sm:$0xc] }
  0x96   : > { %2064 = vmatpush.bf16.msra.mxu3 %v4288_v12  ;;  %v2250_v12 = vld [vmem:[%s4990_s11 + $0x4] sm:$0x7] }
  0x97   : > { %1806 = vmatpush.bf16.msra.mxu0 %v4263_v23 }
  0x98   : > { %1891 = vmatpush.bf16.msra.mxu1 %v4271_v24  ;;  %v4318_v24 = vld [vmem:[%s5272_s3 + $0x5e0] sm:$0xff] }
  0x99   : > { %1971 = vmatpush.bf16.msra.mxu2 %v4279_v25 }
  0x9a   : > { %2065 = vmatpush.bf16.msra.mxu3 %v4287_v26  ;;  %v4293_v26 = vld [vmem:[%s5272_s3 + $0x518] sm:$0xff] }
  0x9b   : > { %1807 = vmatpush.bf16.msra.mxu0 %v4262_v27  ;;  %v2183_v27 = vunpack.c.l.b16 %v2162_v6  ;;  %v2508_v6 = vld [vmem:[%s4990_s11 + $0x8] sm:$0x1] }
  0x9c   : > { %1892 = vmatpush.bf16.msra.mxu1 %v4270_v28  ;;  %v2269_v28 = vunpack.c.l.b16 %v2250_v12 }
  0x9d   : > { %1972 = vmatpush.bf16.msra.mxu2 %v4278_v29  ;;  %v4301_v29 = vld [vmem:[%s5272_s3 + $0x558] sm:$0xff]  ;;  %v2185_v1 = vpack.c.b16 %v2184_v54, %v2183_v27  ;;  %v2427_v54 = vld [vmem:[%s4990_s11 + $0x4] sm:$0xf] }
  0x9e   : > { %2066 = vmatpush.bf16.msra.mxu3 %v4286_v31  ;;  %v4317_v31 = vld [vmem:[%s5272_s3 + $0x5d8] sm:$0xff]  ;;  %v2270_v36 = vpack.c.b16 %v2269_v28, %v2183_v27 }
  0x9f   : > { %1808 = vmatpush.bf16.msra.mxu0 %v4261_v34  ;;  %v4333_v27 = vld [vmem:[%s5272_s3 + $0x658] sm:$0xff] }
  0xa0   : > { %1893 = vmatpush.bf16.msra.mxu1 %v4269_v37 }
  0xa1   : > { %1973 = vmatpush.bf16.msra.mxu2 %v4277_v38 }
  0xa2   : > { %2067 = vmatpush.bf16.msra.mxu3 %v4285_v39  ;;  %v4300_v39 = vld [vmem:[%s5272_s3 + $0x550] sm:$0xff] }
  0xa3   : > { %1809 = vmatpush.bf16.msra.mxu0 %v4260_v41  ;;  %v2077_v41 = vld [vmem:[%s4990_s11] sm:$0xe] }
  0xa4   : > { %1894 = vmatpush.bf16.msra.mxu1 %v4268_v43  ;;  %v2096_v49 = vunpack.c.l.b16 %v2077_v41  ;;  %v4323_v41 = vld [vmem:[%s5272_s3 + $0x608] sm:$0xff] }
  0xa5   : > { %1974 = vmatpush.bf16.msra.mxu2 %v4276_v44 }
  0xa6   : > { %2068 = vmatpush.bf16.msra.mxu3 %v4284_v45  ;;  %v4316_v45 = vld [vmem:[%s5272_s3 + $0x5d0] sm:$0xff] }
  0xa7   : > { %1810 = vmatpush.bf16.msra.mxu0 %v4259_v48  ;;  %v4291_v48 = vld [vmem:[%s5272_s3 + $0x508] sm:$0xff] }
  0xa8   : > { %1895 = vmatpush.bf16.msra.mxu1 %v4267_v50  ;;  %v2272_v50 = vshrl.u32 %v2270_v36, 16 }
  0xa9   : > { %1975 = vmatpush.bf16.msra.mxu2 %v4275_v51  ;;  %v2275_v51 = vshll.u32 %v2270_v36, 16 }
  0xaa   : > { %2069 = vmatpush.bf16.msra.mxu3 %v4283_v53  ;;  %v4307_v53 = vld [vmem:[%s5272_s3 + $0x588] sm:$0xff]  ;;  %v2274_v61 = vrot.slane %v2272_v50, 2 }
  0xab   : > { %1811 = vmatpush.bf16.msra.mxu0 %v4258_v55  ;;  %v446_v21 = vpop.f32.mrf.mxu0  ;;  %v2361_v55 = vunpack.c.l.b16 %v2342_v46 }
  0xac   : > { %1896 = vmatpush.bf16.msra.mxu1 %v4266_v59  ;;  %v507_v23 = vpop.f32.mrf.mxu1  ;;  %v4290_v59 = vld [vmem:[%s5272_s3 + $0x500] sm:$0xff] }
  0xad   : > { %1976 = vmatpush.bf16.msra.mxu2 %v4274_v60  ;;  %v508_v25 = vadd.f32 %v507_v23, %v446_v21  ;;  %v2097_v60 = vpack.c.b16 %v2005_v56, %v2096_v49  ;;  %v2362_v56 = vpack.c.b16 %v2269_v28, %v2361_v55  ;;  %v4325_v23 = vld [vmem:[%s5272_s3 + $0x618] sm:$0xff] }
  0xae   : > { %2070 = vmatpush.bf16.msra.mxu3 %v4282_v3  ;;  %1812 = vmatmul.bf16.vlgmr.msra.gmra.mxu0 %v1754_v4  ;;  %v4345_v4 = vld [vmem:[%s5272_s3 + $0x6b8] sm:$0xff] }
  0xaf   : > { %2148 = vmatpush.bf16.msrb.mxu0 %v4297_v62  ;;  %1897 = vmatmul.bf16.vlgmr.msra.gmra.mxu1 %v1839_v8  ;;  %v2277_v62 = vrot.slane %v2275_v51, 3  ;;  %v4341_v28 = vld [vmem:[%s5272_s3 + $0x698] sm:$0xff]  ;;  %v4330_v51 = vld [vmem:[%s5272_s3 + $0x640] sm:$0xff] }
  0xb0   : > { %2236 = vmatpush.bf16.msrb.mxu1 %v4305_v63  ;;  %1977 = vmatmul.bf16.vlgmr.msra.gmra.mxu2 %v1903_v5  ;;  %v4298_v63 = vld [vmem:[%s5272_s3 + $0x540] sm:$0xff] }
  0xb1   : > { %2328 = vmatpush.bf16.msrb.mxu2 %v4313_v2  ;;  %2071 = vmatmul.bf16.vlgmr.msra.gmra.mxu3 %v2013_v9  ;;  %v4329_v2 = vld [vmem:[%s5272_s3 + $0x638] sm:$0xff]  ;;  %v4314_v5 = vld [vmem:[%s5272_s3 + $0x5c0] sm:$0xff]  ;;  %v2278_v8 = vor.u32 %v2277_v62, %v2274_v61  ;;  %v2186_v9 = vrot.slane %v2185_v1, 2 }
  0xb2   : > { %2413 = vmatpush.bf16.msrb.mxu3 %v4321_v7  ;;  %v2098_v7 = vrot.slane %v2097_v60, 1 }
  0xb3   : > { %2149 = vmatpush.bf16.msrb.mxu0 %v4296_v10  ;;  %v591_v34 = vpop.f32.mrf.mxu2  ;;  %v448_v38 = vpop.f32.mrf.mxu0  ;;  %v2363_v10 = vrot.slane %v2362_v56, 3 }
  0xb4   : > { %2237 = vmatpush.bf16.msrb.mxu1 %v4304_v11  ;;  %v595_v37 = vadd.f32 %v591_v34, %v508_v25  ;;  %v679_v43 = vpop.f32.mrf.mxu3  ;;  %v509_v44 = vpop.f32.mrf.mxu1  ;;  %v4328_v11 = vld [vmem:[%s5272_s3 + $0x630] sm:$0xff]  ;;  %v2528_v25 = vunpack.c.h.b16 %v5003_v32 }
  0xb5   : > { %2329 = vmatpush.bf16.msrb.mxu2 %v4312_v13  ;;  %v4336_v13 = vld [vmem:[%s5272_s3 + $0x670] sm:$0xff]  ;;  %v4331_v44 = vld [vmem:[%s5272_s3 + $0x648] sm:$0xff] }
  0xb6   : > { %2414 = vmatpush.bf16.msrb.mxu3 %v4320_v14  ;;  %v5140_v47 = vadd.f32 %v679_v43, %v595_v37  ;;  %v4344_v14 = vld [vmem:[%s5272_s3 + $0x6b0] sm:$0xff]  ;;  %v2601_v37 = vld [vmem:[%s4990_s11 + $0x4] sm:$0xe] }
  0xb7   : > { %2150 = vmatpush.bf16.msrb.mxu0 %v4295_v15  ;;  %v4327_v15 = vld [vmem:[%s5272_s3 + $0x628] sm:$0xff]  ;;  %v4332_v34 = vld [vmem:[%s5272_s3 + $0x650] sm:$0xff]  ;;  %v2620_v43 = vunpack.c.l.b16 %v2601_v37 }
  0xb8   : > { %2238 = vmatpush.bf16.msrb.mxu1 %v4303_v16  ;;  %v4335_v16 = vld [vmem:[%s5272_s3 + $0x668] sm:$0xff] }
  0xb9   : > { %2330 = vmatpush.bf16.msrb.mxu2 %v4311_v17  ;;  %v4343_v17 = vld [vmem:[%s5272_s3 + $0x6a8] sm:$0xff] }
  0xba   : > { %2415 = vmatpush.bf16.msrb.mxu3 %v4319_v18  ;;  %v4326_v18 = vld [vmem:[%s5272_s3 + $0x620] sm:$0xff] }
  0xbb   : > { %2151 = vmatpush.bf16.msrb.mxu0 %v4294_v19  ;;  %v593_v58 = vpop.f32.mrf.mxu2  ;;  %v4334_v19 = vld [vmem:[%s5272_s3 + $0x660] sm:$0xff] }
  0xbc   : > { %2239 = vmatpush.bf16.msrb.mxu1 %v4302_v20  ;;  %v681_v3 = vpop.f32.mrf.mxu3  ;;  %v4342_v20 = vld [vmem:[%s5272_s3 + $0x6a0] sm:$0xff] }
  0xbd   : > { %2331 = vmatpush.bf16.msrb.mxu2 %v4310_v22 }
  0xbe   : > { %2416 = vmatpush.bf16.msrb.mxu3 %v4318_v24 }
  0xbf   : > { %2152 = vmatpush.bf16.msrb.mxu0 %v4293_v26  ;;  %v2529_v26 = vunpack.c.l.b16 %v2508_v6 }
  0xc0   : > { %2240 = vmatpush.bf16.msrb.mxu1 %v4301_v29 }
  0xc1   : > { %2332 = vmatpush.bf16.msrb.mxu2 %v4309_v30  ;;  %v2530_v32 = vpack.c.b16 %v2529_v26, %v2528_v25  ;;  %v2621_v50 = vpack.c.b16 %v2529_v26, %v2620_v43 }
  0xc2   : > { %2417 = vmatpush.bf16.msrb.mxu3 %v4317_v31  ;;  %v4324_v31 = vld [vmem:[%s5272_s3 + $0x610] sm:$0xff] }
  0xc3   : > { %2153 = vmatpush.bf16.msrb.mxu0 %v4292_v35  ;;  %v4340_v35 = vld [vmem:[%s5272_s3 + $0x690] sm:$0xff]  ;;  %v2534_v42 = vshll.u32 %v2530_v32, 16 }
  0xc4   : > { %2241 = vmatpush.bf16.msrb.mxu1 %v4300_v39 }
  0xc5   : > { %2333 = vmatpush.bf16.msrb.mxu2 %v4308_v40  ;;  %v2536_v49 = vrot.slane %v2534_v42, 1 }
  0xc6   : > { %2418 = vmatpush.bf16.msrb.mxu3 %v4316_v45  ;;  %v4339_v45 = vld [vmem:[%s5272_s3 + $0x688] sm:$0xff] }
  0xc7   : > { %2154 = vmatpush.bf16.msrb.mxu0 %v4291_v48  ;;  %v2532_v48 = vshrl.u32 %v2530_v32, 16 }
  0xc8   : > { %2242 = vmatpush.bf16.msrb.mxu1 %v4299_v52  ;;  %v4338_v52 = vld [vmem:[%s5272_s3 + $0x680] sm:$0xff] }
  0xc9   : > { %2334 = vmatpush.bf16.msrb.mxu2 %v4307_v53  ;;  %v2537_v55 = vor.u32 %v2536_v49, %v2532_v48 }
  0xca   : > { %2419 = vmatpush.bf16.msrb.mxu3 %v4315_v57  ;;  %v2622_v57 = vrot.slane %v2621_v50, 1 }
  0xcb   : > { %2155 = vmatpush.bf16.msrb.mxu0 %v4290_v59  ;;  %v771_v21 = vpop.f32.mrf.mxu0 }
  0xcc   : > { %2243 = vmatpush.bf16.msrb.mxu1 %v4298_v63  ;;  %v856_v22 = vpop.f32.mrf.mxu1  ;;  %v775_v12 = vadd.f32 %v771_v21, %v5140_v47  ;;  %v4322_v47 = vld [vmem:[%s5272_s3 + $0x600] sm:$0xff] }
  0xcd   : > { %2335 = vmatpush.bf16.msrb.mxu2 %v4306_v0 }
  0xce   : > { %2420 = vmatpush.bf16.msrb.mxu3 %v4314_v5  ;;  %2156 = vmatmul.bf16.vlgmr.msrb.gmra.mxu0 %v2098_v7  ;;  %v860_v24 = vadd.f32 %v856_v22, %v775_v12 }
  0xcf   : > { %2493 = vmatpush.bf16.msra.mxu0 %v4329_v2  ;;  %2244 = vmatmul.bf16.vlgmr.msrb.gmra.mxu1 %v2186_v9 }
  0xd0   : > { %2587 = vmatpush.bf16.msra.mxu1 %v4337_v33  ;;  %2336 = vmatmul.bf16.vlgmr.msrb.gmra.mxu2 %v2278_v8 }
  0xd1   : > { %2672 = vmatpush.bf16.msra.mxu2 %v4345_v4  ;;  %2421 = vmatmul.bf16.vlgmr.msrb.gmra.mxu3 %v2363_v10 }
  0xd3   : > { %2494 = vmatpush.bf16.msra.mxu0 %v4328_v11  ;;  %v936_v29 = vpop.f32.mrf.mxu2  ;;  %v773_v38 = vpop.f32.mrf.mxu0 }
  0xd4   : > { %2588 = vmatpush.bf16.msra.mxu1 %v4336_v13  ;;  %v940_v30 = vadd.f32 %v936_v29, %v860_v24  ;;  %v1030_v36 = vpop.f32.mrf.mxu3  ;;  %v858_v40 = vpop.f32.mrf.mxu1 }
  0xd5   : > { %2673 = vmatpush.bf16.msra.mxu2 %v4344_v14 }
  0xd6   : > { %v1034_v39 = vadd.f32 %v1030_v36, %v940_v30 }
  0xd7   : > { %2495 = vmatpush.bf16.msra.mxu0 %v4327_v15 }
  0xd8   : > { %2589 = vmatpush.bf16.msra.mxu1 %v4335_v16 }
  0xd9   : > { %2674 = vmatpush.bf16.msra.mxu2 %v4343_v17 }
  0xdb   : > { %2496 = vmatpush.bf16.msra.mxu0 %v4326_v18  ;;  %v938_v46 = vpop.f32.mrf.mxu2 }
  0xdc   : > { %2590 = vmatpush.bf16.msra.mxu1 %v4334_v19  ;;  %v1032_v53 = vpop.f32.mrf.mxu3 }
  0xdd   : > { %2675 = vmatpush.bf16.msra.mxu2 %v4342_v20 }
  0xdf   : > { %2497 = vmatpush.bf16.msra.mxu0 %v4325_v23 }
  0xe0   : > { %2591 = vmatpush.bf16.msra.mxu1 %v4333_v27 }
  0xe1   : > { %2676 = vmatpush.bf16.msra.mxu2 %v4341_v28 }
  0xe3   : > { %2498 = vmatpush.bf16.msra.mxu0 %v4324_v31 }
  0xe4   : > { %2592 = vmatpush.bf16.msra.mxu1 %v4332_v34 }
  0xe5   : > { %2677 = vmatpush.bf16.msra.mxu2 %v4340_v35 }
  0xe7   : > { %2499 = vmatpush.bf16.msra.mxu0 %v4323_v41 }
  0xe8   : > { %2593 = vmatpush.bf16.msra.mxu1 %v4331_v44 }
  0xe9   : > { %2678 = vmatpush.bf16.msra.mxu2 %v4339_v45  ;;  %v4390_v45 = vld [vmem:[%s5273_s4] ss:$0 sm:$0xff] }
  0xeb   : > { %2500 = vmatpush.bf16.msra.mxu0 %v4322_v47  ;;  %v1115_v58 = vpop.f32.mrf.mxu0 }
  0xec   : > { %2594 = vmatpush.bf16.msra.mxu1 %v4330_v51  ;;  %v1119_v59 = vadd.f32 %v1115_v58, %v1034_v39  ;;  %v1195_v60 = vpop.f32.mrf.mxu1 }
  0xed   : > { %2679 = vmatpush.bf16.msra.mxu2 %v4338_v52 }
  0xee   : > { %2501 = vmatmul.bf16.vlgmr.msra.gmra.mxu0 %v2427_v54  ;;  %v1199_v61 = vadd.f32 %v1195_v60, %v1119_v59 }
  0xef   : > { %2595 = vmatmul.bf16.vlgmr.msra.gmra.mxu1 %v2537_v55 }
  0xf0   : > { %2680 = vmatmul.bf16.vlgmr.msra.gmra.mxu2 %v2622_v57 }
  0xf3   : > { %v1289_v62 = vpop.f32.mrf.mxu2  ;;  %v1117_v0 = vpop.f32.mrf.mxu0 }
  0xf4   : > { %v1293_v63 = vadd.f32 %v1289_v62, %v1199_v61  ;;  %v1374_v1 = vpop.f32.mrf.mxu3  ;;  %v1197_v33 = vpop.f32.mrf.mxu1 }
  0xf6   : > { %v1378_v2 = vadd.f32 %v1374_v1, %v1293_v63 }
  0xfb   : > { %v1291_v56 = vpop.f32.mrf.mxu2 }
  0xfc   : > { %v1376_v3 = vpop.f32.mrf.mxu3 }
 0x10b   : > { %v1462_v4 = vpop.f32.mrf.mxu0 }
 0x10c   : > { %v1466_v5 = vadd.f32 %v1462_v4, %v1378_v2  ;;  %v1554_v7 = vpop.f32.mrf.mxu1 }
 0x10e   : > { %v1558_v8 = vadd.f32 %v1554_v7, %v1466_v5 }
 0x113   : > { %v1639_v9 = vpop.f32.mrf.mxu2  ;;  %v1464_v13 = vpop.f32.mrf.mxu0 }
 0x114   : > { %v1643_v10 = vadd.f32 %v1639_v9, %v1558_v8  ;;  %v1719_v11 = vpop.f32.mrf.mxu3  ;;  %v1556_v14 = vpop.f32.mrf.mxu1 }
 0x116   : > { %v1723_v15 = vadd.f32 %v1719_v11, %v1643_v10 }
 0x11b   : > { %v1641_v16 = vpop.f32.mrf.mxu2 }
 0x11c   : > { %v1721_v17 = vpop.f32.mrf.mxu3 }
 0x12b   : > { %v1813_v18 = vpop.f32.mrf.mxu0 }
 0x12c   : > { %v1898_v19 = vpop.f32.mrf.mxu1  ;;  %v1817_v27 = vadd.f32 %v1813_v18, %v1723_v15 }
 0x12e   : > { %v1902_v31 = vadd.f32 %v1898_v19, %v1817_v27 }
 0x133   : > { %v1978_v20 = vpop.f32.mrf.mxu2  ;;  %v1815_v22 = vpop.f32.mrf.mxu0 }
 0x134   : > { %v2072_v21 = vpop.f32.mrf.mxu3  ;;  %v1900_v6 = vpop.f32.mrf.mxu1  ;;  %v1982_v32 = vadd.f32 %v1978_v20, %v1902_v31 }
 0x136   : > { %v2076_v36 = vadd.f32 %v2072_v21, %v1982_v32 }
 0x13b   : > { %v1980_v12 = vpop.f32.mrf.mxu2 }
 0x13c   : > { %v2074_v23 = vpop.f32.mrf.mxu3 }
 0x14b   : > { %v2157_v24 = vpop.f32.mrf.mxu0 }
 0x14c   : > { %v2245_v25 = vpop.f32.mrf.mxu1  ;;  %v2161_v37 = vadd.f32 %v2157_v24, %v2076_v36 }
 0x14e   : > { %v2249_v38 = vadd.f32 %v2245_v25, %v2161_v37 }
 0x153   : > { %v2337_v26 = vpop.f32.mrf.mxu2  ;;  %v2159_v29 = vpop.f32.mrf.mxu0 }
 0x154   : > { %v2422_v28 = vpop.f32.mrf.mxu3  ;;  %v2247_v30 = vpop.f32.mrf.mxu1  ;;  %v2341_v39 = vadd.f32 %v2337_v26, %v2249_v38 }
 0x156   : > { %v2426_v40 = vadd.f32 %v2422_v28, %v2341_v39 }
 0x15b   : > { %v2339_v34 = vpop.f32.mrf.mxu2 }
 0x15c   : > { %v2424_v35 = vpop.f32.mrf.mxu3 }
 0x16b   : > { %v2502_v41 = vpop.f32.mrf.mxu0 }
 0x16c   : > { %v2596_v42 = vpop.f32.mrf.mxu1  ;;  %v2506_v43 = vadd.f32 %v2502_v41, %v2426_v40 }
 0x16e   : > { %v2600_v44 = vadd.f32 %v2596_v42, %v2506_v43 }
 0x173   : > { %v2681_v46 = vpop.f32.mrf.mxu2  ;;  %v2504_v48 = vpop.f32.mrf.mxu0 }
 0x174   : > { %v2685_v47 = vadd.f32 %v2681_v46, %v2600_v44  ;;  %v2598_v49 = vpop.f32.mrf.mxu1 }
 0x176   : > { %v2690_v50 = vadd.f32 %v4390_v45, %v2685_v47 }
 0x178   : > { %v2691_v51 = vmax.f32 %v2690_v50, 0.0 }
 0x17a   : > { %v2692_v52 = vpack.c.bf16 %v2691_v51, %v2691_v51 }
 0x17b   : > { %v2683_v53 = vpop.f32.mrf.mxu2 }
 0x17c   : > { %v2694_v54 = vrot.slane %v2692_v52, 2 }
 0x17e   : > { %v2698_v55 = vsel %vm2695_vm0, %v2692_v52, %v2694_v54  ;;  %v2700_v57 = vsel %vm2699_vm1, %v2692_v52, %v2694_v54 }
 0x17f   : > { %v2702_v58 = vrot.slane %v2700_v57, 2  ;;  %2705 = vst [vmem:[%s340_s28] sm:$0x1] %v2698_v55 }
 0x181   : > { %2706 = vst [vmem:[%s340_s28 + $0x1] sm:$0x1] %v2702_v58 }
 0x182 PF: > { %s15_s22 = sadd.s32 1, %s4429_s22   ;;  %s5276_s18 = smov %s4421_s20 }
 0x183   : > { %p12_p10 = scmp.ge.s32.totalorder %s15_s22, 6   ;;  %s5277_s19 = smov %s4425_s21 }
 0x184   : > { %s5278_s20 = smov %s5281_s23  ;;  %s5279_s21 = smov %s5285_s24 }
 0x185   :  { %14 = sbr.rel (!%p12_p10) target bundleno = 3 (0x3), region = 102 }

</bundles_post_ra>
